<compile_context>
chip_gen: v5e
topology: v5e:2x2
jax: 0.10.0
libtpu: 0.0.40
codegen_flags: <defaults>
</compile_context>

<pallas_src>
import numpy as np
import jax
import jax.numpy as jnp
from jax.experimental import pallas as pl
from jax.experimental.pallas import tpu as pltpu

# ----------------------------------------------------------------------------
# Static geometry (MNIST 28x28, conv 5x5 pad 2, maxpool 2x2, twice, FC -> 10)
# ----------------------------------------------------------------------------
K = 5
H1, W1 = 28, 28           # conv1 spatial size
WP1 = 32                  # padded row stride of the conv1 input (28 + 2*2)
M1 = H1 * WP1             # 896 conv1 output positions computed (lane axis)
R1 = 1152                 # conv1 input slab width (mult of 128, covers all taps)
C1 = 16

H2, W2 = 14, 14           # pool1 output spatial size
WS2 = 32                  # row stride of conv2's input slab (w kept at stride 2)
R2 = 640                  # conv2 input slab width (18 rows * 32 + tap overreach)
M2 = 448                  # conv2 output positions computed (lane axis)
C2 = 32
MW2 = M2 - 2 - WS2        # 414: width of the shift-maxed (pooled) conv2 slab
H4, W4 = 7, 7             # pool2 output spatial size
NCLS = 10

# Tap offsets in the flattened lane index.
TAPS1 = tuple(kh * WP1 + kw for kh in range(K) for kw in range(K))       # conv1
TAPS2 = tuple(kh * WS2 + 2 * kw for kh in range(K) for kw in range(K))   # conv2

# Garbage-position invariants (review correctness concern): all tap reads stay
# inside the zero-padded slabs, and every position the next stage reads is
# either real data or an explicitly zeroed lane.
assert M1 - 1 + max(TAPS1) < R1
assert M2 - 1 + max(TAPS2) < R2
assert WS2 * (H2 - 1) + 68 + 28 <= R2          # last inter-layer row copy fits
assert 64 * (H4 - 1) + 4 * (W4 - 1) < MW2      # last pooled feature index fits


# ----------------------------------------------------------------------------
# Kernel A: conv1 (5x5, Cin=1) + bias + ReLU + 2x2 maxpool, emitting conv2's
# zero-padded input slab directly (one image per grid step).
# ----------------------------------------------------------------------------
def _conv1_pool_kernel(x_ref, w_ref, b_ref, o_ref):
    # x_ref: (1, 1, R1)  f32  zero-padded 32x32 image, flattened j = h*32 + w
    # w_ref: (16, 25)    f32  per-output-channel tap weights, t = kh*5 + kw
    # b_ref: (16, 1)     f32
    # o_ref: (1, 16, R2) bf16 conv2's zero-padded input slab
    acc = jnp.zeros((C1, M1), jnp.float32)
    for t, off in enumerate(TAPS1):                 # statically unrolled (25)
        xs = x_ref[0, :, off:off + M1]              # (1, M1) shifted window
        acc = acc + w_ref[:, t:t + 1] * xs          # VPU outer product (Cin=1)
    acc = jnp.maximum(acc + b_ref[...], 0.0)        # bias + ReLU

    # Fused 2x2 max-pool: neighbours sit at +1 (w) and +32 (h) lanes.
    t1 = jnp.maximum(acc[:, :-1], acc[:, 1:])       # (16, 895)
    m1 = jnp.maximum(t1[:, :-WP1], t1[:, WP1:])     # (16, 863); value at 64h2+2w2

    # Scatter pooled rows into conv2's padded layout:
    #   out[c, 32*(h2+2) + 2*(w2+2)] = m1[c, 64*h2 + 2*w2]
    # Both sides keep w at stride 2 -> each row is ONE contiguous 28-lane copy.
    # Odd destination lanes carry finite garbage that conv2 never reads (conv2
    # only reads even lane offsets); all padding lanes stay at the zero fill.
    o_ref[0] = jnp.zeros((C1, R2), jnp.bfloat16)
    for h2 in range(H2):
        src = 64 * h2
        dst = WS2 * h2 + 68                          # 32*(h2+2) + 2*2
        o_ref[0, :, dst:dst + 28] = m1[:, src:src + 28].astype(jnp.bfloat16)


def conv1_pool(x_slab, w1, b1):
    B = x_slab.shape[0]
    return pl.pallas_call(
        _conv1_pool_kernel,
        out_shape=jax.ShapeDtypeStruct((B, C1, R2), jnp.bfloat16),
        grid=(B,),
        in_specs=[
            pl.BlockSpec((1, 1, R1), lambda b: (b, 0, 0)),
            pl.BlockSpec((C1, K * K), lambda b: (0, 0)),
            pl.BlockSpec((C1, 1), lambda b: (0, 0)),
        ],
        out_specs=pl.BlockSpec((1, C1, R2), lambda b: (b, 0, 0)),
        compiler_params=pltpu.CompilerParams(
            dimension_semantics=("parallel",)),
    )(x_slab, w1, b1)


# ----------------------------------------------------------------------------
# Kernel B: conv2 (5x5, 16->32) + bias + ReLU + 2x2 maxpool + fused FC -> 10
# (one image per grid step).
# ----------------------------------------------------------------------------
def _conv2_pool_fc_kernel(x_ref, w_ref, b_ref, wfc_ref, bfc_ref, o_ref):
    # x_ref  : (1, 16, R2)   bf16 conv2 input slab (row stride 32, w at stride 2)
    # w_ref  : (25, 32, 16)  bf16 per-tap (Cout, Cin) matrices
    # b_ref  : (32, 1)       f32
    # wfc_ref: (10, 32, MW2) bf16 FC weight scattered onto the pooled-slab layout
    # bfc_ref: (1, 10)       f32
    # o_ref  : (1, 1, 10)    f32  logits
    acc = jnp.zeros((C2, M2), jnp.float32)
    for t, off in enumerate(TAPS2):                 # statically unrolled (25)
        xs = x_ref[0, :, off:off + M2]              # (16, M2) bf16 shifted slab
        acc = acc + jnp.dot(w_ref[t], xs,           # (32,16)@(16,M2) on the MXU
                            preferred_element_type=jnp.float32)
    acc = jnp.maximum(acc + b_ref[...], 0.0)        # bias + ReLU

    # Fused 2x2 max-pool: neighbours sit at +2 (w) and +32 (h) lanes here.
    t1 = jnp.maximum(acc[:, :-2], acc[:, 2:])       # (32, M2-2)
    m2 = jnp.maximum(t1[:, :-WS2], t1[:, WS2:])     # (32, MW2); feat at 64h4+4w4

    # Fused FC: weights were pre-scattered so every garbage lane multiplies a
    # zero weight; garbage values are finite, so they contribute exactly 0.
    parts = []
    for n in range(NCLS):
        w_n = wfc_ref[n].astype(jnp.float32)        # (32, MW2)
        parts.append(jnp.sum(m2 * w_n, keepdims=True))   # (1, 1)
    logits = jnp.concatenate(parts, axis=1) + bfc_ref[...]   # (1, 10)
    o_ref[0] = logits


def conv2_pool_fc(x_slab, w2, b2, wfc, bfc):
    B = x_slab.shape[0]
    return pl.pallas_call(
        _conv2_pool_fc_kernel,
        out_shape=jax.ShapeDtypeStruct((B, 1, NCLS), jnp.float32),
        grid=(B,),
        in_specs=[
            pl.BlockSpec((1, C1, R2), lambda b: (b, 0, 0)),
            pl.BlockSpec((K * K, C2, C1), lambda b: (0, 0, 0)),
            pl.BlockSpec((C2, 1), lambda b: (0, 0)),
            pl.BlockSpec((NCLS, C2, MW2), lambda b: (0, 0, 0)),
            pl.BlockSpec((1, NCLS), lambda b: (0, 0)),
        ],
        out_specs=pl.BlockSpec((1, 1, NCLS), lambda b: (b, 0, 0)),
        compiler_params=pltpu.CompilerParams(
            dimension_semantics=("parallel",)),
    )(x_slab, w2, b2, wfc, bfc)


# ----------------------------------------------------------------------------
# Parameters, one-time layout hoisting, forward pass, pure-JAX reference
# ----------------------------------------------------------------------------
def init_params(key):
    k1, k2, k3, k4, k5, k6 = jax.random.split(key, 6)
    return {
        "w1": jax.random.normal(k1, (16, 1, 5, 5), jnp.float32) * 0.1,
        "b1": jax.random.normal(k2, (16,), jnp.float32) * 0.1,
        "w2": jax.random.normal(k3, (32, 16, 5, 5), jnp.float32) * 0.05,
        "b2": jax.random.normal(k4, (32,), jnp.float32) * 0.05,
        "w_out": jax.random.normal(k5, (10, 32 * 7 * 7), jnp.float32) * 0.02,
        "b_out": jax.random.normal(k6, (10,), jnp.float32) * 0.02,
    }


def prepare_params(params):
    """One-time layout/dtype hoisting: the forward pass has no runtime transposes."""
    # conv1: (16,1,5,5) -> (16,25) f32 (Cin=1 path runs on the f32 VPU; v5e-safe).
    w1 = params["w1"].reshape(C1, K * K).astype(jnp.float32)
    b1 = params["b1"].reshape(C1, 1).astype(jnp.float32)
    # conv2: (32,16,5,5) -> (25,32,16) bf16 per-tap (Cout, Cin) matrices.
    w2 = jnp.transpose(params["w2"], (2, 3, 0, 1)).reshape(K * K, C2, C1)
    w2 = w2.astype(jnp.bfloat16)
    b2 = params["b2"].reshape(C2, 1).astype(jnp.float32)
    # FC: scatter the PyTorch NCHW-flattened weight (index c*49 + h4*7 + w4)
    # onto the pooled-slab layout (feature lane 64*h4 + 4*w4) so the 7x7
    # selection is free at run time; all other lanes get zero weights.
    wfc3 = params["w_out"].reshape(NCLS, C2, H4 * W4)
    idx = (64 * np.arange(H4)[:, None] + 4 * np.arange(W4)[None, :]).reshape(-1)
    wscat = jnp.zeros((NCLS, C2, MW2), jnp.float32).at[:, :, idx].set(wfc3)
    bfc = params["b_out"].reshape(1, NCLS).astype(jnp.float32)
    return {"w1": w1, "b1": b1, "w2": w2, "b2": b2,
            "w_fc": wscat.astype(jnp.bfloat16), "b_fc": bfc}


def cnn_forward(p, x_nchw):
    """Equivalent of CNN.forward.  x_nchw: (B, 1, 28, 28) f32 -> (B, 10) f32."""
    B = x_nchw.shape[0]
    x = x_nchw.reshape(B, H1, W1)                            # C = 1
    xp = jnp.pad(x, ((0, 0), (2, 2), (2, 2)))                # (B, 32, 32)
    x1 = xp.reshape(B, 1, WP1 * WP1)
    x1 = jnp.pad(x1, ((0, 0), (0, 0), (0, R1 - WP1 * WP1)))  # (B, 1, 1152)
    y1 = conv1_pool(x1, p["w1"], p["b1"])                    # (B, 16, 640) bf16
    logits = conv2_pool_fc(y1, p["w2"], p["b2"], p["w_fc"], p["b_fc"])
    return logits.reshape(B, NCLS)


def cnn_reference(params, x_nchw):
    """Pure-JAX reference (lax conv) for a correctness sanity check."""
    dn = jax.lax.conv_dimension_numbers(x_nchw.shape, params["w1"].shape,
                                        ("NCHW", "OIHW", "NCHW"))
    x = jax.lax.conv_general_dilated(x_nchw, params["w1"], (1, 1),
                                     ((2, 2), (2, 2)), dimension_numbers=dn)
    x = jnp.maximum(x + params["b1"][None, :, None, None], 0.0)
    x = jax.lax.reduce_window(x, -jnp.inf, jax.lax.max,
                              (1, 1, 2, 2), (1, 1, 2, 2), "VALID")
    dn2 = jax.lax.conv_dimension_numbers(x.shape, params["w2"].shape,
                                         ("NCHW", "OIHW", "NCHW"))
    x = jax.lax.conv_general_dilated(x, params["w2"], (1, 1),
                                     ((2, 2), (2, 2)), dimension_numbers=dn2)
    x = jnp.maximum(x + params["b2"][None, :, None, None], 0.0)
    x = jax.lax.reduce_window(x, -jnp.inf, jax.lax.max,
                              (1, 1, 2, 2), (1, 1, 2, 2), "VALID")
    x = x.reshape(x.shape[0], -1)
    return x @ params["w_out"].T + params["b_out"]


if __name__ == "__main__":
    key = jax.random.PRNGKey(0)
    pkey, xkey = jax.random.split(key)
    params = init_params(pkey)
    prepared = prepare_params(params)
    # MNIST-shaped input (28x28) is required by the 32*7*7 Linear layer.
    x = jax.random.normal(xkey, (2, 1, 28, 28), jnp.float32)

    fwd = jax.jit(cnn_forward)
    out = jax.block_until_ready(fwd(prepared, x))
    ref = jax.block_until_ready(cnn_reference(params, x))

    assert out.shape == (2, 10), out.shape
    assert bool(jnp.allclose(out, ref, atol=4e-2, rtol=4e-2)), "mismatch vs reference"
    print("KERNEL_OK")
</pallas_src>

<mosaic_0001>
module attributes {stable_mosaic.version = 11 : i64} {
  func.func @_conv1_pool_kernel(%arg0: i32, %arg1: memref<1x1x1152xf32, #tpu.memory_space<vmem>>, %arg2: memref<16x25xf32, #tpu.memory_space<vmem>>, %arg3: memref<16x1xf32, #tpu.memory_space<vmem>>, %arg4: memref<1x16x640xbf16, #tpu.memory_space<vmem>>) attributes {dimension_semantics = [#tpu.dimension_semantics<parallel>], iteration_bounds = array<i64: 2>, scalar_prefetch = 0 : i64, scratch_operands = 0 : i64, tpu.core_type = #tpu.core_type<tc>, window_params = [{transform_indices = @transform_0, window_bounds = array<i64: 1, 1, 1152>}, {pipeline_mode = #tpu.pipeline_mode<synchronous>, transform_indices = @transform_1, window_bounds = array<i64: 16, 25>}, {pipeline_mode = #tpu.pipeline_mode<synchronous>, transform_indices = @transform_2, window_bounds = array<i64: 16, 1>}, {transform_indices = @transform_3, window_bounds = array<i64: 1, 16, 640>}]} {
    %cst = arith.constant 0.000000e+00 : f32
    %0 = vector.broadcast %cst : f32 to vector<16x896xf32>
    %c0 = arith.constant 0 : index
    %c0_0 = arith.constant 0 : index
    %c0_1 = arith.constant 0 : index
    %1 = vector.load %arg1[%c0, %c0_0, %c0_1] : memref<1x1x1152xf32, #tpu.memory_space<vmem>>, vector<1x1x896xf32>
    %2 = vector.shape_cast %1 : vector<1x1x896xf32> to vector<1x896xf32>
    %c0_2 = arith.constant 0 : index
    %c0_3 = arith.constant 0 : index
    %3 = vector.load %arg2[%c0_2, %c0_3] : memref<16x25xf32, #tpu.memory_space<vmem>>, vector<16x1xf32>
    %4 = vector.broadcast %3 : vector<16x1xf32> to vector<16x896xf32>
    %5 = vector.broadcast %2 : vector<1x896xf32> to vector<16x896xf32>
    %6 = arith.mulf %4, %5 : vector<16x896xf32>
    %7 = arith.addf %0, %6 : vector<16x896xf32>
    %c0_4 = arith.constant 0 : index
    %c0_5 = arith.constant 0 : index
    %c1 = arith.constant 1 : index
    %8 = vector.load %arg1[%c0_4, %c0_5, %c1] : memref<1x1x1152xf32, #tpu.memory_space<vmem>>, vector<1x1x896xf32>
    %9 = vector.shape_cast %8 : vector<1x1x896xf32> to vector<1x896xf32>
    %c0_6 = arith.constant 0 : index
    %c1_7 = arith.constant 1 : index
    %10 = vector.load %arg2[%c0_6, %c1_7] : memref<16x25xf32, #tpu.memory_space<vmem>>, vector<16x1xf32>
    %11 = vector.broadcast %10 : vector<16x1xf32> to vector<16x896xf32>
    %12 = vector.broadcast %9 : vector<1x896xf32> to vector<16x896xf32>
    %13 = arith.mulf %11, %12 : vector<16x896xf32>
    %14 = arith.addf %7, %13 : vector<16x896xf32>
    %c0_8 = arith.constant 0 : index
    %c0_9 = arith.constant 0 : index
    %c2 = arith.constant 2 : index
    %15 = vector.load %arg1[%c0_8, %c0_9, %c2] : memref<1x1x1152xf32, #tpu.memory_space<vmem>>, vector<1x1x896xf32>
    %16 = vector.shape_cast %15 : vector<1x1x896xf32> to vector<1x896xf32>
    %c0_10 = arith.constant 0 : index
    %c2_11 = arith.constant 2 : index
    %17 = vector.load %arg2[%c0_10, %c2_11] : memref<16x25xf32, #tpu.memory_space<vmem>>, vector<16x1xf32>
    %18 = vector.broadcast %17 : vector<16x1xf32> to vector<16x896xf32>
    %19 = vector.broadcast %16 : vector<1x896xf32> to vector<16x896xf32>
    %20 = arith.mulf %18, %19 : vector<16x896xf32>
    %21 = arith.addf %14, %20 : vector<16x896xf32>
    %c0_12 = arith.constant 0 : index
    %c0_13 = arith.constant 0 : index
    %c3 = arith.constant 3 : index
    %22 = vector.load %arg1[%c0_12, %c0_13, %c3] : memref<1x1x1152xf32, #tpu.memory_space<vmem>>, vector<1x1x896xf32>
    %23 = vector.shape_cast %22 : vector<1x1x896xf32> to vector<1x896xf32>
    %c0_14 = arith.constant 0 : index
    %c3_15 = arith.constant 3 : index
    %24 = vector.load %arg2[%c0_14, %c3_15] : memref<16x25xf32, #tpu.memory_space<vmem>>, vector<16x1xf32>
    %25 = vector.broadcast %24 : vector<16x1xf32> to vector<16x896xf32>
    %26 = vector.broadcast %23 : vector<1x896xf32> to vector<16x896xf32>
    %27 = arith.mulf %25, %26 : vector<16x896xf32>
    %28 = arith.addf %21, %27 : vector<16x896xf32>
    %c0_16 = arith.constant 0 : index
    %c0_17 = arith.constant 0 : index
    %c4 = arith.constant 4 : index
    %29 = vector.load %arg1[%c0_16, %c0_17, %c4] : memref<1x1x1152xf32, #tpu.memory_space<vmem>>, vector<1x1x896xf32>
    %30 = vector.shape_cast %29 : vector<1x1x896xf32> to vector<1x896xf32>
    %c0_18 = arith.constant 0 : index
    %c4_19 = arith.constant 4 : index
    %31 = vector.load %arg2[%c0_18, %c4_19] : memref<16x25xf32, #tpu.memory_space<vmem>>, vector<16x1xf32>
    %32 = vector.broadcast %31 : vector<16x1xf32> to vector<16x896xf32>
    %33 = vector.broadcast %30 : vector<1x896xf32> to vector<16x896xf32>
    %34 = arith.mulf %32, %33 : vector<16x896xf32>
    %35 = arith.addf %28, %34 : vector<16x896xf32>
    %c0_20 = arith.constant 0 : index
    %c0_21 = arith.constant 0 : index
    %c32 = arith.constant 32 : index
    %36 = vector.load %arg1[%c0_20, %c0_21, %c32] : memref<1x1x1152xf32, #tpu.memory_space<vmem>>, vector<1x1x896xf32>
    %37 = vector.shape_cast %36 : vector<1x1x896xf32> to vector<1x896xf32>
    %c0_22 = arith.constant 0 : index
    %c5 = arith.constant 5 : index
    %38 = vector.load %arg2[%c0_22, %c5] : memref<16x25xf32, #tpu.memory_space<vmem>>, vector<16x1xf32>
    %39 = vector.broadcast %38 : vector<16x1xf32> to vector<16x896xf32>
    %40 = vector.broadcast %37 : vector<1x896xf32> to vector<16x896xf32>
    %41 = arith.mulf %39, %40 : vector<16x896xf32>
    %42 = arith.addf %35, %41 : vector<16x896xf32>
    %c0_23 = arith.constant 0 : index
    %c0_24 = arith.constant 0 : index
    %c33 = arith.constant 33 : index
    %43 = vector.load %arg1[%c0_23, %c0_24, %c33] : memref<1x1x1152xf32, #tpu.memory_space<vmem>>, vector<1x1x896xf32>
    %44 = vector.shape_cast %43 : vector<1x1x896xf32> to vector<1x896xf32>
    %c0_25 = arith.constant 0 : index
    %c6 = arith.constant 6 : index
    %45 = vector.load %arg2[%c0_25, %c6] : memref<16x25xf32, #tpu.memory_space<vmem>>, vector<16x1xf32>
    %46 = vector.broadcast %45 : vector<16x1xf32> to vector<16x896xf32>
    %47 = vector.broadcast %44 : vector<1x896xf32> to vector<16x896xf32>
    %48 = arith.mulf %46, %47 : vector<16x896xf32>
    %49 = arith.addf %42, %48 : vector<16x896xf32>
    %c0_26 = arith.constant 0 : index
    %c0_27 = arith.constant 0 : index
    %c34 = arith.constant 34 : index
    %50 = vector.load %arg1[%c0_26, %c0_27, %c34] : memref<1x1x1152xf32, #tpu.memory_space<vmem>>, vector<1x1x896xf32>
    %51 = vector.shape_cast %50 : vector<1x1x896xf32> to vector<1x896xf32>
    %c0_28 = arith.constant 0 : index
    %c7 = arith.constant 7 : index
    %52 = vector.load %arg2[%c0_28, %c7] : memref<16x25xf32, #tpu.memory_space<vmem>>, vector<16x1xf32>
    %53 = vector.broadcast %52 : vector<16x1xf32> to vector<16x896xf32>
    %54 = vector.broadcast %51 : vector<1x896xf32> to vector<16x896xf32>
    %55 = arith.mulf %53, %54 : vector<16x896xf32>
    %56 = arith.addf %49, %55 : vector<16x896xf32>
    %c0_29 = arith.constant 0 : index
    %c0_30 = arith.constant 0 : index
    %c35 = arith.constant 35 : index
    %57 = vector.load %arg1[%c0_29, %c0_30, %c35] : memref<1x1x1152xf32, #tpu.memory_space<vmem>>, vector<1x1x896xf32>
    %58 = vector.shape_cast %57 : vector<1x1x896xf32> to vector<1x896xf32>
    %c0_31 = arith.constant 0 : index
    %c8 = arith.constant 8 : index
    %59 = vector.load %arg2[%c0_31, %c8] : memref<16x25xf32, #tpu.memory_space<vmem>>, vector<16x1xf32>
    %60 = vector.broadcast %59 : vector<16x1xf32> to vector<16x896xf32>
    %61 = vector.broadcast %58 : vector<1x896xf32> to vector<16x896xf32>
    %62 = arith.mulf %60, %61 : vector<16x896xf32>
    %63 = arith.addf %56, %62 : vector<16x896xf32>
    %c0_32 = arith.constant 0 : index
    %c0_33 = arith.constant 0 : index
    %c36 = arith.constant 36 : index
    %64 = vector.load %arg1[%c0_32, %c0_33, %c36] : memref<1x1x1152xf32, #tpu.memory_space<vmem>>, vector<1x1x896xf32>
    %65 = vector.shape_cast %64 : vector<1x1x896xf32> to vector<1x896xf32>
    %c0_34 = arith.constant 0 : index
    %c9 = arith.constant 9 : index
    %66 = vector.load %arg2[%c0_34, %c9] : memref<16x25xf32, #tpu.memory_space<vmem>>, vector<16x1xf32>
    %67 = vector.broadcast %66 : vector<16x1xf32> to vector<16x896xf32>
    %68 = vector.broadcast %65 : vector<1x896xf32> to vector<16x896xf32>
    %69 = arith.mulf %67, %68 : vector<16x896xf32>
    %70 = arith.addf %63, %69 : vector<16x896xf32>
    %c0_35 = arith.constant 0 : index
    %c0_36 = arith.constant 0 : index
    %c64 = arith.constant 64 : index
    %71 = vector.load %arg1[%c0_35, %c0_36, %c64] : memref<1x1x1152xf32, #tpu.memory_space<vmem>>, vector<1x1x896xf32>
    %72 = vector.shape_cast %71 : vector<1x1x896xf32> to vector<1x896xf32>
    %c0_37 = arith.constant 0 : index
    %c10 = arith.constant 10 : index
    %73 = vector.load %arg2[%c0_37, %c10] : memref<16x25xf32, #tpu.memory_space<vmem>>, vector<16x1xf32>
    %74 = vector.broadcast %73 : vector<16x1xf32> to vector<16x896xf32>
    %75 = vector.broadcast %72 : vector<1x896xf32> to vector<16x896xf32>
    %76 = arith.mulf %74, %75 : vector<16x896xf32>
    %77 = arith.addf %70, %76 : vector<16x896xf32>
    %c0_38 = arith.constant 0 : index
    %c0_39 = arith.constant 0 : index
    %c65 = arith.constant 65 : index
    %78 = vector.load %arg1[%c0_38, %c0_39, %c65] : memref<1x1x1152xf32, #tpu.memory_space<vmem>>, vector<1x1x896xf32>
    %79 = vector.shape_cast %78 : vector<1x1x896xf32> to vector<1x896xf32>
    %c0_40 = arith.constant 0 : index
    %c11 = arith.constant 11 : index
    %80 = vector.load %arg2[%c0_40, %c11] : memref<16x25xf32, #tpu.memory_space<vmem>>, vector<16x1xf32>
    %81 = vector.broadcast %80 : vector<16x1xf32> to vector<16x896xf32>
    %82 = vector.broadcast %79 : vector<1x896xf32> to vector<16x896xf32>
    %83 = arith.mulf %81, %82 : vector<16x896xf32>
    %84 = arith.addf %77, %83 : vector<16x896xf32>
    %c0_41 = arith.constant 0 : index
    %c0_42 = arith.constant 0 : index
    %c66 = arith.constant 66 : index
    %85 = vector.load %arg1[%c0_41, %c0_42, %c66] : memref<1x1x1152xf32, #tpu.memory_space<vmem>>, vector<1x1x896xf32>
    %86 = vector.shape_cast %85 : vector<1x1x896xf32> to vector<1x896xf32>
    %c0_43 = arith.constant 0 : index
    %c12 = arith.constant 12 : index
    %87 = vector.load %arg2[%c0_43, %c12] : memref<16x25xf32, #tpu.memory_space<vmem>>, vector<16x1xf32>
    %88 = vector.broadcast %87 : vector<16x1xf32> to vector<16x896xf32>
    %89 = vector.broadcast %86 : vector<1x896xf32> to vector<16x896xf32>
    %90 = arith.mulf %88, %89 : vector<16x896xf32>
    %91 = arith.addf %84, %90 : vector<16x896xf32>
    %c0_44 = arith.constant 0 : index
    %c0_45 = arith.constant 0 : index
    %c67 = arith.constant 67 : index
    %92 = vector.load %arg1[%c0_44, %c0_45, %c67] : memref<1x1x1152xf32, #tpu.memory_space<vmem>>, vector<1x1x896xf32>
    %93 = vector.shape_cast %92 : vector<1x1x896xf32> to vector<1x896xf32>
    %c0_46 = arith.constant 0 : index
    %c13 = arith.constant 13 : index
    %94 = vector.load %arg2[%c0_46, %c13] : memref<16x25xf32, #tpu.memory_space<vmem>>, vector<16x1xf32>
    %95 = vector.broadcast %94 : vector<16x1xf32> to vector<16x896xf32>
    %96 = vector.broadcast %93 : vector<1x896xf32> to vector<16x896xf32>
    %97 = arith.mulf %95, %96 : vector<16x896xf32>
    %98 = arith.addf %91, %97 : vector<16x896xf32>
    %c0_47 = arith.constant 0 : index
    %c0_48 = arith.constant 0 : index
    %c68 = arith.constant 68 : index
    %99 = vector.load %arg1[%c0_47, %c0_48, %c68] : memref<1x1x1152xf32, #tpu.memory_space<vmem>>, vector<1x1x896xf32>
    %100 = vector.shape_cast %99 : vector<1x1x896xf32> to vector<1x896xf32>
    %c0_49 = arith.constant 0 : index
    %c14 = arith.constant 14 : index
    %101 = vector.load %arg2[%c0_49, %c14] : memref<16x25xf32, #tpu.memory_space<vmem>>, vector<16x1xf32>
    %102 = vector.broadcast %101 : vector<16x1xf32> to vector<16x896xf32>
    %103 = vector.broadcast %100 : vector<1x896xf32> to vector<16x896xf32>
    %104 = arith.mulf %102, %103 : vector<16x896xf32>
    %105 = arith.addf %98, %104 : vector<16x896xf32>
    %c0_50 = arith.constant 0 : index
    %c0_51 = arith.constant 0 : index
    %c96 = arith.constant 96 : index
    %106 = vector.load %arg1[%c0_50, %c0_51, %c96] : memref<1x1x1152xf32, #tpu.memory_space<vmem>>, vector<1x1x896xf32>
    %107 = vector.shape_cast %106 : vector<1x1x896xf32> to vector<1x896xf32>
    %c0_52 = arith.constant 0 : index
    %c15 = arith.constant 15 : index
    %108 = vector.load %arg2[%c0_52, %c15] : memref<16x25xf32, #tpu.memory_space<vmem>>, vector<16x1xf32>
    %109 = vector.broadcast %108 : vector<16x1xf32> to vector<16x896xf32>
    %110 = vector.broadcast %107 : vector<1x896xf32> to vector<16x896xf32>
    %111 = arith.mulf %109, %110 : vector<16x896xf32>
    %112 = arith.addf %105, %111 : vector<16x896xf32>
    %c0_53 = arith.constant 0 : index
    %c0_54 = arith.constant 0 : index
    %c97 = arith.constant 97 : index
    %113 = vector.load %arg1[%c0_53, %c0_54, %c97] : memref<1x1x1152xf32, #tpu.memory_space<vmem>>, vector<1x1x896xf32>
    %114 = vector.shape_cast %113 : vector<1x1x896xf32> to vector<1x896xf32>
    %c0_55 = arith.constant 0 : index
    %c16 = arith.constant 16 : index
    %115 = vector.load %arg2[%c0_55, %c16] : memref<16x25xf32, #tpu.memory_space<vmem>>, vector<16x1xf32>
    %116 = vector.broadcast %115 : vector<16x1xf32> to vector<16x896xf32>
    %117 = vector.broadcast %114 : vector<1x896xf32> to vector<16x896xf32>
    %118 = arith.mulf %116, %117 : vector<16x896xf32>
    %119 = arith.addf %112, %118 : vector<16x896xf32>
    %c0_56 = arith.constant 0 : index
    %c0_57 = arith.constant 0 : index
    %c98 = arith.constant 98 : index
    %120 = vector.load %arg1[%c0_56, %c0_57, %c98] : memref<1x1x1152xf32, #tpu.memory_space<vmem>>, vector<1x1x896xf32>
    %121 = vector.shape_cast %120 : vector<1x1x896xf32> to vector<1x896xf32>
    %c0_58 = arith.constant 0 : index
    %c17 = arith.constant 17 : index
    %122 = vector.load %arg2[%c0_58, %c17] : memref<16x25xf32, #tpu.memory_space<vmem>>, vector<16x1xf32>
    %123 = vector.broadcast %122 : vector<16x1xf32> to vector<16x896xf32>
    %124 = vector.broadcast %121 : vector<1x896xf32> to vector<16x896xf32>
    %125 = arith.mulf %123, %124 : vector<16x896xf32>
    %126 = arith.addf %119, %125 : vector<16x896xf32>
    %c0_59 = arith.constant 0 : index
    %c0_60 = arith.constant 0 : index
    %c99 = arith.constant 99 : index
    %127 = vector.load %arg1[%c0_59, %c0_60, %c99] : memref<1x1x1152xf32, #tpu.memory_space<vmem>>, vector<1x1x896xf32>
    %128 = vector.shape_cast %127 : vector<1x1x896xf32> to vector<1x896xf32>
    %c0_61 = arith.constant 0 : index
    %c18 = arith.constant 18 : index
    %129 = vector.load %arg2[%c0_61, %c18] : memref<16x25xf32, #tpu.memory_space<vmem>>, vector<16x1xf32>
    %130 = vector.broadcast %129 : vector<16x1xf32> to vector<16x896xf32>
    %131 = vector.broadcast %128 : vector<1x896xf32> to vector<16x896xf32>
    %132 = arith.mulf %130, %131 : vector<16x896xf32>
    %133 = arith.addf %126, %132 : vector<16x896xf32>
    %c0_62 = arith.constant 0 : index
    %c0_63 = arith.constant 0 : index
    %c100 = arith.constant 100 : index
    %134 = vector.load %arg1[%c0_62, %c0_63, %c100] : memref<1x1x1152xf32, #tpu.memory_space<vmem>>, vector<1x1x896xf32>
    %135 = vector.shape_cast %134 : vector<1x1x896xf32> to vector<1x896xf32>
    %c0_64 = arith.constant 0 : index
    %c19 = arith.constant 19 : index
    %136 = vector.load %arg2[%c0_64, %c19] : memref<16x25xf32, #tpu.memory_space<vmem>>, vector<16x1xf32>
    %137 = vector.broadcast %136 : vector<16x1xf32> to vector<16x896xf32>
    %138 = vector.broadcast %135 : vector<1x896xf32> to vector<16x896xf32>
    %139 = arith.mulf %137, %138 : vector<16x896xf32>
    %140 = arith.addf %133, %139 : vector<16x896xf32>
    %c0_65 = arith.constant 0 : index
    %c0_66 = arith.constant 0 : index
    %c128 = arith.constant 128 : index
    %141 = vector.load %arg1[%c0_65, %c0_66, %c128] : memref<1x1x1152xf32, #tpu.memory_space<vmem>>, vector<1x1x896xf32>
    %142 = vector.shape_cast %141 : vector<1x1x896xf32> to vector<1x896xf32>
    %c0_67 = arith.constant 0 : index
    %c20 = arith.constant 20 : index
    %143 = vector.load %arg2[%c0_67, %c20] : memref<16x25xf32, #tpu.memory_space<vmem>>, vector<16x1xf32>
    %144 = vector.broadcast %143 : vector<16x1xf32> to vector<16x896xf32>
    %145 = vector.broadcast %142 : vector<1x896xf32> to vector<16x896xf32>
    %146 = arith.mulf %144, %145 : vector<16x896xf32>
    %147 = arith.addf %140, %146 : vector<16x896xf32>
    %c0_68 = arith.constant 0 : index
    %c0_69 = arith.constant 0 : index
    %c129 = arith.constant 129 : index
    %148 = vector.load %arg1[%c0_68, %c0_69, %c129] : memref<1x1x1152xf32, #tpu.memory_space<vmem>>, vector<1x1x896xf32>
    %149 = vector.shape_cast %148 : vector<1x1x896xf32> to vector<1x896xf32>
    %c0_70 = arith.constant 0 : index
    %c21 = arith.constant 21 : index
    %150 = vector.load %arg2[%c0_70, %c21] : memref<16x25xf32, #tpu.memory_space<vmem>>, vector<16x1xf32>
    %151 = vector.broadcast %150 : vector<16x1xf32> to vector<16x896xf32>
    %152 = vector.broadcast %149 : vector<1x896xf32> to vector<16x896xf32>
    %153 = arith.mulf %151, %152 : vector<16x896xf32>
    %154 = arith.addf %147, %153 : vector<16x896xf32>
    %c0_71 = arith.constant 0 : index
    %c0_72 = arith.constant 0 : index
    %c130 = arith.constant 130 : index
    %155 = vector.load %arg1[%c0_71, %c0_72, %c130] : memref<1x1x1152xf32, #tpu.memory_space<vmem>>, vector<1x1x896xf32>
    %156 = vector.shape_cast %155 : vector<1x1x896xf32> to vector<1x896xf32>
    %c0_73 = arith.constant 0 : index
    %c22 = arith.constant 22 : index
    %157 = vector.load %arg2[%c0_73, %c22] : memref<16x25xf32, #tpu.memory_space<vmem>>, vector<16x1xf32>
    %158 = vector.broadcast %157 : vector<16x1xf32> to vector<16x896xf32>
    %159 = vector.broadcast %156 : vector<1x896xf32> to vector<16x896xf32>
    %160 = arith.mulf %158, %159 : vector<16x896xf32>
    %161 = arith.addf %154, %160 : vector<16x896xf32>
    %c0_74 = arith.constant 0 : index
    %c0_75 = arith.constant 0 : index
    %c131 = arith.constant 131 : index
    %162 = vector.load %arg1[%c0_74, %c0_75, %c131] : memref<1x1x1152xf32, #tpu.memory_space<vmem>>, vector<1x1x896xf32>
    %163 = vector.shape_cast %162 : vector<1x1x896xf32> to vector<1x896xf32>
    %c0_76 = arith.constant 0 : index
    %c23 = arith.constant 23 : index
    %164 = vector.load %arg2[%c0_76, %c23] : memref<16x25xf32, #tpu.memory_space<vmem>>, vector<16x1xf32>
    %165 = vector.broadcast %164 : vector<16x1xf32> to vector<16x896xf32>
    %166 = vector.broadcast %163 : vector<1x896xf32> to vector<16x896xf32>
    %167 = arith.mulf %165, %166 : vector<16x896xf32>
    %168 = arith.addf %161, %167 : vector<16x896xf32>
    %c0_77 = arith.constant 0 : index
    %c0_78 = arith.constant 0 : index
    %c132 = arith.constant 132 : index
    %169 = vector.load %arg1[%c0_77, %c0_78, %c132] : memref<1x1x1152xf32, #tpu.memory_space<vmem>>, vector<1x1x896xf32>
    %170 = vector.shape_cast %169 : vector<1x1x896xf32> to vector<1x896xf32>
    %c0_79 = arith.constant 0 : index
    %c24 = arith.constant 24 : index
    %171 = vector.load %arg2[%c0_79, %c24] : memref<16x25xf32, #tpu.memory_space<vmem>>, vector<16x1xf32>
    %172 = vector.broadcast %171 : vector<16x1xf32> to vector<16x896xf32>
    %173 = vector.broadcast %170 : vector<1x896xf32> to vector<16x896xf32>
    %174 = arith.mulf %172, %173 : vector<16x896xf32>
    %175 = arith.addf %168, %174 : vector<16x896xf32>
    %c0_80 = arith.constant 0 : index
    %c0_81 = arith.constant 0 : index
    %176 = vector.load %arg3[%c0_80, %c0_81] : memref<16x1xf32, #tpu.memory_space<vmem>>, vector<16x1xf32>
    %177 = vector.broadcast %176 : vector<16x1xf32> to vector<16x896xf32>
    %178 = arith.addf %175, %177 : vector<16x896xf32>
    %cst_82 = arith.constant 0.000000e+00 : f32
    %179 = vector.broadcast %cst_82 : f32 to vector<16x896xf32>
    %180 = arith.maximumf %178, %179 : vector<16x896xf32>
    %181 = vector.extract_strided_slice %180 {offsets = [0, 0], sizes = [16, 895], strides = [1, 1]} : vector<16x896xf32> to vector<16x895xf32>
    %182 = vector.extract_strided_slice %180 {offsets = [0, 1], sizes = [16, 895], strides = [1, 1]} : vector<16x896xf32> to vector<16x895xf32>
    %183 = arith.maximumf %181, %182 : vector<16x895xf32>
    %184 = vector.extract_strided_slice %183 {offsets = [0, 0], sizes = [16, 863], strides = [1, 1]} : vector<16x895xf32> to vector<16x863xf32>
    %185 = vector.extract_strided_slice %183 {offsets = [0, 32], sizes = [16, 863], strides = [1, 1]} : vector<16x895xf32> to vector<16x863xf32>
    %186 = arith.maximumf %184, %185 : vector<16x863xf32>
    %cst_83 = arith.constant 0.000000e+00 : bf16
    %187 = vector.broadcast %cst_83 : bf16 to vector<16x640xbf16>
    %c0_84 = arith.constant 0 : index
    %c0_85 = arith.constant 0 : index
    %c0_86 = arith.constant 0 : index
    %188 = vector.load %arg4[%c0_84, %c0_85, %c0_86] : memref<1x16x640xbf16, #tpu.memory_space<vmem>>, vector<1x16x640xbf16>
    %189 = vector.shape_cast %188 : vector<1x16x640xbf16> to vector<16x640xbf16>
    %190 = vector.shape_cast %187 : vector<16x640xbf16> to vector<1x16x640xbf16>
    tpu.vector_store %arg4[%c0_84, %c0_85, %c0_86], %190 {strides = array<i32>} : memref<1x16x640xbf16, #tpu.memory_space<vmem>>, vector<1x16x640xbf16>,
    %191 = vector.extract_strided_slice %186 {offsets = [0, 0], sizes = [16, 28], strides = [1, 1]} : vector<16x863xf32> to vector<16x28xf32>
    %192 = arith.truncf %191 : vector<16x28xf32> to vector<16x28xbf16>
    %c0_87 = arith.constant 0 : index
    %c0_88 = arith.constant 0 : index
    %c68_89 = arith.constant 68 : index
    %193 = vector.load %arg4[%c0_87, %c0_88, %c68_89] : memref<1x16x640xbf16, #tpu.memory_space<vmem>>, vector<1x16x28xbf16>
    %194 = vector.shape_cast %193 : vector<1x16x28xbf16> to vector<16x28xbf16>
    %195 = vector.shape_cast %192 : vector<16x28xbf16> to vector<1x16x28xbf16>
    tpu.vector_store %arg4[%c0_87, %c0_88, %c68_89], %195 {strides = array<i32>} : memref<1x16x640xbf16, #tpu.memory_space<vmem>>, vector<1x16x28xbf16>,
    %196 = vector.extract_strided_slice %186 {offsets = [0, 64], sizes = [16, 28], strides = [1, 1]} : vector<16x863xf32> to vector<16x28xf32>
    %197 = arith.truncf %196 : vector<16x28xf32> to vector<16x28xbf16>
    %c0_90 = arith.constant 0 : index
    %c0_91 = arith.constant 0 : index
    %c100_92 = arith.constant 100 : index
    %198 = vector.load %arg4[%c0_90, %c0_91, %c100_92] : memref<1x16x640xbf16, #tpu.memory_space<vmem>>, vector<1x16x28xbf16>
    %199 = vector.shape_cast %198 : vector<1x16x28xbf16> to vector<16x28xbf16>
    %200 = vector.shape_cast %197 : vector<16x28xbf16> to vector<1x16x28xbf16>
    tpu.vector_store %arg4[%c0_90, %c0_91, %c100_92], %200 {strides = array<i32>} : memref<1x16x640xbf16, #tpu.memory_space<vmem>>, vector<1x16x28xbf16>,
    %201 = vector.extract_strided_slice %186 {offsets = [0, 128], sizes = [16, 28], strides = [1, 1]} : vector<16x863xf32> to vector<16x28xf32>
    %202 = arith.truncf %201 : vector<16x28xf32> to vector<16x28xbf16>
    %c0_93 = arith.constant 0 : index
    %c0_94 = arith.constant 0 : index
    %c132_95 = arith.constant 132 : index
    %203 = vector.load %arg4[%c0_93, %c0_94, %c132_95] : memref<1x16x640xbf16, #tpu.memory_space<vmem>>, vector<1x16x28xbf16>
    %204 = vector.shape_cast %203 : vector<1x16x28xbf16> to vector<16x28xbf16>
    %205 = vector.shape_cast %202 : vector<16x28xbf16> to vector<1x16x28xbf16>
    tpu.vector_store %arg4[%c0_93, %c0_94, %c132_95], %205 {strides = array<i32>} : memref<1x16x640xbf16, #tpu.memory_space<vmem>>, vector<1x16x28xbf16>,
    %206 = vector.extract_strided_slice %186 {offsets = [0, 192], sizes = [16, 28], strides = [1, 1]} : vector<16x863xf32> to vector<16x28xf32>
    %207 = arith.truncf %206 : vector<16x28xf32> to vector<16x28xbf16>
    %c0_96 = arith.constant 0 : index
    %c0_97 = arith.constant 0 : index
    %c164 = arith.constant 164 : index
    %208 = vector.load %arg4[%c0_96, %c0_97, %c164] : memref<1x16x640xbf16, #tpu.memory_space<vmem>>, vector<1x16x28xbf16>
    %209 = vector.shape_cast %208 : vector<1x16x28xbf16> to vector<16x28xbf16>
    %210 = vector.shape_cast %207 : vector<16x28xbf16> to vector<1x16x28xbf16>
    tpu.vector_store %arg4[%c0_96, %c0_97, %c164], %210 {strides = array<i32>} : memref<1x16x640xbf16, #tpu.memory_space<vmem>>, vector<1x16x28xbf16>,
    %211 = vector.extract_strided_slice %186 {offsets = [0, 256], sizes = [16, 28], strides = [1, 1]} : vector<16x863xf32> to vector<16x28xf32>
    %212 = arith.truncf %211 : vector<16x28xf32> to vector<16x28xbf16>
    %c0_98 = arith.constant 0 : index
    %c0_99 = arith.constant 0 : index
    %c196 = arith.constant 196 : index
    %213 = vector.load %arg4[%c0_98, %c0_99, %c196] : memref<1x16x640xbf16, #tpu.memory_space<vmem>>, vector<1x16x28xbf16>
    %214 = vector.shape_cast %213 : vector<1x16x28xbf16> to vector<16x28xbf16>
    %215 = vector.shape_cast %212 : vector<16x28xbf16> to vector<1x16x28xbf16>
    tpu.vector_store %arg4[%c0_98, %c0_99, %c196], %215 {strides = array<i32>} : memref<1x16x640xbf16, #tpu.memory_space<vmem>>, vector<1x16x28xbf16>,
    %216 = vector.extract_strided_slice %186 {offsets = [0, 320], sizes = [16, 28], strides = [1, 1]} : vector<16x863xf32> to vector<16x28xf32>
    %217 = arith.truncf %216 : vector<16x28xf32> to vector<16x28xbf16>
    %c0_100 = arith.constant 0 : index
    %c0_101 = arith.constant 0 : index
    %c228 = arith.constant 228 : index
    %218 = vector.load %arg4[%c0_100, %c0_101, %c228] : memref<1x16x640xbf16, #tpu.memory_space<vmem>>, vector<1x16x28xbf16>
    %219 = vector.shape_cast %218 : vector<1x16x28xbf16> to vector<16x28xbf16>
    %220 = vector.shape_cast %217 : vector<16x28xbf16> to vector<1x16x28xbf16>
    tpu.vector_store %arg4[%c0_100, %c0_101, %c228], %220 {strides = array<i32>} : memref<1x16x640xbf16, #tpu.memory_space<vmem>>, vector<1x16x28xbf16>,
    %221 = vector.extract_strided_slice %186 {offsets = [0, 384], sizes = [16, 28], strides = [1, 1]} : vector<16x863xf32> to vector<16x28xf32>
    %222 = arith.truncf %221 : vector<16x28xf32> to vector<16x28xbf16>
    %c0_102 = arith.constant 0 : index
    %c0_103 = arith.constant 0 : index
    %c260 = arith.constant 260 : index
    %223 = vector.load %arg4[%c0_102, %c0_103, %c260] : memref<1x16x640xbf16, #tpu.memory_space<vmem>>, vector<1x16x28xbf16>
    %224 = vector.shape_cast %223 : vector<1x16x28xbf16> to vector<16x28xbf16>
    %225 = vector.shape_cast %222 : vector<16x28xbf16> to vector<1x16x28xbf16>
    tpu.vector_store %arg4[%c0_102, %c0_103, %c260], %225 {strides = array<i32>} : memref<1x16x640xbf16, #tpu.memory_space<vmem>>, vector<1x16x28xbf16>,
    %226 = vector.extract_strided_slice %186 {offsets = [0, 448], sizes = [16, 28], strides = [1, 1]} : vector<16x863xf32> to vector<16x28xf32>
    %227 = arith.truncf %226 : vector<16x28xf32> to vector<16x28xbf16>
    %c0_104 = arith.constant 0 : index
    %c0_105 = arith.constant 0 : index
    %c292 = arith.constant 292 : index
    %228 = vector.load %arg4[%c0_104, %c0_105, %c292] : memref<1x16x640xbf16, #tpu.memory_space<vmem>>, vector<1x16x28xbf16>
    %229 = vector.shape_cast %228 : vector<1x16x28xbf16> to vector<16x28xbf16>
    %230 = vector.shape_cast %227 : vector<16x28xbf16> to vector<1x16x28xbf16>
    tpu.vector_store %arg4[%c0_104, %c0_105, %c292], %230 {strides = array<i32>} : memref<1x16x640xbf16, #tpu.memory_space<vmem>>, vector<1x16x28xbf16>,
    %231 = vector.extract_strided_slice %186 {offsets = [0, 512], sizes = [16, 28], strides = [1, 1]} : vector<16x863xf32> to vector<16x28xf32>
    %232 = arith.truncf %231 : vector<16x28xf32> to vector<16x28xbf16>
    %c0_106 = arith.constant 0 : index
    %c0_107 = arith.constant 0 : index
    %c324 = arith.constant 324 : index
    %233 = vector.load %arg4[%c0_106, %c0_107, %c324] : memref<1x16x640xbf16, #tpu.memory_space<vmem>>, vector<1x16x28xbf16>
    %234 = vector.shape_cast %233 : vector<1x16x28xbf16> to vector<16x28xbf16>
    %235 = vector.shape_cast %232 : vector<16x28xbf16> to vector<1x16x28xbf16>
    tpu.vector_store %arg4[%c0_106, %c0_107, %c324], %235 {strides = array<i32>} : memref<1x16x640xbf16, #tpu.memory_space<vmem>>, vector<1x16x28xbf16>,
    %236 = vector.extract_strided_slice %186 {offsets = [0, 576], sizes = [16, 28], strides = [1, 1]} : vector<16x863xf32> to vector<16x28xf32>
    %237 = arith.truncf %236 : vector<16x28xf32> to vector<16x28xbf16>
    %c0_108 = arith.constant 0 : index
    %c0_109 = arith.constant 0 : index
    %c356 = arith.constant 356 : index
    %238 = vector.load %arg4[%c0_108, %c0_109, %c356] : memref<1x16x640xbf16, #tpu.memory_space<vmem>>, vector<1x16x28xbf16>
    %239 = vector.shape_cast %238 : vector<1x16x28xbf16> to vector<16x28xbf16>
    %240 = vector.shape_cast %237 : vector<16x28xbf16> to vector<1x16x28xbf16>
    tpu.vector_store %arg4[%c0_108, %c0_109, %c356], %240 {strides = array<i32>} : memref<1x16x640xbf16, #tpu.memory_space<vmem>>, vector<1x16x28xbf16>,
    %241 = vector.extract_strided_slice %186 {offsets = [0, 640], sizes = [16, 28], strides = [1, 1]} : vector<16x863xf32> to vector<16x28xf32>
    %242 = arith.truncf %241 : vector<16x28xf32> to vector<16x28xbf16>
    %c0_110 = arith.constant 0 : index
    %c0_111 = arith.constant 0 : index
    %c388 = arith.constant 388 : index
    %243 = vector.load %arg4[%c0_110, %c0_111, %c388] : memref<1x16x640xbf16, #tpu.memory_space<vmem>>, vector<1x16x28xbf16>
    %244 = vector.shape_cast %243 : vector<1x16x28xbf16> to vector<16x28xbf16>
    %245 = vector.shape_cast %242 : vector<16x28xbf16> to vector<1x16x28xbf16>
    tpu.vector_store %arg4[%c0_110, %c0_111, %c388], %245 {strides = array<i32>} : memref<1x16x640xbf16, #tpu.memory_space<vmem>>, vector<1x16x28xbf16>,
    %246 = vector.extract_strided_slice %186 {offsets = [0, 704], sizes = [16, 28], strides = [1, 1]} : vector<16x863xf32> to vector<16x28xf32>
    %247 = arith.truncf %246 : vector<16x28xf32> to vector<16x28xbf16>
    %c0_112 = arith.constant 0 : index
    %c0_113 = arith.constant 0 : index
    %c420 = arith.constant 420 : index
    %248 = vector.load %arg4[%c0_112, %c0_113, %c420] : memref<1x16x640xbf16, #tpu.memory_space<vmem>>, vector<1x16x28xbf16>
    %249 = vector.shape_cast %248 : vector<1x16x28xbf16> to vector<16x28xbf16>
    %250 = vector.shape_cast %247 : vector<16x28xbf16> to vector<1x16x28xbf16>
    tpu.vector_store %arg4[%c0_112, %c0_113, %c420], %250 {strides = array<i32>} : memref<1x16x640xbf16, #tpu.memory_space<vmem>>, vector<1x16x28xbf16>,
    %251 = vector.extract_strided_slice %186 {offsets = [0, 768], sizes = [16, 28], strides = [1, 1]} : vector<16x863xf32> to vector<16x28xf32>
    %252 = arith.truncf %251 : vector<16x28xf32> to vector<16x28xbf16>
    %c0_114 = arith.constant 0 : index
    %c0_115 = arith.constant 0 : index
    %c452 = arith.constant 452 : index
    %253 = vector.load %arg4[%c0_114, %c0_115, %c452] : memref<1x16x640xbf16, #tpu.memory_space<vmem>>, vector<1x16x28xbf16>
    %254 = vector.shape_cast %253 : vector<1x16x28xbf16> to vector<16x28xbf16>
    %255 = vector.shape_cast %252 : vector<16x28xbf16> to vector<1x16x28xbf16>
    tpu.vector_store %arg4[%c0_114, %c0_115, %c452], %255 {strides = array<i32>} : memref<1x16x640xbf16, #tpu.memory_space<vmem>>, vector<1x16x28xbf16>,
    %256 = vector.extract_strided_slice %186 {offsets = [0, 832], sizes = [16, 28], strides = [1, 1]} : vector<16x863xf32> to vector<16x28xf32>
    %257 = arith.truncf %256 : vector<16x28xf32> to vector<16x28xbf16>
    %c0_116 = arith.constant 0 : index
    %c0_117 = arith.constant 0 : index
    %c484 = arith.constant 484 : index
    %258 = vector.load %arg4[%c0_116, %c0_117, %c484] : memref<1x16x640xbf16, #tpu.memory_space<vmem>>, vector<1x16x28xbf16>
    %259 = vector.shape_cast %258 : vector<1x16x28xbf16> to vector<16x28xbf16>
    %260 = vector.shape_cast %257 : vector<16x28xbf16> to vector<1x16x28xbf16>
    tpu.vector_store %arg4[%c0_116, %c0_117, %c484], %260 {strides = array<i32>} : memref<1x16x640xbf16, #tpu.memory_space<vmem>>, vector<1x16x28xbf16>,
    return
  }
  func.func @transform_0(%arg0: i32) -> (i32, i32, i32) {
    %c0_i32 = arith.constant 0 : i32
    %c0_i32_0 = arith.constant 0 : i32
    %c0_i32_1 = arith.constant 0 : i32
    return %arg0, %c0_i32, %c0_i32_0 : i32, i32, i32
  }
  func.func @transform_1(%arg0: i32) -> (i32, i32) {
    %c0_i32 = arith.constant 0 : i32
    %c0_i32_0 = arith.constant 0 : i32
    %c0_i32_1 = arith.constant 0 : i32
    return %c0_i32, %c0_i32_0 : i32, i32
  }
  func.func @transform_2(%arg0: i32) -> (i32, i32) {
    %c0_i32 = arith.constant 0 : i32
    %c0_i32_0 = arith.constant 0 : i32
    %c0_i32_1 = arith.constant 0 : i32
    return %c0_i32, %c0_i32_0 : i32, i32
  }
  func.func @transform_3(%arg0: i32) -> (i32, i32, i32) {
    %c0_i32 = arith.constant 0 : i32
    %c0_i32_0 = arith.constant 0 : i32
    %c0_i32_1 = arith.constant 0 : i32
    return %arg0, %c0_i32, %c0_i32_0 : i32, i32, i32
  }
}

module attributes {stable_mosaic.version = 11 : i64} {
  func.func @_conv2_pool_fc_kernel(%arg0: i32, %arg1: memref<1x16x640xbf16, #tpu.memory_space<vmem>>, %arg2: memref<25x32x16xbf16, #tpu.memory_space<vmem>>, %arg3: memref<32x1xf32, #tpu.memory_space<vmem>>, %arg4: memref<10x32x414xbf16, #tpu.memory_space<vmem>>, %arg5: memref<1x10xf32, #tpu.memory_space<vmem>>, %arg6: memref<1x1x10xf32, #tpu.memory_space<vmem>>) attributes {dimension_semantics = [#tpu.dimension_semantics<parallel>], iteration_bounds = array<i64: 2>, scalar_prefetch = 0 : i64, scratch_operands = 0 : i64, tpu.core_type = #tpu.core_type<tc>, window_params = [{transform_indices = @transform_0, window_bounds = array<i64: 1, 16, 640>}, {pipeline_mode = #tpu.pipeline_mode<synchronous>, transform_indices = @transform_1, window_bounds = array<i64: 25, 32, 16>}, {pipeline_mode = #tpu.pipeline_mode<synchronous>, transform_indices = @transform_2, window_bounds = array<i64: 32, 1>}, {pipeline_mode = #tpu.pipeline_mode<synchronous>, transform_indices = @transform_3, window_bounds = array<i64: 10, 32, 414>}, {pipeline_mode = #tpu.pipeline_mode<synchronous>, transform_indices = @transform_4, window_bounds = array<i64: 1, 10>}, {transform_indices = @transform_5, window_bounds = array<i64: 1, 1, 10>}]} {
    %cst = arith.constant 0.000000e+00 : f32
    %0 = vector.broadcast %cst : f32 to vector<32x448xf32>
    %c0 = arith.constant 0 : index
    %c0_0 = arith.constant 0 : index
    %c0_1 = arith.constant 0 : index
    %1 = vector.load %arg1[%c0, %c0_0, %c0_1] : memref<1x16x640xbf16, #tpu.memory_space<vmem>>, vector<1x16x448xbf16>
    %2 = vector.shape_cast %1 : vector<1x16x448xbf16> to vector<16x448xbf16>
    %c0_2 = arith.constant 0 : index
    %c0_3 = arith.constant 0 : index
    %c0_4 = arith.constant 0 : index
    %3 = vector.load %arg2[%c0_2, %c0_3, %c0_4] : memref<25x32x16xbf16, #tpu.memory_space<vmem>>, vector<1x32x16xbf16>
    %4 = vector.shape_cast %3 : vector<1x32x16xbf16> to vector<32x16xbf16>
    %cst_5 = arith.constant dense<0.000000e+00> : vector<32x448xf32>
    %5 = tpu.matmul %4, %2, %cst_5 {dimension_numbers = #tpu.dot_dimension_numbers<[1], [0], [0], [1], [0, 0, 1, 1], [], []>} : vector<32x16xbf16>, vector<16x448xbf16>, vector<32x448xf32> -> vector<32x448xf32>
    %6 = arith.addf %0, %5 : vector<32x448xf32>
    %c0_6 = arith.constant 0 : index
    %c0_7 = arith.constant 0 : index
    %c2 = arith.constant 2 : index
    %7 = vector.load %arg1[%c0_6, %c0_7, %c2] : memref<1x16x640xbf16, #tpu.memory_space<vmem>>, vector<1x16x448xbf16>
    %8 = vector.shape_cast %7 : vector<1x16x448xbf16> to vector<16x448xbf16>
    %c1 = arith.constant 1 : index
    %c0_8 = arith.constant 0 : index
    %c0_9 = arith.constant 0 : index
    %9 = vector.load %arg2[%c1, %c0_8, %c0_9] : memref<25x32x16xbf16, #tpu.memory_space<vmem>>, vector<1x32x16xbf16>
    %10 = vector.shape_cast %9 : vector<1x32x16xbf16> to vector<32x16xbf16>
    %cst_10 = arith.constant dense<0.000000e+00> : vector<32x448xf32>
    %11 = tpu.matmul %10, %8, %cst_10 {dimension_numbers = #tpu.dot_dimension_numbers<[1], [0], [0], [1], [0, 0, 1, 1], [], []>} : vector<32x16xbf16>, vector<16x448xbf16>, vector<32x448xf32> -> vector<32x448xf32>
    %12 = arith.addf %6, %11 : vector<32x448xf32>
    %c0_11 = arith.constant 0 : index
    %c0_12 = arith.constant 0 : index
    %c4 = arith.constant 4 : index
    %13 = vector.load %arg1[%c0_11, %c0_12, %c4] : memref<1x16x640xbf16, #tpu.memory_space<vmem>>, vector<1x16x448xbf16>
    %14 = vector.shape_cast %13 : vector<1x16x448xbf16> to vector<16x448xbf16>
    %c2_13 = arith.constant 2 : index
    %c0_14 = arith.constant 0 : index
    %c0_15 = arith.constant 0 : index
    %15 = vector.load %arg2[%c2_13, %c0_14, %c0_15] : memref<25x32x16xbf16, #tpu.memory_space<vmem>>, vector<1x32x16xbf16>
    %16 = vector.shape_cast %15 : vector<1x32x16xbf16> to vector<32x16xbf16>
    %cst_16 = arith.constant dense<0.000000e+00> : vector<32x448xf32>
    %17 = tpu.matmul %16, %14, %cst_16 {dimension_numbers = #tpu.dot_dimension_numbers<[1], [0], [0], [1], [0, 0, 1, 1], [], []>} : vector<32x16xbf16>, vector<16x448xbf16>, vector<32x448xf32> -> vector<32x448xf32>
    %18 = arith.addf %12, %17 : vector<32x448xf32>
    %c0_17 = arith.constant 0 : index
    %c0_18 = arith.constant 0 : index
    %c6 = arith.constant 6 : index
    %19 = vector.load %arg1[%c0_17, %c0_18, %c6] : memref<1x16x640xbf16, #tpu.memory_space<vmem>>, vector<1x16x448xbf16>
    %20 = vector.shape_cast %19 : vector<1x16x448xbf16> to vector<16x448xbf16>
    %c3 = arith.constant 3 : index
    %c0_19 = arith.constant 0 : index
    %c0_20 = arith.constant 0 : index
    %21 = vector.load %arg2[%c3, %c0_19, %c0_20] : memref<25x32x16xbf16, #tpu.memory_space<vmem>>, vector<1x32x16xbf16>
    %22 = vector.shape_cast %21 : vector<1x32x16xbf16> to vector<32x16xbf16>
    %cst_21 = arith.constant dense<0.000000e+00> : vector<32x448xf32>
    %23 = tpu.matmul %22, %20, %cst_21 {dimension_numbers = #tpu.dot_dimension_numbers<[1], [0], [0], [1], [0, 0, 1, 1], [], []>} : vector<32x16xbf16>, vector<16x448xbf16>, vector<32x448xf32> -> vector<32x448xf32>
    %24 = arith.addf %18, %23 : vector<32x448xf32>
    %c0_22 = arith.constant 0 : index
    %c0_23 = arith.constant 0 : index
    %c8 = arith.constant 8 : index
    %25 = vector.load %arg1[%c0_22, %c0_23, %c8] : memref<1x16x640xbf16, #tpu.memory_space<vmem>>, vector<1x16x448xbf16>
    %26 = vector.shape_cast %25 : vector<1x16x448xbf16> to vector<16x448xbf16>
    %c4_24 = arith.constant 4 : index
    %c0_25 = arith.constant 0 : index
    %c0_26 = arith.constant 0 : index
    %27 = vector.load %arg2[%c4_24, %c0_25, %c0_26] : memref<25x32x16xbf16, #tpu.memory_space<vmem>>, vector<1x32x16xbf16>
    %28 = vector.shape_cast %27 : vector<1x32x16xbf16> to vector<32x16xbf16>
    %cst_27 = arith.constant dense<0.000000e+00> : vector<32x448xf32>
    %29 = tpu.matmul %28, %26, %cst_27 {dimension_numbers = #tpu.dot_dimension_numbers<[1], [0], [0], [1], [0, 0, 1, 1], [], []>} : vector<32x16xbf16>, vector<16x448xbf16>, vector<32x448xf32> -> vector<32x448xf32>
    %30 = arith.addf %24, %29 : vector<32x448xf32>
    %c0_28 = arith.constant 0 : index
    %c0_29 = arith.constant 0 : index
    %c32 = arith.constant 32 : index
    %31 = vector.load %arg1[%c0_28, %c0_29, %c32] : memref<1x16x640xbf16, #tpu.memory_space<vmem>>, vector<1x16x448xbf16>
    %32 = vector.shape_cast %31 : vector<1x16x448xbf16> to vector<16x448xbf16>
    %c5 = arith.constant 5 : index
    %c0_30 = arith.constant 0 : index
    %c0_31 = arith.constant 0 : index
    %33 = vector.load %arg2[%c5, %c0_30, %c0_31] : memref<25x32x16xbf16, #tpu.memory_space<vmem>>, vector<1x32x16xbf16>
    %34 = vector.shape_cast %33 : vector<1x32x16xbf16> to vector<32x16xbf16>
    %cst_32 = arith.constant dense<0.000000e+00> : vector<32x448xf32>
    %35 = tpu.matmul %34, %32, %cst_32 {dimension_numbers = #tpu.dot_dimension_numbers<[1], [0], [0], [1], [0, 0, 1, 1], [], []>} : vector<32x16xbf16>, vector<16x448xbf16>, vector<32x448xf32> -> vector<32x448xf32>
    %36 = arith.addf %30, %35 : vector<32x448xf32>
    %c0_33 = arith.constant 0 : index
    %c0_34 = arith.constant 0 : index
    %c34 = arith.constant 34 : index
    %37 = vector.load %arg1[%c0_33, %c0_34, %c34] : memref<1x16x640xbf16, #tpu.memory_space<vmem>>, vector<1x16x448xbf16>
    %38 = vector.shape_cast %37 : vector<1x16x448xbf16> to vector<16x448xbf16>
    %c6_35 = arith.constant 6 : index
    %c0_36 = arith.constant 0 : index
    %c0_37 = arith.constant 0 : index
    %39 = vector.load %arg2[%c6_35, %c0_36, %c0_37] : memref<25x32x16xbf16, #tpu.memory_space<vmem>>, vector<1x32x16xbf16>
    %40 = vector.shape_cast %39 : vector<1x32x16xbf16> to vector<32x16xbf16>
    %cst_38 = arith.constant dense<0.000000e+00> : vector<32x448xf32>
    %41 = tpu.matmul %40, %38, %cst_38 {dimension_numbers = #tpu.dot_dimension_numbers<[1], [0], [0], [1], [0, 0, 1, 1], [], []>} : vector<32x16xbf16>, vector<16x448xbf16>, vector<32x448xf32> -> vector<32x448xf32>
    %42 = arith.addf %36, %41 : vector<32x448xf32>
    %c0_39 = arith.constant 0 : index
    %c0_40 = arith.constant 0 : index
    %c36 = arith.constant 36 : index
    %43 = vector.load %arg1[%c0_39, %c0_40, %c36] : memref<1x16x640xbf16, #tpu.memory_space<vmem>>, vector<1x16x448xbf16>
    %44 = vector.shape_cast %43 : vector<1x16x448xbf16> to vector<16x448xbf16>
    %c7 = arith.constant 7 : index
    %c0_41 = arith.constant 0 : index
    %c0_42 = arith.constant 0 : index
    %45 = vector.load %arg2[%c7, %c0_41, %c0_42] : memref<25x32x16xbf16, #tpu.memory_space<vmem>>, vector<1x32x16xbf16>
    %46 = vector.shape_cast %45 : vector<1x32x16xbf16> to vector<32x16xbf16>
    %cst_43 = arith.constant dense<0.000000e+00> : vector<32x448xf32>
    %47 = tpu.matmul %46, %44, %cst_43 {dimension_numbers = #tpu.dot_dimension_numbers<[1], [0], [0], [1], [0, 0, 1, 1], [], []>} : vector<32x16xbf16>, vector<16x448xbf16>, vector<32x448xf32> -> vector<32x448xf32>
    %48 = arith.addf %42, %47 : vector<32x448xf32>
    %c0_44 = arith.constant 0 : index
    %c0_45 = arith.constant 0 : index
    %c38 = arith.constant 38 : index
    %49 = vector.load %arg1[%c0_44, %c0_45, %c38] : memref<1x16x640xbf16, #tpu.memory_space<vmem>>, vector<1x16x448xbf16>
    %50 = vector.shape_cast %49 : vector<1x16x448xbf16> to vector<16x448xbf16>
    %c8_46 = arith.constant 8 : index
    %c0_47 = arith.constant 0 : index
    %c0_48 = arith.constant 0 : index
    %51 = vector.load %arg2[%c8_46, %c0_47, %c0_48] : memref<25x32x16xbf16, #tpu.memory_space<vmem>>, vector<1x32x16xbf16>
    %52 = vector.shape_cast %51 : vector<1x32x16xbf16> to vector<32x16xbf16>
    %cst_49 = arith.constant dense<0.000000e+00> : vector<32x448xf32>
    %53 = tpu.matmul %52, %50, %cst_49 {dimension_numbers = #tpu.dot_dimension_numbers<[1], [0], [0], [1], [0, 0, 1, 1], [], []>} : vector<32x16xbf16>, vector<16x448xbf16>, vector<32x448xf32> -> vector<32x448xf32>
    %54 = arith.addf %48, %53 : vector<32x448xf32>
    %c0_50 = arith.constant 0 : index
    %c0_51 = arith.constant 0 : index
    %c40 = arith.constant 40 : index
    %55 = vector.load %arg1[%c0_50, %c0_51, %c40] : memref<1x16x640xbf16, #tpu.memory_space<vmem>>, vector<1x16x448xbf16>
    %56 = vector.shape_cast %55 : vector<1x16x448xbf16> to vector<16x448xbf16>
    %c9 = arith.constant 9 : index
    %c0_52 = arith.constant 0 : index
    %c0_53 = arith.constant 0 : index
    %57 = vector.load %arg2[%c9, %c0_52, %c0_53] : memref<25x32x16xbf16, #tpu.memory_space<vmem>>, vector<1x32x16xbf16>
    %58 = vector.shape_cast %57 : vector<1x32x16xbf16> to vector<32x16xbf16>
    %cst_54 = arith.constant dense<0.000000e+00> : vector<32x448xf32>
    %59 = tpu.matmul %58, %56, %cst_54 {dimension_numbers = #tpu.dot_dimension_numbers<[1], [0], [0], [1], [0, 0, 1, 1], [], []>} : vector<32x16xbf16>, vector<16x448xbf16>, vector<32x448xf32> -> vector<32x448xf32>
    %60 = arith.addf %54, %59 : vector<32x448xf32>
    %c0_55 = arith.constant 0 : index
    %c0_56 = arith.constant 0 : index
    %c64 = arith.constant 64 : index
    %61 = vector.load %arg1[%c0_55, %c0_56, %c64] : memref<1x16x640xbf16, #tpu.memory_space<vmem>>, vector<1x16x448xbf16>
    %62 = vector.shape_cast %61 : vector<1x16x448xbf16> to vector<16x448xbf16>
    %c10 = arith.constant 10 : index
    %c0_57 = arith.constant 0 : index
    %c0_58 = arith.constant 0 : index
    %63 = vector.load %arg2[%c10, %c0_57, %c0_58] : memref<25x32x16xbf16, #tpu.memory_space<vmem>>, vector<1x32x16xbf16>
    %64 = vector.shape_cast %63 : vector<1x32x16xbf16> to vector<32x16xbf16>
    %cst_59 = arith.constant dense<0.000000e+00> : vector<32x448xf32>
    %65 = tpu.matmul %64, %62, %cst_59 {dimension_numbers = #tpu.dot_dimension_numbers<[1], [0], [0], [1], [0, 0, 1, 1], [], []>} : vector<32x16xbf16>, vector<16x448xbf16>, vector<32x448xf32> -> vector<32x448xf32>
    %66 = arith.addf %60, %65 : vector<32x448xf32>
    %c0_60 = arith.constant 0 : index
    %c0_61 = arith.constant 0 : index
    %c66 = arith.constant 66 : index
    %67 = vector.load %arg1[%c0_60, %c0_61, %c66] : memref<1x16x640xbf16, #tpu.memory_space<vmem>>, vector<1x16x448xbf16>
    %68 = vector.shape_cast %67 : vector<1x16x448xbf16> to vector<16x448xbf16>
    %c11 = arith.constant 11 : index
    %c0_62 = arith.constant 0 : index
    %c0_63 = arith.constant 0 : index
    %69 = vector.load %arg2[%c11, %c0_62, %c0_63] : memref<25x32x16xbf16, #tpu.memory_space<vmem>>, vector<1x32x16xbf16>
    %70 = vector.shape_cast %69 : vector<1x32x16xbf16> to vector<32x16xbf16>
    %cst_64 = arith.constant dense<0.000000e+00> : vector<32x448xf32>
    %71 = tpu.matmul %70, %68, %cst_64 {dimension_numbers = #tpu.dot_dimension_numbers<[1], [0], [0], [1], [0, 0, 1, 1], [], []>} : vector<32x16xbf16>, vector<16x448xbf16>, vector<32x448xf32> -> vector<32x448xf32>
    %72 = arith.addf %66, %71 : vector<32x448xf32>
    %c0_65 = arith.constant 0 : index
    %c0_66 = arith.constant 0 : index
    %c68 = arith.constant 68 : index
    %73 = vector.load %arg1[%c0_65, %c0_66, %c68] : memref<1x16x640xbf16, #tpu.memory_space<vmem>>, vector<1x16x448xbf16>
    %74 = vector.shape_cast %73 : vector<1x16x448xbf16> to vector<16x448xbf16>
    %c12 = arith.constant 12 : index
    %c0_67 = arith.constant 0 : index
    %c0_68 = arith.constant 0 : index
    %75 = vector.load %arg2[%c12, %c0_67, %c0_68] : memref<25x32x16xbf16, #tpu.memory_space<vmem>>, vector<1x32x16xbf16>
    %76 = vector.shape_cast %75 : vector<1x32x16xbf16> to vector<32x16xbf16>
    %cst_69 = arith.constant dense<0.000000e+00> : vector<32x448xf32>
    %77 = tpu.matmul %76, %74, %cst_69 {dimension_numbers = #tpu.dot_dimension_numbers<[1], [0], [0], [1], [0, 0, 1, 1], [], []>} : vector<32x16xbf16>, vector<16x448xbf16>, vector<32x448xf32> -> vector<32x448xf32>
    %78 = arith.addf %72, %77 : vector<32x448xf32>
    %c0_70 = arith.constant 0 : index
    %c0_71 = arith.constant 0 : index
    %c70 = arith.constant 70 : index
    %79 = vector.load %arg1[%c0_70, %c0_71, %c70] : memref<1x16x640xbf16, #tpu.memory_space<vmem>>, vector<1x16x448xbf16>
    %80 = vector.shape_cast %79 : vector<1x16x448xbf16> to vector<16x448xbf16>
    %c13 = arith.constant 13 : index
    %c0_72 = arith.constant 0 : index
    %c0_73 = arith.constant 0 : index
    %81 = vector.load %arg2[%c13, %c0_72, %c0_73] : memref<25x32x16xbf16, #tpu.memory_space<vmem>>, vector<1x32x16xbf16>
    %82 = vector.shape_cast %81 : vector<1x32x16xbf16> to vector<32x16xbf16>
    %cst_74 = arith.constant dense<0.000000e+00> : vector<32x448xf32>
    %83 = tpu.matmul %82, %80, %cst_74 {dimension_numbers = #tpu.dot_dimension_numbers<[1], [0], [0], [1], [0, 0, 1, 1], [], []>} : vector<32x16xbf16>, vector<16x448xbf16>, vector<32x448xf32> -> vector<32x448xf32>
    %84 = arith.addf %78, %83 : vector<32x448xf32>
    %c0_75 = arith.constant 0 : index
    %c0_76 = arith.constant 0 : index
    %c72 = arith.constant 72 : index
    %85 = vector.load %arg1[%c0_75, %c0_76, %c72] : memref<1x16x640xbf16, #tpu.memory_space<vmem>>, vector<1x16x448xbf16>
    %86 = vector.shape_cast %85 : vector<1x16x448xbf16> to vector<16x448xbf16>
    %c14 = arith.constant 14 : index
    %c0_77 = arith.constant 0 : index
    %c0_78 = arith.constant 0 : index
    %87 = vector.load %arg2[%c14, %c0_77, %c0_78] : memref<25x32x16xbf16, #tpu.memory_space<vmem>>, vector<1x32x16xbf16>
    %88 = vector.shape_cast %87 : vector<1x32x16xbf16> to vector<32x16xbf16>
    %cst_79 = arith.constant dense<0.000000e+00> : vector<32x448xf32>
    %89 = tpu.matmul %88, %86, %cst_79 {dimension_numbers = #tpu.dot_dimension_numbers<[1], [0], [0], [1], [0, 0, 1, 1], [], []>} : vector<32x16xbf16>, vector<16x448xbf16>, vector<32x448xf32> -> vector<32x448xf32>
    %90 = arith.addf %84, %89 : vector<32x448xf32>
    %c0_80 = arith.constant 0 : index
    %c0_81 = arith.constant 0 : index
    %c96 = arith.constant 96 : index
    %91 = vector.load %arg1[%c0_80, %c0_81, %c96] : memref<1x16x640xbf16, #tpu.memory_space<vmem>>, vector<1x16x448xbf16>
    %92 = vector.shape_cast %91 : vector<1x16x448xbf16> to vector<16x448xbf16>
    %c15 = arith.constant 15 : index
    %c0_82 = arith.constant 0 : index
    %c0_83 = arith.constant 0 : index
    %93 = vector.load %arg2[%c15, %c0_82, %c0_83] : memref<25x32x16xbf16, #tpu.memory_space<vmem>>, vector<1x32x16xbf16>
    %94 = vector.shape_cast %93 : vector<1x32x16xbf16> to vector<32x16xbf16>
    %cst_84 = arith.constant dense<0.000000e+00> : vector<32x448xf32>
    %95 = tpu.matmul %94, %92, %cst_84 {dimension_numbers = #tpu.dot_dimension_numbers<[1], [0], [0], [1], [0, 0, 1, 1], [], []>} : vector<32x16xbf16>, vector<16x448xbf16>, vector<32x448xf32> -> vector<32x448xf32>
    %96 = arith.addf %90, %95 : vector<32x448xf32>
    %c0_85 = arith.constant 0 : index
    %c0_86 = arith.constant 0 : index
    %c98 = arith.constant 98 : index
    %97 = vector.load %arg1[%c0_85, %c0_86, %c98] : memref<1x16x640xbf16, #tpu.memory_space<vmem>>, vector<1x16x448xbf16>
    %98 = vector.shape_cast %97 : vector<1x16x448xbf16> to vector<16x448xbf16>
    %c16 = arith.constant 16 : index
    %c0_87 = arith.constant 0 : index
    %c0_88 = arith.constant 0 : index
    %99 = vector.load %arg2[%c16, %c0_87, %c0_88] : memref<25x32x16xbf16, #tpu.memory_space<vmem>>, vector<1x32x16xbf16>
    %100 = vector.shape_cast %99 : vector<1x32x16xbf16> to vector<32x16xbf16>
    %cst_89 = arith.constant dense<0.000000e+00> : vector<32x448xf32>
    %101 = tpu.matmul %100, %98, %cst_89 {dimension_numbers = #tpu.dot_dimension_numbers<[1], [0], [0], [1], [0, 0, 1, 1], [], []>} : vector<32x16xbf16>, vector<16x448xbf16>, vector<32x448xf32> -> vector<32x448xf32>
    %102 = arith.addf %96, %101 : vector<32x448xf32>
    %c0_90 = arith.constant 0 : index
    %c0_91 = arith.constant 0 : index
    %c100 = arith.constant 100 : index
    %103 = vector.load %arg1[%c0_90, %c0_91, %c100] : memref<1x16x640xbf16, #tpu.memory_space<vmem>>, vector<1x16x448xbf16>
    %104 = vector.shape_cast %103 : vector<1x16x448xbf16> to vector<16x448xbf16>
    %c17 = arith.constant 17 : index
    %c0_92 = arith.constant 0 : index
    %c0_93 = arith.constant 0 : index
    %105 = vector.load %arg2[%c17, %c0_92, %c0_93] : memref<25x32x16xbf16, #tpu.memory_space<vmem>>, vector<1x32x16xbf16>
    %106 = vector.shape_cast %105 : vector<1x32x16xbf16> to vector<32x16xbf16>
    %cst_94 = arith.constant dense<0.000000e+00> : vector<32x448xf32>
    %107 = tpu.matmul %106, %104, %cst_94 {dimension_numbers = #tpu.dot_dimension_numbers<[1], [0], [0], [1], [0, 0, 1, 1], [], []>} : vector<32x16xbf16>, vector<16x448xbf16>, vector<32x448xf32> -> vector<32x448xf32>
    %108 = arith.addf %102, %107 : vector<32x448xf32>
    %c0_95 = arith.constant 0 : index
    %c0_96 = arith.constant 0 : index
    %c102 = arith.constant 102 : index
    %109 = vector.load %arg1[%c0_95, %c0_96, %c102] : memref<1x16x640xbf16, #tpu.memory_space<vmem>>, vector<1x16x448xbf16>
    %110 = vector.shape_cast %109 : vector<1x16x448xbf16> to vector<16x448xbf16>
    %c18 = arith.constant 18 : index
    %c0_97 = arith.constant 0 : index
    %c0_98 = arith.constant 0 : index
    %111 = vector.load %arg2[%c18, %c0_97, %c0_98] : memref<25x32x16xbf16, #tpu.memory_space<vmem>>, vector<1x32x16xbf16>
    %112 = vector.shape_cast %111 : vector<1x32x16xbf16> to vector<32x16xbf16>
    %cst_99 = arith.constant dense<0.000000e+00> : vector<32x448xf32>
    %113 = tpu.matmul %112, %110, %cst_99 {dimension_numbers = #tpu.dot_dimension_numbers<[1], [0], [0], [1], [0, 0, 1, 1], [], []>} : vector<32x16xbf16>, vector<16x448xbf16>, vector<32x448xf32> -> vector<32x448xf32>
    %114 = arith.addf %108, %113 : vector<32x448xf32>
    %c0_100 = arith.constant 0 : index
    %c0_101 = arith.constant 0 : index
    %c104 = arith.constant 104 : index
    %115 = vector.load %arg1[%c0_100, %c0_101, %c104] : memref<1x16x640xbf16, #tpu.memory_space<vmem>>, vector<1x16x448xbf16>
    %116 = vector.shape_cast %115 : vector<1x16x448xbf16> to vector<16x448xbf16>
    %c19 = arith.constant 19 : index
    %c0_102 = arith.constant 0 : index
    %c0_103 = arith.constant 0 : index
    %117 = vector.load %arg2[%c19, %c0_102, %c0_103] : memref<25x32x16xbf16, #tpu.memory_space<vmem>>, vector<1x32x16xbf16>
    %118 = vector.shape_cast %117 : vector<1x32x16xbf16> to vector<32x16xbf16>
    %cst_104 = arith.constant dense<0.000000e+00> : vector<32x448xf32>
    %119 = tpu.matmul %118, %116, %cst_104 {dimension_numbers = #tpu.dot_dimension_numbers<[1], [0], [0], [1], [0, 0, 1, 1], [], []>} : vector<32x16xbf16>, vector<16x448xbf16>, vector<32x448xf32> -> vector<32x448xf32>
    %120 = arith.addf %114, %119 : vector<32x448xf32>
    %c0_105 = arith.constant 0 : index
    %c0_106 = arith.constant 0 : index
    %c128 = arith.constant 128 : index
    %121 = vector.load %arg1[%c0_105, %c0_106, %c128] : memref<1x16x640xbf16, #tpu.memory_space<vmem>>, vector<1x16x448xbf16>
    %122 = vector.shape_cast %121 : vector<1x16x448xbf16> to vector<16x448xbf16>
    %c20 = arith.constant 20 : index
    %c0_107 = arith.constant 0 : index
    %c0_108 = arith.constant 0 : index
    %123 = vector.load %arg2[%c20, %c0_107, %c0_108] : memref<25x32x16xbf16, #tpu.memory_space<vmem>>, vector<1x32x16xbf16>
    %124 = vector.shape_cast %123 : vector<1x32x16xbf16> to vector<32x16xbf16>
    %cst_109 = arith.constant dense<0.000000e+00> : vector<32x448xf32>
    %125 = tpu.matmul %124, %122, %cst_109 {dimension_numbers = #tpu.dot_dimension_numbers<[1], [0], [0], [1], [0, 0, 1, 1], [], []>} : vector<32x16xbf16>, vector<16x448xbf16>, vector<32x448xf32> -> vector<32x448xf32>
    %126 = arith.addf %120, %125 : vector<32x448xf32>
    %c0_110 = arith.constant 0 : index
    %c0_111 = arith.constant 0 : index
    %c130 = arith.constant 130 : index
    %127 = vector.load %arg1[%c0_110, %c0_111, %c130] : memref<1x16x640xbf16, #tpu.memory_space<vmem>>, vector<1x16x448xbf16>
    %128 = vector.shape_cast %127 : vector<1x16x448xbf16> to vector<16x448xbf16>
    %c21 = arith.constant 21 : index
    %c0_112 = arith.constant 0 : index
    %c0_113 = arith.constant 0 : index
    %129 = vector.load %arg2[%c21, %c0_112, %c0_113] : memref<25x32x16xbf16, #tpu.memory_space<vmem>>, vector<1x32x16xbf16>
    %130 = vector.shape_cast %129 : vector<1x32x16xbf16> to vector<32x16xbf16>
    %cst_114 = arith.constant dense<0.000000e+00> : vector<32x448xf32>
    %131 = tpu.matmul %130, %128, %cst_114 {dimension_numbers = #tpu.dot_dimension_numbers<[1], [0], [0], [1], [0, 0, 1, 1], [], []>} : vector<32x16xbf16>, vector<16x448xbf16>, vector<32x448xf32> -> vector<32x448xf32>
    %132 = arith.addf %126, %131 : vector<32x448xf32>
    %c0_115 = arith.constant 0 : index
    %c0_116 = arith.constant 0 : index
    %c132 = arith.constant 132 : index
    %133 = vector.load %arg1[%c0_115, %c0_116, %c132] : memref<1x16x640xbf16, #tpu.memory_space<vmem>>, vector<1x16x448xbf16>
    %134 = vector.shape_cast %133 : vector<1x16x448xbf16> to vector<16x448xbf16>
    %c22 = arith.constant 22 : index
    %c0_117 = arith.constant 0 : index
    %c0_118 = arith.constant 0 : index
    %135 = vector.load %arg2[%c22, %c0_117, %c0_118] : memref<25x32x16xbf16, #tpu.memory_space<vmem>>, vector<1x32x16xbf16>
    %136 = vector.shape_cast %135 : vector<1x32x16xbf16> to vector<32x16xbf16>
    %cst_119 = arith.constant dense<0.000000e+00> : vector<32x448xf32>
    %137 = tpu.matmul %136, %134, %cst_119 {dimension_numbers = #tpu.dot_dimension_numbers<[1], [0], [0], [1], [0, 0, 1, 1], [], []>} : vector<32x16xbf16>, vector<16x448xbf16>, vector<32x448xf32> -> vector<32x448xf32>
    %138 = arith.addf %132, %137 : vector<32x448xf32>
    %c0_120 = arith.constant 0 : index
    %c0_121 = arith.constant 0 : index
    %c134 = arith.constant 134 : index
    %139 = vector.load %arg1[%c0_120, %c0_121, %c134] : memref<1x16x640xbf16, #tpu.memory_space<vmem>>, vector<1x16x448xbf16>
    %140 = vector.shape_cast %139 : vector<1x16x448xbf16> to vector<16x448xbf16>
    %c23 = arith.constant 23 : index
    %c0_122 = arith.constant 0 : index
    %c0_123 = arith.constant 0 : index
    %141 = vector.load %arg2[%c23, %c0_122, %c0_123] : memref<25x32x16xbf16, #tpu.memory_space<vmem>>, vector<1x32x16xbf16>
    %142 = vector.shape_cast %141 : vector<1x32x16xbf16> to vector<32x16xbf16>
    %cst_124 = arith.constant dense<0.000000e+00> : vector<32x448xf32>
    %143 = tpu.matmul %142, %140, %cst_124 {dimension_numbers = #tpu.dot_dimension_numbers<[1], [0], [0], [1], [0, 0, 1, 1], [], []>} : vector<32x16xbf16>, vector<16x448xbf16>, vector<32x448xf32> -> vector<32x448xf32>
    %144 = arith.addf %138, %143 : vector<32x448xf32>
    %c0_125 = arith.constant 0 : index
    %c0_126 = arith.constant 0 : index
    %c136 = arith.constant 136 : index
    %145 = vector.load %arg1[%c0_125, %c0_126, %c136] : memref<1x16x640xbf16, #tpu.memory_space<vmem>>, vector<1x16x448xbf16>
    %146 = vector.shape_cast %145 : vector<1x16x448xbf16> to vector<16x448xbf16>
    %c24 = arith.constant 24 : index
    %c0_127 = arith.constant 0 : index
    %c0_128 = arith.constant 0 : index
    %147 = vector.load %arg2[%c24, %c0_127, %c0_128] : memref<25x32x16xbf16, #tpu.memory_space<vmem>>, vector<1x32x16xbf16>
    %148 = vector.shape_cast %147 : vector<1x32x16xbf16> to vector<32x16xbf16>
    %cst_129 = arith.constant dense<0.000000e+00> : vector<32x448xf32>
    %149 = tpu.matmul %148, %146, %cst_129 {dimension_numbers = #tpu.dot_dimension_numbers<[1], [0], [0], [1], [0, 0, 1, 1], [], []>} : vector<32x16xbf16>, vector<16x448xbf16>, vector<32x448xf32> -> vector<32x448xf32>
    %150 = arith.addf %144, %149 : vector<32x448xf32>
    %c0_130 = arith.constant 0 : index
    %c0_131 = arith.constant 0 : index
    %151 = vector.load %arg3[%c0_130, %c0_131] : memref<32x1xf32, #tpu.memory_space<vmem>>, vector<32x1xf32>
    %152 = vector.broadcast %151 : vector<32x1xf32> to vector<32x448xf32>
    %153 = arith.addf %150, %152 : vector<32x448xf32>
    %cst_132 = arith.constant 0.000000e+00 : f32
    %154 = vector.broadcast %cst_132 : f32 to vector<32x448xf32>
    %155 = arith.maximumf %153, %154 : vector<32x448xf32>
    %156 = vector.extract_strided_slice %155 {offsets = [0, 0], sizes = [32, 446], strides = [1, 1]} : vector<32x448xf32> to vector<32x446xf32>
    %157 = vector.extract_strided_slice %155 {offsets = [0, 2], sizes = [32, 446], strides = [1, 1]} : vector<32x448xf32> to vector<32x446xf32>
    %158 = arith.maximumf %156, %157 : vector<32x446xf32>
    %159 = vector.extract_strided_slice %158 {offsets = [0, 0], sizes = [32, 414], strides = [1, 1]} : vector<32x446xf32> to vector<32x414xf32>
    %160 = vector.extract_strided_slice %158 {offsets = [0, 32], sizes = [32, 414], strides = [1, 1]} : vector<32x446xf32> to vector<32x414xf32>
    %161 = arith.maximumf %159, %160 : vector<32x414xf32>
    %c0_133 = arith.constant 0 : index
    %c0_134 = arith.constant 0 : index
    %c0_135 = arith.constant 0 : index
    %162 = vector.load %arg4[%c0_133, %c0_134, %c0_135] : memref<10x32x414xbf16, #tpu.memory_space<vmem>>, vector<1x32x414xbf16>
    %163 = vector.shape_cast %162 : vector<1x32x414xbf16> to vector<32x414xbf16>
    %164 = arith.extf %163 : vector<32x414xbf16> to vector<32x414xf32>
    %165 = arith.mulf %161, %164 : vector<32x414xf32>
    %166 = vector.shape_cast %165 : vector<32x414xf32> to vector<1x32x414xf32>
    %cst_136 = arith.constant dense<0.000000e+00> : vector<1xf32>
    %167 = vector.multi_reduction <add>, %166, %cst_136 [1, 2] : vector<1x32x414xf32> to vector<1xf32>
    %168 = vector.shape_cast %167 : vector<1xf32> to vector<1x1x1xf32>
    %169 = vector.extract %168[0, 0, 0] : f32 from vector<1x1x1xf32>
    %170 = vector.broadcast %169 : f32 to vector<1x1xf32>
    %c1_137 = arith.constant 1 : index
    %c0_138 = arith.constant 0 : index
    %c0_139 = arith.constant 0 : index
    %171 = vector.load %arg4[%c1_137, %c0_138, %c0_139] : memref<10x32x414xbf16, #tpu.memory_space<vmem>>, vector<1x32x414xbf16>
    %172 = vector.shape_cast %171 : vector<1x32x414xbf16> to vector<32x414xbf16>
    %173 = arith.extf %172 : vector<32x414xbf16> to vector<32x414xf32>
    %174 = arith.mulf %161, %173 : vector<32x414xf32>
    %175 = vector.shape_cast %174 : vector<32x414xf32> to vector<1x32x414xf32>
    %cst_140 = arith.constant dense<0.000000e+00> : vector<1xf32>
    %176 = vector.multi_reduction <add>, %175, %cst_140 [1, 2] : vector<1x32x414xf32> to vector<1xf32>
    %177 = vector.shape_cast %176 : vector<1xf32> to vector<1x1x1xf32>
    %178 = vector.extract %177[0, 0, 0] : f32 from vector<1x1x1xf32>
    %179 = vector.broadcast %178 : f32 to vector<1x1xf32>
    %c2_141 = arith.constant 2 : index
    %c0_142 = arith.constant 0 : index
    %c0_143 = arith.constant 0 : index
    %180 = vector.load %arg4[%c2_141, %c0_142, %c0_143] : memref<10x32x414xbf16, #tpu.memory_space<vmem>>, vector<1x32x414xbf16>
    %181 = vector.shape_cast %180 : vector<1x32x414xbf16> to vector<32x414xbf16>
    %182 = arith.extf %181 : vector<32x414xbf16> to vector<32x414xf32>
    %183 = arith.mulf %161, %182 : vector<32x414xf32>
    %184 = vector.shape_cast %183 : vector<32x414xf32> to vector<1x32x414xf32>
    %cst_144 = arith.constant dense<0.000000e+00> : vector<1xf32>
    %185 = vector.multi_reduction <add>, %184, %cst_144 [1, 2] : vector<1x32x414xf32> to vector<1xf32>
    %186 = vector.shape_cast %185 : vector<1xf32> to vector<1x1x1xf32>
    %187 = vector.extract %186[0, 0, 0] : f32 from vector<1x1x1xf32>
    %188 = vector.broadcast %187 : f32 to vector<1x1xf32>
    %c3_145 = arith.constant 3 : index
    %c0_146 = arith.constant 0 : index
    %c0_147 = arith.constant 0 : index
    %189 = vector.load %arg4[%c3_145, %c0_146, %c0_147] : memref<10x32x414xbf16, #tpu.memory_space<vmem>>, vector<1x32x414xbf16>
    %190 = vector.shape_cast %189 : vector<1x32x414xbf16> to vector<32x414xbf16>
    %191 = arith.extf %190 : vector<32x414xbf16> to vector<32x414xf32>
    %192 = arith.mulf %161, %191 : vector<32x414xf32>
    %193 = vector.shape_cast %192 : vector<32x414xf32> to vector<1x32x414xf32>
    %cst_148 = arith.constant dense<0.000000e+00> : vector<1xf32>
    %194 = vector.multi_reduction <add>, %193, %cst_148 [1, 2] : vector<1x32x414xf32> to vector<1xf32>
    %195 = vector.shape_cast %194 : vector<1xf32> to vector<1x1x1xf32>
    %196 = vector.extract %195[0, 0, 0] : f32 from vector<1x1x1xf32>
    %197 = vector.broadcast %196 : f32 to vector<1x1xf32>
    %c4_149 = arith.constant 4 : index
    %c0_150 = arith.constant 0 : index
    %c0_151 = arith.constant 0 : index
    %198 = vector.load %arg4[%c4_149, %c0_150, %c0_151] : memref<10x32x414xbf16, #tpu.memory_space<vmem>>, vector<1x32x414xbf16>
    %199 = vector.shape_cast %198 : vector<1x32x414xbf16> to vector<32x414xbf16>
    %200 = arith.extf %199 : vector<32x414xbf16> to vector<32x414xf32>
    %201 = arith.mulf %161, %200 : vector<32x414xf32>
    %202 = vector.shape_cast %201 : vector<32x414xf32> to vector<1x32x414xf32>
    %cst_152 = arith.constant dense<0.000000e+00> : vector<1xf32>
    %203 = vector.multi_reduction <add>, %202, %cst_152 [1, 2] : vector<1x32x414xf32> to vector<1xf32>
    %204 = vector.shape_cast %203 : vector<1xf32> to vector<1x1x1xf32>
    %205 = vector.extract %204[0, 0, 0] : f32 from vector<1x1x1xf32>
    %206 = vector.broadcast %205 : f32 to vector<1x1xf32>
    %c5_153 = arith.constant 5 : index
    %c0_154 = arith.constant 0 : index
    %c0_155 = arith.constant 0 : index
    %207 = vector.load %arg4[%c5_153, %c0_154, %c0_155] : memref<10x32x414xbf16, #tpu.memory_space<vmem>>, vector<1x32x414xbf16>
    %208 = vector.shape_cast %207 : vector<1x32x414xbf16> to vector<32x414xbf16>
    %209 = arith.extf %208 : vector<32x414xbf16> to vector<32x414xf32>
    %210 = arith.mulf %161, %209 : vector<32x414xf32>
    %211 = vector.shape_cast %210 : vector<32x414xf32> to vector<1x32x414xf32>
    %cst_156 = arith.constant dense<0.000000e+00> : vector<1xf32>
    %212 = vector.multi_reduction <add>, %211, %cst_156 [1, 2] : vector<1x32x414xf32> to vector<1xf32>
    %213 = vector.shape_cast %212 : vector<1xf32> to vector<1x1x1xf32>
    %214 = vector.extract %213[0, 0, 0] : f32 from vector<1x1x1xf32>
    %215 = vector.broadcast %214 : f32 to vector<1x1xf32>
    %c6_157 = arith.constant 6 : index
    %c0_158 = arith.constant 0 : index
    %c0_159 = arith.constant 0 : index
    %216 = vector.load %arg4[%c6_157, %c0_158, %c0_159] : memref<10x32x414xbf16, #tpu.memory_space<vmem>>, vector<1x32x414xbf16>
    %217 = vector.shape_cast %216 : vector<1x32x414xbf16> to vector<32x414xbf16>
    %218 = arith.extf %217 : vector<32x414xbf16> to vector<32x414xf32>
    %219 = arith.mulf %161, %218 : vector<32x414xf32>
    %220 = vector.shape_cast %219 : vector<32x414xf32> to vector<1x32x414xf32>
    %cst_160 = arith.constant dense<0.000000e+00> : vector<1xf32>
    %221 = vector.multi_reduction <add>, %220, %cst_160 [1, 2] : vector<1x32x414xf32> to vector<1xf32>
    %222 = vector.shape_cast %221 : vector<1xf32> to vector<1x1x1xf32>
    %223 = vector.extract %222[0, 0, 0] : f32 from vector<1x1x1xf32>
    %224 = vector.broadcast %223 : f32 to vector<1x1xf32>
    %c7_161 = arith.constant 7 : index
    %c0_162 = arith.constant 0 : index
    %c0_163 = arith.constant 0 : index
    %225 = vector.load %arg4[%c7_161, %c0_162, %c0_163] : memref<10x32x414xbf16, #tpu.memory_space<vmem>>, vector<1x32x414xbf16>
    %226 = vector.shape_cast %225 : vector<1x32x414xbf16> to vector<32x414xbf16>
    %227 = arith.extf %226 : vector<32x414xbf16> to vector<32x414xf32>
    %228 = arith.mulf %161, %227 : vector<32x414xf32>
    %229 = vector.shape_cast %228 : vector<32x414xf32> to vector<1x32x414xf32>
    %cst_164 = arith.constant dense<0.000000e+00> : vector<1xf32>
    %230 = vector.multi_reduction <add>, %229, %cst_164 [1, 2] : vector<1x32x414xf32> to vector<1xf32>
    %231 = vector.shape_cast %230 : vector<1xf32> to vector<1x1x1xf32>
    %232 = vector.extract %231[0, 0, 0] : f32 from vector<1x1x1xf32>
    %233 = vector.broadcast %232 : f32 to vector<1x1xf32>
    %c8_165 = arith.constant 8 : index
    %c0_166 = arith.constant 0 : index
    %c0_167 = arith.constant 0 : index
    %234 = vector.load %arg4[%c8_165, %c0_166, %c0_167] : memref<10x32x414xbf16, #tpu.memory_space<vmem>>, vector<1x32x414xbf16>
    %235 = vector.shape_cast %234 : vector<1x32x414xbf16> to vector<32x414xbf16>
    %236 = arith.extf %235 : vector<32x414xbf16> to vector<32x414xf32>
    %237 = arith.mulf %161, %236 : vector<32x414xf32>
    %238 = vector.shape_cast %237 : vector<32x414xf32> to vector<1x32x414xf32>
    %cst_168 = arith.constant dense<0.000000e+00> : vector<1xf32>
    %239 = vector.multi_reduction <add>, %238, %cst_168 [1, 2] : vector<1x32x414xf32> to vector<1xf32>
    %240 = vector.shape_cast %239 : vector<1xf32> to vector<1x1x1xf32>
    %241 = vector.extract %240[0, 0, 0] : f32 from vector<1x1x1xf32>
    %242 = vector.broadcast %241 : f32 to vector<1x1xf32>
    %c9_169 = arith.constant 9 : index
    %c0_170 = arith.constant 0 : index
    %c0_171 = arith.constant 0 : index
    %243 = vector.load %arg4[%c9_169, %c0_170, %c0_171] : memref<10x32x414xbf16, #tpu.memory_space<vmem>>, vector<1x32x414xbf16>
    %244 = vector.shape_cast %243 : vector<1x32x414xbf16> to vector<32x414xbf16>
    %245 = arith.extf %244 : vector<32x414xbf16> to vector<32x414xf32>
    %246 = arith.mulf %161, %245 : vector<32x414xf32>
    %247 = vector.shape_cast %246 : vector<32x414xf32> to vector<1x32x414xf32>
    %cst_172 = arith.constant dense<0.000000e+00> : vector<1xf32>
    %248 = vector.multi_reduction <add>, %247, %cst_172 [1, 2] : vector<1x32x414xf32> to vector<1xf32>
    %249 = vector.shape_cast %248 : vector<1xf32> to vector<1x1x1xf32>
    %250 = vector.extract %249[0, 0, 0] : f32 from vector<1x1x1xf32>
    %251 = vector.broadcast %250 : f32 to vector<1x1xf32>
    %252 = tpu.concatenate %170, %179, %188, %197, %206, %215, %224, %233, %242, %251 in 1 : vector<1x1xf32>, vector<1x1xf32>, vector<1x1xf32>, vector<1x1xf32>, vector<1x1xf32>, vector<1x1xf32>, vector<1x1xf32>, vector<1x1xf32>, vector<1x1xf32>, vector<1x1xf32> -> vector<1x10xf32>
    %c0_173 = arith.constant 0 : index
    %c0_174 = arith.constant 0 : index
    %253 = vector.load %arg5[%c0_173, %c0_174] : memref<1x10xf32, #tpu.memory_space<vmem>>, vector<1x10xf32>
    %254 = arith.addf %252, %253 : vector<1x10xf32>
    %c0_175 = arith.constant 0 : index
    %c0_176 = arith.constant 0 : index
    %c0_177 = arith.constant 0 : index
    %255 = vector.load %arg6[%c0_175, %c0_176, %c0_177] : memref<1x1x10xf32, #tpu.memory_space<vmem>>, vector<1x1x10xf32>
    %256 = vector.shape_cast %255 : vector<1x1x10xf32> to vector<1x10xf32>
    %257 = vector.shape_cast %254 : vector<1x10xf32> to vector<1x1x10xf32>
    tpu.vector_store %arg6[%c0_175, %c0_176, %c0_177], %257 {strides = array<i32>} : memref<1x1x10xf32, #tpu.memory_space<vmem>>, vector<1x1x10xf32>,
    return
  }
  func.func @transform_0(%arg0: i32) -> (i32, i32, i32) {
    %c0_i32 = arith.constant 0 : i32
    %c0_i32_0 = arith.constant 0 : i32
    %c0_i32_1 = arith.constant 0 : i32
    return %arg0, %c0_i32, %c0_i32_0 : i32, i32, i32
  }
  func.func @transform_1(%arg0: i32) -> (i32, i32, i32) {
    %c0_i32 = arith.constant 0 : i32
    %c0_i32_0 = arith.constant 0 : i32
    %c0_i32_1 = arith.constant 0 : i32
    %c0_i32_2 = arith.constant 0 : i32
    return %c0_i32, %c0_i32_0, %c0_i32_1 : i32, i32, i32
  }
  func.func @transform_2(%arg0: i32) -> (i32, i32) {
    %c0_i32 = arith.constant 0 : i32
    %c0_i32_0 = arith.constant 0 : i32
    %c0_i32_1 = arith.constant 0 : i32
    return %c0_i32, %c0_i32_0 : i32, i32
  }
  func.func @transform_3(%arg0: i32) -> (i32, i32, i32) {
    %c0_i32 = arith.constant 0 : i32
    %c0_i32_0 = arith.constant 0 : i32
    %c0_i32_1 = arith.constant 0 : i32
    %c0_i32_2 = arith.constant 0 : i32
    return %c0_i32, %c0_i32_0, %c0_i32_1 : i32, i32, i32
  }
  func.func @transform_4(%arg0: i32) -> (i32, i32) {
    %c0_i32 = arith.constant 0 : i32
    %c0_i32_0 = arith.constant 0 : i32
    %c0_i32_1 = arith.constant 0 : i32
    return %c0_i32, %c0_i32_0 : i32, i32
  }
  func.func @transform_5(%arg0: i32) -> (i32, i32, i32) {
    %c0_i32 = arith.constant 0 : i32
    %c0_i32_0 = arith.constant 0 : i32
    %c0_i32_1 = arith.constant 0 : i32
    return %arg0, %c0_i32, %c0_i32_0 : i32, i32, i32
  }
}

</mosaic_0001>

<bundles_post_ra>
// kernel: cnn_forward.2
= control target key start
LH: loop header
LB: loop body
LE: loop exit
PB: predicated region body
PF: predicated region fallthrough
CT: control target
= control target key end

     0   :  { %s3634_s12 = smov 0   ;;  %s6404_s0 = inlined_call_operand.vmem [shape: f32[2,1,1152], index: 0, kind: input, shape index: {}]   ;;  %s6405_s1 = inlined_call_operand.vmem [shape: f32[16,25], index: 1, kind: input, shape index: {}]   ;;  %s6406_s2 = inlined_call_operand.vmem [shape: f32[16,1], index: 2, kind: input, shape index: {}]   ;;  %s6407_s3 = inlined_call_operand.vmem [shape: bf16[2,16,640], index: 3, kind: output, shape index: {}]  }
   0x1 LB: > { %s3363_s13 = sadd.s32 4294967295, %s3564_s12   ;;  %p3367_p0 = scmp.ge.s32.totalorder %s3564_s12, 1  ;;  %s3564_s12 = sphi %s3634_s12, %s13_s12  }
   0x2   : > { %p136_p1 = scmp.lt.s32.totalorder %s3564_s12, 3 }
   0x4   : > { %p137_p2 = pnand %p3367_p0, %p136_p1 }
   0x6   : > { %140 = sbr.rel (%p137_p2) target bundleno = 3960 (0xf78), region = 32 }
   0xb   : > { %v3645_v0 = vld [vmem:[%s6405_s1] sm:$0xff]  ;;  %p159_p3 = scmp.lt.s32.totalorder %s3363_s13, 1  ;;  %v3566_v1 = vmov 1   ;;  %v3567_v2 = vmov 0   ;;  %v3568_v3 = vmov 2   ;;  %v3658_v4 = vld [vmem:[%s6405_s1 + $0x8] sm:$0xff] }
   0xc   : > { %3430 = vset.pattern.permute.xlu1 %v3566_v1  ;;  %3429 = vset.pattern.permute.xlu0 %v3567_v2  ;;  %v3569_v5 = vmov 3   ;;  %s3570_s26 = smov 127   ;;  %s3571_s27 = smov 126   ;;  %v3573_v61 = vmov 4   ;;  %vm2270_vm0 = vcmask 236544   ;;  %vm315_vm1 = vcmask 1039360  }
   0xd   : > { %227 = vperm.xlu1 %3430, %v3645_v0   ;;  %s7111_s13 = smov (!%p159_p3, %s3363_s13), 1  ;;  %174 = vperm.xlu0 %3429, %v3645_v0   ;;  %s3572_s28 = smov 125   ;;  %vm430_vm2 = vcmask 1031168   ;;  %vm545_vm3 = vcmask 1022976   ;;  %vm660_vm4 = vcmask 1014784   ;;  %vm775_vm5 = vcmask 785408  }
   0xe   : > { %3431 = vset.pattern.permute.xlu2 %v3568_v3  ;;  %s3372_s16 = smul.u32 40, %s7111_s13  ;;  %s3574_s29 = smov 124   ;;  %vm890_vm6 = vcmask 777216   ;;  %vm1005_vm7 = vcmask 769024   ;;  %vm1120_vm8 = vcmask 760832   ;;  %vm1235_vm9 = vcmask 752640  }
   0xf   : > { %359 = vperm.xlu2 %3431, %v3645_v0   ;;  %s3371_s22 = smul.u32 9, %s7111_s13  ;;  %s3576_s30 = smov 96   ;;  %vm1350_vm10 = vcmask 523264   ;;  %vm1465_vm11 = vcmask 515072   ;;  %vm1580_vm12 = vcmask 506880   ;;  %vm1695_vm13 = vcmask 498688  }
  0x10   : > { %s3653_s19 = scalar_lea.vmem %s6407_s3, %s3372_s16  ;;  %s3578_s4 = smov 95   ;;  %vm1810_vm14 = vcmask 490496   ;;  %vm1925_vm15 = vcmask 261120  }
  0x11   : > { %3160 = vst [vmem:[%s3653_s19 + $0x10] sm:$0xf] %v3567_v2  ;;  %s3674_s25 = scalar_lea.vmem %s6404_s0, %s3371_s22  ;;  %s3580_s5 = smov 94  }
  0x12   : > { %3163 = vst [vmem:[%s3653_s19 + $0x24] sm:$0xf] %v3567_v2  ;;  %v225_v6 = vld [vmem:[%s3674_s25] sm:$0xff]  ;;  %s3582_s6 = smov 93   ;;  %s3584_s7 = smov 92  }
  0x13   : > { %3158 = vst [vmem:[%s3653_s19] sm:$0xff] %v3567_v2  ;;  %v3677_v7 = vperm.slane %v225_v6, 3  ;;  %v3679_v8 = vperm.slane %v225_v6, 2  ;;  %v3681_v9 = vperm.slane %v225_v6, 0  ;;  %v3689_v14 = vperm.slane %v225_v6, 6  ;;  %s3586_s8 = smov 64   ;;  %s3588_s14 = smov 63  }
  0x14   : > { %3159 = vst [vmem:[%s3653_s19 + $0x8] sm:$0xff] %v3567_v2  ;;  %v3691_v15 = vperm.slane %v225_v6, 5  ;;  %v3693_v16 = vperm.slane %v225_v6, 1  ;;  %v3701_v21 = vperm.slane %v225_v6, 4  ;;  %v3709_v25 = vperm.slane %v225_v6, 7  ;;  %s3590_s15 = smov 62  }
  0x15   : > { %231 = vperm.xlu1 %3430, %v3658_v4   ;;  %179 = vperm.xlu0 %3429, %v3658_v4   ;;  %3161 = vst [vmem:[%s3653_s19 + $0x14] sm:$0xff] %v3567_v2  ;;  %s3592_s16 = smov 61   ;;  %s3594_s17 = smov 60  }
  0x16   : > { %3162 = vst [vmem:[%s3653_s19 + $0x1c] sm:$0xff] %v3567_v2  ;;  %s3596_s18 = smov 32   ;;  %s3598_s20 = smov 31  }
  0x17   : > { %6597 = vst [vmem:[#allocation2_spill] sm:$0xff] %v3701_v21  ;;  %3436 = vset.pattern.permute.xlu2 %v3573_v61  ;;  %s3600_s21 = smov 30   ;;  %s3602_s22 = smov 29  }
  0x18   : > { %6598 = vst [vmem:[#allocation3_spill] sm:$0xff] %v3709_v25  ;;  %s3604_s23 = smov 28   ;;  %s3613_s13 = smov 100  }
  0x1d   : > { %3432 = vset.pattern.permute.xlu0 %v3568_v3  ;;  %3434 = vset.pattern.permute.xlu1 %v3569_v5 }
  0x1e   : > { %363 = vperm.xlu0 %3432, %v3658_v4   ;;  %478 = vperm.xlu1 %3434, %v3658_v4  }
  0x26   : > { %3433 = vset.pattern.permute.xlu0 %v3569_v5  ;;  %3435 = vset.pattern.permute.xlu1 %v3573_v61 }
  0x27   : > { %474 = vperm.xlu0 %3433, %v3645_v0  }
  0x69   : > { %v360_v33 = vpop.permute.xlu2 %359 }
  0x6a   : > { %v366_v34 = vmul.f32 %v360_v33, %v3681_v9  ;;  %v370_v35 = vmul.f32 %v360_v33, %v3701_v21  ;;  %v368_v38 = vmul.f32 %v360_v33, %v3679_v8  ;;  %v373_v39 = vmul.f32 %v360_v33, %v3709_v25 }
  0x6b   : > { %v367_v40 = vmul.f32 %v360_v33, %v3693_v16  ;;  %v371_v43 = vmul.f32 %v360_v33, %v3691_v15  ;;  %v369_v44 = vmul.f32 %v360_v33, %v3677_v7  ;;  %v372_v47 = vmul.f32 %v360_v33, %v3689_v14 }
  0x7f   : > { %v228_v10 = vpop.permute.xlu1 %227  ;;  %v3717_v29 = vpop.permute.xlu0 %174 }
  0x80   : > { %v254_v11 = vmul.f32 %v3677_v7, %v228_v10  ;;  %v253_v12 = vmul.f32 %v3679_v8, %v228_v10  ;;  %v251_v13 = vmul.f32 %v3681_v9, %v228_v10  ;;  %v257_v17 = vmul.f32 %v3689_v14, %v228_v10 }
  0x81   : > { %v256_v18 = vmul.f32 %v3691_v15, %v228_v10  ;;  %v252_v19 = vmul.f32 %v3693_v16, %v228_v10  ;;  %v255_v24 = vmul.f32 %v3701_v21, %v228_v10  ;;  %v258_v28 = vmul.f32 %v3709_v25, %v228_v10 }
  0x82   : > { %289 = vrot.lane.b32.xlu1 %v254_v11, %s3570_s26  ;;  %287 = vrot.lane.b32.xlu0 %v253_v12, %s3570_s26 }
  0x83   : > { %283 = vrot.lane.b32.xlu2 %v251_v13, %s3570_s26 }
  0x87   : > { %v232_v20 = vpop.permute.xlu1 %231  ;;  %v3728_v37 = vpop.permute.xlu0 %179 }
  0x88   : > { %v260_v22 = vmul.f32 %v3693_v16, %v232_v20  ;;  %v259_v23 = vmul.f32 %v3681_v9, %v232_v20  ;;  %v263_v26 = vmul.f32 %v3701_v21, %v232_v20  ;;  %v262_v27 = vmul.f32 %v3677_v7, %v232_v20 }
  0x89   : > { %v266_v30 = vmul.f32 %v3709_v25, %v232_v20  ;;  %v265_v31 = vmul.f32 %v3689_v14, %v232_v20  ;;  %v261_v32 = vmul.f32 %v3679_v8, %v232_v20  ;;  %v264_v36 = vmul.f32 %v3691_v15, %v232_v20 }
  0x8a   : > { %295 = vrot.lane.b32.xlu1 %v257_v17, %s3570_s26  ;;  %293 = vrot.lane.b32.xlu0 %v256_v18, %s3570_s26 }
  0x8b   : > { %285 = vrot.lane.b32.xlu2 %v252_v19, %s3570_s26 }
  0x90   : > { %v364_v41 = vpop.permute.xlu0 %363  ;;  %v479_v55 = vpop.permute.xlu1 %478 }
  0x91   : > { %v376_v42 = vmul.f32 %v364_v41, %v3679_v8  ;;  %v374_v45 = vmul.f32 %v364_v41, %v3681_v9  ;;  %v379_v46 = vmul.f32 %v364_v41, %v3691_v15  ;;  %v377_v50 = vmul.f32 %v364_v41, %v3677_v7 }
  0x92   : > { %301 = vrot.lane.b32.xlu1 %v260_v22, %s3570_s26  ;;  %299 = vrot.lane.b32.xlu0 %v259_v23, %s3570_s26  ;;  %v375_v51 = vmul.f32 %v364_v41, %v3693_v16  ;;  %v380_v53 = vmul.f32 %v364_v41, %v3689_v14  ;;  %v378_v54 = vmul.f32 %v364_v41, %v3701_v21 }
  0x93   : > { %291 = vrot.lane.b32.xlu2 %v255_v24, %s3570_s26  ;;  %v490_v57 = vmul.f32 %v479_v55, %v3693_v16  ;;  %v381_v58 = vmul.f32 %v364_v41, %v3709_v25  ;;  %v493_v60 = vmul.f32 %v479_v55, %v3701_v21  ;;  %v496_v2 = vmul.f32 %v479_v55, %v3709_v25 }
  0x94   : > { %v491_v10 = vmul.f32 %v479_v55, %v3679_v8  ;;  %v494_v17 = vmul.f32 %v479_v55, %v3691_v15  ;;  %v489_v18 = vmul.f32 %v479_v55, %v3681_v9  ;;  %v492_v22 = vmul.f32 %v479_v55, %v3677_v7 }
  0x99   : > { %v475_v48 = vpop.permute.xlu0 %474 }
  0x9a   : > { %307 = vrot.lane.b32.xlu1 %v263_v26, %s3570_s26  ;;  %305 = vrot.lane.b32.xlu0 %v262_v27, %s3570_s26  ;;  %v484_v49 = vmul.f32 %v475_v48, %v3677_v7  ;;  %v487_v52 = vmul.f32 %v475_v48, %v3689_v14  ;;  %v482_v56 = vmul.f32 %v475_v48, %v3693_v16 }
  0x9b   : > { %297 = vrot.lane.b32.xlu2 %v258_v28, %s3570_s26  ;;  %v485_v62 = vmul.f32 %v475_v48, %v3701_v21  ;;  %v481_v63 = vmul.f32 %v475_v48, %v3681_v9  ;;  %v488_v3 = vmul.f32 %v475_v48, %v3709_v25  ;;  %v483_v5 = vmul.f32 %v475_v48, %v3679_v8 }
  0x9c   : > { %v486_v11 = vmul.f32 %v475_v48, %v3691_v15  ;;  %v495_v26 = vmul.f32 %v479_v55, %v3689_v14 }
  0xa2   : > { %313 = vrot.lane.b32.xlu1 %v266_v30, %s3570_s26  ;;  %311 = vrot.lane.b32.xlu0 %v265_v31, %s3570_s26 }
  0xa3   : > { %303 = vrot.lane.b32.xlu2 %v261_v32, %s3570_s26 }
  0xaa   : > { %398 = vrot.lane.b32.xlu1 %v366_v34, %s3571_s27  ;;  %406 = vrot.lane.b32.xlu0 %v370_v35, %s3571_s27 }
  0xab   : > { %309 = vrot.lane.b32.xlu2 %v264_v36, %s3570_s26 }
  0xb2   : > { %402 = vrot.lane.b32.xlu1 %v368_v38, %s3571_s27  ;;  %412 = vrot.lane.b32.xlu0 %v373_v39, %s3571_s27 }
  0xb3   : > { %400 = vrot.lane.b32.xlu2 %v367_v40, %s3571_s27 }
  0xba   : > { %408 = vrot.lane.b32.xlu1 %v371_v43, %s3571_s27  ;;  %418 = vrot.lane.b32.xlu0 %v376_v42, %s3571_s27 }
  0xbb   : > { %404 = vrot.lane.b32.xlu2 %v369_v44, %s3571_s27 }
  0xc2   : > { %414 = vrot.lane.b32.xlu1 %v374_v45, %s3571_s27  ;;  %424 = vrot.lane.b32.xlu0 %v379_v46, %s3571_s27 }
  0xc3   : > { %410 = vrot.lane.b32.xlu2 %v372_v47, %s3571_s27 }
  0xca   : > { %420 = vrot.lane.b32.xlu1 %v377_v50, %s3571_s27  ;;  %519 = vrot.lane.b32.xlu0 %v484_v49, %s3572_s28 }
  0xcb   : > { %416 = vrot.lane.b32.xlu2 %v375_v51, %s3571_s27 }
  0xd2   : > { %426 = vrot.lane.b32.xlu1 %v380_v53, %s3571_s27  ;;  %525 = vrot.lane.b32.xlu0 %v487_v52, %s3572_s28 }
  0xd3   : > { %422 = vrot.lane.b32.xlu2 %v378_v54, %s3571_s27 }
  0xda   : > { %515 = vrot.lane.b32.xlu1 %v482_v56, %s3572_s28  ;;  %531 = vrot.lane.b32.xlu0 %v490_v57, %s3572_s28 }
  0xdb   : > { %428 = vrot.lane.b32.xlu2 %v381_v58, %s3571_s27  ;;  %v3575_v58 = vmov 5  }
  0xdd   : > { %v3769_v59 = vpop.permute.xlu2 %283 }
  0xe2   : > { %521 = vrot.lane.b32.xlu1 %v485_v62, %s3572_s28  ;;  %537 = vrot.lane.b32.xlu0 %v493_v60, %s3572_s28 }
  0xe3   : > { %513 = vrot.lane.b32.xlu2 %v481_v63, %s3572_s28 }
  0xe5   : > { %v3777_v1 = vpop.permute.xlu2 %285 }
  0xea   : > { %527 = vrot.lane.b32.xlu1 %v488_v3, %s3572_s28  ;;  %543 = vrot.lane.b32.xlu0 %v496_v2, %s3572_s28 }
  0xeb   : > { %517 = vrot.lane.b32.xlu2 %v483_v5, %s3572_s28 }
  0xed   : > { %v3785_v6 = vpop.permute.xlu2 %291 }
  0xf2   : > { %533 = vrot.lane.b32.xlu1 %v491_v10, %s3572_s28 }
  0xf3   : > { %523 = vrot.lane.b32.xlu2 %v486_v11, %s3572_s28 }
  0xf4   : > { %v3791_v12 = vpop.permute.xlu1 %289 }
  0xf5   : > { %v3793_v13 = vpop.permute.xlu2 %297 }
  0xfa   : > { %539 = vrot.lane.b32.xlu1 %v494_v17, %s3572_s28 }
  0xfb   : > { %529 = vrot.lane.b32.xlu2 %v489_v18, %s3572_s28 }
  0xfc   : > { %v3799_v19 = vpop.permute.xlu1 %295 }
  0xfd   : > { %v3801_v20 = vpop.permute.xlu2 %303 }
 0x102   : > { %589 = vperm.xlu1 %3435, %v3645_v0  }
 0x103   : > { %535 = vrot.lane.b32.xlu2 %v492_v22, %s3572_s28 }
 0x104   : > { %v3806_v23 = vpop.permute.xlu1 %301 }
 0x105   : > { %v3808_v24 = vpop.permute.xlu2 %309 }
 0x10a   : > { %3437 = vset.pattern.permute.xlu1 %v3575_v58 }
 0x10b   : > { %541 = vrot.lane.b32.xlu2 %v495_v26, %s3572_s28 }
 0x10c   : > { %v3812_v27 = vpop.permute.xlu1 %307 }
 0x10d   : > { %v3814_v28 = vpop.permute.xlu2 %400 }
 0x113   : > { %593 = vperm.xlu2 %3436, %v3658_v4  }
 0x114   : > { %v3817_v30 = vpop.permute.xlu1 %313 }
 0x115   : > { %v3819_v31 = vpop.permute.xlu2 %404 }
 0x11b   : > { %3438 = vset.pattern.permute.xlu2 %v3575_v58 }
 0x11c   : > { %v3821_v32 = vpop.permute.xlu1 %398 }
 0x11d   : > { %v3823_v33 = vpop.permute.xlu2 %410 }
 0x124   : > { %v3825_v34 = vpop.permute.xlu1 %402 }
 0x125   : > { %v3827_v35 = vpop.permute.xlu2 %416 }
 0x12c   : > { %v3829_v36 = vpop.permute.xlu1 %408 }
 0x12d   : > { %v3831_v38 = vpop.permute.xlu2 %422 }
 0x134   : > { %v3833_v39 = vpop.permute.xlu1 %414 }
 0x135   : > { %v3837_v41 = vpop.permute.xlu2 %428 }
 0x13c   : > { %v3835_v40 = vpop.permute.xlu1 %420 }
 0x13d   : > { %v3841_v43 = vpop.permute.xlu2 %513 }
 0x13e   : > { %6599 = vst [vmem:[#allocation4_spill] sm:$0xff] %v3841_v43 }
 0x144   : > { %v3839_v42 = vpop.permute.xlu1 %426 }
 0x145   : > { %v3845_v45 = vpop.permute.xlu2 %517 }
 0x146   : > { %6601 = vst [vmem:[#allocation6_spill] sm:$0xff] %v3845_v45 }
 0x14c   : > { %v3843_v44 = vpop.permute.xlu1 %515 }
 0x14d   : > { %6600 = vst [vmem:[#allocation5_spill] sm:$0xff] %v3843_v44  ;;  %v3849_v47 = vpop.permute.xlu2 %523 }
 0x14e   : > { %6603 = vst [vmem:[#allocation8_spill] sm:$0xff] %v3849_v47  ;;  %v322_v47 = vsel %vm315_vm1, %v3799_v19, %v3793_v13  ;;  %v210_v13 = vmul.f32 %v3689_v14, %v3728_v37 }
 0x154   : > { %v3847_v46 = vpop.permute.xlu1 %521 }
 0x155   : > { %6602 = vst [vmem:[#allocation7_spill] sm:$0xff] %v3847_v46  ;;  %v3855_v50 = vpop.permute.xlu2 %529 }
 0x156   : > { %6606 = vst [vmem:[#allocation11_spill] sm:$0xff] %v3855_v50  ;;  %v206_v50 = vmul.f32 %v3679_v8, %v3728_v37 }
 0x15c   : > { %v3851_v48 = vpop.permute.xlu1 %527 }
 0x15d   : > { %6604 = vst [vmem:[#allocation9_spill] sm:$0xff] %v3851_v48  ;;  %v3859_v52 = vpop.permute.xlu2 %535 }
 0x15e   : > { %6608 = vst [vmem:[#allocation13_spill] sm:$0xff] %v3859_v52 }
 0x164   : > { %v3853_v49 = vpop.permute.xlu1 %533 }
 0x165   : > { %6605 = vst [vmem:[#allocation10_spill] sm:$0xff] %v3853_v49  ;;  %v3867_v57 = vpop.permute.xlu2 %541 }
 0x166   : > { %6609 = vst [vmem:[#allocation14_spill] sm:$0xff] %v3867_v57 }
 0x16c   : > { %v3857_v51 = vpop.permute.xlu1 %539 }
 0x16d   : > { %6607 = vst [vmem:[#allocation12_spill] sm:$0xff] %v3857_v51  ;;  %v594_v63 = vpop.permute.xlu2 %593 }
 0x16e   : > { %v604_v2 = vmul.f32 %v594_v63, %v3681_v9  ;;  %v606_v10 = vmul.f32 %v594_v63, %v3679_v8  ;;  %v605_v11 = vmul.f32 %v594_v63, %v3693_v16  ;;  %v607_v17 = vmul.f32 %v594_v63, %v3677_v7 }
 0x16f   : > { %v609_v18 = vmul.f32 %v594_v63, %v3691_v15  ;;  %v608_v22 = vmul.f32 %v594_v63, %v3701_v21  ;;  %v610_v26 = vmul.f32 %v594_v63, %v3689_v14 }
 0x174   : > { %v590_v53 = vpop.permute.xlu1 %589 }
 0x175   : > { %v597_v54 = vmul.f32 %v590_v53, %v3693_v16  ;;  %v596_v55 = vmul.f32 %v590_v53, %v3681_v9  ;;  %v598_v56 = vmul.f32 %v590_v53, %v3679_v8  ;;  %v600_v60 = vmul.f32 %v590_v53, %v3701_v21 }
 0x176   : > { %v599_v61 = vmul.f32 %v590_v53, %v3677_v7  ;;  %v601_v62 = vmul.f32 %v590_v53, %v3691_v15  ;;  %v603_v3 = vmul.f32 %v590_v53, %v3709_v25  ;;  %v602_v5 = vmul.f32 %v590_v53, %v3689_v14 }
 0x177   : > { %630 = vrot.lane.b32.xlu1 %v597_v54, %s3574_s29  ;;  %628 = vrot.lane.b32.xlu0 %v596_v55, %s3574_s29  ;;  %v611_v53 = vmul.f32 %v594_v63, %v3709_v25 }
 0x178   : > { %632 = vrot.lane.b32.xlu2 %v598_v56, %s3574_s29 }
 0x17f   : > { %636 = vrot.lane.b32.xlu1 %v600_v60, %s3574_s29  ;;  %634 = vrot.lane.b32.xlu0 %v599_v61, %s3574_s29 }
 0x180   : > { %638 = vrot.lane.b32.xlu2 %v601_v62, %s3574_s29 }
 0x187   : > { %642 = vrot.lane.b32.xlu1 %v603_v3, %s3574_s29  ;;  %640 = vrot.lane.b32.xlu0 %v602_v5, %s3574_s29 }
 0x188   : > { %644 = vrot.lane.b32.xlu2 %v604_v2, %s3574_s29 }
 0x18f   : > { %648 = vrot.lane.b32.xlu1 %v606_v10, %s3574_s29  ;;  %646 = vrot.lane.b32.xlu0 %v605_v11, %s3574_s29 }
 0x190   : > { %650 = vrot.lane.b32.xlu2 %v607_v17, %s3574_s29 }
 0x197   : > { %654 = vrot.lane.b32.xlu1 %v609_v18, %s3574_s29  ;;  %652 = vrot.lane.b32.xlu0 %v608_v22, %s3574_s29  ;;  %v3577_v18 = vmov 6  }
 0x198   : > { %656 = vrot.lane.b32.xlu2 %v610_v26, %s3574_s29 }
 0x19f   : > { %704 = vperm.xlu1 %3437, %v3645_v0   ;;  %658 = vrot.lane.b32.xlu0 %v611_v53, %s3574_s29 }
 0x1a0   : > { %708 = vperm.xlu2 %3438, %v3658_v4  }
 0x1a7   : > { %3439 = vset.pattern.permute.xlu1 %v3577_v18 }
 0x1a8   : > { %3440 = vset.pattern.permute.xlu2 %v3577_v18 }
 0x1d2   : > { %v3899_v55 = vpop.permute.xlu2 %632 }
 0x1d3   : > { %6611 = vst [vmem:[#allocation16_spill] sm:$0xff] %v3899_v55 }
 0x1da   : > { %v3903_v58 = vpop.permute.xlu2 %638 }
 0x1db   : > { %6613 = vst [vmem:[#allocation18_spill] sm:$0xff] %v3903_v58 }
 0x1e2   : > { %v3909_v62 = vpop.permute.xlu2 %644 }
 0x1e3   : > { %6616 = vst [vmem:[#allocation21_spill] sm:$0xff] %v3909_v62 }
 0x1e9   : > { %v3897_v54 = vpop.permute.xlu1 %630 }
 0x1ea   : > { %6610 = vst [vmem:[#allocation15_spill] sm:$0xff] %v3897_v54  ;;  %v3913_v2 = vpop.permute.xlu2 %650 }
 0x1eb   : > { %6618 = vst [vmem:[#allocation23_spill] sm:$0xff] %v3913_v2 }
 0x1f1   : > { %v3901_v56 = vpop.permute.xlu1 %636 }
 0x1f2   : > { %6612 = vst [vmem:[#allocation17_spill] sm:$0xff] %v3901_v56  ;;  %v3921_v17 = vpop.permute.xlu2 %656 }
 0x1f3   : > { %6619 = vst [vmem:[#allocation24_spill] sm:$0xff] %v3921_v17 }
 0x1f9   : > { %v3905_v60 = vpop.permute.xlu1 %642 }
 0x1fa   : > { %6614 = vst [vmem:[#allocation19_spill] sm:$0xff] %v3905_v60 }
 0x201   : > { %v3907_v61 = vpop.permute.xlu1 %648 }
 0x202   : > { %6615 = vst [vmem:[#allocation20_spill] sm:$0xff] %v3907_v61 }
 0x209   : > { %v3911_v63 = vpop.permute.xlu1 %654 }
 0x20a   : > { %6617 = vst [vmem:[#allocation22_spill] sm:$0xff] %v3911_v63 }
 0x211   : > { %v705_v3 = vpop.permute.xlu1 %704 }
 0x212   : > { %v712_v5 = vmul.f32 %v705_v3, %v3693_v16  ;;  %v711_v10 = vmul.f32 %v705_v3, %v3681_v9  ;;  %v713_v11 = vmul.f32 %v705_v3, %v3679_v8  ;;  %v715_v22 = vmul.f32 %v705_v3, %v3701_v21 }
 0x213   : > { %v714_v26 = vmul.f32 %v705_v3, %v3677_v7  ;;  %v716_v53 = vmul.f32 %v705_v3, %v3691_v15  ;;  %v717_v63 = vmul.f32 %v705_v3, %v3689_v14 }
 0x214   : > { %745 = vrot.lane.b32.xlu1 %v712_v5, %s3576_s30  ;;  %743 = vrot.lane.b32.xlu0 %v711_v10, %s3576_s30  ;;  %v709_v5 = vpop.permute.xlu2 %708 }
 0x215   : > { %747 = vrot.lane.b32.xlu2 %v713_v11, %s3576_s30  ;;  %v719_v10 = vmul.f32 %v709_v5, %v3681_v9  ;;  %v718_v11 = vmul.f32 %v705_v3, %v3709_v25  ;;  %v721_v18 = vmul.f32 %v709_v5, %v3679_v8  ;;  %v724_v3 = vmul.f32 %v709_v5, %v3691_v15 }
 0x21c   : > { %751 = vrot.lane.b32.xlu1 %v715_v22, %s3576_s30  ;;  %749 = vrot.lane.b32.xlu0 %v714_v26, %s3576_s30  ;;  %v720_v22 = vmul.f32 %v709_v5, %v3693_v16  ;;  %v722_v26 = vmul.f32 %v709_v5, %v3677_v7 }
 0x21d   : > { %753 = vrot.lane.b32.xlu2 %v716_v53, %s3576_s30  ;;  %v723_v53 = vmul.f32 %v709_v5, %v3701_v21 }
 0x224   : > { %757 = vrot.lane.b32.xlu1 %v718_v11, %s3576_s30  ;;  %755 = vrot.lane.b32.xlu0 %v717_v63, %s3576_s30  ;;  %v725_v63 = vmul.f32 %v709_v5, %v3689_v14 }
 0x225   : > { %759 = vrot.lane.b32.xlu2 %v719_v10, %s3576_s30  ;;  %v726_v10 = vmul.f32 %v709_v5, %v3709_v25 }
 0x22c   : > { %763 = vrot.lane.b32.xlu1 %v721_v18, %s3576_s30  ;;  %761 = vrot.lane.b32.xlu0 %v720_v22, %s3576_s30 }
 0x22d   : > { %765 = vrot.lane.b32.xlu2 %v722_v26, %s3576_s30 }
 0x234   : > { %769 = vrot.lane.b32.xlu1 %v724_v3, %s3576_s30  ;;  %767 = vrot.lane.b32.xlu0 %v723_v53, %s3576_s30 }
 0x235   : > { %771 = vrot.lane.b32.xlu2 %v725_v63, %s3576_s30 }
 0x23c   : > { %819 = vperm.xlu1 %3439, %v3645_v0   ;;  %773 = vrot.lane.b32.xlu0 %v726_v10, %s3576_s30 }
 0x23d   : > { %823 = vperm.xlu2 %3440, %v3658_v4  }
 0x26f   : > { %v3953_v18 = vpop.permute.xlu2 %747 }
 0x270   : > { %6621 = vst [vmem:[#allocation26_spill] sm:$0xff] %v3953_v18 }
 0x277   : > { %v3957_v26 = vpop.permute.xlu2 %753 }
 0x278   : > { %6623 = vst [vmem:[#allocation28_spill] sm:$0xff] %v3957_v26 }
 0x27f   : > { %v3963_v63 = vpop.permute.xlu2 %759 }
 0x280   : > { %6626 = vst [vmem:[#allocation31_spill] sm:$0xff] %v3963_v63  ;;  %v3579_v63 = vmov 7  }
 0x281   : > { %3441 = vset.pattern.permute.xlu1 %v3579_v63  ;;  %3442 = vset.pattern.permute.xlu2 %v3579_v63 }
 0x286   : > { %v3951_v11 = vpop.permute.xlu1 %745 }
 0x287   : > { %6620 = vst [vmem:[#allocation25_spill] sm:$0xff] %v3951_v11  ;;  %v3967_v17 = vpop.permute.xlu2 %765 }
 0x288   : > { %6628 = vst [vmem:[#allocation33_spill] sm:$0xff] %v3967_v17 }
 0x28e   : > { %v3955_v22 = vpop.permute.xlu1 %751 }
 0x28f   : > { %6622 = vst [vmem:[#allocation27_spill] sm:$0xff] %v3955_v22 }
 0x296   : > { %v3959_v3 = vpop.permute.xlu1 %757 }
 0x297   : > { %6624 = vst [vmem:[#allocation29_spill] sm:$0xff] %v3959_v3 }
 0x29e   : > { %v3961_v53 = vpop.permute.xlu1 %763 }
 0x29f   : > { %6625 = vst [vmem:[#allocation30_spill] sm:$0xff] %v3961_v53  ;;  %v3975_v53 = vpop.permute.xlu2 %771 }
 0x2a0   : > { %6629 = vst [vmem:[#allocation34_spill] sm:$0xff] %v3975_v53 }
 0x2a6   : > { %v3965_v5 = vpop.permute.xlu1 %769 }
 0x2a7   : > { %6627 = vst [vmem:[#allocation32_spill] sm:$0xff] %v3965_v5 }
 0x2ae   : > { %v820_v10 = vpop.permute.xlu1 %819 }
 0x2af   : > { %v827_v62 = vmul.f32 %v820_v10, %v3693_v16  ;;  %v826_v11 = vmul.f32 %v820_v10, %v3681_v9  ;;  %v828_v18 = vmul.f32 %v820_v10, %v3679_v8  ;;  %v830_v5 = vmul.f32 %v820_v10, %v3701_v21 }
 0x2b0   : > { %v829_v17 = vmul.f32 %v820_v10, %v3677_v7  ;;  %v831_v3 = vmul.f32 %v820_v10, %v3691_v15  ;;  %v832_v53 = vmul.f32 %v820_v10, %v3689_v14 }
 0x2b1   : > { %860 = vrot.lane.b32.xlu1 %v827_v62, %s3578_s4  ;;  %858 = vrot.lane.b32.xlu0 %v826_v11, %s3578_s4  ;;  %v824_v62 = vpop.permute.xlu2 %823 }
 0x2b2   : > { %862 = vrot.lane.b32.xlu2 %v828_v18, %s3578_s4  ;;  %v834_v11 = vmul.f32 %v824_v62, %v3681_v9  ;;  %v833_v18 = vmul.f32 %v820_v10, %v3709_v25  ;;  %v836_v63 = vmul.f32 %v824_v62, %v3679_v8  ;;  %v838_v10 = vmul.f32 %v824_v62, %v3701_v21 }
 0x2b9   : > { %866 = vrot.lane.b32.xlu1 %v830_v5, %s3578_s4  ;;  %864 = vrot.lane.b32.xlu0 %v829_v17, %s3578_s4  ;;  %v835_v5 = vmul.f32 %v824_v62, %v3693_v16  ;;  %v837_v17 = vmul.f32 %v824_v62, %v3677_v7 }
 0x2ba   : > { %868 = vrot.lane.b32.xlu2 %v831_v3, %s3578_s4  ;;  %v839_v3 = vmul.f32 %v824_v62, %v3691_v15 }
 0x2c1   : > { %872 = vrot.lane.b32.xlu1 %v833_v18, %s3578_s4  ;;  %870 = vrot.lane.b32.xlu0 %v832_v53, %s3578_s4  ;;  %v840_v53 = vmul.f32 %v824_v62, %v3689_v14 }
 0x2c2   : > { %874 = vrot.lane.b32.xlu2 %v834_v11, %s3578_s4  ;;  %v841_v11 = vmul.f32 %v824_v62, %v3709_v25 }
 0x2c9   : > { %878 = vrot.lane.b32.xlu1 %v836_v63, %s3578_s4  ;;  %876 = vrot.lane.b32.xlu0 %v835_v5, %s3578_s4 }
 0x2ca   : > { %880 = vrot.lane.b32.xlu2 %v837_v17, %s3578_s4 }
 0x2d1   : > { %884 = vrot.lane.b32.xlu1 %v839_v3, %s3578_s4  ;;  %882 = vrot.lane.b32.xlu0 %v838_v10, %s3578_s4 }
 0x2d2   : > { %886 = vrot.lane.b32.xlu2 %v840_v53, %s3578_s4 }
 0x2d9   : > { %934 = vperm.xlu1 %3441, %v3645_v0   ;;  %888 = vrot.lane.b32.xlu0 %v841_v11, %s3578_s4 }
 0x2da   : > { %938 = vperm.xlu2 %3442, %v3658_v4  }
 0x30c   : > { %v4007_v63 = vpop.permute.xlu2 %862 }
 0x30d   : > { %6631 = vst [vmem:[#allocation36_spill] sm:$0xff] %v4007_v63 }
 0x314   : > { %v4011_v17 = vpop.permute.xlu2 %868 }
 0x315   : > { %6633 = vst [vmem:[#allocation38_spill] sm:$0xff] %v4011_v17 }
 0x31c   : > { %v4017_v53 = vpop.permute.xlu2 %874 }
 0x31d   : > { %6636 = vst [vmem:[#allocation41_spill] sm:$0xff] %v4017_v53  ;;  %v3581_v53 = vmov 8  }
 0x31e   : > { %3443 = vset.pattern.permute.xlu1 %v3581_v53  ;;  %3444 = vset.pattern.permute.xlu2 %v3581_v53 }
 0x323   : > { %v4005_v18 = vpop.permute.xlu1 %860 }
 0x324   : > { %6630 = vst [vmem:[#allocation35_spill] sm:$0xff] %v4005_v18  ;;  %v4021_v22 = vpop.permute.xlu2 %880 }
 0x325   : > { %6638 = vst [vmem:[#allocation43_spill] sm:$0xff] %v4021_v22 }
 0x32b   : > { %v4009_v5 = vpop.permute.xlu1 %866 }
 0x32c   : > { %6632 = vst [vmem:[#allocation37_spill] sm:$0xff] %v4009_v5 }
 0x333   : > { %v4013_v3 = vpop.permute.xlu1 %872 }
 0x334   : > { %6634 = vst [vmem:[#allocation39_spill] sm:$0xff] %v4013_v3 }
 0x33b   : > { %v4015_v10 = vpop.permute.xlu1 %878 }
 0x33c   : > { %6635 = vst [vmem:[#allocation40_spill] sm:$0xff] %v4015_v10  ;;  %v4029_v10 = vpop.permute.xlu2 %886 }
 0x33d   : > { %6639 = vst [vmem:[#allocation44_spill] sm:$0xff] %v4029_v10 }
 0x343   : > { %v4019_v62 = vpop.permute.xlu1 %884 }
 0x344   : > { %6637 = vst [vmem:[#allocation42_spill] sm:$0xff] %v4019_v62 }
 0x34b   : > { %v935_v11 = vpop.permute.xlu1 %934 }
 0x34c   : > { %v942_v26 = vmul.f32 %v935_v11, %v3693_v16  ;;  %v941_v18 = vmul.f32 %v935_v11, %v3681_v9  ;;  %v943_v63 = vmul.f32 %v935_v11, %v3679_v8  ;;  %v945_v62 = vmul.f32 %v935_v11, %v3701_v21 }
 0x34d   : > { %v944_v22 = vmul.f32 %v935_v11, %v3677_v7  ;;  %v946_v3 = vmul.f32 %v935_v11, %v3691_v15  ;;  %v947_v10 = vmul.f32 %v935_v11, %v3689_v14 }
 0x34e   : > { %975 = vrot.lane.b32.xlu1 %v942_v26, %s3580_s5  ;;  %973 = vrot.lane.b32.xlu0 %v941_v18, %s3580_s5  ;;  %v939_v26 = vpop.permute.xlu2 %938 }
 0x34f   : > { %977 = vrot.lane.b32.xlu2 %v943_v63, %s3580_s5  ;;  %v949_v18 = vmul.f32 %v939_v26, %v3681_v9  ;;  %v948_v63 = vmul.f32 %v935_v11, %v3709_v25  ;;  %v951_v53 = vmul.f32 %v939_v26, %v3679_v8  ;;  %v953_v11 = vmul.f32 %v939_v26, %v3701_v21 }
 0x356   : > { %981 = vrot.lane.b32.xlu1 %v945_v62, %s3580_s5  ;;  %979 = vrot.lane.b32.xlu0 %v944_v22, %s3580_s5  ;;  %v950_v62 = vmul.f32 %v939_v26, %v3693_v16  ;;  %v952_v22 = vmul.f32 %v939_v26, %v3677_v7 }
 0x357   : > { %983 = vrot.lane.b32.xlu2 %v946_v3, %s3580_s5  ;;  %v954_v3 = vmul.f32 %v939_v26, %v3691_v15 }
 0x35e   : > { %987 = vrot.lane.b32.xlu1 %v948_v63, %s3580_s5  ;;  %985 = vrot.lane.b32.xlu0 %v947_v10, %s3580_s5  ;;  %v955_v10 = vmul.f32 %v939_v26, %v3689_v14 }
 0x35f   : > { %989 = vrot.lane.b32.xlu2 %v949_v18, %s3580_s5  ;;  %v956_v18 = vmul.f32 %v939_v26, %v3709_v25 }
 0x366   : > { %993 = vrot.lane.b32.xlu1 %v951_v53, %s3580_s5  ;;  %991 = vrot.lane.b32.xlu0 %v950_v62, %s3580_s5 }
 0x367   : > { %995 = vrot.lane.b32.xlu2 %v952_v22, %s3580_s5 }
 0x36e   : > { %999 = vrot.lane.b32.xlu1 %v954_v3, %s3580_s5  ;;  %997 = vrot.lane.b32.xlu0 %v953_v11, %s3580_s5 }
 0x36f   : > { %1001 = vrot.lane.b32.xlu2 %v955_v10, %s3580_s5 }
 0x376   : > { %1049 = vperm.xlu1 %3443, %v3645_v0   ;;  %1003 = vrot.lane.b32.xlu0 %v956_v18, %s3580_s5 }
 0x377   : > { %1053 = vperm.xlu2 %3444, %v3658_v4  }
 0x3a9   : > { %v4061_v53 = vpop.permute.xlu2 %977 }
 0x3aa   : > { %6641 = vst [vmem:[#allocation46_spill] sm:$0xff] %v4061_v53 }
 0x3b1   : > { %v4065_v22 = vpop.permute.xlu2 %983 }
 0x3b2   : > { %6643 = vst [vmem:[#allocation48_spill] sm:$0xff] %v4065_v22 }
 0x3b9   : > { %v4071_v10 = vpop.permute.xlu2 %989 }
 0x3ba   : > { %6646 = vst [vmem:[#allocation51_spill] sm:$0xff] %v4071_v10  ;;  %v3583_v10 = vmov 9  }
 0x3bb   : > { %3445 = vset.pattern.permute.xlu1 %v3583_v10  ;;  %3446 = vset.pattern.permute.xlu2 %v3583_v10 }
 0x3c0   : > { %v4059_v63 = vpop.permute.xlu1 %975 }
 0x3c1   : > { %6640 = vst [vmem:[#allocation45_spill] sm:$0xff] %v4059_v63  ;;  %v4075_v5 = vpop.permute.xlu2 %995 }
 0x3c2   : > { %6648 = vst [vmem:[#allocation53_spill] sm:$0xff] %v4075_v5 }
 0x3c8   : > { %v4063_v62 = vpop.permute.xlu1 %981 }
 0x3c9   : > { %6642 = vst [vmem:[#allocation47_spill] sm:$0xff] %v4063_v62 }
 0x3d0   : > { %v4067_v3 = vpop.permute.xlu1 %987 }
 0x3d1   : > { %6644 = vst [vmem:[#allocation49_spill] sm:$0xff] %v4067_v3 }
 0x3d8   : > { %v4069_v11 = vpop.permute.xlu1 %993 }
 0x3d9   : > { %6645 = vst [vmem:[#allocation50_spill] sm:$0xff] %v4069_v11  ;;  %v4083_v11 = vpop.permute.xlu2 %1001 }
 0x3da   : > { %6649 = vst [vmem:[#allocation54_spill] sm:$0xff] %v4083_v11 }
 0x3e0   : > { %v4073_v26 = vpop.permute.xlu1 %999 }
 0x3e1   : > { %6647 = vst [vmem:[#allocation52_spill] sm:$0xff] %v4073_v26 }
 0x3e8   : > { %v1050_v18 = vpop.permute.xlu1 %1049 }
 0x3e9   : > { %v1057_v17 = vmul.f32 %v1050_v18, %v3693_v16  ;;  %v1056_v63 = vmul.f32 %v1050_v18, %v3681_v9  ;;  %v1058_v53 = vmul.f32 %v1050_v18, %v3679_v8  ;;  %v1060_v26 = vmul.f32 %v1050_v18, %v3701_v21 }
 0x3ea   : > { %v1059_v5 = vmul.f32 %v1050_v18, %v3677_v7  ;;  %v1061_v3 = vmul.f32 %v1050_v18, %v3691_v15  ;;  %v1062_v11 = vmul.f32 %v1050_v18, %v3689_v14 }
 0x3eb   : > { %1090 = vrot.lane.b32.xlu1 %v1057_v17, %s3582_s6  ;;  %1088 = vrot.lane.b32.xlu0 %v1056_v63, %s3582_s6  ;;  %v1054_v17 = vpop.permute.xlu2 %1053 }
 0x3ec   : > { %1092 = vrot.lane.b32.xlu2 %v1058_v53, %s3582_s6  ;;  %v1064_v63 = vmul.f32 %v1054_v17, %v3681_v9  ;;  %v1063_v53 = vmul.f32 %v1050_v18, %v3709_v25  ;;  %v1066_v10 = vmul.f32 %v1054_v17, %v3679_v8  ;;  %v1068_v18 = vmul.f32 %v1054_v17, %v3701_v21 }
 0x3f3   : > { %1096 = vrot.lane.b32.xlu1 %v1060_v26, %s3582_s6  ;;  %1094 = vrot.lane.b32.xlu0 %v1059_v5, %s3582_s6  ;;  %v1065_v26 = vmul.f32 %v1054_v17, %v3693_v16  ;;  %v1067_v5 = vmul.f32 %v1054_v17, %v3677_v7 }
 0x3f4   : > { %1098 = vrot.lane.b32.xlu2 %v1061_v3, %s3582_s6  ;;  %v1069_v3 = vmul.f32 %v1054_v17, %v3691_v15 }
 0x3fb   : > { %1102 = vrot.lane.b32.xlu1 %v1063_v53, %s3582_s6  ;;  %1100 = vrot.lane.b32.xlu0 %v1062_v11, %s3582_s6  ;;  %v1070_v11 = vmul.f32 %v1054_v17, %v3689_v14 }
 0x3fc   : > { %1104 = vrot.lane.b32.xlu2 %v1064_v63, %s3582_s6  ;;  %v1071_v63 = vmul.f32 %v1054_v17, %v3709_v25 }
 0x403   : > { %1108 = vrot.lane.b32.xlu1 %v1066_v10, %s3582_s6  ;;  %1106 = vrot.lane.b32.xlu0 %v1065_v26, %s3582_s6 }
 0x404   : > { %1110 = vrot.lane.b32.xlu2 %v1067_v5, %s3582_s6 }
 0x40b   : > { %1114 = vrot.lane.b32.xlu1 %v1069_v3, %s3582_s6  ;;  %1112 = vrot.lane.b32.xlu0 %v1068_v18, %s3582_s6 }
 0x40c   : > { %1116 = vrot.lane.b32.xlu2 %v1070_v11, %s3582_s6 }
 0x413   : > { %1164 = vperm.xlu1 %3445, %v3645_v0   ;;  %1118 = vrot.lane.b32.xlu0 %v1071_v63, %s3582_s6 }
 0x414   : > { %1168 = vperm.xlu2 %3446, %v3658_v4  }
 0x446   : > { %v4115_v10 = vpop.permute.xlu2 %1092 }
 0x447   : > { %6651 = vst [vmem:[#allocation56_spill] sm:$0xff] %v4115_v10 }
 0x44e   : > { %v4119_v5 = vpop.permute.xlu2 %1098 }
 0x44f   : > { %6653 = vst [vmem:[#allocation58_spill] sm:$0xff] %v4119_v5 }
 0x456   : > { %v4125_v11 = vpop.permute.xlu2 %1104 }
 0x457   : > { %6656 = vst [vmem:[#allocation61_spill] sm:$0xff] %v4125_v11  ;;  %v3585_v11 = vmov 10  }
 0x458   : > { %3447 = vset.pattern.permute.xlu1 %v3585_v11  ;;  %3448 = vset.pattern.permute.xlu2 %v3585_v11 }
 0x45d   : > { %v4113_v53 = vpop.permute.xlu1 %1090 }
 0x45e   : > { %6650 = vst [vmem:[#allocation55_spill] sm:$0xff] %v4113_v53  ;;  %v4129_v62 = vpop.permute.xlu2 %1110 }
 0x45f   : > { %6658 = vst [vmem:[#allocation63_spill] sm:$0xff] %v4129_v62 }
 0x465   : > { %v4117_v26 = vpop.permute.xlu1 %1096 }
 0x466   : > { %6652 = vst [vmem:[#allocation57_spill] sm:$0xff] %v4117_v26 }
 0x46d   : > { %v4121_v3 = vpop.permute.xlu1 %1102 }
 0x46e   : > { %6654 = vst [vmem:[#allocation59_spill] sm:$0xff] %v4121_v3 }
 0x475   : > { %v4123_v18 = vpop.permute.xlu1 %1108 }
 0x476   : > { %6655 = vst [vmem:[#allocation60_spill] sm:$0xff] %v4123_v18  ;;  %v4137_v18 = vpop.permute.xlu2 %1116 }
 0x477   : > { %6659 = vst [vmem:[#allocation64_spill] sm:$0xff] %v4137_v18 }
 0x47d   : > { %v4127_v17 = vpop.permute.xlu1 %1114 }
 0x47e   : > { %6657 = vst [vmem:[#allocation62_spill] sm:$0xff] %v4127_v17 }
 0x485   : > { %v1165_v63 = vpop.permute.xlu1 %1164 }
 0x486   : > { %v1172_v22 = vmul.f32 %v1165_v63, %v3693_v16  ;;  %v1171_v53 = vmul.f32 %v1165_v63, %v3681_v9  ;;  %v1173_v10 = vmul.f32 %v1165_v63, %v3679_v8  ;;  %v1175_v17 = vmul.f32 %v1165_v63, %v3701_v21 }
 0x487   : > { %v1174_v62 = vmul.f32 %v1165_v63, %v3677_v7  ;;  %v1176_v3 = vmul.f32 %v1165_v63, %v3691_v15  ;;  %v1177_v18 = vmul.f32 %v1165_v63, %v3689_v14 }
 0x488   : > { %1205 = vrot.lane.b32.xlu1 %v1172_v22, %s3584_s7  ;;  %1203 = vrot.lane.b32.xlu0 %v1171_v53, %s3584_s7  ;;  %v1169_v22 = vpop.permute.xlu2 %1168 }
 0x489   : > { %1207 = vrot.lane.b32.xlu2 %v1173_v10, %s3584_s7  ;;  %v1179_v53 = vmul.f32 %v1169_v22, %v3681_v9  ;;  %v1178_v10 = vmul.f32 %v1165_v63, %v3709_v25  ;;  %v1181_v11 = vmul.f32 %v1169_v22, %v3679_v8  ;;  %v1183_v63 = vmul.f32 %v1169_v22, %v3701_v21 }
 0x490   : > { %1211 = vrot.lane.b32.xlu1 %v1175_v17, %s3584_s7  ;;  %1209 = vrot.lane.b32.xlu0 %v1174_v62, %s3584_s7  ;;  %v1180_v17 = vmul.f32 %v1169_v22, %v3693_v16  ;;  %v1182_v62 = vmul.f32 %v1169_v22, %v3677_v7 }
 0x491   : > { %1213 = vrot.lane.b32.xlu2 %v1176_v3, %s3584_s7  ;;  %v1184_v3 = vmul.f32 %v1169_v22, %v3691_v15 }
 0x498   : > { %1217 = vrot.lane.b32.xlu1 %v1178_v10, %s3584_s7  ;;  %1215 = vrot.lane.b32.xlu0 %v1177_v18, %s3584_s7  ;;  %v1185_v18 = vmul.f32 %v1169_v22, %v3689_v14  ;;  %v4164_v10 = vpop.permute.xlu0 %287 }
 0x499   : > { %1219 = vrot.lane.b32.xlu2 %v1179_v53, %s3584_s7  ;;  %v1186_v53 = vmul.f32 %v1169_v22, %v3709_v25 }
 0x4a0   : > { %1223 = vrot.lane.b32.xlu1 %v1181_v11, %s3584_s7  ;;  %1221 = vrot.lane.b32.xlu0 %v1180_v17, %s3584_s7 }
 0x4a1   : > { %1225 = vrot.lane.b32.xlu2 %v1182_v62, %s3584_s7 }
 0x4a8   : > { %1229 = vrot.lane.b32.xlu1 %v1184_v3, %s3584_s7  ;;  %1227 = vrot.lane.b32.xlu0 %v1183_v63, %s3584_s7 }
 0x4a9   : > { %1231 = vrot.lane.b32.xlu2 %v1185_v18, %s3584_s7 }
 0x4b0   : > { %1279 = vperm.xlu1 %3447, %v3645_v0   ;;  %1233 = vrot.lane.b32.xlu0 %v1186_v53, %s3584_s7  ;;  %v4185_v0 = vpop.permute.xlu0 %293 }
 0x4b1   : > { %1283 = vperm.xlu2 %3448, %v3658_v4  }
 0x4e3   : > { %v4171_v17 = vpop.permute.xlu2 %1207 }
 0x4e4   : > { %6661 = vst [vmem:[#allocation66_spill] sm:$0xff] %v4171_v17 }
 0x4eb   : > { %v4175_v3 = vpop.permute.xlu2 %1213 }
 0x4ec   : > { %6663 = vst [vmem:[#allocation68_spill] sm:$0xff] %v4175_v3  ;;  %v4192_v3 = vpop.permute.xlu0 %299 }
 0x4f3   : > { %v4181_v22 = vpop.permute.xlu2 %1219 }
 0x4f4   : > { %6666 = vst [vmem:[#allocation71_spill] sm:$0xff] %v4181_v22  ;;  %v3587_v22 = vmov 11  }
 0x4f5   : > { %3449 = vset.pattern.permute.xlu1 %v3587_v22  ;;  %3450 = vset.pattern.permute.xlu2 %v3587_v22 }
 0x4fa   : > { %v4169_v11 = vpop.permute.xlu1 %1205 }
 0x4fb   : > { %6660 = vst [vmem:[#allocation65_spill] sm:$0xff] %v4169_v11  ;;  %v4187_v53 = vpop.permute.xlu2 %1225 }
 0x4fc   : > { %6668 = vst [vmem:[#allocation73_spill] sm:$0xff] %v4187_v53 }
 0x502   : > { %v4173_v62 = vpop.permute.xlu1 %1211 }
 0x503   : > { %6662 = vst [vmem:[#allocation67_spill] sm:$0xff] %v4173_v62 }
 0x50a   : > { %v4177_v63 = vpop.permute.xlu1 %1217 }
 0x50b   : > { %6664 = vst [vmem:[#allocation69_spill] sm:$0xff] %v4177_v63 }
 0x512   : > { %v4179_v18 = vpop.permute.xlu1 %1223 }
 0x513   : > { %6665 = vst [vmem:[#allocation70_spill] sm:$0xff] %v4179_v18 }
 0x51a   : > { %v4183_v26 = vpop.permute.xlu1 %1229 }
 0x51b   : > { %6667 = vst [vmem:[#allocation72_spill] sm:$0xff] %v4183_v26  ;;  %v4197_v26 = vpop.permute.xlu2 %1231 }
 0x51c   : > { %6669 = vst [vmem:[#allocation74_spill] sm:$0xff] %v4197_v26 }
 0x522   : > { %v1280_v4 = vpop.permute.xlu1 %1279 }
 0x523   : > { %v1287_v11 = vmul.f32 %v1280_v4, %v3693_v16  ;;  %v1286_v17 = vmul.f32 %v1280_v4, %v3681_v9  ;;  %v1288_v62 = vmul.f32 %v1280_v4, %v3679_v8  ;;  %v1290_v18 = vmul.f32 %v1280_v4, %v3701_v21 }
 0x524   : > { %v1289_v53 = vmul.f32 %v1280_v4, %v3677_v7  ;;  %v1291_v63 = vmul.f32 %v1280_v4, %v3691_v15  ;;  %v1293_v26 = vmul.f32 %v1280_v4, %v3709_v25  ;;  %v1292_v22 = vmul.f32 %v1280_v4, %v3689_v14 }
 0x525   : > { %1320 = vrot.lane.b32.xlu1 %v1287_v11, %s3586_s8  ;;  %1318 = vrot.lane.b32.xlu0 %v1286_v17, %s3586_s8  ;;  %v4205_v11 = vpop.permute.xlu0 %305  ;;  %v1284_v17 = vpop.permute.xlu2 %1283 }
 0x526   : > { %1322 = vrot.lane.b32.xlu2 %v1288_v62, %s3586_s8  ;;  %v1294_v62 = vmul.f32 %v1284_v17, %v3681_v9  ;;  %v1297_v5 = vmul.f32 %v1284_v17, %v3677_v7 }
 0x52d   : > { %1326 = vrot.lane.b32.xlu1 %v1290_v18, %s3586_s8  ;;  %1324 = vrot.lane.b32.xlu0 %v1289_v53, %s3586_s8  ;;  %v4213_v18 = vpop.permute.xlu0 %311  ;;  %v1296_v53 = vmul.f32 %v1284_v17, %v3679_v8 }
 0x52e   : > { %1328 = vrot.lane.b32.xlu2 %v1291_v63, %s3586_s8  ;;  %v1295_v63 = vmul.f32 %v1284_v17, %v3693_v16 }
 0x535   : > { %1332 = vrot.lane.b32.xlu1 %v1293_v26, %s3586_s8  ;;  %1330 = vrot.lane.b32.xlu0 %v1292_v22, %s3586_s8  ;;  %v4221_v4 = vpop.permute.xlu0 %406  ;;  %v1299_v26 = vmul.f32 %v1284_v17, %v3691_v15  ;;  %v1300_v22 = vmul.f32 %v1284_v17, %v3689_v14 }
 0x536   : > { %1334 = vrot.lane.b32.xlu2 %v1294_v62, %s3586_s8  ;;  %v1298_v62 = vmul.f32 %v1284_v17, %v3701_v21 }
 0x53d   : > { %1338 = vrot.lane.b32.xlu1 %v1296_v53, %s3586_s8  ;;  %1336 = vrot.lane.b32.xlu0 %v1295_v63, %s3586_s8  ;;  %v1301_v53 = vmul.f32 %v1284_v17, %v3709_v25  ;;  %v4230_v61 = vpop.permute.xlu0 %412  ;;  %v4242_v63 = vld [vmem:[%s6405_s1 + $0x8] sm:$0xff] }
 0x53e   : > { %1340 = vrot.lane.b32.xlu2 %v1297_v5, %s3586_s8  ;;  %v4235_v5 = vld [vmem:[%s6405_s1] sm:$0xff] }
 0x545   : > { %1344 = vrot.lane.b32.xlu1 %v1299_v26, %s3586_s8  ;;  %1342 = vrot.lane.b32.xlu0 %v1298_v62, %s3586_s8  ;;  %v4261_v58 = vpop.permute.xlu0 %418 }
 0x546   : > { %1346 = vrot.lane.b32.xlu2 %v1300_v22, %s3586_s8 }
 0x54d   : > { %1394 = vperm.xlu1 %3449, %v4235_v5   ;;  %1348 = vrot.lane.b32.xlu0 %v1301_v53, %s3586_s8 }
 0x54e   : > { %1398 = vperm.xlu2 %3450, %v4242_v63  }
 0x580   : > { %v4247_v17 = vpop.permute.xlu2 %1322 }
 0x581   : > { %6671 = vst [vmem:[#allocation76_spill] sm:$0xff] %v4247_v17 }
 0x588   : > { %v4251_v22 = vpop.permute.xlu2 %1328 }
 0x589   : > { %6673 = vst [vmem:[#allocation78_spill] sm:$0xff] %v4251_v22 }
 0x590   : > { %v4257_v53 = vpop.permute.xlu2 %1334 }
 0x591   : > { %6676 = vst [vmem:[#allocation81_spill] sm:$0xff] %v4257_v53  ;;  %v4271_v53 = vpop.permute.xlu0 %424 }
 0x597   : > { %v4245_v26 = vpop.permute.xlu1 %1320 }
 0x598   : > { %6670 = vst [vmem:[#allocation75_spill] sm:$0xff] %v4245_v26  ;;  %v4263_v54 = vpop.permute.xlu2 %1340 }
 0x599   : > { %6678 = vst [vmem:[#allocation83_spill] sm:$0xff] %v4263_v54 }
 0x59f   : > { %v4249_v62 = vpop.permute.xlu1 %1326 }
 0x5a0   : > { %6672 = vst [vmem:[#allocation77_spill] sm:$0xff] %v4249_v62 }
 0x5a7   : > { %v4253_v2 = vpop.permute.xlu1 %1332 }
 0x5a8   : > { %6674 = vst [vmem:[#allocation79_spill] sm:$0xff] %v4253_v2 }
 0x5af   : > { %v4255_v60 = vpop.permute.xlu1 %1338 }
 0x5b0   : > { %6675 = vst [vmem:[#allocation80_spill] sm:$0xff] %v4255_v60  ;;  %v3589_v60 = vmov 12  }
 0x5b1   : > { %3451 = vset.pattern.permute.xlu1 %v3589_v60  ;;  %3452 = vset.pattern.permute.xlu2 %v3589_v60 }
 0x5b7   : > { %v4259_v56 = vpop.permute.xlu1 %1344 }
 0x5b8   : > { %6677 = vst [vmem:[#allocation82_spill] sm:$0xff] %v4259_v56  ;;  %v4273_v56 = vpop.permute.xlu2 %1346 }
 0x5b9   : > { %6679 = vst [vmem:[#allocation84_spill] sm:$0xff] %v4273_v56 }
 0x5bf   : > { %v1395_v55 = vpop.permute.xlu1 %1394 }
 0x5c0   : > { %v1402_v26 = vmul.f32 %v1395_v55, %v3693_v16  ;;  %v1401_v17 = vmul.f32 %v1395_v55, %v3681_v9  ;;  %v1403_v62 = vmul.f32 %v1395_v55, %v3679_v8  ;;  %v1405_v54 = vmul.f32 %v1395_v55, %v3701_v21 }
 0x5c1   : > { %v1404_v2 = vmul.f32 %v1395_v55, %v3677_v7  ;;  %v1406_v22 = vmul.f32 %v1395_v55, %v3691_v15  ;;  %v1408_v56 = vmul.f32 %v1395_v55, %v3709_v25  ;;  %v1407_v60 = vmul.f32 %v1395_v55, %v3689_v14 }
 0x5c2   : > { %1435 = vrot.lane.b32.xlu1 %v1402_v26, %s3588_s14  ;;  %1433 = vrot.lane.b32.xlu0 %v1401_v17, %s3588_s14  ;;  %v4281_v26 = vpop.permute.xlu0 %519  ;;  %v1399_v17 = vpop.permute.xlu2 %1398 }
 0x5c3   : > { %1437 = vrot.lane.b32.xlu2 %v1403_v62, %s3588_s14  ;;  %v1409_v62 = vmul.f32 %v1399_v17, %v3681_v9  ;;  %v1412_v51 = vmul.f32 %v1399_v17, %v3677_v7 }
 0x5ca   : > { %1441 = vrot.lane.b32.xlu1 %v1405_v54, %s3588_s14  ;;  %1439 = vrot.lane.b32.xlu0 %v1404_v2, %s3588_s14  ;;  %v4289_v54 = vpop.permute.xlu0 %525  ;;  %v1411_v2 = vmul.f32 %v1399_v17, %v3679_v8 }
 0x5cb   : > { %1443 = vrot.lane.b32.xlu2 %v1406_v22, %s3588_s14  ;;  %6680 = vst [vmem:[#allocation85_spill] sm:$0xff] %v4289_v54  ;;  %v1410_v22 = vmul.f32 %v1399_v17, %v3693_v16  ;;  %v320_v54 = vsel %vm315_vm1, %v3785_v6, %v4185_v0 }
 0x5d2   : > { %1447 = vrot.lane.b32.xlu1 %v1408_v56, %s3588_s14  ;;  %1445 = vrot.lane.b32.xlu0 %v1407_v60, %s3588_s14  ;;  %v4297_v55 = vpop.permute.xlu0 %531  ;;  %v1414_v56 = vmul.f32 %v1399_v17, %v3691_v15  ;;  %v1415_v60 = vmul.f32 %v1399_v17, %v3689_v14 }
 0x5d3   : > { %1449 = vrot.lane.b32.xlu2 %v1409_v62, %s3588_s14  ;;  %6681 = vst [vmem:[#allocation86_spill] sm:$0xff] %v4297_v55  ;;  %v1413_v62 = vmul.f32 %v1399_v17, %v3701_v21  ;;  %v317_v55 = vsel %vm315_vm1, %v3777_v1, %v4164_v10 }
 0x5da   : > { %1453 = vrot.lane.b32.xlu1 %v1411_v2, %s3588_s14  ;;  %1451 = vrot.lane.b32.xlu0 %v1410_v22, %s3588_s14  ;;  %v1416_v2 = vmul.f32 %v1399_v17, %v3709_v25  ;;  %v4306_v57 = vpop.permute.xlu0 %537 }
 0x5db   : > { %1455 = vrot.lane.b32.xlu2 %v1412_v51, %s3588_s14  ;;  %6682 = vst [vmem:[#allocation87_spill] sm:$0xff] %v4306_v57 }
 0x5e2   : > { %1459 = vrot.lane.b32.xlu1 %v1414_v56, %s3588_s14  ;;  %1457 = vrot.lane.b32.xlu0 %v1413_v62, %s3588_s14  ;;  %v4327_v57 = vpop.permute.xlu0 %543 }
 0x5e3   : > { %1461 = vrot.lane.b32.xlu2 %v1415_v60, %s3588_s14  ;;  %6691 = vst [vmem:[#allocation96_spill] sm:$0xff] %v4327_v57 }
 0x5ea   : > { %1509 = vperm.xlu1 %3451, %v4235_v5   ;;  %1463 = vrot.lane.b32.xlu0 %v1416_v2, %s3588_s14 }
 0x5eb   : > { %1513 = vperm.xlu2 %3452, %v4242_v63  }
 0x61d   : > { %v4313_v22 = vpop.permute.xlu2 %1437 }
 0x61e   : > { %6684 = vst [vmem:[#allocation89_spill] sm:$0xff] %v4313_v22 }
 0x625   : > { %v4317_v56 = vpop.permute.xlu2 %1443 }
 0x626   : > { %6686 = vst [vmem:[#allocation91_spill] sm:$0xff] %v4317_v56  ;;  %v4334_v56 = vpop.permute.xlu0 %628 }
 0x627   : > { %6693 = vst [vmem:[#allocation98_spill] sm:$0xff] %v4334_v56 }
 0x62d   : > { %v4323_v17 = vpop.permute.xlu2 %1449 }
 0x62e   : > { %6689 = vst [vmem:[#allocation94_spill] sm:$0xff] %v4323_v17  ;;  %v3591_v17 = vmov 13  }
 0x62f   : > { %3453 = vset.pattern.permute.xlu1 %v3591_v17  ;;  %3454 = vset.pattern.permute.xlu2 %v3591_v17 }
 0x634   : > { %v4311_v51 = vpop.permute.xlu1 %1435 }
 0x635   : > { %6683 = vst [vmem:[#allocation88_spill] sm:$0xff] %v4311_v51  ;;  %v4329_v2 = vpop.permute.xlu2 %1455 }
 0x636   : > { %6692 = vst [vmem:[#allocation97_spill] sm:$0xff] %v4329_v2 }
 0x63c   : > { %v4315_v49 = vpop.permute.xlu1 %1441 }
 0x63d   : > { %6685 = vst [vmem:[#allocation90_spill] sm:$0xff] %v4315_v49 }
 0x644   : > { %v4319_v62 = vpop.permute.xlu1 %1447 }
 0x645   : > { %6687 = vst [vmem:[#allocation92_spill] sm:$0xff] %v4319_v62 }
 0x64c   : > { %v4321_v60 = vpop.permute.xlu1 %1453 }
 0x64d   : > { %6688 = vst [vmem:[#allocation93_spill] sm:$0xff] %v4321_v60 }
 0x654   : > { %v4325_v52 = vpop.permute.xlu1 %1459 }
 0x655   : > { %6690 = vst [vmem:[#allocation95_spill] sm:$0xff] %v4325_v52  ;;  %v4339_v52 = vpop.permute.xlu2 %1461 }
 0x656   : > { %6694 = vst [vmem:[#allocation99_spill] sm:$0xff] %v4339_v52 }
 0x65c   : > { %v1510_v48 = vpop.permute.xlu1 %1509 }
 0x65d   : > { %v1517_v51 = vmul.f32 %v1510_v48, %v3693_v16  ;;  %v1516_v22 = vmul.f32 %v1510_v48, %v3681_v9  ;;  %v1518_v49 = vmul.f32 %v1510_v48, %v3679_v8  ;;  %v1520_v60 = vmul.f32 %v1510_v48, %v3701_v21 }
 0x65e   : > { %v1519_v2 = vmul.f32 %v1510_v48, %v3677_v7  ;;  %v1521_v62 = vmul.f32 %v1510_v48, %v3691_v15  ;;  %v1523_v52 = vmul.f32 %v1510_v48, %v3709_v25  ;;  %v1522_v17 = vmul.f32 %v1510_v48, %v3689_v14 }
 0x65f   : > { %1550 = vrot.lane.b32.xlu1 %v1517_v51, %s3590_s15  ;;  %1548 = vrot.lane.b32.xlu0 %v1516_v22, %s3590_s15  ;;  %v4347_v51 = vpop.permute.xlu0 %634 }
 0x660   : > { %1552 = vrot.lane.b32.xlu2 %v1518_v49, %s3590_s15  ;;  %6695 = vst [vmem:[#allocation100_spill] sm:$0xff] %v4347_v51  ;;  %v1514_v49 = vpop.permute.xlu2 %1513 }
 0x661   : > { %v1524_v22 = vmul.f32 %v1514_v49, %v3681_v9  ;;  %v1527_v51 = vmul.f32 %v1514_v49, %v3677_v7 }
 0x667   : > { %1556 = vrot.lane.b32.xlu1 %v1520_v60, %s3590_s15  ;;  %1554 = vrot.lane.b32.xlu0 %v1519_v2, %s3590_s15  ;;  %v4355_v60 = vpop.permute.xlu0 %640  ;;  %v1526_v2 = vmul.f32 %v1514_v49, %v3679_v8 }
 0x668   : > { %1558 = vrot.lane.b32.xlu2 %v1521_v62, %s3590_s15  ;;  %6696 = vst [vmem:[#allocation101_spill] sm:$0xff] %v4355_v60  ;;  %v1525_v62 = vmul.f32 %v1514_v49, %v3693_v16 }
 0x66f   : > { %1562 = vrot.lane.b32.xlu1 %v1523_v52, %s3590_s15  ;;  %1560 = vrot.lane.b32.xlu0 %v1522_v17, %s3590_s15  ;;  %v4363_v48 = vpop.permute.xlu0 %646  ;;  %v1529_v52 = vmul.f32 %v1514_v49, %v3691_v15  ;;  %v1530_v17 = vmul.f32 %v1514_v49, %v3689_v14 }
 0x670   : > { %1564 = vrot.lane.b32.xlu2 %v1524_v22, %s3590_s15  ;;  %6697 = vst [vmem:[#allocation102_spill] sm:$0xff] %v4363_v48  ;;  %v1528_v22 = vmul.f32 %v1514_v49, %v3701_v21 }
 0x677   : > { %1568 = vrot.lane.b32.xlu1 %v1526_v2, %s3590_s15  ;;  %1566 = vrot.lane.b32.xlu0 %v1525_v62, %s3590_s15  ;;  %v1531_v2 = vmul.f32 %v1514_v49, %v3709_v25  ;;  %v4372_v60 = vpop.permute.xlu0 %652 }
 0x678   : > { %1570 = vrot.lane.b32.xlu2 %v1527_v51, %s3590_s15  ;;  %6698 = vst [vmem:[#allocation103_spill] sm:$0xff] %v4372_v60 }
 0x67f   : > { %1574 = vrot.lane.b32.xlu1 %v1529_v52, %s3590_s15  ;;  %1572 = vrot.lane.b32.xlu0 %v1528_v22, %s3590_s15  ;;  %v4393_v56 = vpop.permute.xlu0 %658 }
 0x680   : > { %1576 = vrot.lane.b32.xlu2 %v1530_v17, %s3590_s15  ;;  %6707 = vst [vmem:[#allocation112_spill] sm:$0xff] %v4393_v56 }
 0x687   : > { %1624 = vperm.xlu1 %3453, %v4235_v5   ;;  %1578 = vrot.lane.b32.xlu0 %v1531_v2, %s3590_s15 }
 0x688   : > { %1628 = vperm.xlu2 %3454, %v4242_v63  }
 0x6ba   : > { %v4379_v62 = vpop.permute.xlu2 %1552 }
 0x6bb   : > { %6700 = vst [vmem:[#allocation105_spill] sm:$0xff] %v4379_v62 }
 0x6c2   : > { %v4383_v52 = vpop.permute.xlu2 %1558 }
 0x6c3   : > { %6702 = vst [vmem:[#allocation107_spill] sm:$0xff] %v4383_v52  ;;  %v4400_v52 = vpop.permute.xlu0 %743 }
 0x6c4   : > { %6709 = vst [vmem:[#allocation114_spill] sm:$0xff] %v4400_v52 }
 0x6ca   : > { %v4389_v49 = vpop.permute.xlu2 %1564 }
 0x6cb   : > { %6705 = vst [vmem:[#allocation110_spill] sm:$0xff] %v4389_v49  ;;  %v3593_v49 = vmov 14  }
 0x6cc   : > { %3455 = vset.pattern.permute.xlu1 %v3593_v49  ;;  %3456 = vset.pattern.permute.xlu2 %v3593_v49 }
 0x6d1   : > { %v4377_v51 = vpop.permute.xlu1 %1550 }
 0x6d2   : > { %6699 = vst [vmem:[#allocation104_spill] sm:$0xff] %v4377_v51  ;;  %v4395_v2 = vpop.permute.xlu2 %1570 }
 0x6d3   : > { %6708 = vst [vmem:[#allocation113_spill] sm:$0xff] %v4395_v2 }
 0x6d9   : > { %v4381_v48 = vpop.permute.xlu1 %1556 }
 0x6da   : > { %6701 = vst [vmem:[#allocation106_spill] sm:$0xff] %v4381_v48 }
 0x6e1   : > { %v4385_v22 = vpop.permute.xlu1 %1562 }
 0x6e2   : > { %6703 = vst [vmem:[#allocation108_spill] sm:$0xff] %v4385_v22 }
 0x6e9   : > { %v4387_v17 = vpop.permute.xlu1 %1568 }
 0x6ea   : > { %6704 = vst [vmem:[#allocation109_spill] sm:$0xff] %v4387_v17 }
 0x6f1   : > { %v4391_v60 = vpop.permute.xlu1 %1574 }
 0x6f2   : > { %6706 = vst [vmem:[#allocation111_spill] sm:$0xff] %v4391_v60  ;;  %v4405_v60 = vpop.permute.xlu2 %1576 }
 0x6f3   : > { %6710 = vst [vmem:[#allocation115_spill] sm:$0xff] %v4405_v60 }
 0x6f9   : > { %v1625_v57 = vpop.permute.xlu1 %1624 }
 0x6fa   : > { %v1632_v51 = vmul.f32 %v1625_v57, %v3693_v16  ;;  %v1631_v62 = vmul.f32 %v1625_v57, %v3681_v9  ;;  %v1633_v48 = vmul.f32 %v1625_v57, %v3679_v8  ;;  %v1635_v17 = vmul.f32 %v1625_v57, %v3701_v21 }
 0x6fb   : > { %v1634_v2 = vmul.f32 %v1625_v57, %v3677_v7  ;;  %v1636_v22 = vmul.f32 %v1625_v57, %v3691_v15  ;;  %v1638_v60 = vmul.f32 %v1625_v57, %v3709_v25  ;;  %v1637_v49 = vmul.f32 %v1625_v57, %v3689_v14 }
 0x6fc   : > { %1665 = vrot.lane.b32.xlu1 %v1632_v51, %s3592_s16  ;;  %1663 = vrot.lane.b32.xlu0 %v1631_v62, %s3592_s16  ;;  %v4413_v51 = vpop.permute.xlu0 %749 }
 0x6fd   : > { %1667 = vrot.lane.b32.xlu2 %v1633_v48, %s3592_s16  ;;  %6711 = vst [vmem:[#allocation116_spill] sm:$0xff] %v4413_v51  ;;  %v1629_v48 = vpop.permute.xlu2 %1628 }
 0x6fe   : > { %v1639_v62 = vmul.f32 %v1629_v48, %v3681_v9  ;;  %v1642_v51 = vmul.f32 %v1629_v48, %v3677_v7 }
 0x704   : > { %1671 = vrot.lane.b32.xlu1 %v1635_v17, %s3592_s16  ;;  %1669 = vrot.lane.b32.xlu0 %v1634_v2, %s3592_s16  ;;  %v4421_v17 = vpop.permute.xlu0 %755  ;;  %v1641_v2 = vmul.f32 %v1629_v48, %v3679_v8 }
 0x705   : > { %1673 = vrot.lane.b32.xlu2 %v1636_v22, %s3592_s16  ;;  %6712 = vst [vmem:[#allocation117_spill] sm:$0xff] %v4421_v17  ;;  %v1640_v22 = vmul.f32 %v1629_v48, %v3693_v16 }
 0x70c   : > { %1677 = vrot.lane.b32.xlu1 %v1638_v60, %s3592_s16  ;;  %1675 = vrot.lane.b32.xlu0 %v1637_v49, %s3592_s16  ;;  %v4429_v57 = vpop.permute.xlu0 %761  ;;  %v1644_v60 = vmul.f32 %v1629_v48, %v3691_v15  ;;  %v1645_v49 = vmul.f32 %v1629_v48, %v3689_v14 }
 0x70d   : > { %1679 = vrot.lane.b32.xlu2 %v1639_v62, %s3592_s16  ;;  %6713 = vst [vmem:[#allocation118_spill] sm:$0xff] %v4429_v57  ;;  %v1643_v62 = vmul.f32 %v1629_v48, %v3701_v21 }
 0x714   : > { %1683 = vrot.lane.b32.xlu1 %v1641_v2, %s3592_s16  ;;  %1681 = vrot.lane.b32.xlu0 %v1640_v22, %s3592_s16  ;;  %v1646_v2 = vmul.f32 %v1629_v48, %v3709_v25  ;;  %v4438_v17 = vpop.permute.xlu0 %767 }
 0x715   : > { %1685 = vrot.lane.b32.xlu2 %v1642_v51, %s3592_s16  ;;  %6714 = vst [vmem:[#allocation119_spill] sm:$0xff] %v4438_v17 }
 0x71c   : > { %1689 = vrot.lane.b32.xlu1 %v1644_v60, %s3592_s16  ;;  %1687 = vrot.lane.b32.xlu0 %v1643_v62, %s3592_s16  ;;  %v4459_v52 = vpop.permute.xlu0 %773 }
 0x71d   : > { %1691 = vrot.lane.b32.xlu2 %v1645_v49, %s3592_s16  ;;  %6723 = vst [vmem:[#allocation128_spill] sm:$0xff] %v4459_v52 }
 0x724   : > { %1739 = vperm.xlu1 %3455, %v4235_v5   ;;  %1693 = vrot.lane.b32.xlu0 %v1646_v2, %s3592_s16 }
 0x725   : > { %1743 = vperm.xlu2 %3456, %v4242_v63  }
 0x757   : > { %v4445_v22 = vpop.permute.xlu2 %1667 }
 0x758   : > { %6716 = vst [vmem:[#allocation121_spill] sm:$0xff] %v4445_v22 }
 0x75f   : > { %v4449_v60 = vpop.permute.xlu2 %1673 }
 0x760   : > { %6718 = vst [vmem:[#allocation123_spill] sm:$0xff] %v4449_v60  ;;  %v4466_v60 = vpop.permute.xlu0 %858 }
 0x761   : > { %6725 = vst [vmem:[#allocation130_spill] sm:$0xff] %v4466_v60 }
 0x767   : > { %v4455_v48 = vpop.permute.xlu2 %1679 }
 0x768   : > { %6721 = vst [vmem:[#allocation126_spill] sm:$0xff] %v4455_v48  ;;  %v3595_v48 = vmov 15  }
 0x769   : > { %3457 = vset.pattern.permute.xlu1 %v3595_v48  ;;  %3458 = vset.pattern.permute.xlu2 %v3595_v48 }
 0x76e   : > { %v4443_v51 = vpop.permute.xlu1 %1665 }
 0x76f   : > { %6715 = vst [vmem:[#allocation120_spill] sm:$0xff] %v4443_v51  ;;  %v4461_v2 = vpop.permute.xlu2 %1685 }
 0x770   : > { %6724 = vst [vmem:[#allocation129_spill] sm:$0xff] %v4461_v2 }
 0x776   : > { %v4447_v57 = vpop.permute.xlu1 %1671 }
 0x777   : > { %6717 = vst [vmem:[#allocation122_spill] sm:$0xff] %v4447_v57 }
 0x77e   : > { %v4451_v62 = vpop.permute.xlu1 %1677 }
 0x77f   : > { %6719 = vst [vmem:[#allocation124_spill] sm:$0xff] %v4451_v62 }
 0x786   : > { %v4453_v49 = vpop.permute.xlu1 %1683 }
 0x787   : > { %6720 = vst [vmem:[#allocation125_spill] sm:$0xff] %v4453_v49 }
 0x78e   : > { %v4457_v17 = vpop.permute.xlu1 %1689 }
 0x78f   : > { %6722 = vst [vmem:[#allocation127_spill] sm:$0xff] %v4457_v17  ;;  %v4471_v17 = vpop.permute.xlu2 %1691 }
 0x790   : > { %6726 = vst [vmem:[#allocation131_spill] sm:$0xff] %v4471_v17 }
 0x796   : > { %v1740_v56 = vpop.permute.xlu1 %1739 }
 0x797   : > { %v1747_v51 = vmul.f32 %v1740_v56, %v3693_v16  ;;  %v1746_v22 = vmul.f32 %v1740_v56, %v3681_v9  ;;  %v1748_v57 = vmul.f32 %v1740_v56, %v3679_v8  ;;  %v1750_v49 = vmul.f32 %v1740_v56, %v3701_v21 }
 0x798   : > { %v1749_v2 = vmul.f32 %v1740_v56, %v3677_v7  ;;  %v1751_v62 = vmul.f32 %v1740_v56, %v3691_v15  ;;  %v1753_v17 = vmul.f32 %v1740_v56, %v3709_v25  ;;  %v1752_v48 = vmul.f32 %v1740_v56, %v3689_v14 }
 0x799   : > { %1780 = vrot.lane.b32.xlu1 %v1747_v51, %s3594_s17  ;;  %1778 = vrot.lane.b32.xlu0 %v1746_v22, %s3594_s17  ;;  %v4479_v51 = vpop.permute.xlu0 %864 }
 0x79a   : > { %1782 = vrot.lane.b32.xlu2 %v1748_v57, %s3594_s17  ;;  %6727 = vst [vmem:[#allocation132_spill] sm:$0xff] %v4479_v51  ;;  %v1744_v57 = vpop.permute.xlu2 %1743 }
 0x79b   : > { %v1754_v22 = vmul.f32 %v1744_v57, %v3681_v9  ;;  %v1757_v51 = vmul.f32 %v1744_v57, %v3677_v7 }
 0x7a1   : > { %1786 = vrot.lane.b32.xlu1 %v1750_v49, %s3594_s17  ;;  %1784 = vrot.lane.b32.xlu0 %v1749_v2, %s3594_s17  ;;  %v4487_v49 = vpop.permute.xlu0 %870  ;;  %v1756_v2 = vmul.f32 %v1744_v57, %v3679_v8 }
 0x7a2   : > { %1788 = vrot.lane.b32.xlu2 %v1751_v62, %s3594_s17  ;;  %6728 = vst [vmem:[#allocation133_spill] sm:$0xff] %v4487_v49  ;;  %v1755_v62 = vmul.f32 %v1744_v57, %v3693_v16 }
 0x7a9   : > { %1792 = vrot.lane.b32.xlu1 %v1753_v17, %s3594_s17  ;;  %1790 = vrot.lane.b32.xlu0 %v1752_v48, %s3594_s17  ;;  %v4495_v56 = vpop.permute.xlu0 %876  ;;  %v1759_v17 = vmul.f32 %v1744_v57, %v3691_v15  ;;  %v1760_v48 = vmul.f32 %v1744_v57, %v3689_v14 }
 0x7aa   : > { %1794 = vrot.lane.b32.xlu2 %v1754_v22, %s3594_s17  ;;  %6729 = vst [vmem:[#allocation134_spill] sm:$0xff] %v4495_v56  ;;  %v1758_v22 = vmul.f32 %v1744_v57, %v3701_v21 }
 0x7b1   : > { %1798 = vrot.lane.b32.xlu1 %v1756_v2, %s3594_s17  ;;  %1796 = vrot.lane.b32.xlu0 %v1755_v62, %s3594_s17  ;;  %v1761_v2 = vmul.f32 %v1744_v57, %v3709_v25  ;;  %v4504_v49 = vpop.permute.xlu0 %882 }
 0x7b2   : > { %1800 = vrot.lane.b32.xlu2 %v1757_v51, %s3594_s17  ;;  %6730 = vst [vmem:[#allocation135_spill] sm:$0xff] %v4504_v49 }
 0x7b9   : > { %1804 = vrot.lane.b32.xlu1 %v1759_v17, %s3594_s17  ;;  %1802 = vrot.lane.b32.xlu0 %v1758_v22, %s3594_s17  ;;  %v4509_v51 = vpop.permute.xlu0 %888 }
 0x7ba   : > { %1806 = vrot.lane.b32.xlu2 %v1760_v48, %s3594_s17  ;;  %6731 = vst [vmem:[#allocation136_spill] sm:$0xff] %v4509_v51 }
 0x7c1   : > { %1854 = vperm.xlu1 %3457, %v4235_v5   ;;  %1808 = vrot.lane.b32.xlu0 %v1761_v2, %s3594_s17  ;;  %v4511_v62 = vpop.permute.xlu0 %973 }
 0x7c2   : > { %1858 = vperm.xlu2 %3458, %v4242_v63   ;;  %6732 = vst [vmem:[#allocation137_spill] sm:$0xff] %v4511_v62 }
 0x7c9   : > { %v4513_v56 = vpop.permute.xlu0 %979 }
 0x7ca   : > { %6733 = vst [vmem:[#allocation138_spill] sm:$0xff] %v4513_v56 }
 0x7d1   : > { %v4521_v57 = vpop.permute.xlu0 %985 }
 0x7d2   : > { %6737 = vst [vmem:[#allocation142_spill] sm:$0xff] %v4521_v57 }
 0x7d9   : > { %v4527_v2 = vpop.permute.xlu0 %991 }
 0x7da   : > { %6740 = vst [vmem:[#allocation145_spill] sm:$0xff] %v4527_v2 }
 0x7e1   : > { %v4533_v62 = vpop.permute.xlu0 %997 }
 0x7e2   : > { %6743 = vst [vmem:[#allocation148_spill] sm:$0xff] %v4533_v62 }
 0x7f4   : > { %v4517_v22 = vpop.permute.xlu2 %1782 }
 0x7f5   : > { %6735 = vst [vmem:[#allocation140_spill] sm:$0xff] %v4517_v22  ;;  %v4539_v22 = vpop.permute.xlu0 %1003 }
 0x7f6   : > { %6746 = vst [vmem:[#allocation151_spill] sm:$0xff] %v4539_v22 }
 0x7fc   : > { %v4523_v49 = vpop.permute.xlu2 %1788 }
 0x7fd   : > { %6738 = vst [vmem:[#allocation143_spill] sm:$0xff] %v4523_v49 }
 0x804   : > { %v4531_v51 = vpop.permute.xlu2 %1794 }
 0x805   : > { %6742 = vst [vmem:[#allocation147_spill] sm:$0xff] %v4531_v51 }
 0x80b   : > { %v4515_v17 = vpop.permute.xlu1 %1780 }
 0x80c   : > { %6734 = vst [vmem:[#allocation139_spill] sm:$0xff] %v4515_v17  ;;  %v4537_v17 = vpop.permute.xlu2 %1800 }
 0x80d   : > { %6745 = vst [vmem:[#allocation150_spill] sm:$0xff] %v4537_v17 }
 0x813   : > { %v4519_v48 = vpop.permute.xlu1 %1786 }
 0x814   : > { %6736 = vst [vmem:[#allocation141_spill] sm:$0xff] %v4519_v48  ;;  %v4547_v51 = vpop.permute.xlu2 %1806 }
 0x815   : > { %6747 = vst [vmem:[#allocation152_spill] sm:$0xff] %v4547_v51 }
 0x81b   : > { %v4525_v60 = vpop.permute.xlu1 %1792 }
 0x81c   : > { %6739 = vst [vmem:[#allocation144_spill] sm:$0xff] %v4525_v60 }
 0x823   : > { %v4529_v52 = vpop.permute.xlu1 %1798 }
 0x824   : > { %6741 = vst [vmem:[#allocation146_spill] sm:$0xff] %v4529_v52  ;;  %v4549_v52 = vpop.permute.xlu0 %1088 }
 0x825   : > { %6748 = vst [vmem:[#allocation153_spill] sm:$0xff] %v4549_v52 }
 0x82b   : > { %v4535_v56 = vpop.permute.xlu1 %1804 }
 0x82c   : > { %6744 = vst [vmem:[#allocation149_spill] sm:$0xff] %v4535_v56  ;;  %v3597_v56 = vmov 16   ;;  %v4560_v51 = vpop.permute.xlu0 %1094 }
 0x82d   : > { %3459 = vset.pattern.permute.xlu1 %v3597_v56  ;;  %3460 = vset.pattern.permute.xlu2 %v3597_v56  ;;  %6749 = vst [vmem:[#allocation154_spill] sm:$0xff] %v4560_v51 }
 0x833   : > { %v1855_v48 = vpop.permute.xlu1 %1854 }
 0x834   : > { %v1862_v57 = vmul.f32 %v1855_v48, %v3693_v16  ;;  %v1861_v49 = vmul.f32 %v1855_v48, %v3681_v9  ;;  %v1863_v60 = vmul.f32 %v1855_v48, %v3679_v8  ;;  %v1865_v17 = vmul.f32 %v1855_v48, %v3701_v21  ;;  %v4570_v52 = vpop.permute.xlu0 %1100 }
 0x835   : > { %v1864_v22 = vmul.f32 %v1855_v48, %v3677_v7  ;;  %v1866_v62 = vmul.f32 %v1855_v48, %v3691_v15  ;;  %v1867_v56 = vmul.f32 %v1855_v48, %v3689_v14  ;;  %6750 = vst [vmem:[#allocation155_spill] sm:$0xff] %v4570_v52 }
 0x836   : > { %1895 = vrot.lane.b32.xlu1 %v1862_v57, %s3596_s18  ;;  %1893 = vrot.lane.b32.xlu0 %v1861_v49, %s3596_s18  ;;  %v1868_v57 = vmul.f32 %v1855_v48, %v3709_v25 }
 0x837   : > { %1897 = vrot.lane.b32.xlu2 %v1863_v60, %s3596_s18  ;;  %v1859_v60 = vpop.permute.xlu2 %1858 }
 0x838   : > { %v1869_v49 = vmul.f32 %v1859_v60, %v3681_v9  ;;  %v1874_v48 = vmul.f32 %v1859_v60, %v3691_v15 }
 0x83e   : > { %1901 = vrot.lane.b32.xlu1 %v1865_v17, %s3596_s18  ;;  %1899 = vrot.lane.b32.xlu0 %v1864_v22, %s3596_s18  ;;  %v1871_v17 = vmul.f32 %v1859_v60, %v3679_v8  ;;  %v1870_v22 = vmul.f32 %v1859_v60, %v3693_v16 }
 0x83f   : > { %1903 = vrot.lane.b32.xlu2 %v1866_v62, %s3596_s18  ;;  %v1872_v62 = vmul.f32 %v1859_v60, %v3677_v7 }
 0x846   : > { %1907 = vrot.lane.b32.xlu1 %v1868_v57, %s3596_s18  ;;  %1905 = vrot.lane.b32.xlu0 %v1867_v56, %s3596_s18  ;;  %v1873_v57 = vmul.f32 %v1859_v60, %v3701_v21  ;;  %v4579_v56 = vpop.permute.xlu0 %1106 }
 0x847   : > { %1909 = vrot.lane.b32.xlu2 %v1869_v49, %s3596_s18  ;;  %v1875_v49 = vmul.f32 %v1859_v60, %v3689_v14  ;;  %6751 = vst [vmem:[#allocation156_spill] sm:$0xff] %v4579_v56 }
 0x84e   : > { %1913 = vrot.lane.b32.xlu1 %v1871_v17, %s3596_s18  ;;  %1911 = vrot.lane.b32.xlu0 %v1870_v22, %s3596_s18  ;;  %v1876_v17 = vmul.f32 %v1859_v60, %v3709_v25  ;;  %v4585_v22 = vpop.permute.xlu0 %1112 }
 0x84f   : > { %1915 = vrot.lane.b32.xlu2 %v1872_v62, %s3596_s18  ;;  %6752 = vst [vmem:[#allocation157_spill] sm:$0xff] %v4585_v22 }
 0x856   : > { %1919 = vrot.lane.b32.xlu1 %v1874_v48, %s3596_s18  ;;  %1917 = vrot.lane.b32.xlu0 %v1873_v57, %s3596_s18  ;;  %v4587_v62 = vpop.permute.xlu0 %1118 }
 0x857   : > { %1921 = vrot.lane.b32.xlu2 %v1875_v49, %s3596_s18  ;;  %6753 = vst [vmem:[#allocation158_spill] sm:$0xff] %v4587_v62 }
 0x85e   : > { %1969 = vperm.xlu1 %3459, %v4235_v5   ;;  %1923 = vrot.lane.b32.xlu0 %v1876_v17, %s3596_s18  ;;  %v4589_v52 = vpop.permute.xlu0 %1203 }
 0x85f   : > { %1973 = vperm.xlu2 %3460, %v4242_v63   ;;  %6754 = vst [vmem:[#allocation159_spill] sm:$0xff] %v4589_v52 }
 0x866   : > { %v4591_v48 = vpop.permute.xlu0 %1209 }
 0x867   : > { %6755 = vst [vmem:[#allocation160_spill] sm:$0xff] %v4591_v48 }
 0x86e   : > { %v4593_v57 = vpop.permute.xlu0 %1215 }
 0x86f   : > { %6756 = vst [vmem:[#allocation161_spill] sm:$0xff] %v4593_v57 }
 0x876   : > { %v4595_v49 = vpop.permute.xlu0 %1221 }
 0x877   : > { %6757 = vst [vmem:[#allocation162_spill] sm:$0xff] %v4595_v49 }
 0x87e   : > { %v4597_v56 = vpop.permute.xlu0 %1227 }
 0x87f   : > { %6758 = vst [vmem:[#allocation163_spill] sm:$0xff] %v4597_v56 }
 0x886   : > { %v4599_v60 = vpop.permute.xlu0 %1233 }
 0x887   : > { %6759 = vst [vmem:[#allocation164_spill] sm:$0xff] %v4599_v60 }
 0x88e   : > { %v4605_v2 = vpop.permute.xlu0 %1318 }
 0x88f   : > { %6762 = vst [vmem:[#allocation167_spill] sm:$0xff] %v4605_v2 }
 0x891   : > { %v4603_v17 = vpop.permute.xlu2 %1897 }
 0x892   : > { %6761 = vst [vmem:[#allocation166_spill] sm:$0xff] %v4603_v17 }
 0x896   : > { %v4613_v48 = vpop.permute.xlu0 %1324 }
 0x897   : > { %6766 = vst [vmem:[#allocation171_spill] sm:$0xff] %v4613_v48 }
 0x899   : > { %v4609_v62 = vpop.permute.xlu2 %1903 }
 0x89a   : > { %6764 = vst [vmem:[#allocation169_spill] sm:$0xff] %v4609_v62 }
 0x89e   : > { %v4619_v56 = vpop.permute.xlu0 %1330 }
 0x89f   : > { %6769 = vst [vmem:[#allocation174_spill] sm:$0xff] %v4619_v56 }
 0x8a1   : > { %v4617_v49 = vpop.permute.xlu2 %1909 }
 0x8a2   : > { %6768 = vst [vmem:[#allocation173_spill] sm:$0xff] %v4617_v49 }
 0x8a6   : > { %v4625_v17 = vpop.permute.xlu0 %1336 }
 0x8a7   : > { %6772 = vst [vmem:[#allocation177_spill] sm:$0xff] %v4625_v17 }
 0x8a8   : > { %v4601_v51 = vpop.permute.xlu1 %1895 }
 0x8a9   : > { %6760 = vst [vmem:[#allocation165_spill] sm:$0xff] %v4601_v51  ;;  %v4623_v51 = vpop.permute.xlu2 %1915 }
 0x8aa   : > { %6771 = vst [vmem:[#allocation176_spill] sm:$0xff] %v4623_v51 }
 0x8b0   : > { %v4607_v22 = vpop.permute.xlu1 %1901 }
 0x8b1   : > { %6763 = vst [vmem:[#allocation168_spill] sm:$0xff] %v4607_v22  ;;  %v4633_v49 = vpop.permute.xlu2 %1921 }
 0x8b2   : > { %6773 = vst [vmem:[#allocation178_spill] sm:$0xff] %v4633_v49 }
 0x8b8   : > { %v4611_v52 = vpop.permute.xlu1 %1907 }
 0x8b9   : > { %6765 = vst [vmem:[#allocation170_spill] sm:$0xff] %v4611_v52 }
 0x8c0   : > { %v4615_v57 = vpop.permute.xlu1 %1913 }
 0x8c1   : > { %6767 = vst [vmem:[#allocation172_spill] sm:$0xff] %v4615_v57  ;;  %v4635_v57 = vpop.permute.xlu0 %1342 }
 0x8c2   : > { %6774 = vst [vmem:[#allocation179_spill] sm:$0xff] %v4635_v57 }
 0x8c8   : > { %v4621_v60 = vpop.permute.xlu1 %1919 }
 0x8c9   : > { %6770 = vst [vmem:[#allocation175_spill] sm:$0xff] %v4621_v60  ;;  %v3599_v60 = vmov 17  }
 0x8ca   : > { %3461 = vset.pattern.permute.xlu1 %v3599_v60  ;;  %3462 = vset.pattern.permute.xlu2 %v3599_v60 }
 0x8d0   : > { %v1970_v2 = vpop.permute.xlu1 %1969 }
 0x8d1   : > { %v1977_v22 = vmul.f32 %v1970_v2, %v3693_v16  ;;  %v1976_v62 = vmul.f32 %v1970_v2, %v3681_v9  ;;  %v1978_v52 = vmul.f32 %v1970_v2, %v3679_v8  ;;  %v1980_v51 = vmul.f32 %v1970_v2, %v3701_v21 }
 0x8d2   : > { %v1979_v17 = vmul.f32 %v1970_v2, %v3677_v7  ;;  %v1981_v56 = vmul.f32 %v1970_v2, %v3691_v15  ;;  %v1983_v60 = vmul.f32 %v1970_v2, %v3709_v25  ;;  %v1982_v49 = vmul.f32 %v1970_v2, %v3689_v14 }
 0x8d3   : > { %2010 = vrot.lane.b32.xlu1 %v1977_v22, %s3598_s20  ;;  %2008 = vrot.lane.b32.xlu0 %v1976_v62, %s3598_s20  ;;  %v4644_v62 = vpop.permute.xlu0 %1348 }
 0x8d4   : > { %2012 = vrot.lane.b32.xlu2 %v1978_v52, %s3598_s20  ;;  %v1974_v52 = vpop.permute.xlu2 %1973  ;;  %6775 = vst [vmem:[#allocation180_spill] sm:$0xff] %v4644_v62 }
 0x8d5   : > { %v1984_v22 = vmul.f32 %v1974_v52, %v3681_v9  ;;  %v1989_v2 = vmul.f32 %v1974_v52, %v3691_v15 }
 0x8db   : > { %2016 = vrot.lane.b32.xlu1 %v1980_v51, %s3598_s20  ;;  %2014 = vrot.lane.b32.xlu0 %v1979_v17, %s3598_s20  ;;  %v1986_v51 = vmul.f32 %v1974_v52, %v3679_v8  ;;  %v1985_v17 = vmul.f32 %v1974_v52, %v3693_v16  ;;  %v4654_v57 = vpop.permute.xlu0 %1433 }
 0x8dc   : > { %2018 = vrot.lane.b32.xlu2 %v1981_v56, %s3598_s20  ;;  %v1987_v56 = vmul.f32 %v1974_v52, %v3677_v7  ;;  %6776 = vst [vmem:[#allocation181_spill] sm:$0xff] %v4654_v57 }
 0x8e3   : > { %2022 = vrot.lane.b32.xlu1 %v1983_v60, %s3598_s20  ;;  %2020 = vrot.lane.b32.xlu0 %v1982_v49, %s3598_s20  ;;  %v1988_v49 = vmul.f32 %v1974_v52, %v3701_v21  ;;  %v4662_v60 = vpop.permute.xlu0 %1439 }
 0x8e4   : > { %2024 = vrot.lane.b32.xlu2 %v1984_v22, %s3598_s20  ;;  %v1990_v22 = vmul.f32 %v1974_v52, %v3689_v14  ;;  %6777 = vst [vmem:[#allocation182_spill] sm:$0xff] %v4662_v60 }
 0x8eb   : > { %2028 = vrot.lane.b32.xlu1 %v1986_v51, %s3598_s20  ;;  %2026 = vrot.lane.b32.xlu0 %v1985_v17, %s3598_s20  ;;  %v1991_v51 = vmul.f32 %v1974_v52, %v3709_v25  ;;  %v4671_v17 = vpop.permute.xlu0 %1445 }
 0x8ec   : > { %2030 = vrot.lane.b32.xlu2 %v1987_v56, %s3598_s20  ;;  %6778 = vst [vmem:[#allocation183_spill] sm:$0xff] %v4671_v17 }
 0x8f3   : > { %2034 = vrot.lane.b32.xlu1 %v1989_v2, %s3598_s20  ;;  %2032 = vrot.lane.b32.xlu0 %v1988_v49, %s3598_s20  ;;  %v4673_v56 = vpop.permute.xlu0 %1451 }
 0x8f4   : > { %2036 = vrot.lane.b32.xlu2 %v1990_v22, %s3598_s20  ;;  %6779 = vst [vmem:[#allocation184_spill] sm:$0xff] %v4673_v56 }
 0x8fb   : > { %2084 = vperm.xlu1 %3461, %v4235_v5   ;;  %2038 = vrot.lane.b32.xlu0 %v1991_v51, %s3598_s20  ;;  %v4675_v57 = vpop.permute.xlu0 %1457 }
 0x8fc   : > { %2088 = vperm.xlu2 %3462, %v4242_v63   ;;  %6780 = vst [vmem:[#allocation185_spill] sm:$0xff] %v4675_v57 }
 0x903   : > { %v4677_v60 = vpop.permute.xlu0 %1463 }
 0x904   : > { %6781 = vst [vmem:[#allocation186_spill] sm:$0xff] %v4677_v60 }
 0x90b   : > { %v4679_v2 = vpop.permute.xlu0 %1548 }
 0x90c   : > { %6782 = vst [vmem:[#allocation187_spill] sm:$0xff] %v4679_v2 }
 0x913   : > { %v4681_v49 = vpop.permute.xlu0 %1554 }
 0x914   : > { %6783 = vst [vmem:[#allocation188_spill] sm:$0xff] %v4681_v49 }
 0x91b   : > { %v4683_v22 = vpop.permute.xlu0 %1560 }
 0x91c   : > { %6784 = vst [vmem:[#allocation189_spill] sm:$0xff] %v4683_v22 }
 0x923   : > { %v4685_v52 = vpop.permute.xlu0 %1566 }
 0x924   : > { %6785 = vst [vmem:[#allocation190_spill] sm:$0xff] %v4685_v52 }
 0x92b   : > { %v4691_v48 = vpop.permute.xlu0 %1572 }
 0x92c   : > { %6788 = vst [vmem:[#allocation193_spill] sm:$0xff] %v4691_v48 }
 0x92e   : > { %v4689_v51 = vpop.permute.xlu2 %2012 }
 0x92f   : > { %6787 = vst [vmem:[#allocation192_spill] sm:$0xff] %v4689_v51 }
 0x933   : > { %v4697_v57 = vpop.permute.xlu0 %1578 }
 0x934   : > { %6791 = vst [vmem:[#allocation196_spill] sm:$0xff] %v4697_v57 }
 0x936   : > { %v4695_v56 = vpop.permute.xlu2 %2018 }
 0x937   : > { %6790 = vst [vmem:[#allocation195_spill] sm:$0xff] %v4695_v56 }
 0x93b   : > { %v4701_v2 = vpop.permute.xlu0 %1663 }
 0x93c   : > { %6793 = vst [vmem:[#allocation198_spill] sm:$0xff] %v4701_v2 }
 0x93e   : > { %v4705_v22 = vpop.permute.xlu2 %2024 }
 0x93f   : > { %6795 = vst [vmem:[#allocation200_spill] sm:$0xff] %v4705_v22  ;;  %v3601_v22 = vmov 18  }
 0x940   : > { %3463 = vset.pattern.permute.xlu1 %v3601_v22  ;;  %3464 = vset.pattern.permute.xlu2 %v3601_v22 }
 0x945   : > { %v4687_v62 = vpop.permute.xlu1 %2010 }
 0x946   : > { %6786 = vst [vmem:[#allocation191_spill] sm:$0xff] %v4687_v62  ;;  %v4709_v62 = vpop.permute.xlu0 %1669  ;;  %v4711_v51 = vpop.permute.xlu2 %2030 }
 0x947   : > { %6797 = vst [vmem:[#allocation202_spill] sm:$0xff] %v4709_v62 }
 0x948   : > { %6798 = vst [vmem:[#allocation203_spill] sm:$0xff] %v4711_v51 }
 0x94d   : > { %v4693_v17 = vpop.permute.xlu1 %2016 }
 0x94e   : > { %6789 = vst [vmem:[#allocation194_spill] sm:$0xff] %v4693_v17 }
 0x955   : > { %v4699_v60 = vpop.permute.xlu1 %2022 }
 0x956   : > { %6792 = vst [vmem:[#allocation197_spill] sm:$0xff] %v4699_v60 }
 0x95d   : > { %v4703_v49 = vpop.permute.xlu1 %2028 }
 0x95e   : > { %6794 = vst [vmem:[#allocation199_spill] sm:$0xff] %v4703_v49  ;;  %v4718_v49 = vpop.permute.xlu0 %1675 }
 0x95f   : > { %6799 = vst [vmem:[#allocation204_spill] sm:$0xff] %v4718_v49 }
 0x965   : > { %v4707_v52 = vpop.permute.xlu1 %2034 }
 0x966   : > { %6796 = vst [vmem:[#allocation201_spill] sm:$0xff] %v4707_v52  ;;  %v4721_v52 = vpop.permute.xlu2 %2036 }
 0x967   : > { %6800 = vst [vmem:[#allocation205_spill] sm:$0xff] %v4721_v52 }
 0x96d   : > { %v2085_v48 = vpop.permute.xlu1 %2084 }
 0x96e   : > { %v2092_v17 = vmul.f32 %v2085_v48, %v3693_v16  ;;  %v2091_v56 = vmul.f32 %v2085_v48, %v3681_v9  ;;  %v2093_v57 = vmul.f32 %v2085_v48, %v3679_v8  ;;  %v2095_v51 = vmul.f32 %v2085_v48, %v3701_v21 }
 0x96f   : > { %v2094_v60 = vmul.f32 %v2085_v48, %v3677_v7  ;;  %v2096_v62 = vmul.f32 %v2085_v48, %v3691_v15  ;;  %v2098_v52 = vmul.f32 %v2085_v48, %v3709_v25  ;;  %v2097_v22 = vmul.f32 %v2085_v48, %v3689_v14 }
 0x970   : > { %2125 = vrot.lane.b32.xlu1 %v2092_v17, %s3600_s21  ;;  %2123 = vrot.lane.b32.xlu0 %v2091_v56, %s3600_s21  ;;  %v2089_v17 = vpop.permute.xlu2 %2088  ;;  %v4729_v56 = vpop.permute.xlu0 %1681 }
 0x971   : > { %2127 = vrot.lane.b32.xlu2 %v2093_v57, %s3600_s21  ;;  %6801 = vst [vmem:[#allocation206_spill] sm:$0xff] %v4729_v56  ;;  %v2099_v57 = vmul.f32 %v2089_v17, %v3681_v9  ;;  %v2102_v56 = vmul.f32 %v2089_v17, %v3677_v7  ;;  %v2104_v48 = vmul.f32 %v2089_v17, %v3691_v15 }
 0x978   : > { %2131 = vrot.lane.b32.xlu1 %v2095_v51, %s3600_s21  ;;  %2129 = vrot.lane.b32.xlu0 %v2094_v60, %s3600_s21  ;;  %v2101_v51 = vmul.f32 %v2089_v17, %v3679_v8  ;;  %v2100_v60 = vmul.f32 %v2089_v17, %v3693_v16 }
 0x979   : > { %2133 = vrot.lane.b32.xlu2 %v2096_v62, %s3600_s21  ;;  %v4739_v62 = vpop.permute.xlu0 %1687 }
 0x97a   : > { %6802 = vst [vmem:[#allocation207_spill] sm:$0xff] %v4739_v62 }
 0x980   : > { %2137 = vrot.lane.b32.xlu1 %v2098_v52, %s3600_s21  ;;  %2135 = vrot.lane.b32.xlu0 %v2097_v22, %s3600_s21  ;;  %v2103_v52 = vmul.f32 %v2089_v17, %v3701_v21 }
 0x981   : > { %2139 = vrot.lane.b32.xlu2 %v2099_v57, %s3600_s21  ;;  %v4747_v22 = vpop.permute.xlu0 %1693  ;;  %v2105_v57 = vmul.f32 %v2089_v17, %v3689_v14 }
 0x982   : > { %6803 = vst [vmem:[#allocation208_spill] sm:$0xff] %v4747_v22 }
 0x988   : > { %2143 = vrot.lane.b32.xlu1 %v2101_v51, %s3600_s21  ;;  %2141 = vrot.lane.b32.xlu0 %v2100_v60, %s3600_s21  ;;  %v2106_v51 = vmul.f32 %v2089_v17, %v3709_v25 }
 0x989   : > { %2145 = vrot.lane.b32.xlu2 %v2102_v56, %s3600_s21  ;;  %v4754_v62 = vpop.permute.xlu0 %1778 }
 0x98a   : > { %6804 = vst [vmem:[#allocation209_spill] sm:$0xff] %v4754_v62 }
 0x990   : > { %2149 = vrot.lane.b32.xlu1 %v2104_v48, %s3600_s21  ;;  %2147 = vrot.lane.b32.xlu0 %v2103_v52, %s3600_s21 }
 0x991   : > { %2151 = vrot.lane.b32.xlu2 %v2105_v57, %s3600_s21  ;;  %v4759_v56 = vpop.permute.xlu0 %1784 }
 0x992   : > { %6805 = vst [vmem:[#allocation210_spill] sm:$0xff] %v4759_v56 }
 0x998   : > { %2199 = vperm.xlu1 %3463, %v4235_v5   ;;  %2153 = vrot.lane.b32.xlu0 %v2106_v51, %s3600_s21 }
 0x999   : > { %2203 = vperm.xlu2 %3464, %v4242_v63   ;;  %v4761_v60 = vpop.permute.xlu0 %1790 }
 0x99a   : > { %6806 = vst [vmem:[#allocation211_spill] sm:$0xff] %v4761_v60 }
 0x9a1   : > { %v4763_v22 = vpop.permute.xlu0 %1796 }
 0x9a2   : > { %6807 = vst [vmem:[#allocation212_spill] sm:$0xff] %v4763_v22 }
 0x9a9   : > { %v4765_v48 = vpop.permute.xlu0 %1802 }
 0x9aa   : > { %6808 = vst [vmem:[#allocation213_spill] sm:$0xff] %v4765_v48 }
 0x9b1   : > { %v4767_v52 = vpop.permute.xlu0 %1808 }
 0x9b2   : > { %6809 = vst [vmem:[#allocation214_spill] sm:$0xff] %v4767_v52 }
 0x9b9   : > { %v4769_v57 = vpop.permute.xlu0 %1893 }
 0x9ba   : > { %6810 = vst [vmem:[#allocation215_spill] sm:$0xff] %v4769_v57 }
 0x9c1   : > { %v4771_v17 = vpop.permute.xlu0 %1899 }
 0x9c2   : > { %6811 = vst [vmem:[#allocation216_spill] sm:$0xff] %v4771_v17 }
 0x9c9   : > { %v4775_v49 = vpop.permute.xlu0 %1905 }
 0x9ca   : > { %6813 = vst [vmem:[#allocation218_spill] sm:$0xff] %v4775_v49 }
 0x9cb   : > { %v4777_v51 = vpop.permute.xlu2 %2127 }
 0x9cc   : > { %6814 = vst [vmem:[#allocation219_spill] sm:$0xff] %v4777_v51 }
 0x9d1   : > { %v4781_v56 = vpop.permute.xlu0 %1911 }
 0x9d2   : > { %6816 = vst [vmem:[#allocation221_spill] sm:$0xff] %v4781_v56 }
 0x9d3   : > { %v4783_v60 = vpop.permute.xlu2 %2133 }
 0x9d4   : > { %6817 = vst [vmem:[#allocation222_spill] sm:$0xff] %v4783_v60 }
 0x9d9   : > { %v4787_v48 = vpop.permute.xlu0 %1917 }
 0x9da   : > { %6819 = vst [vmem:[#allocation224_spill] sm:$0xff] %v4787_v48 }
 0x9db   : > { %v4791_v57 = vpop.permute.xlu2 %2139 }
 0x9dc   : > { %6821 = vst [vmem:[#allocation226_spill] sm:$0xff] %v4791_v57 }
 0x9e2   : > { %v4773_v62 = vpop.permute.xlu1 %2125 }
 0x9e3   : > { %6812 = vst [vmem:[#allocation217_spill] sm:$0xff] %v4773_v62  ;;  %v4795_v62 = vpop.permute.xlu0 %1923  ;;  %v4797_v49 = vpop.permute.xlu2 %2145 }
 0x9e4   : > { %6823 = vst [vmem:[#allocation228_spill] sm:$0xff] %v4795_v62  ;;  %v3603_v62 = vmov 19  }
 0x9e5   : > { %6824 = vst [vmem:[#allocation229_spill] sm:$0xff] %v4797_v49  ;;  %3465 = vset.pattern.permute.xlu1 %v3603_v62  ;;  %3466 = vset.pattern.permute.xlu2 %v3603_v62 }
 0x9ea   : > { %v4779_v2 = vpop.permute.xlu1 %2131 }
 0x9eb   : > { %6815 = vst [vmem:[#allocation220_spill] sm:$0xff] %v4779_v2  ;;  %v4799_v2 = vpop.permute.xlu0 %2008 }
 0x9ec   : > { %6825 = vst [vmem:[#allocation230_spill] sm:$0xff] %v4799_v2 }
 0x9f2   : > { %v4785_v22 = vpop.permute.xlu1 %2137 }
 0x9f3   : > { %6818 = vst [vmem:[#allocation223_spill] sm:$0xff] %v4785_v22  ;;  %v4812_v49 = vpop.permute.xlu0 %2014 }
 0x9f4   : > { %6827 = vst [vmem:[#allocation232_spill] sm:$0xff] %v4812_v49 }
 0x9fa   : > { %v4789_v52 = vpop.permute.xlu1 %2143 }
 0x9fb   : > { %6820 = vst [vmem:[#allocation225_spill] sm:$0xff] %v4789_v52 }
 0xa02   : > { %v4793_v17 = vpop.permute.xlu1 %2149 }
 0xa03   : > { %6822 = vst [vmem:[#allocation227_spill] sm:$0xff] %v4793_v17  ;;  %v4807_v17 = vpop.permute.xlu2 %2151 }
 0xa04   : > { %6826 = vst [vmem:[#allocation231_spill] sm:$0xff] %v4807_v17  ;;  %v4823_v17 = vpop.permute.xlu0 %2020 }
 0xa05   : > { %6828 = vst [vmem:[#allocation233_spill] sm:$0xff] %v4823_v17 }
 0xa0a   : > { %v2200_v51 = vpop.permute.xlu1 %2199 }
 0xa0b   : > { %v2207_v56 = vmul.f32 %v2200_v51, %v3693_v16  ;;  %v2206_v60 = vmul.f32 %v2200_v51, %v3681_v9  ;;  %v2208_v22 = vmul.f32 %v2200_v51, %v3679_v8  ;;  %v2210_v2 = vmul.f32 %v2200_v51, %v3701_v21 }
 0xa0c   : > { %v2209_v57 = vmul.f32 %v2200_v51, %v3677_v7  ;;  %v2211_v52 = vmul.f32 %v2200_v51, %v3691_v15  ;;  %v2212_v62 = vmul.f32 %v2200_v51, %v3689_v14 }
 0xa0d   : > { %2240 = vrot.lane.b32.xlu1 %v2207_v56, %s3602_s22  ;;  %2238 = vrot.lane.b32.xlu0 %v2206_v60, %s3602_s22  ;;  %v2213_v60 = vmul.f32 %v2200_v51, %v3709_v25  ;;  %v4831_v51 = vpop.permute.xlu0 %2026 }
 0xa0e   : > { %2242 = vrot.lane.b32.xlu2 %v2208_v22, %s3602_s22  ;;  %v2204_v22 = vpop.permute.xlu2 %2203  ;;  %6829 = vst [vmem:[#allocation234_spill] sm:$0xff] %v4831_v51 }
 0xa0f   : > { %v2214_v56 = vmul.f32 %v2204_v22, %v3681_v9 }
 0xa15   : > { %2246 = vrot.lane.b32.xlu1 %v2210_v2, %s3602_s22  ;;  %2244 = vrot.lane.b32.xlu0 %v2209_v57, %s3602_s22  ;;  %v2216_v2 = vmul.f32 %v2204_v22, %v3679_v8  ;;  %v2215_v57 = vmul.f32 %v2204_v22, %v3693_v16  ;;  %v4839_v48 = vpop.permute.xlu0 %2032 }
 0xa16   : > { %2248 = vrot.lane.b32.xlu2 %v2211_v52, %s3602_s22  ;;  %v2217_v52 = vmul.f32 %v2204_v22, %v3677_v7  ;;  %6830 = vst [vmem:[#allocation235_spill] sm:$0xff] %v4839_v48 }
 0xa1d   : > { %2252 = vrot.lane.b32.xlu1 %v2213_v60, %s3602_s22  ;;  %2250 = vrot.lane.b32.xlu0 %v2212_v62, %s3602_s22  ;;  %v2219_v60 = vmul.f32 %v2204_v22, %v3691_v15  ;;  %v2220_v62 = vmul.f32 %v2204_v22, %v3689_v14 }
 0xa1e   : > { %2254 = vrot.lane.b32.xlu2 %v2214_v56, %s3602_s22  ;;  %v2218_v56 = vmul.f32 %v2204_v22, %v3701_v21 }
 0xa25   : > { %2258 = vrot.lane.b32.xlu1 %v2216_v2, %s3602_s22  ;;  %2256 = vrot.lane.b32.xlu0 %v2215_v57, %s3602_s22  ;;  %v2221_v2 = vmul.f32 %v2204_v22, %v3709_v25  ;;  %v4845_v57 = vpop.permute.xlu0 %2038 }
 0xa26   : > { %2260 = vrot.lane.b32.xlu2 %v2217_v52, %s3602_s22  ;;  %6831 = vst [vmem:[#allocation236_spill] sm:$0xff] %v4845_v57 }
 0xa2d   : > { %2264 = vrot.lane.b32.xlu1 %v2219_v60, %s3602_s22  ;;  %2262 = vrot.lane.b32.xlu0 %v2218_v56, %s3602_s22  ;;  %v4847_v52 = vpop.permute.xlu0 %2123 }
 0xa2e   : > { %2266 = vrot.lane.b32.xlu2 %v2220_v62, %s3602_s22  ;;  %6832 = vst [vmem:[#allocation237_spill] sm:$0xff] %v4847_v52 }
 0xa35   : > { %2314 = vperm.xlu1 %3465, %v4235_v5   ;;  %2268 = vrot.lane.b32.xlu0 %v2221_v2, %s3602_s22  ;;  %v4849_v51 = vpop.permute.xlu0 %2129 }
 0xa36   : > { %2318 = vperm.xlu2 %3466, %v4242_v63   ;;  %6833 = vst [vmem:[#allocation238_spill] sm:$0xff] %v4849_v51 }
 0xa3d   : > { %v4851_v60 = vpop.permute.xlu0 %2135 }
 0xa3e   : > { %6834 = vst [vmem:[#allocation239_spill] sm:$0xff] %v4851_v60 }
 0xa45   : > { %v4853_v56 = vpop.permute.xlu0 %2141 }
 0xa46   : > { %6835 = vst [vmem:[#allocation240_spill] sm:$0xff] %v4853_v56 }
 0xa4d   : > { %v4855_v62 = vpop.permute.xlu0 %2147 }
 0xa4e   : > { %6836 = vst [vmem:[#allocation241_spill] sm:$0xff] %v4855_v62 }
 0xa55   : > { %v4859_v22 = vpop.permute.xlu0 %2153 }
 0xa56   : > { %6838 = vst [vmem:[#allocation243_spill] sm:$0xff] %v4859_v22 }
 0xa68   : > { %v4857_v48 = vpop.permute.xlu2 %2242 }
 0xa69   : > { %6837 = vst [vmem:[#allocation242_spill] sm:$0xff] %v4857_v48 }
 0xa70   : > { %v4865_v63 = vpop.permute.xlu2 %2248 }
 0xa71   : > { %6841 = vst [vmem:[#allocation246_spill] sm:$0xff] %v4865_v63 }
 0xa78   : > { %v2255_v17 = vpop.permute.xlu2 %2254 }
 0xa7f   : > { %v4861_v5 = vpop.permute.xlu1 %2240  ;;  %v4863_v2 = vpop.permute.xlu0 %2238 }
 0xa80   : > { %6839 = vst [vmem:[#allocation244_spill] sm:$0xff] %v4861_v5  ;;  %v2261_v22 = vpop.permute.xlu2 %2260 }
 0xa81   : > { %6840 = vst [vmem:[#allocation245_spill] sm:$0xff] %v4863_v2 }
 0xa87   : > { %v4867_v57 = vpop.permute.xlu1 %2246  ;;  %v4869_v52 = vpop.permute.xlu0 %2244 }
 0xa88   : > { %6842 = vst [vmem:[#allocation247_spill] sm:$0xff] %v4867_v57 }
 0xa89   : > { %6843 = vst [vmem:[#allocation248_spill] sm:$0xff] %v4869_v52  ;;  %v4886_v52 = vpop.permute.xlu2 %2266 }
 0xa8a   : > { %6849 = vst [vmem:[#allocation254_spill] sm:$0xff] %v4886_v52 }
 0xa8f   : > { %v2253_v60 = vpop.permute.xlu1 %2252  ;;  %v4871_v56 = vpop.permute.xlu0 %2250 }
 0xa90   : > { %6844 = vst [vmem:[#allocation249_spill] sm:$0xff] %v4871_v56  ;;  %v4875_v62 = vsel %vm2270_vm0, %v4871_v56, %v2253_v60 }
 0xa91   : > { %6845 = vst [vmem:[#allocation250_spill] sm:$0xff] %v4875_v62 }
 0xa97   : > { %v2259_v48 = vpop.permute.xlu1 %2258  ;;  %v2257_v5 = vpop.permute.xlu0 %2256 }
 0xa98   : > { %v4878_v2 = vsel %vm2270_vm0, %v2259_v48, %v2261_v22  ;;  %v4881_v63 = vsel %vm2270_vm0, %v2255_v17, %v2257_v5  ;;  %v4884_v57 = vsel %vm2270_vm0, %v2257_v5, %v2259_v48 }
 0xa99   : > { %6846 = vst [vmem:[#allocation251_spill] sm:$0xff] %v4878_v2 }
 0xa9a   : > { %6847 = vst [vmem:[#allocation252_spill] sm:$0xff] %v4881_v63  ;;  %v208_v63 = vmul.f32 %v3701_v21, %v3728_v37 }
 0xa9b   : > { %6848 = vst [vmem:[#allocation253_spill] sm:$0xff] %v4884_v57  ;;  %v204_v57 = vmul.f32 %v3681_v9, %v3728_v37 }
 0xa9f   : > { %v2265_v51 = vpop.permute.xlu1 %2264  ;;  %v2263_v49 = vpop.permute.xlu0 %2262 }
 0xaa0   : > { %v4890_v60 = vsel %vm2270_vm0, %v2265_v51, %v4886_v52  ;;  %v4893_v62 = vsel %vm2270_vm0, %v2261_v22, %v2263_v49  ;;  %v4896_v56 = vsel %vm2270_vm0, %v2263_v49, %v2265_v51  ;;  %v3605_v52 = vmov 20  }
 0xaa1   : > { %6850 = vst [vmem:[#allocation255_spill] sm:$0xff] %v4890_v60  ;;  %3467 = vset.pattern.permute.xlu1 %v3605_v52  ;;  %3468 = vset.pattern.permute.xlu2 %v3605_v52  ;;  %v200_v52 = vmul.f32 %v3677_v7, %v3717_v29  ;;  %v316_v60 = vsel %vm315_vm1, %v3769_v59, %v3777_v1 }
 0xaa2   : > { %6851 = vst [vmem:[#allocation256_spill] sm:$0xff] %v4893_v62  ;;  %v205_v62 = vmul.f32 %v3693_v16, %v3728_v37  ;;  %v318_v59 = vsel %vm315_vm1, %v4164_v10, %v3791_v12  ;;  %v321_v1 = vsel %vm315_vm1, %v4185_v0, %v3799_v19  ;;  %v324_v0 = vsel %vm315_vm1, %v3806_v23, %v3801_v20 }
 0xaa3   : > { %6852 = vst [vmem:[#allocation257_spill] sm:$0xff] %v4896_v56  ;;  %v4919_v56 = vpop.permute.xlu2 %2318 }
 0xaa4   : > { %v2329_v46 = vmul.f32 %v4919_v56, %v3681_v9 }
 0xaa7   : > { %v2315_v2 = vpop.permute.xlu1 %2314 }
 0xaa8   : > { %v2322_v17 = vmul.f32 %v2315_v2, %v3693_v16  ;;  %v2321_v48 = vmul.f32 %v2315_v2, %v3681_v9  ;;  %v2323_v5 = vmul.f32 %v2315_v2, %v3679_v8  ;;  %v2325_v49 = vmul.f32 %v2315_v2, %v3701_v21 }
 0xaa9   : > { %v2324_v51 = vmul.f32 %v2315_v2, %v3677_v7  ;;  %v2326_v22 = vmul.f32 %v2315_v2, %v3691_v15  ;;  %v2327_v43 = vmul.f32 %v2315_v2, %v3689_v14 }
 0xaaa   : > { %2355 = vrot.lane.b32.xlu1 %v2322_v17, %s3604_s23  ;;  %2353 = vrot.lane.b32.xlu0 %v2321_v48, %s3604_s23  ;;  %v6588_v17 = vmov 21   ;;  %v197_v48 = vmul.f32 %v3681_v9, %v3717_v29  ;;  %v209_v9 = vmul.f32 %v3691_v15, %v3728_v37 }
 0xaab   : > { %2357 = vrot.lane.b32.xlu2 %v2323_v5, %s3604_s23  ;;  %3469 = vset.pattern.permute.xlu0 %v6588_v17  ;;  %v198_v5 = vmul.f32 %v3693_v16, %v3717_v29  ;;  %v202_v17 = vmul.f32 %v3691_v15, %v3717_v29 }
 0xaac   : > { %v344_v10 = vadd.f32 %v316_v60, %v197_v48 }
 0xaad   : > { %v349_v19 = vadd.f32 %v321_v1, %v202_v17  ;;  %v2334_v1 = vmul.f32 %v4919_v56, %v3691_v15 }
 0xab2   : > { %2361 = vrot.lane.b32.xlu1 %v2325_v49, %s3604_s23  ;;  %2359 = vrot.lane.b32.xlu0 %v2324_v51, %s3604_s23  ;;  %v199_v49 = vmul.f32 %v3679_v8, %v3717_v29  ;;  %v203_v51 = vmul.f32 %v3689_v14, %v3717_v29 }
 0xab3   : > { %2363 = vrot.lane.b32.xlu2 %v2326_v22, %s3604_s23  ;;  %v201_v22 = vmul.f32 %v3701_v21, %v3717_v29  ;;  %v319_v29 = vsel %vm315_vm1, %v3791_v12, %v3785_v6  ;;  %v2328_v21 = vmul.f32 %v2315_v2, %v3709_v25  ;;  %v207_v12 = vmul.f32 %v3677_v7, %v3728_v37 }
 0xab4   : > { %v347_v44 = vadd.f32 %v319_v29, %v200_v52  ;;  %v345_v6 = vadd.f32 %v317_v55, %v198_v5  ;;  %v346_v2 = vadd.f32 %v318_v59, %v199_v49  ;;  %v350_v25 = vadd.f32 %v322_v47, %v203_v51  ;;  %v6853_v51 = vld [vmem:[#allocation6_spill] sm:$0xff] }
 0xab5   : > { %v348_v45 = vadd.f32 %v320_v54, %v201_v22  ;;  %v323_v37 = vsel %vm315_vm1, %v4192_v3, %v3806_v23  ;;  %v328_v47 = vsel %vm315_vm1, %v3808_v24, %v4213_v18  ;;  %v329_v23 = vsel %vm315_vm1, %v4213_v18, %v3817_v30 }
 0xab6   : > { %v431_v3 = vsel %vm430_vm2, %v3821_v32, %v3814_v28  ;;  %v2331_v54 = vmul.f32 %v4919_v56, %v3679_v8  ;;  %v2332_v30 = vmul.f32 %v4919_v56, %v3677_v7  ;;  %v356_v17 = vadd.f32 %v328_v47, %v209_v9 }
 0xab7   : > { %v432_v32 = vsel %vm430_vm2, %v3814_v28, %v3825_v34  ;;  %v357_v48 = vadd.f32 %v329_v23, %v210_v13  ;;  %v459_v52 = vadd.f32 %v431_v3, %v344_v10  ;;  %v433_v8 = vsel %vm430_vm2, %v3825_v34, %v3819_v31  ;;  %v6857_v13 = vld [vmem:[#allocation85_spill] sm:$0xff]  ;;  %v6858_v10 = vld [vmem:[#allocation8_spill] sm:$0xff]  ;;  %v6863_v3 = vld [vmem:[#allocation87_spill] sm:$0xff] }
 0xab8   : > { %v435_v7 = vsel %vm430_vm2, %v4221_v4, %v3829_v36  ;;  %v460_v28 = vadd.f32 %v432_v32, %v345_v6  ;;  %v438_v34 = vsel %vm430_vm2, %v3833_v39, %v3827_v35  ;;  %v444_v49 = vsel %vm430_vm2, %v3839_v42, %v3837_v41  ;;  %v6856_v41 = vld [vmem:[#allocation2_spill] sm:$0xff]  ;;  %v6862_v23 = vld [vmem:[#allocation9_spill] sm:$0xff]  ;;  %v6868_v32 = vld [vmem:[#allocation12_spill] sm:$0xff] }
 0xab9   : > { %v551_v6 = vsel %vm545_vm3, %v6858_v10, %v6857_v13 }
 0xaba   : > { %2367 = vrot.lane.b32.xlu1 %v2328_v21, %s3604_s23  ;;  %2365 = vrot.lane.b32.xlu0 %v2327_v43, %s3604_s23  ;;  %v327_v21 = vsel %vm315_vm1, %v3812_v27, %v3808_v24  ;;  %v325_v43 = vsel %vm315_vm1, %v3801_v20, %v4205_v11  ;;  %v434_v20 = vsel %vm430_vm2, %v3819_v31, %v4221_v4 }
 0xabb   : > { %2369 = vrot.lane.b32.xlu2 %v2329_v46, %s3604_s23  ;;  %v326_v46 = vsel %vm315_vm1, %v4205_v11, %v3812_v27  ;;  %v2330_v27 = vmul.f32 %v4919_v56, %v3693_v16  ;;  %v352_v11 = vadd.f32 %v324_v0, %v205_v62  ;;  %v351_v24 = vadd.f32 %v323_v37, %v204_v57  ;;  %v6859_v0 = vld [vmem:[#allocation7_spill] sm:$0xff] }
 0xabc   : > { %v355_v55 = vadd.f32 %v327_v21, %v208_v63  ;;  %v353_v18 = vadd.f32 %v325_v43, %v206_v50  ;;  %v354_v60 = vadd.f32 %v326_v46, %v207_v12  ;;  %v462_v5 = vadd.f32 %v434_v20, %v347_v44  ;;  %v6860_v43 = vld [vmem:[#allocation86_spill] sm:$0xff]  ;;  %v6861_v46 = vld [vmem:[#allocation11_spill] sm:$0xff]  ;;  %v6864_v20 = vld [vmem:[#allocation13_spill] sm:$0xff] }
 0xabd   : > { %v437_v16 = vsel %vm430_vm2, %v3823_v33, %v4230_v61  ;;  %v436_v50 = vsel %vm430_vm2, %v3829_v36, %v3823_v33  ;;  %v439_v31 = vsel %vm430_vm2, %v3827_v35, %v4261_v58  ;;  %v461_v44 = vadd.f32 %v433_v8, %v346_v2 }
 0xabe   : > { %v442_v33 = vsel %vm430_vm2, %v3831_v38, %v4271_v53  ;;  %v440_v36 = vsel %vm430_vm2, %v4261_v58, %v3835_v40  ;;  %v441_v61 = vsel %vm430_vm2, %v3835_v40, %v3831_v38  ;;  %v465_v4 = vadd.f32 %v437_v16, %v350_v25  ;;  %v6854_v25 = vld [vmem:[#allocation5_spill] sm:$0xff]  ;;  %v6855_v40 = vld [vmem:[#allocation4_spill] sm:$0xff] }
 0xabf   : > { %v463_v57 = vadd.f32 %v435_v7, %v348_v45  ;;  %v464_v62 = vadd.f32 %v436_v50, %v349_v19  ;;  %v443_v35 = vsel %vm430_vm2, %v4271_v53, %v3839_v42  ;;  %v467_v39 = vadd.f32 %v439_v31, %v352_v11  ;;  %v6869_v7 = vld [vmem:[#allocation16_spill] sm:$0xff]  ;;  %v6870_v50 = vld [vmem:[#allocation15_spill] sm:$0xff] }
 0xac0   : > { %v466_v63 = vadd.f32 %v438_v34, %v351_v24  ;;  %v548_v58 = vsel %vm545_vm3, %v6853_v51, %v4281_v26  ;;  %v470_v22 = vadd.f32 %v442_v33, %v355_v55  ;;  %v468_v29 = vadd.f32 %v440_v36, %v353_v18  ;;  %v6866_v18 = vld [vmem:[#allocation96_spill] sm:$0xff] }
 0xac1   : > { %v469_v38 = vadd.f32 %v441_v61, %v354_v60  ;;  %v546_v45 = vsel %vm545_vm3, %v6855_v40, %v6854_v25  ;;  %v471_v59 = vadd.f32 %v443_v35, %v356_v17  ;;  %v547_v53 = vsel %vm545_vm3, %v6854_v25, %v6853_v51  ;;  %v6867_v60 = vld [vmem:[#allocation14_spill] sm:$0xff]  ;;  %v6874_v35 = vld [vmem:[#allocation3_spill] sm:$0xff]  ;;  %v6876_v25 = vld [vmem:[#allocation101_spill] sm:$0xff] }
 0xac2   : > { %2373 = vrot.lane.b32.xlu1 %v2331_v54, %s3604_s23  ;;  %2371 = vrot.lane.b32.xlu0 %v2330_v27, %s3604_s23  ;;  %v2333_v42 = vmul.f32 %v4919_v56, %v6856_v41  ;;  %v472_v12 = vadd.f32 %v444_v49, %v357_v48  ;;  %v576_v9 = vadd.f32 %v548_v58, %v461_v44  ;;  %v6865_v27 = vld [vmem:[#allocation10_spill] sm:$0xff]  ;;  %v6875_v58 = vld [vmem:[#allocation100_spill] sm:$0xff]  ;;  %v6877_v40 = vld [vmem:[#allocation19_spill] sm:$0xff] }
 0xac3   : > { %2375 = vrot.lane.b32.xlu2 %v2332_v30, %s3604_s23  ;;  %v2335_v2 = vmul.f32 %v4919_v56, %v3689_v14  ;;  %v574_v19 = vadd.f32 %v546_v45, %v459_v52  ;;  %v549_v37 = vsel %vm545_vm3, %v4281_v26, %v6859_v0  ;;  %v550_v15 = vsel %vm545_vm3, %v6859_v0, %v6858_v10  ;;  %v6871_v44 = vld [vmem:[#allocation98_spill] sm:$0xff]  ;;  %v3553_v10 = vld [vmem:[%s6405_s1 + $0x8] sm:$0xff]  ;;  %v6882_v0 = vld [vmem:[#allocation24_spill] sm:$0xff] }
 0xac4   : > { %v575_v21 = vadd.f32 %v547_v53, %v460_v28  ;;  %v553_v47 = vsel %vm545_vm3, %v6861_v46, %v6860_v43  ;;  %v552_v14 = vsel %vm545_vm3, %v6857_v13, %v6862_v23  ;;  %v579_v26 = vadd.f32 %v551_v6, %v464_v62  ;;  %v6873_v62 = vld [vmem:[#allocation17_spill] sm:$0xff]  ;;  %v6878_v53 = vld [vmem:[#allocation23_spill] sm:$0xff] }
 0xac5   : > { %v556_v54 = vsel %vm545_vm3, %v6864_v20, %v6863_v3  ;;  %v554_v11 = vsel %vm545_vm3, %v6860_v43, %v6865_v27  ;;  %v555_v24 = vsel %vm545_vm3, %v6865_v27, %v6864_v20  ;;  %v577_v55 = vadd.f32 %v549_v37, %v462_v5  ;;  %v6883_v37 = vld [vmem:[#allocation22_spill] sm:$0xff]  ;;  %v6884_v46 = vld [vmem:[#allocation103_spill] sm:$0xff]  ;;  %v6887_v27 = vld [vmem:[#allocation25_spill] sm:$0xff] }
 0xac6   : > { %v578_v30 = vadd.f32 %v550_v15, %v463_v57  ;;  %v559_v17 = vsel %vm545_vm3, %v6867_v60, %v6866_v18  ;;  %v557_v48 = vsel %vm545_vm3, %v6863_v3, %v6868_v32  ;;  %v581_v52 = vadd.f32 %v553_v47, %v466_v63  ;;  %v6872_v57 = vld [vmem:[#allocation18_spill] sm:$0xff]  ;;  %v6885_v3 = vld [vmem:[#allocation112_spill] sm:$0xff] }
 0xac7   : > { %v580_v8 = vadd.f32 %v552_v14, %v465_v4  ;;  %v558_v16 = vsel %vm545_vm3, %v6868_v32, %v6867_v60  ;;  %v662_v28 = vsel %vm660_vm4, %v6870_v50, %v6869_v7  ;;  %v584_v5 = vadd.f32 %v556_v54, %v469_v38  ;;  %v6886_v54 = vld [vmem:[#allocation26_spill] sm:$0xff]  ;;  %v6889_v18 = vld [vmem:[#allocation28_spill] sm:$0xff]  ;;  %v6890_v60 = vld [vmem:[#allocation27_spill] sm:$0xff] }
 0xac8   : > { %v582_v31 = vadd.f32 %v554_v11, %v467_v39  ;;  %v583_v34 = vadd.f32 %v555_v24, %v468_v29  ;;  %v661_v33 = vsel %vm660_vm4, %v6871_v44, %v6870_v50  ;;  %v587_v36 = vadd.f32 %v559_v17, %v472_v12  ;;  %v6881_v12 = vld [vmem:[#allocation21_spill] sm:$0xff] }
 0xac9   : > { %v585_v61 = vadd.f32 %v557_v48, %v470_v22  ;;  %v665_v4 = vsel %vm660_vm4, %v6873_v62, %v6872_v57  ;;  %v2336_v63 = vmul.f32 %v4919_v56, %v6874_v35  ;;  %v586_v49 = vadd.f32 %v558_v16, %v471_v59  ;;  %v3552_v56 = vld [vmem:[%s6405_s1] sm:$0xff] }
 0xaca   : > { %2379 = vrot.lane.b32.xlu1 %v2334_v1, %s3604_s23  ;;  %2377 = vrot.lane.b32.xlu0 %v2333_v42, %s3604_s23  ;;  %v690_v51 = vadd.f32 %v662_v28, %v575_v21  ;;  %v663_v39 = vsel %vm660_vm4, %v6869_v7, %v6875_v58  ;;  %v664_v29 = vsel %vm660_vm4, %v6875_v58, %v6873_v62  ;;  %v6879_v1 = vld [vmem:[#allocation20_spill] sm:$0xff]  ;;  %v6880_v42 = vld [vmem:[#allocation102_spill] sm:$0xff]  ;;  %v6892_v28 = vld [vmem:[#allocation117_spill] sm:$0xff] }
 0xacb   : > { %2381 = vrot.lane.b32.xlu2 %v2335_v2, %s3604_s23  ;;  %v689_v38 = vadd.f32 %v661_v33, %v574_v19  ;;  %v666_v22 = vsel %vm660_vm4, %v6872_v57, %v6876_v25  ;;  %v667_v45 = vsel %vm660_vm4, %v6876_v25, %v6877_v40  ;;  %v693_v59 = vadd.f32 %v665_v4, %v578_v30  ;;  %v6895_v57 = vld [vmem:[#allocation30_spill] sm:$0xff]  ;;  %v6900_v25 = vld [vmem:[#allocation32_spill] sm:$0xff]  ;;  %v6901_v40 = vld [vmem:[#allocation119_spill] sm:$0xff] }
 0xacc   : > { %v670_v41 = vsel %vm660_vm4, %v6879_v1, %v6878_v53  ;;  %v668_v13 = vsel %vm660_vm4, %v6881_v12, %v6880_v42  ;;  %v691_v6 = vadd.f32 %v663_v39, %v576_v9  ;;  %v692_v2 = vadd.f32 %v664_v29, %v577_v55  ;;  %v6888_v55 = vld [vmem:[#allocation114_spill] sm:$0xff] }
 0xacd   : > { %v669_v19 = vsel %vm660_vm4, %v6880_v42, %v6879_v1  ;;  %v673_v15 = vsel %vm660_vm4, %v6883_v37, %v6882_v0  ;;  %v694_v21 = vadd.f32 %v666_v22, %v579_v26  ;;  %v695_v43 = vadd.f32 %v667_v45, %v580_v8  ;;  %v6904_v42 = vld [vmem:[#allocation35_spill] sm:$0xff] }
 0xace   : > { %v671_v47 = vsel %vm660_vm4, %v6878_v53, %v6884_v46  ;;  %v672_v23 = vsel %vm660_vm4, %v6884_v46, %v6883_v37  ;;  %v698_v9 = vadd.f32 %v670_v41, %v583_v34  ;;  %v696_v14 = vadd.f32 %v668_v13, %v581_v52  ;;  %v6891_v52 = vld [vmem:[#allocation116_spill] sm:$0xff]  ;;  %v6893_v34 = vld [vmem:[#allocation29_spill] sm:$0xff] }
 0xacf   : > { %v674_v20 = vsel %vm660_vm4, %v6882_v0, %v6885_v3  ;;  %v777_v11 = vsel %vm775_vm5, %v6887_v27, %v6886_v54  ;;  %v697_v26 = vadd.f32 %v669_v19, %v582_v31  ;;  %v701_v24 = vadd.f32 %v673_v15, %v586_v49  ;;  %v6898_v49 = vld [vmem:[#allocation31_spill] sm:$0xff]  ;;  %v6902_v53 = vld [vmem:[#allocation128_spill] sm:$0xff]  ;;  %v6906_v19 = vld [vmem:[#allocation38_spill] sm:$0xff] }
 0xad0   : > { %v776_v30 = vsel %vm775_vm5, %v6888_v55, %v6887_v27  ;;  %v780_v17 = vsel %vm775_vm5, %v6890_v60, %v6889_v18  ;;  %v699_v32 = vadd.f32 %v671_v47, %v584_v5  ;;  %v700_v48 = vadd.f32 %v672_v23, %v585_v61  ;;  %v6894_v61 = vld [vmem:[#allocation33_spill] sm:$0xff]  ;;  %v6903_v41 = vld [vmem:[#allocation36_spill] sm:$0xff] }
 0xad1   : > { %v778_v8 = vsel %vm775_vm5, %v6886_v54, %v6891_v52  ;;  %v779_v16 = vsel %vm775_vm5, %v6891_v52, %v6890_v60  ;;  %v702_v7 = vadd.f32 %v674_v20, %v587_v36  ;;  %v805_v50 = vadd.f32 %v777_v11, %v690_v51  ;;  %v6907_v0 = vld [vmem:[#allocation37_spill] sm:$0xff]  ;;  %v6910_v11 = vld [vmem:[#allocation39_spill] sm:$0xff]  ;;  %v3554_v52 = vld [vmem:[%s3653_s19] sm:$0xff] }
 0xad2   : > { %2430 = vperm.xlu1 %3467, %v3552_v56   ;;  %2383 = vrot.lane.b32.xlu0 %v2336_v63, %s3604_s23  ;;  %v781_v31 = vsel %vm775_vm5, %v6889_v18, %v6892_v28  ;;  %v782_v44 = vsel %vm775_vm5, %v6892_v28, %v6893_v34  ;;  %v804_v5 = vadd.f32 %v776_v30, %v689_v38  ;;  %v6896_v4 = vmov 21   ;;  %v6897_v63 = vld [vmem:[#allocation118_spill] sm:$0xff]  ;;  %v6909_v3 = vld [vmem:[#allocation133_spill] sm:$0xff]  ;;  %v6911_v30 = vld [vmem:[#allocation43_spill] sm:$0xff] }
 0xad3   : > { %2434 = vperm.xlu2 %3468, %v3553_v10   ;;  %v808_v33 = vadd.f32 %v780_v17, %v693_v59  ;;  %v785_v62 = vsel %vm775_vm5, %v6895_v57, %v6894_v61  ;;  %v806_v36 = vadd.f32 %v778_v8, %v691_v6  ;;  %v807_v35 = vadd.f32 %v779_v16, %v692_v2  ;;  %v6899_v38 = vld [vmem:[#allocation34_spill] sm:$0xff]  ;;  %v6912_v18 = vld [vmem:[#allocation40_spill] sm:$0xff] }
 0xad4   : > { %v783_v51 = vsel %vm775_vm5, %v6898_v49, %v6897_v63  ;;  %v784_v58 = vsel %vm775_vm5, %v6897_v63, %v6895_v57  ;;  %v809_v39 = vadd.f32 %v781_v31, %v694_v21  ;;  %v810_v29 = vadd.f32 %v782_v44, %v695_v43  ;;  %v6905_v6 = vld [vmem:[#allocation130_spill] sm:$0xff]  ;;  %v6908_v43 = vld [vmem:[#allocation132_spill] sm:$0xff]  ;;  %v6917_v31 = vld [vmem:[#allocation135_spill] sm:$0xff] }
 0xad5   : > { %v788_v22 = vsel %vm775_vm5, %v6900_v25, %v6899_v38  ;;  %v786_v45 = vsel %vm775_vm5, %v6894_v61, %v6901_v40  ;;  %v787_v59 = vsel %vm775_vm5, %v6901_v40, %v6900_v25  ;;  %v789_v1 = vsel %vm775_vm5, %v6899_v38, %v6902_v53  ;;  %v6913_v17 = vld [vmem:[#allocation134_spill] sm:$0xff]  ;;  %v6921_v63 = vld [vmem:[#allocation137_spill] sm:$0xff] }
 0xad6   : > { %v892_v12 = vsel %vm890_vm6, %v6904_v42, %v6903_v41  ;;  %v811_v13 = vadd.f32 %v783_v51, %v696_v14  ;;  %v891_v2 = vsel %vm890_vm6, %v6905_v6, %v6904_v42  ;;  %v895_v37 = vsel %vm890_vm6, %v6907_v0, %v6906_v19  ;;  %v6919_v57 = vld [vmem:[#allocation46_spill] sm:$0xff]  ;;  %v6922_v51 = vld [vmem:[#allocation48_spill] sm:$0xff] }
 0xad7   : > { %v816_v15 = vadd.f32 %v788_v22, %v701_v24  ;;  %v814_v21 = vadd.f32 %v786_v45, %v699_v32  ;;  %v893_v46 = vsel %vm890_vm6, %v6903_v41, %v6908_v43  ;;  %v894_v47 = vsel %vm890_vm6, %v6908_v43, %v6907_v0  ;;  %v6914_v32 = vld [vmem:[#allocation41_spill] sm:$0xff]  ;;  %v6924_v22 = vld [vmem:[#allocation138_spill] sm:$0xff] }
 0xad8   : > { %v815_v23 = vadd.f32 %v787_v59, %v700_v48  ;;  %v920_v14 = vadd.f32 %v892_v12, %v805_v50  ;;  %v896_v20 = vsel %vm890_vm6, %v6906_v19, %v6909_v3  ;;  %v919_v54 = vadd.f32 %v891_v2, %v804_v5  ;;  %v6916_v50 = vld [vmem:[#allocation42_spill] sm:$0xff]  ;;  %v6927_v2 = vld [vmem:[#allocation53_spill] sm:$0xff] }
 0xad9   : > { %v923_v27 = vadd.f32 %v895_v37, %v808_v33  ;;  %v921_v24 = vadd.f32 %v893_v46, %v806_v36  ;;  %v922_v55 = vadd.f32 %v894_v47, %v807_v35  ;;  %v900_v60 = vsel %vm890_vm6, %v6912_v18, %v6911_v30  ;;  %v6918_v33 = vld [vmem:[#allocation136_spill] sm:$0xff]  ;;  %v6925_v42 = vld [vmem:[#allocation142_spill] sm:$0xff]  ;;  %v6929_v37 = vld [vmem:[#allocation145_spill] sm:$0xff] }
 0xada   : > { %2482 = vperm.xlu0 %3469, %v3552_v56   ;;  %3470 = vset.pattern.permute.xlu1 %v6896_v4  ;;  %v813_v56 = vadd.f32 %v785_v62, %v698_v9  ;;  %v817_v9 = vadd.f32 %v789_v1, %v702_v7  ;;  %v898_v48 = vsel %vm890_vm6, %v6914_v32, %v6913_v17  ;;  %v6915_v7 = vld [vmem:[#allocation44_spill] sm:$0xff]  ;;  %v6920_v62 = vld [vmem:[#allocation45_spill] sm:$0xff]  ;;  %v6928_v19 = vld [vmem:[#allocation50_spill] sm:$0xff] }
 0xadb   : > { %2486 = vperm.xlu1 %3470, %v3553_v10   ;;  %v812_v10 = vadd.f32 %v784_v58, %v697_v26  ;;  %v897_v26 = vsel %vm890_vm6, %v6909_v3, %v6910_v11  ;;  %v924_v8 = vadd.f32 %v896_v20, %v809_v39  ;;  %v899_v16 = vsel %vm890_vm6, %v6913_v17, %v6912_v18  ;;  %v6923_v58 = vld [vmem:[#allocation47_spill] sm:$0xff]  ;;  %v6931_v47 = vld [vmem:[#allocation54_spill] sm:$0xff]  ;;  %v6937_v17 = vld [vmem:[#allocation153_spill] sm:$0xff] }
 0xadc   : > { %v903_v28 = vsel %vm890_vm6, %v6916_v50, %v6915_v7  ;;  %v901_v34 = vsel %vm890_vm6, %v6911_v30, %v6917_v31  ;;  %v925_v44 = vadd.f32 %v897_v26, %v810_v29  ;;  %v902_v5 = vsel %vm890_vm6, %v6917_v31, %v6916_v50  ;;  %v6934_v11 = vld [vmem:[#allocation151_spill] sm:$0xff]  ;;  %v6935_v30 = vld [vmem:[#allocation56_spill] sm:$0xff] }
 0xadd   : > { %v904_v61 = vsel %vm890_vm6, %v6915_v7, %v6918_v33  ;;  %v1007_v4 = vsel %vm1005_vm7, %v6920_v62, %v6919_v57  ;;  %v928_v36 = vadd.f32 %v900_v60, %v813_v56  ;;  %v926_v35 = vadd.f32 %v898_v48, %v811_v13  ;;  %v6926_v13 = vld [vmem:[#allocation49_spill] sm:$0xff]  ;;  %v6936_v18 = vld [vmem:[#allocation55_spill] sm:$0xff] }
 0xade   : > { %v1006_v49 = vsel %vm1005_vm7, %v6921_v63, %v6920_v62  ;;  %v1010_v39 = vsel %vm1005_vm7, %v6923_v58, %v6922_v51  ;;  %v927_v29 = vadd.f32 %v899_v16, %v812_v10  ;;  %v931_v38 = vadd.f32 %v903_v28, %v816_v15  ;;  %v6930_v15 = vld [vmem:[#allocation51_spill] sm:$0xff]  ;;  %v6938_v16 = vld [vmem:[#allocation58_spill] sm:$0xff]  ;;  %v6939_v7 = vld [vmem:[#allocation57_spill] sm:$0xff] }
 0xadf   : > { %v929_v25 = vadd.f32 %v901_v34, %v814_v21  ;;  %v1008_v40 = vsel %vm1005_vm7, %v6919_v57, %v6924_v22  ;;  %v930_v45 = vadd.f32 %v902_v5, %v815_v23  ;;  %v932_v59 = vadd.f32 %v904_v61, %v817_v9  ;;  %v6932_v23 = vld [vmem:[#allocation52_spill] sm:$0xff]  ;;  %v6940_v34 = vld [vmem:[#allocation154_spill] sm:$0xff]  ;;  %v6941_v57 = vld [vmem:[#allocation155_spill] sm:$0xff] }
 0xae0   : > { %v1035_v53 = vadd.f32 %v1007_v4, %v920_v14  ;;  %v1009_v56 = vsel %vm1005_vm7, %v6924_v22, %v6923_v58  ;;  %v1034_v1 = vadd.f32 %v1006_v49, %v919_v54  ;;  %v1038_v41 = vadd.f32 %v1010_v39, %v923_v27  ;;  %v6933_v14 = vld [vmem:[#allocation148_spill] sm:$0xff]  ;;  %v6942_v4 = vld [vmem:[#allocation59_spill] sm:$0xff]  ;;  %v6946_v39 = vld [vmem:[#allocation61_spill] sm:$0xff] }
 0xae1   : > { %v1011_v12 = vsel %vm1005_vm7, %v6922_v51, %v6925_v42  ;;  %v1012_v10 = vsel %vm1005_vm7, %v6925_v42, %v6926_v13  ;;  %v1036_v6 = vadd.f32 %v1008_v40, %v921_v24  ;;  %v1015_v0 = vsel %vm1005_vm7, %v6928_v19, %v6927_v2  ;;  %v6943_v63 = vld [vmem:[#allocation63_spill] sm:$0xff]  ;;  %v6944_v49 = vld [vmem:[#allocation60_spill] sm:$0xff] }
 0xae2   : > { %3549 = vset.pattern.permute.xlu0 %v3554_v52  ;;  %v1013_v21 = vsel %vm1005_vm7, %v6930_v15, %v6929_v37  ;;  %v1037_v43 = vadd.f32 %v1009_v56, %v922_v55  ;;  %v1014_v46 = vsel %vm1005_vm7, %v6929_v37, %v6928_v19  ;;  %v1018_v9 = vsel %vm1005_vm7, %v6932_v23, %v6931_v47  ;;  %v6945_v58 = vld [vmem:[#allocation156_spill] sm:$0xff]  ;;  %v6952_v19 = vld [vmem:[#allocation65_spill] sm:$0xff] }
 0xae3   : > { %v1016_v3 = vsel %vm1005_vm7, %v6927_v2, %v6933_v14  ;;  %v1039_v20 = vadd.f32 %v1011_v12, %v924_v8  ;;  %v1040_v54 = vadd.f32 %v1012_v10, %v925_v44  ;;  %v1017_v27 = vsel %vm1005_vm7, %v6933_v14, %v6932_v23  ;;  %v6947_v40 = vld [vmem:[#allocation64_spill] sm:$0xff]  ;;  %v6950_v10 = vld [vmem:[#allocation158_spill] sm:$0xff] }
 0xae4   : > { %v1019_v26 = vsel %vm1005_vm7, %v6931_v47, %v6934_v11  ;;  %v1043_v24 = vadd.f32 %v1015_v0, %v928_v36  ;;  %v1041_v55 = vadd.f32 %v1013_v21, %v926_v35  ;;  %v1122_v60 = vsel %vm1120_vm8, %v6936_v18, %v6935_v30  ;;  %v6951_v2 = vld [vmem:[#allocation66_spill] sm:$0xff]  ;;  %v6953_v21 = vld [vmem:[#allocation159_spill] sm:$0xff] }
 0xae5   : > { %v1121_v32 = vsel %vm1120_vm8, %v6937_v17, %v6936_v18  ;;  %v1042_v48 = vadd.f32 %v1014_v46, %v927_v29  ;;  %v1046_v52 = vadd.f32 %v1018_v9, %v931_v38  ;;  %v1044_v8 = vadd.f32 %v1016_v3, %v929_v25  ;;  %v6954_v46 = vld [vmem:[#allocation68_spill] sm:$0xff]  ;;  %v6955_v47 = vld [vmem:[#allocation67_spill] sm:$0xff]  ;;  %v6959_v17 = vld [vmem:[#allocation73_spill] sm:$0xff] }
 0xae6   : > { %v1125_v50 = vsel %vm1120_vm8, %v6939_v7, %v6938_v16  ;;  %v1045_v28 = vadd.f32 %v1017_v27, %v930_v45  ;;  %v1047_v31 = vadd.f32 %v1019_v26, %v932_v59  ;;  %v1123_v44 = vsel %vm1120_vm8, %v6935_v30, %v6940_v34  ;;  %v6948_v45 = vld [vmem:[#allocation62_spill] sm:$0xff]  ;;  %v6956_v3 = vld [vmem:[#allocation160_spill] sm:$0xff]  ;;  %v6957_v26 = vld [vmem:[#allocation161_spill] sm:$0xff] }
 0xae7   : > { %v1124_v5 = vsel %vm1120_vm8, %v6940_v34, %v6939_v7  ;;  %v1150_v33 = vadd.f32 %v1122_v60, %v1035_v53  ;;  %v1149_v61 = vadd.f32 %v1121_v32, %v1034_v1  ;;  %v1126_v62 = vsel %vm1120_vm8, %v6938_v16, %v6941_v57  ;;  %v6949_v1 = vld [vmem:[#allocation157_spill] sm:$0xff]  ;;  %v6960_v32 = vld [vmem:[#allocation70_spill] sm:$0xff] }
 0xae8   : > { %v1127_v36 = vsel %vm1120_vm8, %v6941_v57, %v6942_v4  ;;  %v1153_v35 = vadd.f32 %v1125_v50, %v1038_v41  ;;  %v1130_v51 = vsel %vm1120_vm8, %v6944_v49, %v6943_v63  ;;  %v1128_v29 = vsel %vm1120_vm8, %v6946_v39, %v6945_v58 }
 0xae9   : > { %v1151_v38 = vadd.f32 %v1123_v44, %v1036_v6  ;;  %v1152_v25 = vadd.f32 %v1124_v5, %v1037_v43  ;;  %v1129_v22 = vsel %vm1120_vm8, %v6945_v58, %v6944_v49  ;;  %v1133_v59 = vsel %vm1120_vm8, %v6948_v45, %v6947_v40  ;;  %v6963_v44 = vld [vmem:[#allocation74_spill] sm:$0xff]  ;;  %v6964_v5 = vld [vmem:[#allocation72_spill] sm:$0xff]  ;;  %v6968_v58 = vld [vmem:[#allocation75_spill] sm:$0xff] }
 0xaea   : > { %v1154_v53 = vadd.f32 %v1126_v62, %v1039_v20  ;;  %v1155_v56 = vadd.f32 %v1127_v36, %v1040_v54  ;;  %v1131_v41 = vsel %vm1120_vm8, %v6943_v63, %v6949_v1  ;;  %v1132_v42 = vsel %vm1120_vm8, %v6949_v1, %v6948_v45 }
 0xaeb   : > { %v1158_v12 = vadd.f32 %v1130_v51, %v1043_v24  ;;  %v1156_v13 = vadd.f32 %v1128_v29, %v1041_v55  ;;  %v1134_v6 = vsel %vm1120_vm8, %v6947_v40, %v6950_v10  ;;  %v1237_v0 = vsel %vm1235_vm9, %v6952_v19, %v6951_v2  ;;  %v6958_v55 = vld [vmem:[#allocation69_spill] sm:$0xff]  ;;  %v6967_v51 = vld [vmem:[#allocation76_spill] sm:$0xff]  ;;  %v6969_v29 = vld [vmem:[#allocation167_spill] sm:$0xff] }
 0xaec   : > { %v1157_v37 = vadd.f32 %v1129_v22, %v1042_v48  ;;  %v1161_v15 = vadd.f32 %v1133_v59, %v1046_v52  ;;  %v1236_v43 = vsel %vm1235_vm9, %v6953_v21, %v6952_v19  ;;  %v1240_v23 = vsel %vm1235_vm9, %v6955_v47, %v6954_v46  ;;  %v6961_v52 = vld [vmem:[#allocation162_spill] sm:$0xff]  ;;  %v6971_v22 = vld [vmem:[#allocation77_spill] sm:$0xff]  ;;  %v6974_v10 = vld [vmem:[#allocation79_spill] sm:$0xff] }
 0xaed   : > { %v1159_v9 = vadd.f32 %v1131_v41, %v1044_v8  ;;  %v1160_v14 = vadd.f32 %v1132_v42, %v1045_v28  ;;  %v1238_v20 = vsel %vm1235_vm9, %v6951_v2, %v6956_v3  ;;  %v1239_v54 = vsel %vm1235_vm9, %v6956_v3, %v6955_v47  ;;  %v6962_v8 = vld [vmem:[#allocation71_spill] sm:$0xff]  ;;  %v6977_v47 = vld [vmem:[#allocation177_spill] sm:$0xff] }
 0xaee   : > { %v1162_v27 = vadd.f32 %v1134_v6, %v1047_v31  ;;  %v1265_v11 = vadd.f32 %v1237_v0, %v1150_v33  ;;  %v1241_v24 = vsel %vm1235_vm9, %v6954_v46, %v6957_v26  ;;  %v1242_v30 = vsel %vm1235_vm9, %v6957_v26, %v6958_v55 }
 0xaef   : > { %v1264_v18 = vadd.f32 %v1236_v43, %v1149_v61  ;;  %v1268_v60 = vadd.f32 %v1240_v23, %v1153_v35  ;;  %v1245_v48 = vsel %vm1235_vm9, %v6960_v32, %v6959_v17  ;;  %v1243_v16 = vsel %vm1235_vm9, %v6962_v8, %v6961_v52  ;;  %v6965_v61 = vld [vmem:[#allocation163_spill] sm:$0xff]  ;;  %v6966_v35 = vld [vmem:[#allocation164_spill] sm:$0xff]  ;;  %v6978_v23 = vld [vmem:[#allocation81_spill] sm:$0xff] }
 0xaf0   : > { %v1266_v7 = vadd.f32 %v1238_v20, %v1151_v38  ;;  %v1267_v50 = vadd.f32 %v1239_v54, %v1152_v25  ;;  %v1244_v28 = vsel %vm1235_vm9, %v6961_v52, %v6960_v32  ;;  %v1269_v31 = vadd.f32 %v1241_v24, %v1154_v53  ;;  %v6970_v25 = vld [vmem:[#allocation78_spill] sm:$0xff]  ;;  %v6972_v53 = vld [vmem:[#allocation171_spill] sm:$0xff]  ;;  %v6979_v54 = vld [vmem:[#allocation84_spill] sm:$0xff] }
 0xaf1   : > { %v1270_v34 = vadd.f32 %v1242_v30, %v1155_v56  ;;  %v1248_v33 = vsel %vm1235_vm9, %v6964_v5, %v6963_v44  ;;  %v1246_v57 = vsel %vm1235_vm9, %v6959_v17, %v6965_v61  ;;  %v1273_v62 = vadd.f32 %v1245_v48, %v1158_v12  ;;  %v6973_v12 = vld [vmem:[#allocation174_spill] sm:$0xff]  ;;  %v6981_v24 = vld [vmem:[#allocation179_spill] sm:$0xff]  ;;  %v6983_v32 = vld [vmem:[#allocation89_spill] sm:$0xff] }
 0xaf2   : > { %v1271_v4 = vadd.f32 %v1243_v16, %v1156_v13  ;;  %v1247_v36 = vsel %vm1235_vm9, %v6965_v61, %v6964_v5  ;;  %v1249_v63 = vsel %vm1235_vm9, %v6963_v44, %v6966_v35  ;;  %v1272_v49 = vadd.f32 %v1244_v28, %v1157_v37  ;;  %v6975_v37 = vld [vmem:[#allocation83_spill] sm:$0xff]  ;;  %v6984_v48 = vld [vmem:[#allocation88_spill] sm:$0xff]  ;;  %v6985_v8 = vld [vmem:[#allocation181_spill] sm:$0xff] }
 0xaf3   : > { %v1352_v39 = vsel %vm1350_vm10, %v6968_v58, %v6967_v51  ;;  %v1351_v38 = vsel %vm1350_vm10, %v6969_v29, %v6968_v58  ;;  %v1355_v40 = vsel %vm1350_vm10, %v6971_v22, %v6970_v25  ;;  %v1276_v45 = vadd.f32 %v1248_v33, %v1161_v15  ;;  %v6976_v15 = vld [vmem:[#allocation80_spill] sm:$0xff]  ;;  %v6988_v44 = vld [vmem:[#allocation182_spill] sm:$0xff] }
 0xaf4   : > { %v1274_v59 = vadd.f32 %v1246_v57, %v1159_v9  ;;  %v1353_v56 = vsel %vm1350_vm10, %v6967_v51, %v6972_v53  ;;  %v1354_v1 = vsel %vm1350_vm10, %v6972_v53, %v6971_v22  ;;  %v1275_v41 = vadd.f32 %v1247_v36, %v1160_v14 }
 0xaf5   : > { %v1277_v42 = vadd.f32 %v1249_v63, %v1162_v27  ;;  %v1356_v13 = vsel %vm1350_vm10, %v6970_v25, %v6973_v12  ;;  %v1357_v6 = vsel %vm1350_vm10, %v6973_v12, %v6974_v10  ;;  %v1380_v2 = vadd.f32 %v1352_v39, %v1265_v11  ;;  %v6980_v27 = vld [vmem:[#allocation82_spill] sm:$0xff]  ;;  %v6992_v25 = vld [vmem:[#allocation93_spill] sm:$0xff] }
 0xaf6   : > { %v1379_v19 = vadd.f32 %v1351_v38, %v1264_v18  ;;  %v1383_v0 = vadd.f32 %v1355_v40, %v1268_v60  ;;  %v1360_v21 = vsel %vm1350_vm10, %v6976_v15, %v6975_v37  ;;  %v1381_v43 = vadd.f32 %v1353_v56, %v1266_v7  ;;  %v6982_v18 = vld [vmem:[#allocation180_spill] sm:$0xff]  ;;  %v6986_v7 = vld [vmem:[#allocation91_spill] sm:$0xff]  ;;  %v6991_v38 = vld [vmem:[#allocation97_spill] sm:$0xff] }
 0xaf7   : > { %v1382_v46 = vadd.f32 %v1354_v1, %v1267_v50  ;;  %v1358_v9 = vsel %vm1350_vm10, %v6978_v23, %v6977_v47  ;;  %v1384_v14 = vadd.f32 %v1356_v13, %v1269_v31  ;;  %v1385_v3 = vadd.f32 %v1357_v6, %v1270_v34  ;;  %v6987_v50 = vld [vmem:[#allocation90_spill] sm:$0xff]  ;;  %v6995_v1 = vld [vmem:[#allocation99_spill] sm:$0xff]  ;;  %v6997_v13 = vld [vmem:[#allocation185_spill] sm:$0xff] }
 0xaf8   : > { %v1359_v20 = vsel %vm1350_vm10, %v6977_v47, %v6976_v15  ;;  %v1363_v11 = vsel %vm1350_vm10, %v6980_v27, %v6979_v54  ;;  %v1388_v26 = vadd.f32 %v1360_v21, %v1273_v62  ;;  %v1361_v55 = vsel %vm1350_vm10, %v6975_v37, %v6981_v24  ;;  %v6999_v37 = vld [vmem:[#allocation105_spill] sm:$0xff]  ;;  %v7000_v15 = vld [vmem:[#allocation104_spill] sm:$0xff]  ;;  %v7002_v47 = vld [vmem:[#allocation107_spill] sm:$0xff] }
 0xaf9   : > { %v1362_v30 = vsel %vm1350_vm10, %v6981_v24, %v6980_v27  ;;  %v1364_v60 = vsel %vm1350_vm10, %v6979_v54, %v6982_v18  ;;  %v1386_v17 = vadd.f32 %v1358_v9, %v1271_v4  ;;  %v1467_v52 = vsel %vm1465_vm11, %v6984_v48, %v6983_v32  ;;  %v6989_v4 = vld [vmem:[#allocation183_spill] sm:$0xff]  ;;  %v7003_v23 = vld [vmem:[#allocation106_spill] sm:$0xff]  ;;  %v7004_v54 = vld [vmem:[#allocation188_spill] sm:$0xff] }
 0xafa   : > { %v1466_v16 = vsel %vm1465_vm11, %v6985_v8, %v6984_v48  ;;  %v1470_v28 = vsel %vm1465_vm11, %v6987_v50, %v6986_v7  ;;  %v1387_v31 = vadd.f32 %v1359_v20, %v1272_v49  ;;  %v1391_v34 = vadd.f32 %v1363_v11, %v1276_v45  ;;  %v6990_v49 = vld [vmem:[#allocation92_spill] sm:$0xff] }
 0xafb   : > { %v1468_v5 = vsel %vm1465_vm11, %v6983_v32, %v6988_v44  ;;  %v1469_v33 = vsel %vm1465_vm11, %v6988_v44, %v6987_v50  ;;  %v1389_v61 = vadd.f32 %v1361_v55, %v1274_v59  ;;  %v1390_v57 = vadd.f32 %v1362_v30, %v1275_v41  ;;  %v6993_v45 = vld [vmem:[#allocation184_spill] sm:$0xff]  ;;  %v6994_v59 = vld [vmem:[#allocation94_spill] sm:$0xff]  ;;  %v6996_v41 = vld [vmem:[#allocation95_spill] sm:$0xff] }
 0xafc   : > { %v1392_v62 = vadd.f32 %v1364_v60, %v1277_v42  ;;  %v1471_v36 = vsel %vm1465_vm11, %v6986_v7, %v6989_v4  ;;  %v1495_v35 = vadd.f32 %v1467_v52, %v1380_v2  ;;  %v1494_v63 = vadd.f32 %v1466_v16, %v1379_v19  ;;  %v6998_v2 = vld [vmem:[#allocation186_spill] sm:$0xff]  ;;  %v7005_v32 = vld [vmem:[#allocation189_spill] sm:$0xff]  ;;  %v7006_v52 = vld [vmem:[#allocation108_spill] sm:$0xff] }
 0xafd   : > { %v1498_v51 = vadd.f32 %v1470_v28, %v1383_v0  ;;  %v1472_v58 = vsel %vm1465_vm11, %v6989_v4, %v6990_v49  ;;  %v1496_v39 = vadd.f32 %v1468_v5, %v1381_v43  ;;  %v1497_v29 = vadd.f32 %v1469_v33, %v1382_v46  ;;  %v7001_v43 = vld [vmem:[#allocation187_spill] sm:$0xff]  ;;  %v7007_v16 = vld [vmem:[#allocation113_spill] sm:$0xff] }
 0xafe   : > { %v1475_v22 = vsel %vm1465_vm11, %v6992_v25, %v6991_v38  ;;  %v1499_v40 = vadd.f32 %v1471_v36, %v1384_v14  ;;  %v1473_v53 = vsel %vm1465_vm11, %v6994_v59, %v6993_v45  ;;  %v1474_v56 = vsel %vm1465_vm11, %v6993_v45, %v6992_v25  ;;  %v7008_v7 = vld [vmem:[#allocation109_spill] sm:$0xff]  ;;  %v7011_v33 = vld [vmem:[#allocation115_spill] sm:$0xff]  ;;  %v7017_v25 = vld [vmem:[#allocation198_spill] sm:$0xff] }
 0xaff   : > { %v1478_v42 = vsel %vm1465_vm11, %v6996_v41, %v6995_v1  ;;  %v1500_v12 = vadd.f32 %v1472_v58, %v1385_v3  ;;  %v1476_v10 = vsel %vm1465_vm11, %v6991_v38, %v6997_v13  ;;  %v1477_v6 = vsel %vm1465_vm11, %v6997_v13, %v6996_v41  ;;  %v7013_v4 = vld [vmem:[#allocation193_spill] sm:$0xff] }
 0xb00   : > { %v1479_v19 = vsel %vm1465_vm11, %v6995_v1, %v6998_v2  ;;  %v1503_v0 = vadd.f32 %v1475_v22, %v1388_v26  ;;  %v1582_v21 = vsel %vm1580_vm12, %v7000_v15, %v6999_v37  ;;  %v1581_v46 = vsel %vm1580_vm12, %v7001_v43, %v7000_v15  ;;  %v7022_v43 = vld [vmem:[#allocation124_spill] sm:$0xff] }
 0xb01   : > { %v1585_v9 = vsel %vm1580_vm12, %v7003_v23, %v7002_v47  ;;  %v1501_v14 = vadd.f32 %v1473_v53, %v1386_v17  ;;  %v1502_v3 = vadd.f32 %v1474_v56, %v1387_v31  ;;  %v1506_v20 = vadd.f32 %v1478_v42, %v1391_v34  ;;  %v7009_v31 = vld [vmem:[#allocation190_spill] sm:$0xff]  ;;  %v7018_v53 = vld [vmem:[#allocation123_spill] sm:$0xff] }
 0xb02   : > { %v1583_v27 = vsel %vm1580_vm12, %v6999_v37, %v7004_v54  ;;  %v1504_v11 = vadd.f32 %v1476_v10, %v1389_v61  ;;  %v1505_v26 = vadd.f32 %v1477_v6, %v1390_v57  ;;  %v1507_v24 = vadd.f32 %v1479_v19, %v1392_v62  ;;  %v7010_v34 = vld [vmem:[#allocation110_spill] sm:$0xff]  ;;  %v7012_v61 = vld [vmem:[#allocation111_spill] sm:$0xff] }
 0xb03   : > { %v1584_v55 = vsel %vm1580_vm12, %v7004_v54, %v7003_v23  ;;  %v1610_v30 = vadd.f32 %v1582_v21, %v1495_v35  ;;  %v1609_v18 = vadd.f32 %v1581_v46, %v1494_v63  ;;  %v1613_v60 = vadd.f32 %v1585_v9, %v1498_v51  ;;  %v7014_v63 = vld [vmem:[#allocation196_spill] sm:$0xff]  ;;  %v7019_v56 = vld [vmem:[#allocation122_spill] sm:$0xff]  ;;  %v7024_v23 = vld [vmem:[#allocation125_spill] sm:$0xff] }
 0xb04   : > { %v1586_v17 = vsel %vm1580_vm12, %v7002_v47, %v7005_v32  ;;  %v1611_v48 = vadd.f32 %v1583_v27, %v1496_v39  ;;  %v1587_v8 = vsel %vm1580_vm12, %v7005_v32, %v7006_v52  ;;  %v1590_v50 = vsel %vm1580_vm12, %v7008_v7, %v7007_v16  ;;  %v7015_v39 = vld [vmem:[#allocation121_spill] sm:$0xff]  ;;  %v7026_v54 = vld [vmem:[#allocation126_spill] sm:$0xff] }
 0xb05   : > { %v1612_v28 = vadd.f32 %v1584_v55, %v1497_v29  ;;  %v1588_v44 = vsel %vm1580_vm12, %v7010_v34, %v7009_v31  ;;  %v1589_v5 = vsel %vm1580_vm12, %v7009_v31, %v7008_v7  ;;  %v1593_v57 = vsel %vm1580_vm12, %v7012_v61, %v7011_v33  ;;  %v7016_v29 = vld [vmem:[#allocation120_spill] sm:$0xff]  ;;  %v5499_v15 = vpop.permute.xlu2 %2357  ;;  %v7023_v47 = vld [vmem:[#allocation129_spill] sm:$0xff] }
 0xb06   : > { %v1614_v62 = vadd.f32 %v1586_v17, %v1499_v40  ;;  %v1591_v36 = vsel %vm1580_vm12, %v7007_v16, %v7013_v4  ;;  %v1592_v35 = vsel %vm1580_vm12, %v7013_v4, %v7012_v61  ;;  %v1594_v51 = vsel %vm1580_vm12, %v7011_v33, %v7014_v63  ;;  %v7031_v7 = vld [vmem:[#allocation140_spill] sm:$0xff] }
 0xb07   : > { %v1615_v49 = vadd.f32 %v1587_v8, %v1500_v12  ;;  %v1618_v58 = vadd.f32 %v1590_v50, %v1503_v0  ;;  %v1697_v38 = vsel %vm1695_vm13, %v7016_v29, %v7015_v39  ;;  %v1696_v22 = vsel %vm1695_vm13, %v7017_v25, %v7016_v29  ;;  %v7020_v12 = vld [vmem:[#allocation202_spill] sm:$0xff]  ;;  %v7021_v0 = vld [vmem:[#allocation204_spill] sm:$0xff]  ;;  %v7032_v50 = vld [vmem:[#allocation139_spill] sm:$0xff] }
 0xb08   : > { %v1616_v40 = vadd.f32 %v1588_v44, %v1501_v14  ;;  %v1617_v45 = vadd.f32 %v1589_v5, %v1502_v3  ;;  %v1621_v59 = vadd.f32 %v1593_v57, %v1506_v20  ;;  %v1700_v1 = vsel %vm1695_vm13, %v7019_v56, %v7018_v53  ;;  %v5507_v14 = vpop.permute.xlu0 %2268  ;;  %v7025_v20 = vld [vmem:[#allocation206_spill] sm:$0xff]  ;;  %v7030_v8 = vld [vmem:[#allocation208_spill] sm:$0xff]  ;;  %v7033_v5 = vld [vmem:[#allocation209_spill] sm:$0xff] }
 0xb09   : > { %v1619_v41 = vadd.f32 %v1591_v36, %v1504_v11  ;;  %v1620_v42 = vadd.f32 %v1592_v35, %v1505_v26  ;;  %v1622_v13 = vadd.f32 %v1594_v51, %v1507_v24  ;;  %v1698_v10 = vsel %vm1695_vm13, %v7015_v39, %v7020_v12  ;;  %v7027_v26 = vld [vmem:[#allocation131_spill] sm:$0xff]  ;;  %v7035_v36 = vld [vmem:[#allocation141_spill] sm:$0xff]  ;;  %v7037_v29 = vld [vmem:[#allocation216_spill] sm:$0xff] }
 0xb0a   : > { %v1725_v6 = vadd.f32 %v1697_v38, %v1610_v30  ;;  %v1724_v2 = vadd.f32 %v1696_v22, %v1609_v18  ;;  %v1699_v19 = vsel %vm1695_vm13, %v7020_v12, %v7019_v56  ;;  %v1701_v37 = vsel %vm1695_vm13, %v7018_v53, %v7021_v0  ;;  %v7028_v24 = vld [vmem:[#allocation127_spill] sm:$0xff]  ;;  %v7038_v38 = vld [vmem:[#allocation166_spill] sm:$0xff]  ;;  %v7039_v22 = vld [vmem:[#allocation168_spill] sm:$0xff] }
 0xb0b   : > { %v1728_v21 = vadd.f32 %v1700_v1, %v1613_v60  ;;  %v1702_v46 = vsel %vm1695_vm13, %v7021_v0, %v7022_v43  ;;  %v1705_v9 = vsel %vm1695_vm13, %v7024_v23, %v7023_v47  ;;  %v1726_v3 = vadd.f32 %v1698_v10, %v1611_v48  ;;  %v7029_v60 = vld [vmem:[#allocation207_spill] sm:$0xff]  ;;  %v7043_v10 = vld [vmem:[#allocation194_spill] sm:$0xff] }
 0xb0c   : > { %v1703_v27 = vsel %vm1695_vm13, %v7026_v54, %v7025_v20  ;;  %v1704_v11 = vsel %vm1695_vm13, %v7025_v20, %v7024_v23  ;;  %v1708_v55 = vsel %vm1695_vm13, %v7028_v24, %v7027_v26  ;;  %v1727_v30 = vadd.f32 %v1699_v19, %v1612_v28  ;;  %v7040_v53 = vld [vmem:[#allocation211_spill] sm:$0xff]  ;;  %v7045_v23 = vld [vmem:[#allocation150_spill] sm:$0xff]  ;;  %v7047_v20 = vld [vmem:[#allocation212_spill] sm:$0xff] }
 0xb0d   : > { %v1729_v18 = vadd.f32 %v1701_v37, %v1614_v62  ;;  %v1706_v32 = vsel %vm1695_vm13, %v7023_v47, %v7029_v60  ;;  %v1707_v17 = vsel %vm1695_vm13, %v7029_v60, %v7028_v24  ;;  %v1730_v48 = vadd.f32 %v1702_v46, %v1615_v49  ;;  %v7034_v62 = vld [vmem:[#allocation210_spill] sm:$0xff]  ;;  %v7044_v37 = vld [vmem:[#allocation144_spill] sm:$0xff]  ;;  %v7048_v54 = vld [vmem:[#allocation147_spill] sm:$0xff] }
 0xb0e   : > { %v1733_v52 = vadd.f32 %v1705_v9, %v1618_v58  ;;  %v1709_v16 = vsel %vm1695_vm13, %v7027_v26, %v7030_v8  ;;  %v1812_v31 = vsel %vm1810_vm14, %v7032_v50, %v7031_v7  ;;  %v1731_v28 = vadd.f32 %v1703_v27, %v1616_v40  ;;  %v7036_v58 = vld [vmem:[#allocation143_spill] sm:$0xff]  ;;  %v7046_v9 = vld [vmem:[#allocation146_spill] sm:$0xff] }
 0xb0f   : > { %v5530_v34 = vadd.f32 %v1704_v11, %v1617_v45  ;;  %v5532_v44 = vadd.f32 %v1708_v55, %v1621_v59  ;;  %v1811_v33 = vsel %vm1810_vm14, %v7033_v5, %v7032_v50  ;;  %v5537_v61 = vadd.f32 %v1706_v32, %v1619_v41  ;;  %v7049_v11 = vld [vmem:[#allocation238_spill] sm:$0xff]  ;;  %v7050_v26 = vld [vmem:[#allocation219_spill] sm:$0xff]  ;;  %v7051_v55 = vld [vmem:[#allocation220_spill] sm:$0xff] }
 0xb10   : > { %v5539_v57 = vadd.f32 %v1707_v17, %v1620_v42  ;;  %v1813_v4 = vsel %vm1810_vm14, %v7031_v7, %v7034_v62  ;;  %v1814_v35 = vsel %vm1810_vm14, %v7034_v62, %v7035_v36  ;;  %v5547_v63 = vadd.f32 %v1709_v16, %v1622_v13  ;;  %v7041_v42 = vld [vmem:[#allocation232_spill] sm:$0xff] }
 0xb11   : > { %v5549_v51 = vadd.f32 %v1812_v31, %v1725_v6  ;;  %vm2385_vm6 = vcmask 228352   ;;  %v5551_v49 = vadd.f32 %v1811_v33, %v1724_v2  ;;  %v1815_v39 = vsel %vm1810_vm14, %v7035_v36, %v7036_v58  ;;  %v7042_v13 = vld [vmem:[#allocation192_spill] sm:$0xff]  ;;  %v5571_v2 = vpop.permute.xlu2 %2363  ;;  %v7053_v31 = vld [vmem:[#allocation242_spill] sm:$0xff]  ;;  %v7054_v33 = vld [vmem:[#allocation247_spill] sm:$0xff] }
 0xb12   : > { %v1928_v25 = vsel %vm1925_vm15, %v7038_v38, %v7037_v29  ;;  %v1929_v40 = vsel %vm1925_vm15, %v7037_v29, %v7039_v22  ;;  %v1841_v45 = vadd.f32 %v1813_v4, %v1726_v3  ;;  %v1842_v59 = vadd.f32 %v1814_v35, %v1727_v30  ;;  %v7052_v50 = vld [vmem:[#allocation248_spill] sm:$0xff] }
 0xb13   : > { %v1816_v56 = vsel %vm1810_vm14, %v7036_v58, %v7040_v53  ;;  %vm2040_vm7 = vcmask 252928   ;;  %v1817_v43 = vsel %vm1810_vm14, %v7040_v53, %v7044_v37  ;;  %vm2155_vm8 = vcmask 244736   ;;  %v7056_v58 = vld [vmem:[#allocation149_spill] sm:$0xff] }
 0xb14   : > { %v2043_v12 = vsel %vm2040_vm7, %v7042_v13, %v7041_v42  ;;  %v2044_v6 = vsel %vm2040_vm7, %v7041_v42, %v7043_v10  ;;  %v1956_v46 = vadd.f32 %v1928_v25, %v1841_v45  ;;  %v1957_v47 = vadd.f32 %v1929_v40, %v1842_v59  ;;  %v7058_v25 = vld [vmem:[#allocation218_spill] sm:$0xff]  ;;  %v7059_v40 = vld [vmem:[#allocation169_spill] sm:$0xff] }
 0xb15   : > { %v1820_v3 = vsel %vm1810_vm14, %v7046_v9, %v7045_v23  ;;  %v1818_v27 = vsel %vm1810_vm14, %v7048_v54, %v7047_v20  ;;  %v2158_v24 = vsel %vm2155_vm8, %v7050_v26, %v7049_v11  ;;  %v2159_v30 = vsel %vm2155_vm8, %v7049_v11, %v7051_v55  ;;  %v7060_v59 = vld [vmem:[#allocation170_spill] sm:$0xff]  ;;  %v7063_v37 = vld [vmem:[#allocation197_spill] sm:$0xff] }
 0xb16   : > { %v5595_v60 = vadd.f32 %v1815_v39, %v1728_v21  ;;  %v1844_v32 = vadd.f32 %v1816_v56, %v1729_v18  ;;  %v2071_v17 = vadd.f32 %v2043_v12, %v1956_v46  ;;  %v2072_v8 = vadd.f32 %v2044_v6, %v1957_v47  ;;  %v7055_v18 = vld [vmem:[#allocation152_spill] sm:$0xff]  ;;  %v7057_v39 = vld [vmem:[#allocation213_spill] sm:$0xff]  ;;  %v7062_v56 = vld [vmem:[#allocation195_spill] sm:$0xff] }
 0xb17   : > { %v1845_v16 = vadd.f32 %v1817_v43, %v1730_v48  ;;  %v1819_v7 = vsel %vm1810_vm14, %v7047_v20, %v7046_v9  ;;  %v2273_v5 = vsel %vm2270_vm0, %v7053_v31, %v7052_v50  ;;  %v2274_v62 = vsel %vm2270_vm0, %v7052_v50, %v7054_v33  ;;  %v7064_v11 = vld [vmem:[#allocation214_spill] sm:$0xff]  ;;  %v7067_v50 = vld [vmem:[#allocation223_spill] sm:$0xff] }
 0xb18   : > { %v1848_v4 = vadd.f32 %v1820_v3, %v1733_v52  ;;  %v1846_v36 = vadd.f32 %v1818_v27, %v1731_v28  ;;  %v2186_v21 = vadd.f32 %v2158_v24, %v2071_v17  ;;  %v2187_v35 = vadd.f32 %v2159_v30, %v2072_v8  ;;  %v7061_v28 = vld [vmem:[#allocation233_spill] sm:$0xff]  ;;  %v7065_v30 = vld [vmem:[#allocation239_spill] sm:$0xff]  ;;  %v7066_v17 = vld [vmem:[#allocation222_spill] sm:$0xff] }
 0xb19   : > { %v1823_v48 = vsel %vm1810_vm14, %v7056_v58, %v7055_v18  ;;  %v1821_v29 = vsel %vm1810_vm14, %v7045_v23, %v7057_v39  ;;  %v1931_v45 = vsel %vm1925_vm15, %v7059_v40, %v7058_v25  ;;  %v1932_v53 = vsel %vm1925_vm15, %v7058_v25, %v7060_v59  ;;  %v7073_v59 = vld [vmem:[#allocation246_spill] sm:$0xff] }
 0xb1a   : > { %v1822_v52 = vsel %vm1810_vm14, %v7057_v39, %v7056_v58  ;;  %v2302_v42 = vadd.f32 %v2274_v62, %v2187_v35  ;;  %v2047_v43 = vsel %vm2040_vm7, %v7061_v28, %v7063_v37  ;;  %v1959_v9 = vadd.f32 %v1931_v45, %v1844_v32  ;;  %v2370_v32 = vpop.permute.xlu2 %2369  ;;  %v7069_v62 = vld [vmem:[#allocation172_spill] sm:$0xff]  ;;  %v7070_v58 = vld [vmem:[#allocation221_spill] sm:$0xff] }
 0xb1b   : > { %v1960_v3 = vadd.f32 %v1932_v53, %v1845_v16  ;;  %v1847_v27 = vadd.f32 %v1819_v7, %v5530_v34  ;;  %v1824_v24 = vsel %vm1810_vm14, %v7055_v18, %v7064_v11  ;;  %v2161_v8 = vsel %vm2155_vm8, %v7066_v17, %v7065_v30  ;;  %v7071_v39 = vld [vmem:[#allocation173_spill] sm:$0xff]  ;;  %v7080_v11 = vld [vmem:[#allocation200_spill] sm:$0xff] }
 0xb1c   : > { %v2356_v1 = vpop.permute.xlu1 %2355  ;;  %v2354_v41 = vpop.permute.xlu0 %2353  ;;  %v1851_v16 = vadd.f32 %v1823_v48, %v5532_v44  ;;  %v1849_v35 = vadd.f32 %v1821_v29, %v5537_v61  ;;  %v1850_v18 = vadd.f32 %v1822_v52, %v5539_v57  ;;  %v1933_v25 = vsel %vm1925_vm15, %v7071_v39, %v7070_v58  ;;  %v7072_v45 = vld [vmem:[#allocation249_spill] sm:$0xff]  ;;  %v7075_v61 = vld [vmem:[#allocation215_spill] sm:$0xff] }
 0xb1d   : > { %v5575_v19 = vsel %vm2385_vm6, %v2356_v1, %v5499_v15  ;;  %v5578_v0 = vsel %vm2385_vm6, %v2354_v41, %v2356_v1  ;;  %v2046_v1 = vsel %vm2040_vm7, %v7062_v56, %v7061_v28  ;;  %v2301_v41 = vadd.f32 %v2273_v5, %v2186_v21  ;;  %v7068_v5 = vld [vmem:[#allocation176_spill] sm:$0xff]  ;;  %v7074_v48 = vld [vmem:[#allocation165_spill] sm:$0xff] }
 0xb1e   : > { %v1935_v21 = vsel %vm1925_vm15, %v7069_v62, %v7068_v5  ;;  %v2074_v34 = vadd.f32 %v2046_v1, %v1959_v9  ;;  %v2075_v7 = vadd.f32 %v2047_v43, %v1960_v3  ;;  %v2276_v53 = vsel %vm2270_vm0, %v7073_v59, %v7072_v45  ;;  %v7078_v43 = vld [vmem:[#allocation250_spill] sm:$0xff] }
 0xb1f   : > { %v5661_v44 = vadd.f32 %v1824_v24, %v5547_v63  ;;  %v1927_v28 = vsel %vm1925_vm15, %v7074_v48, %v7038_v38  ;;  %v1926_v57 = vsel %vm1925_vm15, %v7075_v61, %v7074_v48  ;;  %v1930_v29 = vsel %vm1925_vm15, %v7039_v22, %v7059_v40  ;;  %v7079_v3 = vld [vmem:[#allocation234_spill] sm:$0xff] }
 0xb20   : > { %v2189_v1 = vadd.f32 %v2161_v8, %v2074_v34  ;;  %v1963_v52 = vadd.f32 %v1935_v21, %v1848_v4  ;;  %v1934_v63 = vsel %vm1925_vm15, %v7070_v58, %v7069_v62  ;;  %v2048_v24 = vsel %vm2040_vm7, %v7080_v11, %v7079_v3  ;;  %v7082_v8 = vld [vmem:[#allocation175_spill] sm:$0xff]  ;;  %v7083_v21 = vld [vmem:[#allocation224_spill] sm:$0xff]  ;;  %v7085_v58 = vld [vmem:[#allocation225_spill] sm:$0xff] }
 0xb21   : > { %v1962_v40 = vadd.f32 %v1934_v63, %v1847_v27  ;;  %v1936_v34 = vsel %vm1925_vm15, %v7068_v5, %v7083_v21  ;;  %v1955_v5 = vadd.f32 %v1927_v28, %v5549_v51  ;;  %v1954_v61 = vadd.f32 %v1926_v57, %v5551_v49  ;;  %v7088_v11 = vld [vmem:[#allocation228_spill] sm:$0xff]  ;;  %v7090_v51 = vld [vmem:[#allocation205_spill] sm:$0xff] }
 0xb22   : > { %v2304_v37 = vadd.f32 %v2276_v53, %v2189_v1  ;;  %v1937_v53 = vsel %vm1925_vm15, %v7083_v21, %v7082_v8  ;;  %v1958_v63 = vadd.f32 %v1930_v29, %v5595_v60  ;;  %v7091_v28 = vld [vmem:[#allocation201_spill] sm:$0xff]  ;;  %v7092_v60 = vld [vmem:[#allocation235_spill] sm:$0xff]  ;;  %v7094_v29 = vld [vmem:[#allocation252_spill] sm:$0xff] }
 0xb23   : > { %v2053_v49 = vsel %vm2040_vm7, %v7091_v28, %v7090_v51 }
 0xb24   : > { %v2362_v12 = vpop.permute.xlu1 %2361  ;;  %v2360_v6 = vpop.permute.xlu0 %2359 }
 0xb25   : > { %v5629_v46 = vsel %vm2385_vm6, %v2362_v12, %v5571_v2  ;;  %v2388_v47 = vsel %vm2385_vm6, %v5499_v15, %v2360_v6  ;;  %v2389_v23 = vsel %vm2385_vm6, %v2360_v6, %v2362_v12  ;;  %v2162_v15 = vsel %vm2155_vm8, %v7065_v30, %v7067_v50  ;;  %v7076_v12 = vld [vmem:[#allocation203_spill] sm:$0xff]  ;;  %v7081_v30 = vld [vmem:[#allocation178_spill] sm:$0xff] }
 0xb26   : > { %v5634_v20 = vadd.f32 %v2388_v47, %v2301_v41  ;;  %v5636_v54 = vadd.f32 %v2389_v23, %v2302_v42  ;;  %v2190_v41 = vadd.f32 %v2162_v15, %v2075_v7  ;;  %v1961_v42 = vadd.f32 %v1933_v25, %v1846_v36  ;;  %v7077_v6 = vld [vmem:[#allocation199_spill] sm:$0xff]  ;;  %v7084_v7 = vld [vmem:[#allocation229_spill] sm:$0xff]  ;;  %v7087_v25 = vld [vmem:[#allocation226_spill] sm:$0xff] }
 0xb27   : > { %v2050_v38 = vsel %vm2040_vm7, %v7077_v6, %v7076_v12  ;;  %v2049_v22 = vsel %vm2040_vm7, %v7079_v3, %v7077_v6  ;;  %v1938_v50 = vsel %vm1925_vm15, %v7082_v8, %v7081_v30  ;;  %v2165_v39 = vsel %vm2155_vm8, %v7085_v58, %v7084_v7 }
 0xb28   : > { %v2305_v47 = vadd.f32 %v7078_v43, %v2190_v41  ;;  %v2078_v48 = vadd.f32 %v2050_v38, %v1963_v52  ;;  %v2076_v1 = vadd.f32 %v2048_v24, %v1961_v42  ;;  %v2077_v41 = vadd.f32 %v2049_v22, %v1962_v40  ;;  %v7089_v52 = vld [vmem:[#allocation191_spill] sm:$0xff]  ;;  %v7095_v38 = vld [vmem:[#allocation253_spill] sm:$0xff] }
 0xb29   : > { %v1966_v6 = vadd.f32 %v1938_v50, %v1851_v16  ;;  %v1964_v43 = vadd.f32 %v1936_v34, %v1849_v35  ;;  %v1965_v3 = vadd.f32 %v1937_v53, %v1850_v18  ;;  %v2042_v42 = vsel %vm2040_vm7, %v7089_v52, %v7042_v13  ;;  %v7093_v35 = vld [vmem:[#allocation251_spill] sm:$0xff] }
 0xb2a   : > { %v2051_v16 = vsel %vm2040_vm7, %v7076_v12, %v7092_v60  ;;  %v2052_v13 = vsel %vm2040_vm7, %v7092_v60, %v7091_v28  ;;  %v7096_v12 = vld [vmem:[#allocation230_spill] sm:$0xff] }
 0xb2b   : > { %v2041_v50 = vsel %vm2040_vm7, %v7096_v12, %v7089_v52 }
 0xb2c   : > { %v2368_v23 = vpop.permute.xlu1 %2367  ;;  %v2366_v9 = vpop.permute.xlu0 %2365 }
 0xb2d   : > { %v2391_v4 = vsel %vm2385_vm6, %v5571_v2, %v2366_v9  ;;  %v2392_v36 = vsel %vm2385_vm6, %v2366_v9, %v2368_v23  ;;  %v7086_v2 = vld [vmem:[#allocation240_spill] sm:$0xff] }
 0xb2e   : > { %v5691_v15 = vadd.f32 %v2391_v4, %v2304_v37  ;;  %v5693_v62 = vadd.f32 %v2392_v36, %v2305_v47  ;;  %v2163_v27 = vsel %vm2155_vm8, %v7087_v25, %v7086_v2  ;;  %v2164_v45 = vsel %vm2155_vm8, %v7086_v2, %v7085_v58  ;;  %v2376_v37 = vpop.permute.xlu2 %2375  ;;  %v7097_v2 = vld [vmem:[#allocation231_spill] sm:$0xff] }
 0xb2f   : > { %v2193_v47 = vadd.f32 %v2165_v39, %v2078_v48  ;;  %v2191_v23 = vadd.f32 %v2163_v27, %v2076_v1  ;;  %v2192_v9 = vadd.f32 %v2164_v45, %v2077_v41  ;;  %v1939_v4 = vsel %vm1925_vm15, %v7081_v30, %v7088_v11  ;;  %v7098_v25 = vld [vmem:[#allocation227_spill] sm:$0xff]  ;;  %v7099_v27 = vld [vmem:[#allocation241_spill] sm:$0xff] }
 0xb30   : > { %v2045_v39 = vsel %vm2040_vm7, %v7043_v10, %v7062_v56  ;;  %v2166_v45 = vsel %vm2155_vm8, %v7084_v7, %v7099_v27  ;;  %v2167_v53 = vsel %vm2155_vm8, %v7099_v27, %v7098_v25  ;;  %v2081_v48 = vadd.f32 %v2053_v49, %v1966_v6  ;;  %v7102_v6 = vld [vmem:[#allocation237_spill] sm:$0xff] }
 0xb31   : > { %v2308_v57 = vadd.f32 %v7093_v35, %v2193_v47  ;;  %v2306_v18 = vadd.f32 %v7094_v29, %v2191_v23  ;;  %v2307_v24 = vadd.f32 %v7095_v38, %v2192_v9  ;;  %v2079_v1 = vadd.f32 %v2051_v16, %v1964_v43  ;;  %v7100_v47 = vld [vmem:[#allocation236_spill] sm:$0xff]  ;;  %v7101_v35 = vld [vmem:[#allocation217_spill] sm:$0xff] }
 0xb32   : > { %v2080_v41 = vadd.f32 %v2052_v13, %v1965_v3  ;;  %v2054_v23 = vsel %vm2040_vm7, %v7090_v51, %v7100_v47  ;;  %v1967_v10 = vadd.f32 %v1939_v4, %v5661_v44  ;;  %v2070_v56 = vadd.f32 %v2042_v42, %v1955_v5  ;;  %v7103_v5 = vld [vmem:[#allocation243_spill] sm:$0xff]  ;;  %v7105_v42 = vld [vmem:[#allocation256_spill] sm:$0xff]  ;;  %v7106_v49 = vld [vmem:[#allocation257_spill] sm:$0xff] }
 0xb33   : > { %v2069_v9 = vadd.f32 %v2041_v50, %v1954_v61  ;;  %v2073_v11 = vadd.f32 %v2045_v39, %v1958_v63  ;;  %v2194_v28 = vadd.f32 %v2166_v45, %v2079_v1  ;;  %v2156_v43 = vsel %vm2155_vm8, %v7102_v6, %v7101_v35  ;;  %v7104_v63 = vld [vmem:[#allocation255_spill] sm:$0xff] }
 0xb34   : > { %v2374_v22 = vpop.permute.xlu1 %2373  ;;  %v2372_v36 = vpop.permute.xlu0 %2371  ;;  %v2195_v60 = vadd.f32 %v2167_v53, %v2080_v41  ;;  %v2082_v7 = vadd.f32 %v2054_v23, %v1967_v10  ;;  %v2160_v3 = vsel %vm2155_vm8, %v7051_v55, %v7066_v17  ;;  %v2169_v61 = vsel %vm2155_vm8, %v7097_v2, %v7103_v5  ;;  %v2480_v39 = vld [vmem:[%s3674_s25 + $0x1] sm:$0xff] }
 0xb35   : > { %v2395_v40 = vsel %vm2385_vm6, %v2374_v22, %v2376_v37  ;;  %v2393_v30 = vsel %vm2385_vm6, %v2370_v32, %v2372_v36  ;;  %v2394_v8 = vsel %vm2385_vm6, %v2372_v36, %v2374_v22  ;;  %v2168_v32 = vsel %vm2155_vm8, %v7098_v25, %v7097_v2  ;;  %v7108_v22 = vld [vmem:[#allocation245_spill] sm:$0xff] }
 0xb36   : > { %v5737_v21 = vadd.f32 %v2395_v40, %v2308_v57  ;;  %v5739_v34 = vadd.f32 %v2393_v30, %v2306_v18  ;;  %v5741_v58 = vadd.f32 %v2394_v8, %v2307_v24  ;;  %v2196_v52 = vadd.f32 %v2168_v32, %v2081_v48  ;;  %v2382_v44 = vpop.permute.xlu2 %2381  ;;  %v7107_v18 = vld [vmem:[#allocation244_spill] sm:$0xff] }
 0xb37   : > { %v2157_v57 = vsel %vm2155_vm8, %v7101_v35, %v7050_v26  ;;  %v2309_v51 = vadd.f32 %v7105_v42, %v2194_v28  ;;  %v2310_v26 = vadd.f32 %v7106_v49, %v2195_v60  ;;  %v2272_v38 = vsel %vm2270_vm0, %v7107_v18, %v7053_v31 }
 0xb38   : > { %v2311_v4 = vadd.f32 %v7104_v63, %v2196_v52  ;;  %v2271_v36 = vsel %vm2270_vm0, %v7108_v22, %v7107_v18  ;;  %v2185_v8 = vadd.f32 %v2157_v57, %v2070_v56  ;;  %v2184_v12 = vadd.f32 %v2156_v43, %v2069_v9 }
 0xb39   : > { %v2275_v31 = vsel %vm2270_vm0, %v7054_v33, %v7073_v59  ;;  %v2188_v2 = vadd.f32 %v2160_v3, %v2073_v11  ;;  %v2197_v25 = vadd.f32 %v2169_v61, %v2082_v7  ;;  %v5796_v48 = vperm.slane %v2480_v39, 1 }
 0xb3a   : > { %v2300_v32 = vadd.f32 %v2272_v38, %v2185_v8  ;;  %v2299_v27 = vadd.f32 %v2271_v36, %v2184_v12  ;;  %v5798_v1 = vperm.slane %v2480_v39, 0  ;;  %v5802_v33 = vperm.slane %v2480_v39, 6 }
 0xb3b   : > { %v2303_v45 = vadd.f32 %v2275_v31, %v2188_v2  ;;  %v5804_v59 = vperm.slane %v2480_v39, 2  ;;  %v5807_v56 = vperm.slane %v2480_v39, 3  ;;  %v5809_v9 = vperm.slane %v2480_v39, 4  ;;  %v5871_v31 = vld [vmem:[%s6405_s1] sm:$0xff] }
 0xb3c   : > { %v2380_v16 = vpop.permute.xlu1 %2379  ;;  %v2378_v29 = vpop.permute.xlu0 %2377  ;;  %v2415_v41 = vadd.f32 %v5575_v19, %v2300_v32  ;;  %v2414_v47 = vadd.f32 %v5578_v0, %v2299_v27  ;;  %v5811_v11 = vperm.slane %v2480_v39, 5 }
 0xb3d   : > { %v2398_v55 = vsel %vm2385_vm6, %v2380_v16, %v2382_v44  ;;  %v2396_v17 = vsel %vm2385_vm6, %v2376_v37, %v2378_v29  ;;  %v2397_v24 = vsel %vm2385_vm6, %v2378_v29, %v2380_v16  ;;  %v7109_v37 = vld [vmem:[#allocation254_spill] sm:$0xff]  ;;  %v5847_v16 = vperm.slane %v2480_v39, 7 }
 0xb3e   : > { %v5783_v13 = vadd.f32 %v2398_v55, %v2311_v4  ;;  %v5785_v40 = vadd.f32 %v2396_v17, %v2309_v51  ;;  %v5787_v30 = vadd.f32 %v2397_v24, %v2310_v26  ;;  %v2284_v50 = vsel %vm2270_vm0, %v7109_v37, %v5507_v14  ;;  %v5878_v37 = vld [vmem:[%s6405_s1 + $0x8] sm:$0xff] }
 0xb3f   : > { %v2312_v53 = vadd.f32 %v2284_v50, %v2197_v25  ;;  %v2418_v14 = vadd.f32 %v5629_v46, %v2303_v45  ;;  %v2435_v50 = vpop.permute.xlu2 %2434  ;;  %vm3174_vm0 = vcmask 781856  }
 0xb44   : > { %v2431_v23 = vpop.permute.xlu1 %2430  ;;  %v2384_v10 = vpop.permute.xlu0 %2383 }
 0xb45   : > { %v2399_v52 = vsel %vm2385_vm6, %v2382_v44, %v2384_v10  ;;  %v2454_v19 = vmul.f32 %v5804_v59, %v2431_v23  ;;  %v2452_v0 = vmul.f32 %v5798_v1, %v2431_v23  ;;  %v2453_v28 = vmul.f32 %v5796_v48, %v2431_v23 }
 0xb46   : > { %v5817_v60 = vadd.f32 %v2399_v52, %v2312_v53  ;;  %v2457_v46 = vmul.f32 %v5811_v11, %v2431_v23  ;;  %v2455_v7 = vmul.f32 %v5807_v56, %v2431_v23  ;;  %v2456_v35 = vmul.f32 %v5809_v9, %v2431_v23 }
 0xb47   : > { %v2468_v57 = vadd.f32 %v2454_v19, %v5634_v20  ;;  %v2466_v6 = vadd.f32 %v2452_v0, %v2414_v47  ;;  %v2467_v43 = vadd.f32 %v2453_v28, %v2415_v41  ;;  %v2458_v3 = vmul.f32 %v5802_v33, %v2431_v23 }
 0xb48   : > { %v5825_v44 = vadd.f32 %v2457_v46, %v5691_v15  ;;  %v5828_v5 = vadd.f32 %v2455_v7, %v5636_v54  ;;  %v5830_v61 = vadd.f32 %v2456_v35, %v2418_v14  ;;  %v3607_v54 = vmov 22  }
 0xb49   : > { %v5833_v63 = vadd.f32 %v2458_v3, %v5693_v62  ;;  %3471 = vset.pattern.permute.xlu1 %v3607_v54  ;;  %3472 = vset.pattern.permute.xlu2 %v3607_v54  ;;  %v2461_v54 = vmul.f32 %v5804_v59, %v2435_v50 }
 0xb4c   : > { %v2483_v4 = vpop.permute.xlu0 %2482 }
 0xb4d   : > { %v2509_v42 = vmul.f32 %v5807_v56, %v2483_v4  ;;  %v2507_v20 = vmul.f32 %v5796_v48, %v2483_v4  ;;  %v2506_v51 = vmul.f32 %v5798_v1, %v2483_v4  ;;  %v2512_v15 = vmul.f32 %v5802_v33, %v2483_v4  ;;  %v2487_v26 = vpop.permute.xlu1 %2486 }
 0xb4e   : > { %v2510_v62 = vmul.f32 %v5809_v9, %v2483_v4  ;;  %v2508_v49 = vmul.f32 %v5804_v59, %v2483_v4  ;;  %v2515_v29 = vmul.f32 %v5796_v48, %v2487_v26  ;;  %v2513_v18 = vmul.f32 %v5847_v16, %v2483_v4 }
 0xb4f   : > { %2544 = vrot.lane.b32.xlu0 %v2509_v42, %s3570_s26  ;;  %2540 = vrot.lane.b32.xlu1 %v2507_v20, %s3570_s26  ;;  %v2511_v38 = vmul.f32 %v5811_v11, %v2483_v4  ;;  %v2518_v55 = vmul.f32 %v5809_v9, %v2487_v26  ;;  %v2516_v17 = vmul.f32 %v5804_v59, %v2487_v26 }
 0xb50   : > { %2538 = vrot.lane.b32.xlu2 %v2506_v51, %s3570_s26  ;;  %v2514_v24 = vmul.f32 %v5798_v1, %v2487_v26  ;;  %v2521_v22 = vmul.f32 %v5847_v16, %v2487_v26  ;;  %v2519_v36 = vmul.f32 %v5811_v11, %v2487_v26  ;;  %v2517_v8 = vmul.f32 %v5807_v56, %v2487_v26 }
 0xb51   : > { %v2520_v12 = vmul.f32 %v5802_v33, %v2487_v26 }
 0xb57   : > { %2550 = vrot.lane.b32.xlu0 %v2512_v15, %s3570_s26  ;;  %2546 = vrot.lane.b32.xlu1 %v2510_v62, %s3570_s26 }
 0xb58   : > { %2542 = vrot.lane.b32.xlu2 %v2508_v49, %s3570_s26 }
 0xb5f   : > { %2556 = vrot.lane.b32.xlu0 %v2515_v29, %s3570_s26  ;;  %2552 = vrot.lane.b32.xlu1 %v2513_v18, %s3570_s26  ;;  %v2475_v29 = vadd.f32 %v2461_v54, %v5737_v21 }
 0xb60   : > { %2548 = vrot.lane.b32.xlu2 %v2511_v38, %s3570_s26 }
 0xb67   : > { %2562 = vrot.lane.b32.xlu0 %v2518_v55, %s3570_s26  ;;  %2558 = vrot.lane.b32.xlu1 %v2516_v17, %s3570_s26 }
 0xb68   : > { %2554 = vrot.lane.b32.xlu2 %v2514_v24, %s3570_s26 }
 0xb6f   : > { %2568 = vrot.lane.b32.xlu0 %v2521_v22, %s3570_s26  ;;  %2564 = vrot.lane.b32.xlu1 %v2519_v36, %s3570_s26  ;;  %v2465_v22 = vmul.f32 %v5802_v33, %v2435_v50 }
 0xb70   : > { %2560 = vrot.lane.b32.xlu2 %v2517_v8, %s3570_s26 }
 0xb71   : > { %v2479_v8 = vadd.f32 %v2465_v22, %v5817_v60 }
 0xb77   : > { %2613 = vperm.xlu1 %3471, %v5871_v31  }
 0xb78   : > { %2566 = vrot.lane.b32.xlu2 %v2520_v12, %s3570_s26 }
 0xb80   : > { %2617 = vperm.xlu2 %3472, %v5878_v37  }
 0xbaa   : > { %v2539_v39 = vpop.permute.xlu2 %2538 }
 0xbb2   : > { %v2543_v2 = vpop.permute.xlu2 %2542 }
 0xbba   : > { %v2549_v27 = vpop.permute.xlu2 %2548 }
 0xbc1   : > { %v2545_v25 = vpop.permute.xlu0 %2544  ;;  %v2541_v32 = vpop.permute.xlu1 %2540 }
 0xbc2   : > { %v2572_v45 = vsel %vm315_vm1, %v2543_v2, %v2545_v25  ;;  %v2570_v53 = vsel %vm315_vm1, %v2539_v39, %v2541_v32  ;;  %v2571_v41 = vsel %vm315_vm1, %v2541_v32, %v2543_v2 }
 0xbc3   : > { %v5884_v47 = vadd.f32 %v2572_v45, %v2468_v57  ;;  %v5886_v14 = vadd.f32 %v2570_v53, %v2466_v6  ;;  %v5888_v23 = vadd.f32 %v2571_v41, %v2467_v43  ;;  %v2555_v57 = vpop.permute.xlu2 %2554  ;;  %v2459_v6 = vmul.f32 %v5798_v1, %v2435_v50 }
 0xbc5   : > { %v2473_v3 = vadd.f32 %v2459_v6, %v5739_v34 }
 0xbc9   : > { %v2551_v10 = vpop.permute.xlu0 %2550  ;;  %v2547_v52 = vpop.permute.xlu1 %2546 }
 0xbca   : > { %v2575_v19 = vsel %vm315_vm1, %v2549_v27, %v2551_v10  ;;  %v2573_v0 = vsel %vm315_vm1, %v2545_v25, %v2547_v52  ;;  %v2574_v28 = vsel %vm315_vm1, %v2547_v52, %v2549_v27 }
 0xbcb   : > { %v5894_v46 = vadd.f32 %v2575_v19, %v5825_v44  ;;  %v5897_v7 = vadd.f32 %v2573_v0, %v5828_v5  ;;  %v5900_v35 = vadd.f32 %v2574_v28, %v5830_v61  ;;  %v2462_v5 = vmul.f32 %v5807_v56, %v2435_v50  ;;  %v2561_v15 = vpop.permute.xlu2 %2560 }
 0xbcc   : > { %v2460_v61 = vmul.f32 %v5796_v48, %v2435_v50 }
 0xbcd   : > { %v2476_v34 = vadd.f32 %v2462_v5, %v5785_v40  ;;  %v2463_v40 = vmul.f32 %v5809_v9, %v2435_v50 }
 0xbce   : > { %v2474_v26 = vadd.f32 %v2460_v61, %v5741_v58  ;;  %v2464_v58 = vmul.f32 %v5811_v11, %v2435_v50 }
 0xbcf   : > { %v2477_v39 = vadd.f32 %v2463_v40, %v5787_v30 }
 0xbd0   : > { %v2478_v2 = vadd.f32 %v2464_v58, %v5783_v13  ;;  %v3608_v13 = vmov 23  }
 0xbd1   : > { %v2557_v43 = vpop.permute.xlu0 %2556  ;;  %v2553_v4 = vpop.permute.xlu1 %2552  ;;  %3473 = vset.pattern.permute.xlu1 %v3608_v13  ;;  %3474 = vset.pattern.permute.xlu2 %v3608_v13 }
 0xbd2   : > { %v2577_v42 = vsel %vm315_vm1, %v2555_v57, %v2557_v43  ;;  %v2576_v20 = vsel %vm315_vm1, %v2551_v10, %v2553_v4 }
 0xbd3   : > { %v5906_v51 = vadd.f32 %v2577_v42, %v2473_v3  ;;  %v5909_v44 = vadd.f32 %v2576_v20, %v5833_v63  ;;  %v2567_v36 = vpop.permute.xlu2 %2566 }
 0xbd9   : > { %v2563_v62 = vpop.permute.xlu0 %2562  ;;  %v2559_v49 = vpop.permute.xlu1 %2558 }
 0xbda   : > { %v2580_v18 = vsel %vm315_vm1, %v2561_v15, %v2563_v62  ;;  %v2578_v63 = vsel %vm315_vm1, %v2557_v43, %v2559_v49  ;;  %v2579_v38 = vsel %vm315_vm1, %v2559_v49, %v2561_v15 }
 0xbdb   : > { %v5920_v55 = vadd.f32 %v2580_v18, %v2476_v34  ;;  %v5922_v17 = vadd.f32 %v2578_v63, %v2474_v26  ;;  %v5924_v24 = vadd.f32 %v2579_v38, %v2475_v29  ;;  %v2618_v28 = vpop.permute.xlu2 %2617 }
 0xbdc   : > { %v2628_v57 = vmul.f32 %v2618_v28, %v5798_v1  ;;  %v2630_v3 = vmul.f32 %v2618_v28, %v5804_v59  ;;  %v2629_v4 = vmul.f32 %v2618_v28, %v5796_v48  ;;  %v2631_v42 = vmul.f32 %v2618_v28, %v5807_v56 }
 0xbdd   : > { %v2633_v20 = vmul.f32 %v2618_v28, %v5811_v11  ;;  %v2632_v5 = vmul.f32 %v2618_v28, %v5809_v9  ;;  %v2634_v61 = vmul.f32 %v2618_v28, %v5802_v33  ;;  %v2635_v54 = vmul.f32 %v2618_v28, %v5847_v16 }
 0xbe1   : > { %v2569_v21 = vpop.permute.xlu0 %2568  ;;  %v2565_v12 = vpop.permute.xlu1 %2564 }
 0xbe2   : > { %v2583_v25 = vsel %vm315_vm1, %v2567_v36, %v2569_v21  ;;  %v2581_v32 = vsel %vm315_vm1, %v2563_v62, %v2565_v12  ;;  %v2582_v27 = vsel %vm315_vm1, %v2565_v12, %v2567_v36 }
 0xbe3   : > { %v5935_v45 = vadd.f32 %v2583_v25, %v2479_v8  ;;  %v5937_v53 = vadd.f32 %v2581_v32, %v2477_v39  ;;  %v5939_v50 = vadd.f32 %v2582_v27, %v2478_v2 }
 0xbe9   : > { %v2614_v41 = vpop.permute.xlu1 %2613 }
 0xbea   : > { %v2621_v60 = vmul.f32 %v2614_v41, %v5796_v48  ;;  %v2620_v10 = vmul.f32 %v2614_v41, %v5798_v1  ;;  %v2622_v30 = vmul.f32 %v2614_v41, %v5804_v59  ;;  %v2624_v52 = vmul.f32 %v2614_v41, %v5809_v9 }
 0xbeb   : > { %v2623_v19 = vmul.f32 %v2614_v41, %v5807_v56  ;;  %v2625_v0 = vmul.f32 %v2614_v41, %v5811_v11  ;;  %v2627_v6 = vmul.f32 %v2614_v41, %v5847_v16  ;;  %v2626_v43 = vmul.f32 %v2614_v41, %v5802_v33 }
 0xbec   : > { %2654 = vrot.lane.b32.xlu1 %v2621_v60, %s3571_s27  ;;  %2652 = vrot.lane.b32.xlu0 %v2620_v10, %s3571_s27 }
 0xbed   : > { %2656 = vrot.lane.b32.xlu2 %v2622_v30, %s3571_s27 }
 0xbf4   : > { %2660 = vrot.lane.b32.xlu1 %v2624_v52, %s3571_s27  ;;  %2658 = vrot.lane.b32.xlu0 %v2623_v19, %s3571_s27 }
 0xbf5   : > { %2662 = vrot.lane.b32.xlu2 %v2625_v0, %s3571_s27 }
 0xbfc   : > { %2666 = vrot.lane.b32.xlu1 %v2627_v6, %s3571_s27  ;;  %2664 = vrot.lane.b32.xlu0 %v2626_v43, %s3571_s27 }
 0xbfd   : > { %2668 = vrot.lane.b32.xlu2 %v2628_v57, %s3571_s27 }
 0xc04   : > { %2672 = vrot.lane.b32.xlu1 %v2630_v3, %s3571_s27  ;;  %2670 = vrot.lane.b32.xlu0 %v2629_v4, %s3571_s27 }
 0xc05   : > { %2674 = vrot.lane.b32.xlu2 %v2631_v42, %s3571_s27 }
 0xc0c   : > { %2678 = vrot.lane.b32.xlu1 %v2633_v20, %s3571_s27  ;;  %2676 = vrot.lane.b32.xlu0 %v2632_v5, %s3571_s27 }
 0xc0d   : > { %2680 = vrot.lane.b32.xlu2 %v2634_v61, %s3571_s27 }
 0xc14   : > { %2727 = vperm.xlu1 %3473, %v5871_v31   ;;  %2682 = vrot.lane.b32.xlu0 %v2635_v54, %s3571_s27 }
 0xc15   : > { %2731 = vperm.xlu2 %3474, %v5878_v37  }
 0xc47   : > { %v2657_v15 = vpop.permute.xlu2 %2656 }
 0xc4f   : > { %v2663_v49 = vpop.permute.xlu2 %2662 }
 0xc57   : > { %v2669_v12 = vpop.permute.xlu2 %2668 }
 0xc5e   : > { %v2655_v62 = vpop.permute.xlu1 %2654  ;;  %v2653_v34 = vpop.permute.xlu0 %2652 }
 0xc5f   : > { %v2685_v26 = vsel %vm430_vm2, %v2655_v62, %v2657_v15  ;;  %v2684_v29 = vsel %vm430_vm2, %v2653_v34, %v2655_v62 }
 0xc60   : > { %v5978_v18 = vadd.f32 %v2685_v26, %v5888_v23  ;;  %v5981_v63 = vadd.f32 %v2684_v29, %v5886_v14 }
 0xc66   : > { %v2661_v38 = vpop.permute.xlu1 %2660  ;;  %v2659_v22 = vpop.permute.xlu0 %2658 }
 0xc67   : > { %v2688_v40 = vsel %vm430_vm2, %v2661_v38, %v2663_v49  ;;  %v2686_v58 = vsel %vm430_vm2, %v2657_v15, %v2659_v22  ;;  %v2687_v36 = vsel %vm430_vm2, %v2659_v22, %v2661_v38 }
 0xc68   : > { %v5987_v21 = vadd.f32 %v2688_v40, %v5900_v35  ;;  %v5990_v8 = vadd.f32 %v2686_v58, %v5884_v47  ;;  %v5993_v23 = vadd.f32 %v2687_v36, %v5897_v7  ;;  %v2675_v35 = vpop.permute.xlu2 %2674  ;;  %v3557_v58 = vld [vmem:[%s3653_s19] sm:$0xff] }
 0xc6e   : > { %v2667_v14 = vpop.permute.xlu1 %2666  ;;  %v2665_v39 = vpop.permute.xlu0 %2664 }
 0xc6f   : > { %v2689_v2 = vsel %vm430_vm2, %v2663_v49, %v2665_v39  ;;  %v2690_v25 = vsel %vm430_vm2, %v2665_v39, %v2667_v14 }
 0xc70   : > { %v5998_v32 = vadd.f32 %v2689_v2, %v5894_v46  ;;  %v6001_v27 = vadd.f32 %v2690_v25, %v5909_v44  ;;  %v2681_v44 = vpop.permute.xlu2 %2680 }
 0xc76   : > { %v2673_v41 = vpop.permute.xlu1 %2672  ;;  %v2671_v47 = vpop.permute.xlu0 %2670 }
 0xc77   : > { %v2693_v60 = vsel %vm430_vm2, %v2673_v41, %v2675_v35  ;;  %v2691_v7 = vsel %vm430_vm2, %v2669_v12, %v2671_v47  ;;  %v2692_v10 = vsel %vm430_vm2, %v2671_v47, %v2673_v41 }
 0xc78   : > { %v6007_v30 = vadd.f32 %v2693_v60, %v5924_v24  ;;  %v6010_v13 = vadd.f32 %v2691_v7, %v5906_v51  ;;  %v6013_v46 = vadd.f32 %v2692_v10, %v5922_v17 }
 0xc7e   : > { %v2679_v52 = vpop.permute.xlu1 %2678  ;;  %v2677_v19 = vpop.permute.xlu0 %2676 }
 0xc7f   : > { %v2696_v0 = vsel %vm430_vm2, %v2679_v52, %v2681_v44  ;;  %v2694_v28 = vsel %vm430_vm2, %v2675_v35, %v2677_v19  ;;  %v2695_v57 = vsel %vm430_vm2, %v2677_v19, %v2679_v52 }
 0xc80   : > { %v6019_v6 = vadd.f32 %v2696_v0, %v5939_v50  ;;  %v6022_v24 = vadd.f32 %v2694_v28, %v5920_v55  ;;  %v6025_v51 = vadd.f32 %v2695_v57, %v5937_v53  ;;  %v3609_v55 = vmov 24  }
 0xc81   : > { %3475 = vset.pattern.permute.xlu1 %v3609_v55  ;;  %3476 = vset.pattern.permute.xlu2 %v3609_v55 }
 0xc86   : > { %v2728_v17 = vpop.permute.xlu1 %2727  ;;  %v2683_v43 = vpop.permute.xlu0 %2682 }
 0xc87   : > { %v2697_v3 = vsel %vm430_vm2, %v2681_v44, %v2683_v43  ;;  %v2735_v4 = vmul.f32 %v2728_v17, %v5796_v48  ;;  %v2734_v42 = vmul.f32 %v2728_v17, %v5798_v1  ;;  %v2736_v20 = vmul.f32 %v2728_v17, %v5804_v59 }
 0xc88   : > { %v6032_v5 = vadd.f32 %v2697_v3, %v5935_v45  ;;  %v2738_v53 = vmul.f32 %v2728_v17, %v5809_v9  ;;  %v2737_v50 = vmul.f32 %v2728_v17, %v5807_v56  ;;  %v2739_v61 = vmul.f32 %v2728_v17, %v5811_v11  ;;  %v2732_v45 = vpop.permute.xlu2 %2731 }
 0xc89   : > { %2768 = vrot.lane.b32.xlu1 %v2735_v4, %s3572_s28  ;;  %2766 = vrot.lane.b32.xlu0 %v2734_v42, %s3572_s28  ;;  %v2742_v54 = vmul.f32 %v2732_v45, %v5798_v1  ;;  %v2741_v15 = vmul.f32 %v2728_v17, %v5847_v16  ;;  %v2740_v62 = vmul.f32 %v2728_v17, %v5802_v33  ;;  %vm3196_vm2 = vcmask 257056  }
 0xc8a   : > { %2770 = vrot.lane.b32.xlu2 %v2736_v20, %s3572_s28  ;;  %v2744_v34 = vmul.f32 %v2732_v45, %v5804_v59  ;;  %v2743_v49 = vmul.f32 %v2732_v45, %v5796_v48  ;;  %v2745_v26 = vmul.f32 %v2732_v45, %v5807_v56  ;;  %v2747_v29 = vmul.f32 %v2732_v45, %v5811_v11 }
 0xc8b   : > { %v2746_v38 = vmul.f32 %v2732_v45, %v5809_v9  ;;  %v2748_v22 = vmul.f32 %v2732_v45, %v5802_v33  ;;  %v2749_v40 = vmul.f32 %v2732_v45, %v5847_v16 }
 0xc91   : > { %2774 = vrot.lane.b32.xlu1 %v2738_v53, %s3572_s28  ;;  %2772 = vrot.lane.b32.xlu0 %v2737_v50, %s3572_s28 }
 0xc92   : > { %2776 = vrot.lane.b32.xlu2 %v2739_v61, %s3572_s28 }
 0xc99   : > { %2780 = vrot.lane.b32.xlu1 %v2741_v15, %s3572_s28  ;;  %2778 = vrot.lane.b32.xlu0 %v2740_v62, %s3572_s28 }
 0xc9a   : > { %2782 = vrot.lane.b32.xlu2 %v2742_v54, %s3572_s28 }
 0xca1   : > { %2786 = vrot.lane.b32.xlu1 %v2744_v34, %s3572_s28  ;;  %2784 = vrot.lane.b32.xlu0 %v2743_v49, %s3572_s28 }
 0xca2   : > { %2788 = vrot.lane.b32.xlu2 %v2745_v26, %s3572_s28 }
 0xca9   : > { %2792 = vrot.lane.b32.xlu1 %v2747_v29, %s3572_s28  ;;  %2790 = vrot.lane.b32.xlu0 %v2746_v38, %s3572_s28 }
 0xcaa   : > { %2794 = vrot.lane.b32.xlu2 %v2748_v22, %s3572_s28 }
 0xcb1   : > { %2841 = vperm.xlu1 %3475, %v5871_v31   ;;  %2796 = vrot.lane.b32.xlu0 %v2749_v40, %s3572_s28 }
 0xcb2   : > { %2845 = vperm.xlu2 %3476, %v5878_v37  }
 0xcb9   : > { %3477 = vset.pattern.permute.xlu1 %v3557_v58 }
 0xcba   : > { %3478 = vset.pattern.permute.xlu2 %v3557_v58 }
 0xce4   : > { %v2771_v36 = vpop.permute.xlu2 %2770 }
 0xcec   : > { %v2777_v39 = vpop.permute.xlu2 %2776 }
 0xcf4   : > { %v2783_v52 = vpop.permute.xlu2 %2782 }
 0xcfb   : > { %v2769_v12 = vpop.permute.xlu1 %2768  ;;  %v2767_v14 = vpop.permute.xlu0 %2766 }
 0xcfc   : > { %v2799_v2 = vsel %vm545_vm3, %v2769_v12, %v2771_v36  ;;  %v2798_v25 = vsel %vm545_vm3, %v2767_v14, %v2769_v12 }
 0xcfd   : > { %v6069_v35 = vadd.f32 %v2799_v2, %v5978_v18  ;;  %v6072_v31 = vadd.f32 %v2798_v25, %v5981_v63 }
 0xd03   : > { %v2775_v41 = vpop.permute.xlu1 %2774  ;;  %v2773_v47 = vpop.permute.xlu0 %2772 }
 0xd04   : > { %v2802_v37 = vsel %vm545_vm3, %v2775_v41, %v2777_v39  ;;  %v2800_v60 = vsel %vm545_vm3, %v2771_v36, %v2773_v47  ;;  %v2801_v7 = vsel %vm545_vm3, %v2773_v47, %v2775_v41 }
 0xd05   : > { %v6078_v10 = vadd.f32 %v2802_v37, %v5987_v21  ;;  %v6081_v44 = vadd.f32 %v2800_v60, %v5990_v8  ;;  %v6084_v18 = vadd.f32 %v2801_v7, %v5993_v23  ;;  %v2789_v21 = vpop.permute.xlu2 %2788 }
 0xd0b   : > { %v2781_v63 = vpop.permute.xlu1 %2780  ;;  %v2779_v19 = vpop.permute.xlu0 %2778 }
 0xd0c   : > { %v2803_v0 = vsel %vm545_vm3, %v2777_v39, %v2779_v19  ;;  %v2804_v28 = vsel %vm545_vm3, %v2779_v19, %v2781_v63 }
 0xd0d   : > { %v6089_v57 = vadd.f32 %v2803_v0, %v5998_v32  ;;  %v6092_v17 = vadd.f32 %v2804_v28, %v6001_v27  ;;  %v2795_v27 = vpop.permute.xlu2 %2794 }
 0xd13   : > { %v2787_v43 = vpop.permute.xlu1 %2786  ;;  %v2785_v8 = vpop.permute.xlu0 %2784 }
 0xd14   : > { %v2807_v3 = vsel %vm545_vm3, %v2787_v43, %v2789_v21  ;;  %v2805_v23 = vsel %vm545_vm3, %v2783_v52, %v2785_v8  ;;  %v2806_v4 = vsel %vm545_vm3, %v2785_v8, %v2787_v43 }
 0xd15   : > { %v6098_v42 = vadd.f32 %v2807_v3, %v6007_v30  ;;  %v6101_v20 = vadd.f32 %v2805_v23, %v6010_v13  ;;  %v6104_v32 = vadd.f32 %v2806_v4, %v6013_v46 }
 0xd1b   : > { %v2793_v55 = vpop.permute.xlu1 %2792  ;;  %v2791_v53 = vpop.permute.xlu0 %2790 }
 0xd1c   : > { %v2810_v50 = vsel %vm545_vm3, %v2793_v55, %v2795_v27  ;;  %v2808_v61 = vsel %vm545_vm3, %v2789_v21, %v2791_v53  ;;  %v2809_v45 = vsel %vm545_vm3, %v2791_v53, %v2793_v55 }
 0xd1d   : > { %v6110_v54 = vadd.f32 %v2810_v50, %v6019_v6  ;;  %v6113_v30 = vadd.f32 %v2808_v61, %v6022_v24  ;;  %v6116_v13 = vadd.f32 %v2809_v45, %v6025_v51 }
 0xd23   : > { %v2842_v46 = vpop.permute.xlu1 %2841  ;;  %v2797_v15 = vpop.permute.xlu0 %2796 }
 0xd24   : > { %v2811_v62 = vsel %vm545_vm3, %v2795_v27, %v2797_v15  ;;  %v2849_v34 = vmul.f32 %v2842_v46, %v5796_v48  ;;  %v2848_v49 = vmul.f32 %v2842_v46, %v5798_v1  ;;  %v2850_v26 = vmul.f32 %v2842_v46, %v5804_v59 }
 0xd25   : > { %v6123_v29 = vadd.f32 %v2811_v62, %v6032_v5  ;;  %v2852_v6 = vmul.f32 %v2842_v46, %v5809_v9  ;;  %v2851_v24 = vmul.f32 %v2842_v46, %v5807_v56  ;;  %v2853_v51 = vmul.f32 %v2842_v46, %v5811_v11  ;;  %v2846_v5 = vpop.permute.xlu2 %2845 }
 0xd26   : > { %2882 = vrot.lane.b32.xlu1 %v2849_v34, %s3574_s29  ;;  %2880 = vrot.lane.b32.xlu0 %v2848_v49, %s3574_s29  ;;  %v2856_v38 = vmul.f32 %v2846_v5, %v5798_v1  ;;  %v2855_v22 = vmul.f32 %v2842_v46, %v5847_v16  ;;  %v2854_v40 = vmul.f32 %v2842_v46, %v5802_v33  ;;  %vm3205_vm3 = vcmask 519456  }
 0xd27   : > { %2884 = vrot.lane.b32.xlu2 %v2850_v26, %s3574_s29  ;;  %v2858_v58 = vmul.f32 %v2846_v5, %v5804_v59  ;;  %v2857_v36 = vmul.f32 %v2846_v5, %v5796_v48  ;;  %v2859_v12 = vmul.f32 %v2846_v5, %v5807_v56  ;;  %v2861_v1 = vmul.f32 %v2846_v5, %v5811_v11  ;;  %v2954_v48 = vld [vmem:[%s6406_s2] sm:$0xff]  ;;  %v2955_v56 = vld [vmem:[%s6406_s2 + $0x8] sm:$0xff] }
 0xd28   : > { %v2860_v14 = vmul.f32 %v2846_v5, %v5809_v9  ;;  %v2862_v39 = vmul.f32 %v2846_v5, %v5802_v33  ;;  %v2863_v59 = vmul.f32 %v2846_v5, %v5847_v16 }
 0xd2e   : > { %2888 = vrot.lane.b32.xlu1 %v2852_v6, %s3574_s29  ;;  %2886 = vrot.lane.b32.xlu0 %v2851_v24, %s3574_s29 }
 0xd2f   : > { %2890 = vrot.lane.b32.xlu2 %v2853_v51, %s3574_s29 }
 0xd36   : > { %2894 = vrot.lane.b32.xlu1 %v2855_v22, %s3574_s29  ;;  %2892 = vrot.lane.b32.xlu0 %v2854_v40, %s3574_s29 }
 0xd37   : > { %2896 = vrot.lane.b32.xlu2 %v2856_v38, %s3574_s29 }
 0xd3e   : > { %2900 = vrot.lane.b32.xlu1 %v2858_v58, %s3574_s29  ;;  %2898 = vrot.lane.b32.xlu0 %v2857_v36, %s3574_s29 }
 0xd3f   : > { %2902 = vrot.lane.b32.xlu2 %v2859_v12, %s3574_s29 }
 0xd46   : > { %2906 = vrot.lane.b32.xlu1 %v2861_v1, %s3574_s29  ;;  %2904 = vrot.lane.b32.xlu0 %v2860_v14, %s3574_s29 }
 0xd47   : > { %2908 = vrot.lane.b32.xlu2 %v2862_v39, %s3574_s29 }
 0xd4e   : > { %2958 = vperm.xlu1 %3477, %v2954_v48   ;;  %2910 = vrot.lane.b32.xlu0 %v2863_v59, %s3574_s29  ;;  %s3611_s29 = smov 68  }
 0xd4f   : > { %2963 = vperm.xlu2 %3478, %v2955_v56  }
 0xd81   : > { %v2885_v33 = vpop.permute.xlu2 %2884 }
 0xd89   : > { %v2891_v2 = vpop.permute.xlu2 %2890 }
 0xd91   : > { %v2897_v47 = vpop.permute.xlu2 %2896 }
 0xd98   : > { %v2883_v9 = vpop.permute.xlu1 %2882  ;;  %v2881_v11 = vpop.permute.xlu0 %2880 }
 0xd99   : > { %v2903_v7 = vpop.permute.xlu2 %2902  ;;  %v2913_v28 = vsel %vm660_vm4, %v2883_v9, %v2885_v33  ;;  %v2912_v21 = vsel %vm660_vm4, %v2881_v11, %v2883_v9 }
 0xd9a   : > { %v2941_v55 = vadd.f32 %v2913_v28, %v6069_v35  ;;  %v2940_v53 = vadd.f32 %v2912_v21, %v6072_v31 }
 0xda0   : > { %v2889_v25 = vpop.permute.xlu1 %2888  ;;  %v2887_v41 = vpop.permute.xlu0 %2886 }
 0xda1   : > { %v2909_v19 = vpop.permute.xlu2 %2908  ;;  %v2916_v43 = vsel %vm660_vm4, %v2889_v25, %v2891_v2  ;;  %v2914_v8 = vsel %vm660_vm4, %v2885_v33, %v2887_v41  ;;  %v2915_v3 = vsel %vm660_vm4, %v2887_v41, %v2889_v25 }
 0xda2   : > { %v2944_v50 = vadd.f32 %v2916_v43, %v6078_v10  ;;  %v2942_v45 = vadd.f32 %v2914_v8, %v6081_v44  ;;  %v2943_v46 = vadd.f32 %v2915_v3, %v6084_v18 }
 0xda8   : > { %v2895_v37 = vpop.permute.xlu1 %2894  ;;  %v2893_v60 = vpop.permute.xlu0 %2892 }
 0xda9   : > { %v2917_v23 = vsel %vm660_vm4, %v2891_v2, %v2893_v60  ;;  %v2918_v34 = vsel %vm660_vm4, %v2893_v60, %v2895_v37  ;;  %v2964_v24 = vpop.permute.xlu2 %2963 }
 0xdaa   : > { %v2945_v15 = vadd.f32 %v2917_v23, %v6089_v57  ;;  %v2946_v22 = vadd.f32 %v2918_v34, %v6092_v17 }
 0xdb0   : > { %v2901_v52 = vpop.permute.xlu1 %2900  ;;  %v2899_v16 = vpop.permute.xlu0 %2898 }
 0xdb1   : > { %v2920_v4 = vsel %vm660_vm4, %v2899_v16, %v2901_v52  ;;  %v2921_v62 = vsel %vm660_vm4, %v2901_v52, %v2903_v7  ;;  %v2919_v49 = vsel %vm660_vm4, %v2897_v47, %v2899_v16 }
 0xdb2   : > { %v2948_v35 = vadd.f32 %v2920_v4, %v6104_v32  ;;  %v2949_v57 = vadd.f32 %v2921_v62, %v6098_v42  ;;  %v2947_v40 = vadd.f32 %v2919_v49, %v6101_v20 }
 0xdb4   : > { %v6201_v39 = vadd.f32 %v2964_v24, %v2948_v35  ;;  %v6203_v56 = vadd.f32 %v2964_v24, %v2949_v57  ;;  %v2973_v9 = vadd.f32 %v2964_v24, %v2947_v40 }
 0xdb6   : > { %v2988_v47 = vmax.f32 %v6201_v39, 0.0  ;;  %v2989_v37 = vmax.f32 %v6203_v56, 0.0  ;;  %v2987_v52 = vmax.f32 %v2973_v9, 0.0 }
 0xdb8   : > { %v2907_v63 = vpop.permute.xlu1 %2906  ;;  %v2905_v0 = vpop.permute.xlu0 %2904 }
 0xdb9   : > { %v2922_v27 = vsel %vm660_vm4, %v2903_v7, %v2905_v0  ;;  %v2923_v61 = vsel %vm660_vm4, %v2905_v0, %v2907_v63  ;;  %v2924_v11 = vsel %vm660_vm4, %v2907_v63, %v2909_v19 }
 0xdba   : > { %v2950_v31 = vadd.f32 %v2922_v27, %v6113_v30  ;;  %v2951_v10 = vadd.f32 %v2923_v61, %v6116_v13  ;;  %v2952_v7 = vadd.f32 %v2924_v11, %v6110_v54 }
 0xdbc   : > { %v6193_v14 = vadd.f32 %v2964_v24, %v2950_v31  ;;  %v6195_v42 = vadd.f32 %v2964_v24, %v2951_v10 }
 0xdbe   : > { %v2990_v2 = vmax.f32 %v6193_v14, 0.0  ;;  %v2991_v25 = vmax.f32 %v6195_v42, 0.0 }
 0xdc0   : > { %v2959_v26 = vpop.permute.xlu1 %2958  ;;  %v2911_v58 = vpop.permute.xlu0 %2910  ;;  %v3504_v16 = vpack.i.bf16 %v2991_v25, %v2990_v2 }
 0xdc1   : > { %v6181_v6 = vadd.f32 %v2959_v26, %v2944_v50  ;;  %v6183_v44 = vadd.f32 %v2959_v26, %v2945_v15  ;;  %v6185_v18 = vadd.f32 %v2959_v26, %v2942_v45  ;;  %v2969_v51 = vadd.f32 %v2959_v26, %v2943_v46 }
 0xdc2   : > { %v2966_v5 = vadd.f32 %v2959_v26, %v2940_v53  ;;  %v2967_v38 = vadd.f32 %v2959_v26, %v2941_v55  ;;  %v2972_v20 = vadd.f32 %v2959_v26, %v2946_v22  ;;  %v2925_v33 = vsel %vm660_vm4, %v2909_v19, %v2911_v58 }
 0xdc3   : > { %v2984_v32 = vmax.f32 %v6181_v6, 0.0  ;;  %v2985_v30 = vmax.f32 %v6183_v44, 0.0  ;;  %v2982_v13 = vmax.f32 %v6185_v18, 0.0  ;;  %v2983_v36 = vmax.f32 %v2969_v51, 0.0 }
 0xdc4   : > { %v2980_v12 = vmax.f32 %v2966_v5, 0.0  ;;  %v2981_v1 = vmax.f32 %v2967_v38, 0.0  ;;  %v2953_v41 = vadd.f32 %v2925_v33, %v6123_v29  ;;  %v2986_v60 = vmax.f32 %v2972_v20, 0.0 }
 0xdc5   : > { %v3489_v17 = vpack.i.bf16 %v2985_v30, %v2984_v32  ;;  %v3484_v48 = vpack.i.bf16 %v2983_v36, %v2982_v13  ;;  %v3499_v19 = vpack.i.bf16 %v2989_v37, %v2988_v47  ;;  %v6223_v29 = vadd.f32 %v2964_v24, %v2952_v7 }
 0xdc6   : > { %v3479_v59 = vpack.i.bf16 %v2981_v1, %v2980_v12  ;;  %v6220_v63 = vadd.f32 %v2964_v24, %v2953_v41  ;;  %v3494_v0 = vpack.i.bf16 %v2987_v52, %v2986_v60 }
 0xdc7   : > { %3490 = vrot.lane.b32.xlu2 %v3489_v17, %s3570_s26  ;;  %3485 = vrot.lane.b32.xlu1 %v3484_v48, %s3570_s26  ;;  %v2992_v28 = vmax.f32 %v6223_v29, 0.0 }
 0xdc8   : > { %3480 = vrot.lane.b32.xlu0 %v3479_v59, %s3570_s26  ;;  %v2993_v54 = vmax.f32 %v6220_v63, 0.0 }
 0xdca   : > { %v3509_v21 = vpack.i.bf16 %v2993_v54, %v2992_v28 }
 0xdcf   : > { %3505 = vrot.lane.b32.xlu2 %v3504_v16, %s3570_s26  ;;  %3500 = vrot.lane.b32.xlu1 %v3499_v19, %s3570_s26 }
 0xdd0   : > { %3495 = vrot.lane.b32.xlu0 %v3494_v0, %s3570_s26 }
 0xdd8   : > { %3510 = vrot.lane.b32.xlu0 %v3509_v21, %s3570_s26  ;;  %s3610_s26 = smov 36  }
 0xe21   : > { %v3491_v43 = vpop.permute.xlu2 %3490 }
 0xe22   : > { %v3492_v8 = vunpack.i.l.bf16 %v3491_v43  ;;  %v3493_v31 = vunpack.i.h.bf16 %v3491_v43 }
 0xe29   : > { %v3506_v35 = vpop.permute.xlu2 %3505 }
 0xe2a   : > { %v3507_v18 = vunpack.i.l.bf16 %v3506_v35  ;;  %v3508_v56 = vunpack.i.h.bf16 %v3506_v35 }
 0xe2c   : > { %v3045_v6 = vsel %vm315_vm1, %v3507_v18, %v3508_v56 }
 0xe39   : > { %v3486_v3 = vpop.permute.xlu1 %3485 }
 0xe3a   : > { %v3481_v23 = vpop.permute.xlu0 %3480  ;;  %v3488_v4 = vunpack.i.h.bf16 %v3486_v3  ;;  %v3487_v27 = vunpack.i.l.bf16 %v3486_v3 }
 0xe3b   : > { %v3483_v55 = vunpack.i.h.bf16 %v3481_v23  ;;  %v3482_v53 = vunpack.i.l.bf16 %v3481_v23 }
 0xe3c   : > { %v3039_v50 = vsel %vm315_vm1, %v3488_v4, %v3492_v8  ;;  %v3038_v61 = vsel %vm315_vm1, %v3487_v27, %v3488_v4 }
 0xe3d   : > { %v3037_v45 = vsel %vm315_vm1, %v3483_v55, %v3487_v27  ;;  %v3036_v46 = vsel %vm315_vm1, %v3482_v53, %v3483_v55  ;;  %v6234_v15 = vmax.f32 %v2983_v36, %v3039_v50  ;;  %v6236_v62 = vmax.f32 %v2982_v13, %v3038_v61 }
 0xe3e   : > { %v6238_v34 = vmax.f32 %v2981_v1, %v3037_v45  ;;  %v3062_v49 = vmax.f32 %v2980_v12, %v3036_v46  ;;  %v3040_v13 = vsel %vm315_vm1, %v3492_v8, %v3493_v31 }
 0xe3f   : > { %v3519_v26 = vpack.i.bf16 %v6234_v15, %v6236_v62  ;;  %v6256_v59 = vmax.f32 %v2984_v32, %v3040_v13 }
 0xe40   : > { %v3514_v10 = vpack.i.bf16 %v6238_v34, %v3062_v49 }
 0xe41   : > { %3520 = vrot.lane.b32.xlu2 %v3519_v26, %s3576_s30  ;;  %v3501_v57 = vpop.permute.xlu1 %3500 }
 0xe42   : > { %v3496_v24 = vpop.permute.xlu0 %3495  ;;  %3515 = vrot.lane.b32.xlu1 %v3514_v10, %s3576_s30  ;;  %v3503_v51 = vunpack.i.h.bf16 %v3501_v57  ;;  %v3502_v5 = vunpack.i.l.bf16 %v3501_v57 }
 0xe43   : > { %v3498_v38 = vunpack.i.h.bf16 %v3496_v24  ;;  %v3497_v22 = vunpack.i.l.bf16 %v3496_v24 }
 0xe44   : > { %v3044_v40 = vsel %vm315_vm1, %v3503_v51, %v3507_v18  ;;  %v3043_v58 = vsel %vm315_vm1, %v3502_v5, %v3503_v51 }
 0xe45   : > { %v3042_v36 = vsel %vm315_vm1, %v3498_v38, %v3502_v5  ;;  %v6249_v12 = vmax.f32 %v2986_v60, %v3497_v22  ;;  %v6251_v1 = vmax.f32 %v2989_v37, %v3044_v40  ;;  %v3070_v17 = vmax.f32 %v2988_v47, %v3043_v58 }
 0xe46   : > { %v3069_v39 = vmax.f32 %v2987_v52, %v3042_v36  ;;  %v3041_v48 = vsel %vm315_vm1, %v3493_v31, %v3497_v22  ;;  %v6276_v60 = vmax.f32 %v2990_v2, %v3045_v6 }
 0xe47   : > { %v6260_v20 = vmax.f32 %v2985_v30, %v3041_v48  ;;  %v3534_v9 = vpack.i.bf16 %v6251_v1, %v3070_v17 }
 0xe48   : > { %v3529_v33 = vpack.i.bf16 %v3069_v39, %v6249_v12 }
 0xe49   : > { %v3524_v11 = vpack.i.bf16 %v6260_v20, %v6256_v59  ;;  %3535 = vrot.lane.b32.xlu2 %v3534_v9, %s3576_s30 }
 0xe4a   : > { %v3511_v41 = vpop.permute.xlu0 %3510  ;;  %3530 = vrot.lane.b32.xlu1 %v3529_v33, %s3576_s30 }
 0xe4b   : > { %v3513_v32 = vunpack.i.h.bf16 %v3511_v41  ;;  %v3512_v47 = vunpack.i.l.bf16 %v3511_v41  ;;  %3525 = vrot.lane.b32.xlu0 %v3524_v11, %s3576_s30 }
 0xe4d   : > { %v6270_v44 = vmax.f32 %v2993_v54, %v3513_v32  ;;  %v3047_v30 = vsel %vm315_vm1, %v3512_v47, %v3513_v32  ;;  %v3046_v37 = vsel %vm315_vm1, %v3508_v56, %v3512_v47  ;;  %vm3183_vm1 = vcmask 1044256  }
 0xe4e   : > { %v6278_v7 = vmax.f32 %v2992_v28, %v3047_v30  ;;  %v6282_v52 = vmax.f32 %v2991_v25, %v3046_v37 }
 0xe50   : > { %v3544_v16 = vpack.i.bf16 %v6270_v44, %v6278_v7  ;;  %v3539_v63 = vpack.i.bf16 %v6282_v52, %v6276_v60 }
 0xe52   : > { %3545 = vrot.lane.b32.xlu1 %v3544_v16, %s3576_s30 }
 0xe53   : > { %3540 = vrot.lane.b32.xlu0 %v3539_v63, %s3576_s30  ;;  %s3612_s30 = smov 4  }
 0xe9b   : > { %v3521_v19 = vpop.permute.xlu2 %3520 }
 0xe9c   : > { %v3523_v27 = vunpack.i.h.bf16 %v3521_v19  ;;  %v3522_v55 = vunpack.i.l.bf16 %v3521_v19 }
 0xe9e   : > { %v3120_v46 = vsel %vm775_vm5, %v3522_v55, %v3523_v27 }
 0xe9f   : > { %v3146_v31 = vmax.f32 %v6236_v62, %v3120_v46 }
 0xea1   : > { %v3208_v57 = vpack.c.bf16 %v3146_v31, %v3146_v31 }
 0xea3   : > { %v3536_v14 = vpop.permute.xlu2 %3535 }
 0xea4   : > { %v3538_v54 = vunpack.i.h.bf16 %v3536_v14  ;;  %v3537_v28 = vunpack.i.l.bf16 %v3536_v14 }
 0xea6   : > { %v3125_v43 = vsel %vm775_vm5, %v3537_v28, %v3538_v54 }
 0xea7   : > { %v3152_v4 = vmax.f32 %v3070_v17, %v3125_v43 }
 0xea9   : > { %v3187_v45 = vpack.c.bf16 %v3152_v4, %v3152_v4 }
 0xeb4   : > { %v3516_v2 = vpop.permute.xlu1 %3515 }
 0xeb5   : > { %v3518_v0 = vunpack.i.h.bf16 %v3516_v2  ;;  %v3517_v29 = vunpack.i.l.bf16 %v3516_v2 }
 0xeb7   : > { %v3118_v42 = vsel %vm775_vm5, %v3517_v29, %v3518_v0 }
 0xeb8   : > { %v3144_v25 = vmax.f32 %v3062_v49, %v3118_v42  ;;  %v3119_v49 = vsel %vm775_vm5, %v3518_v0, %v3522_v55 }
 0xeb9   : > { %v3145_v26 = vmax.f32 %v6238_v34, %v3119_v49 }
 0xeba   : > { %v3164_v21 = vpack.c.bf16 %v3144_v25, %v3144_v25 }
 0xebb   : > { %v3186_v18 = vpack.c.bf16 %v3145_v26, %v3145_v26 }
 0xebc   : > { %v6292_v8 = vpop.permute.xlu1 %3530  ;;  %3177 = vrot.lane.b32.xlu1 %v3164_v21, %s3610_s26  ;;  %3168 = vrot.lane.b32.xlu2 %v3164_v21, %s3611_s29 }
 0xebd   : > { %v3526_v3 = vpop.permute.xlu0 %3525  ;;  %v3533_v23 = vunpack.i.h.bf16 %v6292_v8  ;;  %v3532_v38 = vunpack.i.l.bf16 %v6292_v8 }
 0xebe   : > { %v3528_v5 = vunpack.i.h.bf16 %v3526_v3  ;;  %v3527_v62 = vunpack.i.l.bf16 %v3526_v3 }
 0xebf   : > { %v3124_v53 = vsel %vm775_vm5, %v3533_v23, %v3537_v28 }
 0xec0   : > { %v3151_v50 = vmax.f32 %v3069_v39, %v3124_v53  ;;  %v3123_v34 = vsel %vm775_vm5, %v3528_v5, %v3532_v38  ;;  %v3121_v13 = vsel %vm775_vm5, %v3523_v27, %v3527_v62  ;;  %v3122_v41 = vsel %vm775_vm5, %v3527_v62, %v3528_v5 }
 0xec1   : > { %v3149_v58 = vmax.f32 %v6260_v20, %v3123_v34  ;;  %v3147_v36 = vmax.f32 %v6234_v15, %v3121_v13  ;;  %v3148_v32 = vmax.f32 %v6256_v59, %v3122_v41  ;;  %v3150_v59 = vmax.f32 %v6249_v12, %v3532_v38 }
 0xec2   : > { %v3165_v61 = vpack.c.bf16 %v3151_v50, %v3151_v50 }
 0xec3   : > { %v3268_v48 = vpack.c.bf16 %v3149_v58, %v3149_v58  ;;  %v3228_v33 = vpack.c.bf16 %v3147_v36, %v3147_v36  ;;  %v3248_v47 = vpack.c.bf16 %v3148_v32, %v3148_v32  ;;  %v3288_v63 = vpack.c.bf16 %v3150_v59, %v3150_v59 }
 0xec4   : > { %3170 = vrot.lane.b32.xlu0 %v3165_v61, %s3611_s29  ;;  %3192 = vrot.lane.b32.xlu1 %v3187_v45, %s3612_s30  ;;  %v3546_v40 = vpop.permute.xlu1 %3545 }
 0xec5   : > { %v3541_v35 = vpop.permute.xlu0 %3540  ;;  %3179 = vrot.lane.b32.xlu2 %v3165_v61, %s3610_s26  ;;  %v3548_v17 = vunpack.i.h.bf16 %v3546_v40  ;;  %v3547_v39 = vunpack.i.l.bf16 %v3546_v40 }
 0xec6   : > { %v3542_v10 = vunpack.i.l.bf16 %v3541_v35 }
 0xec7   : > { %v3129_v9 = vsel %vm775_vm5, %v3547_v39, %v3548_v17  ;;  %v3157_v37 = vmax.f32 %v6270_v44, %v3548_v17 }
 0xec8   : > { %v3126_v24 = vsel %vm775_vm5, %v3538_v54, %v3542_v10  ;;  %v3156_v20 = vmax.f32 %v6278_v7, %v3129_v9 }
 0xec9   : > { %v3153_v51 = vmax.f32 %v6251_v1, %v3126_v24  ;;  %v3543_v1 = vunpack.i.h.bf16 %v3541_v35  ;;  %v3289_v7 = vpack.c.bf16 %v3157_v37, %v3157_v37 }
 0xeca   : > { %v3269_v6 = vpack.c.bf16 %v3156_v20, %v3156_v20 }
 0xecb   : > { %v3209_v22 = vpack.c.bf16 %v3153_v51, %v3153_v51  ;;  %v3127_v56 = vsel %vm775_vm5, %v3542_v10, %v3543_v1  ;;  %v3128_v30 = vsel %vm775_vm5, %v3543_v1, %v3547_v39 }
 0xecc   : > { %3190 = vrot.lane.b32.xlu0 %v3186_v18, %s3612_s30  ;;  %3212 = vrot.lane.b32.xlu1 %v3208_v57, %s3611_s29  ;;  %v3154_v11 = vmax.f32 %v6276_v60, %v3127_v56  ;;  %v3155_v60 = vmax.f32 %v6282_v52, %v3128_v30 }
 0xecd   : > { %3199 = vrot.lane.b32.xlu2 %v3186_v18, %s3613_s13 }
 0xece   : > { %v3229_v15 = vpack.c.bf16 %v3154_v11, %v3154_v11  ;;  %v3249_v16 = vpack.c.bf16 %v3155_v60, %v3155_v60 }
 0xed4   : > { %3201 = vrot.lane.b32.xlu0 %v3187_v45, %s3613_s13  ;;  %3222 = vrot.lane.b32.xlu1 %v3209_v22, %s3610_s26 }
 0xed5   : > { %3214 = vrot.lane.b32.xlu2 %v3209_v22, %s3611_s29 }
 0xedc   : > { %3220 = vrot.lane.b32.xlu0 %v3208_v57, %s3610_s26  ;;  %3272 = vrot.lane.b32.xlu1 %v3268_v48, %s3612_s30 }
 0xedd   : > { %3232 = vrot.lane.b32.xlu2 %v3228_v33, %s3612_s30 }
 0xee4   : > { %3234 = vrot.lane.b32.xlu0 %v3229_v15, %s3612_s30  ;;  %3242 = vrot.lane.b32.xlu1 %v3229_v15, %s3613_s13 }
 0xee5   : > { %3274 = vrot.lane.b32.xlu2 %v3269_v6, %s3612_s30 }
 0xeec   : > { %3240 = vrot.lane.b32.xlu0 %v3228_v33, %s3613_s13  ;;  %3252 = vrot.lane.b32.xlu1 %v3248_v47, %s3611_s29 }
 0xeed   : > { %3280 = vrot.lane.b32.xlu2 %v3268_v48, %s3613_s13 }
 0xef4   : > { %3282 = vrot.lane.b32.xlu0 %v3269_v6, %s3613_s13  ;;  %3294 = vrot.lane.b32.xlu1 %v3289_v7, %s3611_s29 }
 0xef5   : > { %3254 = vrot.lane.b32.xlu2 %v3249_v16, %s3611_s29 }
 0xefc   : > { %3292 = vrot.lane.b32.xlu0 %v3288_v63, %s3611_s29  ;;  %3300 = vrot.lane.b32.xlu1 %v3288_v63, %s3610_s26 }
 0xefd   : > { %3260 = vrot.lane.b32.xlu2 %v3248_v47, %s3610_s26 }
 0xf04   : > { %3262 = vrot.lane.b32.xlu0 %v3249_v16, %s3610_s26 }
 0xf05   : > { %3302 = vrot.lane.b32.xlu2 %v3289_v7, %s3610_s26 }
 0xf16   : > { %v3169_v44 = vpop.permute.xlu2 %3168 }
 0xf17   : > { %3175 = vst.msk [vmem:[%s3653_s19] sm:$0xf] %vm3174_vm0, %v3169_v44 }
 0xf1f   : > { %v3180_v12 = vpop.permute.xlu2 %3179 }
 0xf27   : > { %v3200_v52 = vpop.permute.xlu2 %3199 }
 0xf2e   : > { %v3178_v19 = vpop.permute.xlu1 %3177 }
 0xf2f   : > { %3184 = vst.msk [vmem:[%s3653_s19] sm:$0xf] %vm3183_vm1, %v3178_v19  ;;  %v3215_v14 = vpop.permute.xlu2 %3214 }
 0xf36   : > { %v3171_v2 = vpop.permute.xlu0 %3170  ;;  %v3193_v0 = vpop.permute.xlu1 %3192 }
 0xf37   : > { %3176 = vst.msk [vmem:[%s3653_s19 + $0x14] sm:$0xf] %vm3174_vm0, %v3171_v2  ;;  %v3233_v29 = vpop.permute.xlu2 %3232 }
 0xf38   : > { %3185 = vst.msk [vmem:[%s3653_s19 + $0x14] sm:$0xf] %vm3183_vm1, %v3180_v12 }
 0xf39   : > { %3198 = vst.msk [vmem:[%s3653_s19 + $0x18] sm:$0xf] %vm3196_vm2, %v3193_v0 }
 0xf3a   : > { %3238 = vst.msk [vmem:[%s3653_s19 + $0x8] sm:$0xf] %vm3196_vm2, %v3233_v29 }
 0xf3e   : > { %v3191_v54 = vpop.permute.xlu0 %3190  ;;  %v3213_v28 = vpop.permute.xlu1 %3212 }
 0xf3f   : > { %3197 = vst.msk [vmem:[%s3653_s19 + $0x4] sm:$0xf] %vm3196_vm2, %v3191_v54  ;;  %v3275_v42 = vpop.permute.xlu2 %3274 }
 0xf40   : > { %3206 = vst.msk [vmem:[%s3653_s19 + $0x4] sm:$0xf] %vm3205_vm3, %v3200_v52 }
 0xf41   : > { %3218 = vst.msk [vmem:[%s3653_s19 + $0x4] sm:$0xf] %vm3174_vm0, %v3213_v28 }
 0xf42   : > { %3279 = vst.msk [vmem:[%s3653_s19 + $0x20] sm:$0xf] %vm3196_vm2, %v3275_v42 }
 0xf46   : > { %v3202_v25 = vpop.permute.xlu0 %3201  ;;  %v3223_v21 = vpop.permute.xlu1 %3222 }
 0xf47   : > { %3207 = vst.msk [vmem:[%s3653_s19 + $0x18] sm:$0xf] %vm3205_vm3, %v3202_v25  ;;  %v3281_v43 = vpop.permute.xlu2 %3280 }
 0xf48   : > { %3219 = vst.msk [vmem:[%s3653_s19 + $0x18] sm:$0xf] %vm3174_vm0, %v3215_v14 }
 0xf49   : > { %3227 = vst.msk [vmem:[%s3653_s19 + $0x18] sm:$0xf] %vm3183_vm1, %v3223_v21 }
 0xf4e   : > { %v3221_v8 = vpop.permute.xlu0 %3220  ;;  %v3273_v3 = vpop.permute.xlu1 %3272 }
 0xf4f   : > { %3226 = vst.msk [vmem:[%s3653_s19 + $0x4] sm:$0xf] %vm3183_vm1, %v3221_v8  ;;  %v3255_v23 = vpop.permute.xlu2 %3254 }
 0xf50   : > { %3278 = vst.msk [vmem:[%s3653_s19 + $0xc] sm:$0xf] %vm3196_vm2, %v3273_v3 }
 0xf51   : > { %3286 = vst.msk [vmem:[%s3653_s19 + $0xc] sm:$0xf] %vm3205_vm3, %v3281_v43 }
 0xf56   : > { %v3235_v4 = vpop.permute.xlu0 %3234  ;;  %v3243_v27 = vpop.permute.xlu1 %3242 }
 0xf57   : > { %3239 = vst.msk [vmem:[%s3653_s19 + $0x1c] sm:$0xf] %vm3196_vm2, %v3235_v4  ;;  %v3261_v55 = vpop.permute.xlu2 %3260 }
 0xf58   : > { %3247 = vst.msk [vmem:[%s3653_s19 + $0x1c] sm:$0xf] %vm3205_vm3, %v3243_v27 }
 0xf59   : > { %3259 = vst.msk [vmem:[%s3653_s19 + $0x1c] sm:$0xf] %vm3174_vm0, %v3255_v23 }
 0xf5e   : > { %v3241_v53 = vpop.permute.xlu0 %3240  ;;  %v3253_v50 = vpop.permute.xlu1 %3252 }
 0xf5f   : > { %3246 = vst.msk [vmem:[%s3653_s19 + $0x8] sm:$0xf] %vm3205_vm3, %v3241_v53  ;;  %v3303_v46 = vpop.permute.xlu2 %3302 }
 0xf60   : > { %3258 = vst.msk [vmem:[%s3653_s19 + $0x8] sm:$0xf] %vm3174_vm0, %v3253_v50 }
 0xf61   : > { %3266 = vst.msk [vmem:[%s3653_s19 + $0x8] sm:$0xf] %vm3183_vm1, %v3261_v55 }
 0xf66   : > { %v3283_v61 = vpop.permute.xlu0 %3282  ;;  %v3295_v45 = vpop.permute.xlu1 %3294 }
 0xf67   : > { %3287 = vst.msk [vmem:[%s3653_s19 + $0x20] sm:$0xf] %vm3205_vm3, %v3283_v61 }
 0xf68   : > { %3299 = vst.msk [vmem:[%s3653_s19 + $0x20] sm:$0xf] %vm3174_vm0, %v3295_v45 }
 0xf69   : > { %3307 = vst.msk [vmem:[%s3653_s19 + $0x20] sm:$0xf] %vm3183_vm1, %v3303_v46 }
 0xf6e   : > { %v3293_v49 = vpop.permute.xlu0 %3292  ;;  %v3301_v35 = vpop.permute.xlu1 %3300 }
 0xf6f   : > { %3298 = vst.msk [vmem:[%s3653_s19 + $0xc] sm:$0xf] %vm3174_vm0, %v3293_v49 }
 0xf70   : > { %3306 = vst.msk [vmem:[%s3653_s19 + $0xc] sm:$0xf] %vm3183_vm1, %v3301_v35 }
 0xf76   : > { %v3263_v31 = vpop.permute.xlu0 %3262 }
 0xf77   : > { %3267 = vst.msk [vmem:[%s3653_s19 + $0x1c] sm:$0xf] %vm3183_vm1, %v3263_v31 }
 0xf78 PF: > { %s13_s12 = sadd.s32 1, %s3564_s12  }
 0xf79   : > { %p10_p4 = scmp.ge.s32.totalorder %s13_s12, 4  }
 0xf7b   :  { %12 = sbr.rel (!%p10_p4) target bundleno = 1 (0x1), region = 62 }

// kernel: cnn_forward.3
= control target key start
LH: loop header
LB: loop body
LE: loop exit
PB: predicated region body
PF: predicated region fallthrough
CT: control target
= control target key end

     0   :  { %10 = vsyncpa [#allocation3], 0  ;;  %s7472_s0 = inlined_call_operand.vmem [shape: bf16[2,16,640], index: 0, kind: input, shape index: {}]   ;;  %s7473_s1 = inlined_call_operand.vmem [shape: bf16[25,32,16], index: 1, kind: input, shape index: {}]   ;;  %s7474_s2 = inlined_call_operand.vmem [shape: f32[32,1], index: 2, kind: input, shape index: {}]   ;;  %s7475_s3 = inlined_call_operand.vmem [shape: bf16[10,32,414], index: 3, kind: input, shape index: {}]   ;;  %s7476_s4 = inlined_call_operand.vmem [shape: f32[1,10], index: 4, kind: input, shape index: {}]   ;;  %s7477_s5 = inlined_call_operand.hbm [shape: f32[2,1,10], index: 5, kind: output, shape index: {}]  }
   0x1   :  { %12 = vsyncpa [#allocation3 + $0x1], 0  ;;  %s5401_s18 = smov 0   ;;  %s5403_s19 = smov 0  }
   0x2   :  { %s5405_s20 = smov 0   ;;  %s5407_s21 = smov 0  }
   0x3 LB: > { %s5422_s22 = sadd.s32 4294967295, %s5349_s21   ;;  %s4514_s23 = sadd.s32 4294967294, %s5349_s21   ;;  %s5349_s21 = sphi %s5407_s21, %s7528_s21   ;;  %s5345_s20 = sphi %s5405_s20, %s7527_s20   ;;  %s5341_s19 = sphi %s5403_s19, %s7526_s19   ;;  %s5337_s18 = sphi %s5401_s18, %s7525_s18  }
   0x4   : > { %s5426_s24 = sadd.s32 1, %s5349_s21   ;;  %s135_s25 = sadd.s32 1, %s5345_s20 }
   0x5   : > { %s132_s26 = ssub.s32 %s5349_s21, %s5426_s24  ;;  %p145_p0 = scmp.ne.s32.totalorder %s5345_s20, %s5341_s19 }
   0x6   : > { %p133_p1 = scmp.eq.s32.totalorder %s132_s26, 0  ;;  %p146_p2 = scmp.eq.s32.totalorder %s5422_s22, 1 }
   0x7   : > { %p151_p3 = scmp.ne.s32.totalorder %s5341_s19, %s5337_s18  ;;  %p152_p4 = scmp.eq.s32.totalorder %s4514_s23, 1 }
   0x8   : > { %s5437_s27 = scalar_select %p133_p1, %s5345_s20, %s135_s25  }
   0x9   : > { %p5439_p5 = por %p146_p2, %p145_p0  ;;  %p5443_p6 = por %p152_p4, %p151_p3 }
   0xa   : > { %p4517_p7 = scmp.ge.s32.totalorder %s5349_s21, 1  ;;  %p190_p8 = scmp.lt.s32.totalorder %s5349_s21, 3 }
   0xc   : > { %p191_p9 = pnand %p4517_p7, %p190_p8 }
   0xd   : > { %p217_p10 = scmp.lt.s32.totalorder (!%p191_p9), %s5422_s22, 1  ;;  %s5351_s10 = smov (!%p191_p9), 126  }
   0xe   : > { %194 = sbr.rel (%p191_p9) target bundleno = 1626 (0x65a), region = 40  ;;  %s5352_s11 = smov (!%p191_p9), 124  }
   0xf   : > { %s5353_s12 = smov (!%p191_p9), 122   ;;  %s5354_s13 = smov (!%p191_p9), 120  }
  0x10   : > { %s5355_s14 = smov (!%p191_p9), 96   ;;  %s5356_s15 = smov (!%p191_p9), 94  }
  0x11   : > { %s5357_s16 = smov (!%p191_p9), 92   ;;  %s5358_s17 = smov (!%p191_p9), 90  }
  0x12   : > { %s5359_s26 = smov (!%p191_p9), 88   ;;  %s5363_s23 = smov (!%p191_p9), 58  }
  0x13   : > { %s218_s30 = scalar_select %p217_p10, %s5422_s22, 1  ;;  %vm270_vm0 = vcmask 1031168   ;;  %v5147_v16 = vld [vmem:[%s7473_s1 + $0x10] sm:$0xff]  ;;  %vm278_vm1 = vcmask 130048   ;;  %vm480_vm2 = vcmask 1014784   ;;  %v5148_v27 = vld [vmem:[%s7473_s1 + $0x18] sm:$0xff] }
  0x14   : > { %v5145_v29 = vld [vmem:[%s7473_s1] sm:$0xff]  ;;  %vm609_vm3 = vcmask 998400   ;;  %v5146_v36 = vld [vmem:[%s7473_s1 + $0x8] sm:$0xff]  ;;  %vm738_vm4 = vcmask 982016   ;;  %v5151_v47 = vld [vmem:[%s7473_s1 + $0x30] sm:$0xff]  ;;  %vm867_vm5 = vcmask 785408  }
  0x15   : > { %s5204_s6 = smul.u32 40, %s218_s30  ;;  %v5149_v38 = vld [vmem:[%s7473_s1 + $0x20] sm:$0xff]  ;;  %v5150_v45 = vld [vmem:[%s7473_s1 + $0x28] sm:$0xff]  ;;  %v5152_v54 = vld [vmem:[%s7473_s1 + $0x38] sm:$0xff]  ;;  %vm996_vm6 = vcmask 769024   ;;  %vm1125_vm7 = vcmask 752640  }
  0x16   : > { %v5153_v56 = vld [vmem:[%s7473_s1 + $0x40] sm:$0xff]  ;;  %vm1254_vm8 = vcmask 736256   ;;  %s5364_s30 = smov 56   ;;  %vm1383_vm9 = vcmask 719872   ;;  %s5365_s8 = smov 32   ;;  %vm1512_vm10 = vcmask 523264  }
  0x17   : > { %s5454_s9 = scalar_lea.vmem %s7472_s0, %s5204_s6  ;;  %s5361_s6 = smov 62   ;;  %vm1670_vm11 = vcmask 506880   ;;  %vm1802_vm12 = vcmask 490496   ;;  %vm1934_vm13 = vcmask 474112   ;;  %vm2066_vm14 = vcmask 457728  }
  0x18   : > { %v4541_v0 = vld [vmem:[%s5454_s9 + $0x8] sm:$0xf]  ;;  %v5144_v1 = vld [vmem:[%s5454_s9 + $0x18] sm:$0xf0]  ;;  %v4533_v2 = vld [vmem:[%s5454_s9] sm:$0xf] }
  0x19   : > { %v5459_v3 = vor.u32 %v5144_v1, %v4541_v0  ;;  %v5143_v4 = vld [vmem:[%s5454_s9 + $0x10] sm:$0xf0]  ;;  %v5142_v6 = vld [vmem:[%s5454_s9 + $0xc] sm:$0xf]  ;;  %v4543_v7 = vld [vmem:[%s5454_s9 + $0x1c] sm:$0xf0] }
  0x1a   : > { %v5462_v5 = vor.u32 %v5143_v4, %v4533_v2  ;;  %v5141_v8 = vld [vmem:[%s5454_s9 + $0x4] sm:$0xf]  ;;  %v4535_v9 = vld [vmem:[%s5454_s9 + $0x14] sm:$0xf0]  ;;  %v5474_v10 = vor.u32 %v5142_v6, %v4543_v7  ;;  %v5154_v7 = vld [vmem:[%s7473_s1 + $0x48] sm:$0xff]  ;;  %vm2198_vm15 = vcmask 261120  }
  0x1b   : > { %266 = vrot.lane.b32.xlu0 %v5459_v3, %s5351_s10  ;;  %476 = vrot.lane.b32.xlu2 %v5459_v3, %s5352_s11  ;;  %v5476_v11 = vor.u32 %v5141_v8, %v4535_v9 }
  0x1c   : > { %262 = vrot.lane.b32.xlu1 %v5462_v5, %s5351_s10 }
  0x23   : > { %268 = vrot.lane.b32.xlu0 %v5474_v10, %s5351_s10  ;;  %478 = vrot.lane.b32.xlu2 %v5474_v10, %s5352_s11 }
  0x24   : > { %264 = vrot.lane.b32.xlu1 %v5476_v11, %s5351_s10 }
  0x2b   : > { %472 = vrot.lane.b32.xlu0 %v5462_v5, %s5352_s11  ;;  %605 = vrot.lane.b32.xlu2 %v5459_v3, %s5353_s12 }
  0x2c   : > { %474 = vrot.lane.b32.xlu1 %v5476_v11, %s5352_s11 }
  0x33   : > { %607 = vrot.lane.b32.xlu0 %v5474_v10, %s5353_s12  ;;  %603 = vrot.lane.b32.xlu2 %v5476_v11, %s5353_s12 }
  0x34   : > { %601 = vrot.lane.b32.xlu1 %v5462_v5, %s5353_s12 }
  0x3b   : > { %734 = vrot.lane.b32.xlu0 %v5459_v3, %s5354_s13  ;;  %730 = vrot.lane.b32.xlu2 %v5462_v5, %s5354_s13 }
  0x3c   : > { %736 = vrot.lane.b32.xlu1 %v5474_v10, %s5354_s13 }
  0x43   : > { %732 = vrot.lane.b32.xlu0 %v5476_v11, %s5354_s13  ;;  %865 = vrot.lane.b32.xlu2 %v5474_v10, %s5355_s14 }
  0x44   : > { %863 = vrot.lane.b32.xlu1 %v5459_v3, %s5355_s14 }
  0x4b   : > { %859 = vrot.lane.b32.xlu0 %v5462_v5, %s5355_s14  ;;  %992 = vrot.lane.b32.xlu2 %v5459_v3, %s5356_s15 }
  0x4c   : > { %861 = vrot.lane.b32.xlu1 %v5476_v11, %s5355_s14 }
  0x53   : > { %994 = vrot.lane.b32.xlu0 %v5474_v10, %s5356_s15  ;;  %990 = vrot.lane.b32.xlu2 %v5476_v11, %s5356_s15 }
  0x54   : > { %988 = vrot.lane.b32.xlu1 %v5462_v5, %s5356_s15  ;;  %s5360_s15 = smov 64  }
  0x5b   : > { %1121 = vrot.lane.b32.xlu0 %v5459_v3, %s5357_s16  ;;  %1117 = vrot.lane.b32.xlu2 %v5462_v5, %s5357_s16 }
  0x5c   : > { %1123 = vrot.lane.b32.xlu1 %v5474_v10, %s5357_s16 }
  0x63   : > { %1119 = vrot.lane.b32.xlu0 %v5476_v11, %s5357_s16  ;;  %1252 = vrot.lane.b32.xlu2 %v5474_v10, %s5358_s17 }
  0x64   : > { %1250 = vrot.lane.b32.xlu1 %v5459_v3, %s5358_s17 }
  0x6b   : > { %1246 = vrot.lane.b32.xlu0 %v5462_v5, %s5358_s17  ;;  %1379 = vrot.lane.b32.xlu2 %v5459_v3, %s5359_s26 }
  0x6c   : > { %1248 = vrot.lane.b32.xlu1 %v5476_v11, %s5358_s17  ;;  %s5366_s17 = smov 30  }
  0x73   : > { %1381 = vrot.lane.b32.xlu0 %v5474_v10, %s5359_s26  ;;  %1377 = vrot.lane.b32.xlu2 %v5476_v11, %s5359_s26 }
  0x74   : > { %1375 = vrot.lane.b32.xlu1 %v5462_v5, %s5359_s26  ;;  %s5367_s26 = smov 28  }
  0x75   : > { %v477_v13 = vpop.permute.xlu2 %476 }
  0x7b   : > { %1508 = vrot.lane.b32.xlu0 %v5459_v3, %s5360_s15  ;;  %1504 = vrot.lane.b32.xlu2 %v5462_v5, %s5360_s15 }
  0x7c   : > { %1510 = vrot.lane.b32.xlu1 %v5474_v10, %s5360_s15 }
  0x7d   : > { %v479_v21 = vpop.permute.xlu2 %478 }
  0x7e   : > { %v483_v22 = vsel %vm480_vm2, %v477_v13, %v479_v21 }
  0x83   : > { %1506 = vrot.lane.b32.xlu0 %v5476_v11, %s5360_s15  ;;  %s5362_s15 = smov 60  }
  0x85   : > { %v606_v28 = vpop.permute.xlu2 %605 }
  0x8d   : > { %v267_v12 = vpop.permute.xlu0 %266  ;;  %v604_v31 = vpop.permute.xlu2 %603 }
  0x8e   : > { %v263_v14 = vpop.permute.xlu1 %262  ;;  %v611_v34 = vsel %vm609_vm3, %v604_v31, %v606_v28 }
  0x95   : > { %v269_v15 = vpop.permute.xlu0 %268  ;;  %v731_v41 = vpop.permute.xlu2 %730 }
  0x96   : > { %v265_v17 = vpop.permute.xlu1 %264  ;;  %349 = vmatpush.bf16.msra.mxu3 %v269_v15  ;;  %v273_v18 = vsel %vm270_vm0, %v267_v12, %v269_v15 }
  0x97   : > { %v271_v19 = vsel %vm270_vm0, %v263_v14, %v265_v17  ;;  %v272_v20 = vsel %vm270_vm0, %v265_v17, %v267_v12  ;;  %330 = vmatpush.bf16.msra.mxu2 %v273_v18  ;;  %v5155_v17 = vld [vmem:[%s7473_s1 + $0x50] sm:$0xff] }
  0x98   : > { %292 = vmatpush.bf16.msra.mxu0 %v271_v19  ;;  %311 = vmatpush.bf16.msra.mxu1 %v272_v20 }
  0x99   : > { %4553 = vmatmul.msk.bf16.vlgmr.msra.gmra.mxu3 %vm278_vm1, %v5147_v16 }
  0x9a   : > { %445 = vmatpush.bf16.msrb.mxu3 %v5474_v10  ;;  %4551 = vmatmul.msk.bf16.vlgmr.msra.gmra.mxu2 %vm278_vm1, %v5147_v16 }
  0x9b   : > { %4547 = vmatmul.msk.bf16.vlgmr.msra.gmra.mxu0 %vm278_vm1, %v5147_v16  ;;  %4549 = vmatmul.msk.bf16.vlgmr.msra.gmra.mxu1 %vm278_vm1, %v5147_v16 }
  0x9c   : > { %388 = vmatpush.bf16.msrb.mxu0 %v5462_v5  ;;  %407 = vmatpush.bf16.msrb.mxu1 %v5476_v11 }
  0x9d   : > { %426 = vmatpush.bf16.msrb.mxu2 %v5459_v3  ;;  %v473_v23 = vpop.permute.xlu0 %472  ;;  %v866_v48 = vpop.permute.xlu2 %865 }
  0x9e   : > { %558 = vmatpush.bf16.msra.mxu3 %v479_v21  ;;  %v475_v24 = vpop.permute.xlu1 %474 }
  0x9f   : > { %v482_v25 = vsel %vm480_vm2, %v475_v24, %v477_v13  ;;  %v481_v26 = vsel %vm480_vm2, %v473_v23, %v475_v24 }
  0xa0   : > { %520 = vmatpush.bf16.msra.mxu1 %v482_v25  ;;  %501 = vmatpush.bf16.msra.mxu0 %v481_v26 }
  0xa1   : > { %539 = vmatpush.bf16.msra.mxu2 %v483_v22 }
  0xa5   : > { %v608_v30 = vpop.permute.xlu0 %607  ;;  %v993_v55 = vpop.permute.xlu2 %992 }
  0xa6   : > { %v602_v32 = vpop.permute.xlu1 %601  ;;  %v612_v33 = vsel %vm609_vm3, %v606_v28, %v608_v30 }
  0xa7   : > { %v610_v35 = vsel %vm609_vm3, %v602_v32, %v604_v31  ;;  %v4781_v32 = vld [vmem:[%s5454_s9 + $0x10] sm:$0xf] }
  0xa9   : > { %4554 = vmatmul.msk.bf16.gmra.mxu3 %vm278_vm1, %v5148_v27 }
  0xaa   : > { %4552 = vmatmul.msk.bf16.gmra.mxu2 %vm278_vm1, %v5148_v27 }
  0xab   : > { %4548 = vmatmul.msk.bf16.gmra.mxu0 %vm278_vm1, %v5148_v27  ;;  %4550 = vmatmul.msk.bf16.gmra.mxu1 %vm278_vm1, %v5148_v27 }
  0xad   : > { %v735_v37 = vpop.permute.xlu0 %734  ;;  %v991_v58 = vpop.permute.xlu2 %990 }
  0xae   : > { %v737_v40 = vpop.permute.xlu1 %736  ;;  %v998_v62 = vsel %vm996_vm6, %v991_v58, %v993_v55 }
  0xaf   : > { %v741_v43 = vsel %vm738_vm4, %v735_v37, %v737_v40 }
  0xb5   : > { %v733_v39 = vpop.permute.xlu0 %732  ;;  %v1118_v26 = vpop.permute.xlu2 %1117 }
  0xb6   : > { %v740_v42 = vsel %vm738_vm4, %v733_v39, %v735_v37  ;;  %v739_v44 = vsel %vm738_vm4, %v731_v41, %v733_v39  ;;  %v864_v46 = vpop.permute.xlu1 %863 }
  0xb7   : > { %v870_v51 = vsel %vm867_vm5, %v864_v46, %v866_v48 }
  0xb9   : > { %4569 = vmatmul.msk.bf16.vlgmr.msrb.gmra.mxu3 %vm278_vm1, %v5145_v29 }
  0xba   : > { %4567 = vmatmul.msk.bf16.vlgmr.msrb.gmra.mxu2 %vm278_vm1, %v5145_v29  ;;  %687 = vmatpush.bf16.msrb.mxu3 %v608_v30 }
  0xbb   : > { %4563 = vmatmul.msk.bf16.vlgmr.msrb.gmra.mxu0 %vm278_vm1, %v5145_v29  ;;  %4565 = vmatmul.msk.bf16.vlgmr.msrb.gmra.mxu1 %vm278_vm1, %v5145_v29 }
  0xbc   : > { %649 = vmatpush.bf16.msrb.mxu1 %v611_v34  ;;  %668 = vmatpush.bf16.msrb.mxu2 %v612_v33  ;;  %v5171_v33 = vld [vmem:[%s5454_s9 + $0x20] sm:$0xf0]  ;;  %v4773_v34 = vld [vmem:[%s5454_s9 + $0x8] sm:$0xf] }
  0xbd   : > { %630 = vmatpush.bf16.msrb.mxu0 %v610_v35  ;;  %v860_v50 = vpop.permute.xlu0 %859  ;;  %v5651_v35 = vor.u32 %v5171_v33, %v4781_v32 }
  0xbe   : > { %v862_v49 = vpop.permute.xlu1 %861 }
  0xbf   : > { %v869_v52 = vsel %vm867_vm5, %v862_v49, %v864_v46  ;;  %v868_v53 = vsel %vm867_vm5, %v860_v50, %v862_v49  ;;  %1668 = vrot.lane.b32.xlu0 %v5651_v35, %s5361_s6 }
  0xc5   : > { %v995_v57 = vpop.permute.xlu0 %994 }
  0xc6   : > { %v999_v61 = vsel %vm996_vm6, %v993_v55, %v995_v57  ;;  %v989_v63 = vpop.permute.xlu1 %988 }
  0xc7   : > { %v997_v0 = vsel %vm996_vm6, %v989_v63, %v991_v58  ;;  %vm2330_vm6 = vcmask 244736  }
  0xc9   : > { %4570 = vmatmul.msk.bf16.gmra.mxu3 %vm278_vm1, %v5146_v36 }
  0xca   : > { %4568 = vmatmul.msk.bf16.gmra.mxu2 %vm278_vm1, %v5146_v36 }
  0xcb   : > { %4564 = vmatmul.msk.bf16.gmra.mxu0 %vm278_vm1, %v5146_v36  ;;  %4566 = vmatmul.msk.bf16.gmra.mxu1 %vm278_vm1, %v5146_v36  ;;  %v5170_v36 = vld [vmem:[%s5454_s9 + $0x18] sm:$0xf0] }
  0xcc   : > { %v5654_v39 = vor.u32 %v5170_v36, %v4773_v34 }
  0xcd   : > { %v1122_v11 = vpop.permute.xlu0 %1121 }
  0xce   : > { %v1124_v19 = vpop.permute.xlu1 %1123  ;;  %1664 = vrot.lane.b32.xlu1 %v5654_v39, %s5361_s6  ;;  %1796 = vrot.lane.b32.xlu0 %v5654_v39, %s5362_s15 }
  0xcf   : > { %v1128_v25 = vsel %vm1125_vm7, %v1122_v11, %v1124_v19 }
  0xd5   : > { %v1120_v18 = vpop.permute.xlu0 %1119 }
  0xd6   : > { %v1127_v24 = vsel %vm1125_vm7, %v1120_v18, %v1122_v11  ;;  %v1126_v27 = vsel %vm1125_vm7, %v1118_v26, %v1120_v18  ;;  %v1251_v55 = vpop.permute.xlu1 %1250  ;;  %vm2462_vm7 = vcmask 228352  }
  0xd9   : > { %4589 = vmatmul.msk.bf16.vlgmr.msra.gmra.mxu3 %vm278_vm1, %v5149_v38 }
  0xda   : > { %4587 = vmatmul.msk.bf16.vlgmr.msra.gmra.mxu2 %vm278_vm1, %v5149_v38  ;;  %816 = vmatpush.bf16.msra.mxu3 %v737_v40 }
  0xdb   : > { %4583 = vmatmul.msk.bf16.vlgmr.msra.gmra.mxu0 %vm278_vm1, %v5149_v38  ;;  %4585 = vmatmul.msk.bf16.vlgmr.msra.gmra.mxu1 %vm278_vm1, %v5149_v38 }
  0xdc   : > { %778 = vmatpush.bf16.msra.mxu1 %v740_v42  ;;  %797 = vmatpush.bf16.msra.mxu2 %v741_v43 }
  0xdd   : > { %759 = vmatpush.bf16.msra.mxu0 %v739_v44  ;;  %v1247_v18 = vpop.permute.xlu0 %1246 }
  0xe9   : > { %4590 = vmatmul.msk.bf16.gmra.mxu3 %vm278_vm1, %v5150_v45 }
  0xea   : > { %4588 = vmatmul.msk.bf16.gmra.mxu2 %vm278_vm1, %v5150_v45 }
  0xeb   : > { %4584 = vmatmul.msk.bf16.gmra.mxu0 %vm278_vm1, %v5150_v45  ;;  %4586 = vmatmul.msk.bf16.gmra.mxu1 %vm278_vm1, %v5150_v45  ;;  %v5156_v45 = vld [vmem:[%s7473_s1 + $0x58] sm:$0xff] }
  0xf9   : > { %4609 = vmatmul.msk.bf16.vlgmr.msrb.gmra.mxu3 %vm278_vm1, %v5151_v47 }
  0xfa   : > { %4607 = vmatmul.msk.bf16.vlgmr.msrb.gmra.mxu2 %vm278_vm1, %v5151_v47  ;;  %945 = vmatpush.bf16.msrb.mxu3 %v866_v48  ;;  %v5169_v48 = vld [vmem:[%s5454_s9 + $0x10] sm:$0xf0] }
  0xfb   : > { %4603 = vmatmul.msk.bf16.vlgmr.msrb.gmra.mxu0 %vm278_vm1, %v5151_v47  ;;  %4605 = vmatmul.msk.bf16.vlgmr.msrb.gmra.mxu1 %vm278_vm1, %v5151_v47  ;;  %v4765_v47 = vld [vmem:[%s5454_s9] sm:$0xf] }
  0xfc   : > { %907 = vmatpush.bf16.msrb.mxu1 %v869_v52  ;;  %926 = vmatpush.bf16.msrb.mxu2 %v870_v51  ;;  %v5673_v49 = vor.u32 %v5169_v48, %v4765_v47 }
  0xfd   : > { %888 = vmatpush.bf16.msrb.mxu0 %v868_v53 }
  0xfe   : > { %1660 = vrot.lane.b32.xlu1 %v5673_v49, %s5361_s6  ;;  %1792 = vrot.lane.b32.xlu0 %v5673_v49, %s5362_s15 }
 0x109   : > { %4610 = vmatmul.msk.bf16.gmra.mxu3 %vm278_vm1, %v5152_v54 }
 0x10a   : > { %4608 = vmatmul.msk.bf16.gmra.mxu2 %vm278_vm1, %v5152_v54 }
 0x10b   : > { %4604 = vmatmul.msk.bf16.gmra.mxu0 %vm278_vm1, %v5152_v54  ;;  %4606 = vmatmul.msk.bf16.gmra.mxu1 %vm278_vm1, %v5152_v54 }
 0x118   : > { %v294_v59 = vpop.f32.mrf.mxu0  ;;  %v313_v60 = vpop.f32.mrf.mxu1 }
 0x119   : > { %4629 = vmatmul.msk.bf16.vlgmr.msra.gmra.mxu3 %vm278_vm1, %v5153_v56 }
 0x11a   : > { %4627 = vmatmul.msk.bf16.vlgmr.msra.gmra.mxu2 %vm278_vm1, %v5153_v56  ;;  %1074 = vmatpush.bf16.msra.mxu3 %v995_v57 }
 0x11b   : > { %4623 = vmatmul.msk.bf16.vlgmr.msra.gmra.mxu0 %vm278_vm1, %v5153_v56  ;;  %4625 = vmatmul.msk.bf16.vlgmr.msra.gmra.mxu1 %vm278_vm1, %v5153_v56 }
 0x11c   : > { %v351_v1 = vpop.f32.mrf.mxu3  ;;  %1036 = vmatpush.bf16.msra.mxu1 %v998_v62  ;;  %1055 = vmatpush.bf16.msra.mxu2 %v999_v61 }
 0x11d   : > { %v332_v2 = vpop.f32.mrf.mxu2  ;;  %1017 = vmatpush.bf16.msra.mxu0 %v997_v0 }
 0x120   : > { %v296_v3 = vpop.f32.mrf.mxu0  ;;  %v315_v4 = vpop.f32.mrf.mxu1 }
 0x124   : > { %v353_v5 = vpop.f32.mrf.mxu3 }
 0x125   : > { %v334_v6 = vpop.f32.mrf.mxu2 }
 0x128   : > { %v299_v8 = vpop.f32.mrf.mxu0  ;;  %v318_v9 = vpop.f32.mrf.mxu1 }
 0x129   : > { %4630 = vmatmul.msk.bf16.gmra.mxu3 %vm278_vm1, %v5154_v7 }
 0x12a   : > { %4628 = vmatmul.msk.bf16.gmra.mxu2 %vm278_vm1, %v5154_v7 }
 0x12b   : > { %4624 = vmatmul.msk.bf16.gmra.mxu0 %vm278_vm1, %v5154_v7  ;;  %4626 = vmatmul.msk.bf16.gmra.mxu1 %vm278_vm1, %v5154_v7 }
 0x12c   : > { %v5621_v10 = vpop.f32.mrf.mxu3 }
 0x12d   : > { %v5623_v12 = vpop.f32.mrf.mxu2 }
 0x130   : > { %v5625_v13 = vpop.f32.mrf.mxu0  ;;  %v5627_v14 = vpop.f32.mrf.mxu1 }
 0x134   : > { %v5629_v15 = vpop.f32.mrf.mxu3 }
 0x135   : > { %v5631_v16 = vpop.f32.mrf.mxu2 }
 0x138   : > { %v390_v20 = vpop.f32.mrf.mxu0  ;;  %v409_v21 = vpop.f32.mrf.mxu1 }
 0x139   : > { %v5636_v22 = vadd.f32 %v390_v20, %v294_v59  ;;  %v5638_v23 = vadd.f32 %v409_v21, %v313_v60  ;;  %4649 = vmatmul.msk.bf16.vlgmr.msrb.gmra.mxu3 %vm278_vm1, %v5155_v17  ;;  %v5168_v59 = vld [vmem:[%s5454_s9 + $0xc] sm:$0xf]  ;;  %v4775_v60 = vld [vmem:[%s5454_s9 + $0x1c] sm:$0xf0] }
 0x13a   : > { %4647 = vmatmul.msk.bf16.vlgmr.msrb.gmra.mxu2 %vm278_vm1, %v5155_v17  ;;  %1203 = vmatpush.bf16.msrb.mxu3 %v1124_v19  ;;  %v5695_v61 = vor.u32 %v5168_v59, %v4775_v60 }
 0x13b   : > { %4643 = vmatmul.msk.bf16.vlgmr.msrb.gmra.mxu0 %vm278_vm1, %v5155_v17  ;;  %4645 = vmatmul.msk.bf16.vlgmr.msrb.gmra.mxu1 %vm278_vm1, %v5155_v17 }
 0x13c   : > { %v447_v28 = vpop.f32.mrf.mxu3  ;;  %1165 = vmatpush.bf16.msrb.mxu1 %v1127_v24  ;;  %1184 = vmatpush.bf16.msrb.mxu2 %v1128_v25 }
 0x13d   : > { %v5644_v29 = vadd.f32 %v447_v28, %v351_v1  ;;  %v428_v30 = vpop.f32.mrf.mxu2  ;;  %1146 = vmatpush.bf16.msrb.mxu0 %v1126_v27  ;;  %1666 = vrot.lane.b32.xlu2 %v5695_v61, %s5361_s6 }
 0x13e   : > { %v5646_v31 = vadd.f32 %v428_v30, %v332_v2  ;;  %1798 = vrot.lane.b32.xlu1 %v5695_v61, %s5362_s15  ;;  %1930 = vrot.lane.b32.xlu0 %v5695_v61, %s5363_s23 }
 0x140   : > { %v392_v37 = vpop.f32.mrf.mxu0  ;;  %v411_v38 = vpop.f32.mrf.mxu1 }
 0x141   : > { %v5656_v40 = vadd.f32 %v392_v37, %v296_v3  ;;  %v5658_v41 = vadd.f32 %v411_v38, %v315_v4 }
 0x144   : > { %v449_v42 = vpop.f32.mrf.mxu3 }
 0x145   : > { %v5664_v43 = vadd.f32 %v449_v42, %v353_v5  ;;  %v430_v44 = vpop.f32.mrf.mxu2  ;;  %v5157_v5 = vld [vmem:[%s7473_s1 + $0x60] sm:$0xff] }
 0x146   : > { %v5669_v46 = vadd.f32 %v430_v44, %v334_v6  ;;  %v1253_v6 = vpop.permute.xlu2 %1252 }
 0x148   : > { %v395_v50 = vpop.f32.mrf.mxu0  ;;  %v414_v51 = vpop.f32.mrf.mxu1 }
 0x149   : > { %v5675_v52 = vadd.f32 %v395_v50, %v299_v8  ;;  %v5677_v53 = vadd.f32 %v414_v51, %v318_v9  ;;  %4650 = vmatmul.msk.bf16.gmra.mxu3 %vm278_vm1, %v5156_v45  ;;  %v1249_v8 = vpop.permute.xlu1 %1248  ;;  %v5167_v9 = vld [vmem:[%s5454_s9 + $0x4] sm:$0xf] }
 0x14a   : > { %4648 = vmatmul.msk.bf16.gmra.mxu2 %vm278_vm1, %v5156_v45  ;;  %v1255_v19 = vsel %vm1254_vm8, %v1247_v18, %v1249_v8 }
 0x14b   : > { %4644 = vmatmul.msk.bf16.gmra.mxu0 %vm278_vm1, %v5156_v45  ;;  %4646 = vmatmul.msk.bf16.gmra.mxu1 %vm278_vm1, %v5156_v45 }
 0x14c   : > { %v452_v54 = vpop.f32.mrf.mxu3 }
 0x14d   : > { %v5688_v56 = vadd.f32 %v452_v54, %v5621_v10  ;;  %v433_v57 = vpop.f32.mrf.mxu2  ;;  %v4767_v10 = vld [vmem:[%s5454_s9 + $0x14] sm:$0xf0] }
 0x14e   : > { %v5691_v58 = vadd.f32 %v433_v57, %v5623_v12  ;;  %v5720_v11 = vor.u32 %v5167_v9, %v4767_v10 }
 0x150   : > { %v397_v62 = vpop.f32.mrf.mxu0  ;;  %v416_v63 = vpop.f32.mrf.mxu1  ;;  %1662 = vrot.lane.b32.xlu2 %v5720_v11, %s5361_s6  ;;  %1794 = vrot.lane.b32.xlu1 %v5720_v11, %s5362_s15 }
 0x151   : > { %v5698_v0 = vadd.f32 %v397_v62, %v5625_v13  ;;  %v5701_v1 = vadd.f32 %v416_v63, %v5627_v14  ;;  %v1257_v14 = vsel %vm1254_vm8, %v1251_v55, %v1253_v6  ;;  %1926 = vrot.lane.b32.xlu0 %v5720_v11, %s5363_s23  ;;  %v1376_v63 = vpop.permute.xlu1 %1375 }
 0x154   : > { %v454_v2 = vpop.f32.mrf.mxu3 }
 0x155   : > { %v5710_v3 = vadd.f32 %v454_v2, %v5629_v15  ;;  %v435_v4 = vpop.f32.mrf.mxu2 }
 0x156   : > { %v5716_v7 = vadd.f32 %v435_v4, %v5631_v16  ;;  %v1256_v16 = vsel %vm1254_vm8, %v1249_v8, %v1251_v55  ;;  %vm2594_vm8 = vcmask 211968  }
 0x158   : > { %v503_v12 = vpop.f32.mrf.mxu0  ;;  %v522_v13 = vpop.f32.mrf.mxu1  ;;  %1800 = vrot.lane.b32.xlu2 %v5651_v35, %s5362_s15  ;;  %1932 = vrot.lane.b32.xlu1 %v5651_v35, %s5363_s23  ;;  %s5368_s15 = smov 26  }
 0x159   : > { %v5724_v15 = vadd.f32 %v503_v12, %v5636_v22  ;;  %v5727_v17 = vadd.f32 %v522_v13, %v5638_v23  ;;  %4669 = vmatmul.msk.bf16.vlgmr.msra.gmra.mxu3 %vm278_vm1, %v5157_v5  ;;  %2064 = vrot.lane.b32.xlu0 %v5651_v35, %s5364_s30  ;;  %v5160_v13 = vld [vmem:[%s7473_s1 + $0x78] sm:$0xff] }
 0x15a   : > { %4667 = vmatmul.msk.bf16.vlgmr.msra.gmra.mxu2 %vm278_vm1, %v5157_v5  ;;  %1332 = vmatpush.bf16.msra.mxu3 %v1253_v6 }
 0x15b   : > { %4663 = vmatmul.msk.bf16.vlgmr.msra.gmra.mxu0 %vm278_vm1, %v5157_v5  ;;  %4665 = vmatmul.msk.bf16.vlgmr.msra.gmra.mxu1 %vm278_vm1, %v5157_v5 }
 0x15c   : > { %v560_v20 = vpop.f32.mrf.mxu3  ;;  %1294 = vmatpush.bf16.msra.mxu1 %v1256_v16  ;;  %1313 = vmatpush.bf16.msra.mxu2 %v1257_v14 }
 0x15d   : > { %v5738_v21 = vadd.f32 %v560_v20, %v5644_v29  ;;  %v541_v22 = vpop.f32.mrf.mxu2  ;;  %1275 = vmatpush.bf16.msra.mxu0 %v1255_v19 }
 0x15e   : > { %v5743_v23 = vadd.f32 %v541_v22, %v5646_v31  ;;  %v5158_v31 = vld [vmem:[%s7473_s1 + $0x68] sm:$0xff] }
 0x160   : > { %v505_v24 = vpop.f32.mrf.mxu0  ;;  %v524_v25 = vpop.f32.mrf.mxu1  ;;  %1928 = vrot.lane.b32.xlu2 %v5654_v39, %s5363_s23  ;;  %2060 = vrot.lane.b32.xlu1 %v5654_v39, %s5364_s30 }
 0x161   : > { %v5748_v26 = vadd.f32 %v505_v24, %v5656_v40  ;;  %v5751_v27 = vadd.f32 %v524_v25, %v5658_v41  ;;  %v1380_v40 = vpop.permute.xlu2 %1379  ;;  %2192 = vrot.lane.b32.xlu0 %v5654_v39, %s5365_s8 }
 0x164   : > { %v562_v28 = vpop.f32.mrf.mxu3 }
 0x165   : > { %v5756_v29 = vadd.f32 %v562_v28, %v5664_v43  ;;  %v543_v30 = vpop.f32.mrf.mxu2 }
 0x166   : > { %v5764_v32 = vadd.f32 %v543_v30, %v5669_v46 }
 0x168   : > { %v508_v33 = vpop.f32.mrf.mxu0  ;;  %v527_v34 = vpop.f32.mrf.mxu1  ;;  %1924 = vrot.lane.b32.xlu2 %v5673_v49, %s5363_s23  ;;  %2056 = vrot.lane.b32.xlu1 %v5673_v49, %s5364_s30 }
 0x169   : > { %v5769_v36 = vadd.f32 %v508_v33, %v5675_v52  ;;  %v5772_v37 = vadd.f32 %v527_v34, %v5677_v53  ;;  %4670 = vmatmul.msk.bf16.gmra.mxu3 %vm278_vm1, %v5158_v31  ;;  %v5159_v52 = vld [vmem:[%s7473_s1 + $0x70] sm:$0xff]  ;;  %v1382_v53 = vpop.permute.xlu0 %1381  ;;  %v1378_v55 = vpop.permute.xlu2 %1377  ;;  %2188 = vrot.lane.b32.xlu0 %v5673_v49, %s5365_s8 }
 0x16a   : > { %4668 = vmatmul.msk.bf16.gmra.mxu2 %vm278_vm1, %v5158_v31  ;;  %v1385_v62 = vsel %vm1383_vm9, %v1378_v55, %v1380_v40  ;;  %v1511_v34 = vpop.permute.xlu1 %1510 }
 0x16b   : > { %4664 = vmatmul.msk.bf16.gmra.mxu0 %vm278_vm1, %v5158_v31  ;;  %4666 = vmatmul.msk.bf16.gmra.mxu1 %vm278_vm1, %v5158_v31  ;;  %v5161_v31 = vld [vmem:[%s7473_s1 + $0x80] sm:$0xff] }
 0x16c   : > { %v565_v38 = vpop.f32.mrf.mxu3 }
 0x16d   : > { %v5781_v41 = vadd.f32 %v565_v38, %v5688_v56  ;;  %v546_v42 = vpop.f32.mrf.mxu2 }
 0x16e   : > { %v5786_v43 = vadd.f32 %v546_v42, %v5691_v58  ;;  %v1386_v58 = vsel %vm1383_vm9, %v1380_v40, %v1382_v53 }
 0x170   : > { %v510_v44 = vpop.f32.mrf.mxu0  ;;  %v529_v45 = vpop.f32.mrf.mxu1  ;;  %2062 = vrot.lane.b32.xlu2 %v5695_v61, %s5364_s30  ;;  %2194 = vrot.lane.b32.xlu1 %v5695_v61, %s5365_s8 }
 0x171   : > { %v5791_v46 = vadd.f32 %v510_v44, %v5698_v0  ;;  %v5794_v47 = vadd.f32 %v529_v45, %v5701_v1  ;;  %v1384_v0 = vsel %vm1383_vm9, %v1376_v63, %v1378_v55  ;;  %2326 = vrot.lane.b32.xlu0 %v5695_v61, %s5366_s17  ;;  %v1509_v19 = vpop.permute.xlu0 %1508  ;;  %vm2726_vm9 = vcmask 195584  }
 0x172   : > { %v1515_v42 = vsel %vm1512_vm10, %v1509_v19, %v1511_v34 }
 0x174   : > { %v567_v48 = vpop.f32.mrf.mxu3 }
 0x175   : > { %v5799_v50 = vadd.f32 %v567_v48, %v5710_v3  ;;  %v548_v51 = vpop.f32.mrf.mxu2 }
 0x176   : > { %v5807_v54 = vadd.f32 %v548_v51, %v5716_v7 }
 0x178   : > { %v632_v56 = vpop.f32.mrf.mxu0  ;;  %v651_v57 = vpop.f32.mrf.mxu1  ;;  %2058 = vrot.lane.b32.xlu2 %v5720_v11, %s5364_s30  ;;  %2190 = vrot.lane.b32.xlu1 %v5720_v11, %s5365_s8  ;;  %s4455_s30 = scalar_lea.hbm %s7477_s5, %s5422_s22 }
 0x179   : > { %v5813_v59 = vadd.f32 %v632_v56, %v5724_v15  ;;  %v5816_v60 = vadd.f32 %v651_v57, %v5727_v17  ;;  %4689 = vmatmul.msk.bf16.vlgmr.msrb.gmra.mxu3 %vm278_vm1, %v5159_v52  ;;  %2322 = vrot.lane.b32.xlu0 %v5720_v11, %s5366_s17  ;;  %v5162_v57 = vld [vmem:[%s7473_s1 + $0x88] sm:$0xff] }
 0x17a   : > { %4687 = vmatmul.msk.bf16.vlgmr.msrb.gmra.mxu2 %vm278_vm1, %v5159_v52  ;;  %1461 = vmatpush.bf16.msrb.mxu3 %v1382_v53 }
 0x17b   : > { %4683 = vmatmul.msk.bf16.vlgmr.msrb.gmra.mxu0 %vm278_vm1, %v5159_v52  ;;  %4685 = vmatmul.msk.bf16.vlgmr.msrb.gmra.mxu1 %vm278_vm1, %v5159_v52 }
 0x17c   : > { %v689_v1 = vpop.f32.mrf.mxu3  ;;  %1423 = vmatpush.bf16.msrb.mxu1 %v1385_v62  ;;  %1442 = vmatpush.bf16.msrb.mxu2 %v1386_v58 }
 0x17d   : > { %v5827_v2 = vadd.f32 %v689_v1, %v5738_v21  ;;  %v670_v3 = vpop.f32.mrf.mxu2  ;;  %1404 = vmatpush.bf16.msrb.mxu0 %v1384_v0 }
 0x17e   : > { %v5832_v4 = vadd.f32 %v670_v3, %v5743_v23 }
 0x180   : > { %v634_v5 = vpop.f32.mrf.mxu0  ;;  %v653_v6 = vpop.f32.mrf.mxu1  ;;  %2196 = vrot.lane.b32.xlu2 %v5651_v35, %s5365_s8  ;;  %2328 = vrot.lane.b32.xlu1 %v5651_v35, %s5366_s17 }
 0x181   : > { %v5837_v7 = vadd.f32 %v634_v5, %v5748_v26  ;;  %v5840_v8 = vadd.f32 %v653_v6, %v5751_v27  ;;  %2460 = vrot.lane.b32.xlu0 %v5651_v35, %s5367_s26 }
 0x184   : > { %v691_v9 = vpop.f32.mrf.mxu3 }
 0x185   : > { %v5845_v10 = vadd.f32 %v691_v9, %v5756_v29  ;;  %v672_v12 = vpop.f32.mrf.mxu2 }
 0x186   : > { %v5853_v14 = vadd.f32 %v672_v12, %v5764_v32  ;;  %v1507_v32 = vpop.permute.xlu0 %1506  ;;  %v1665_v12 = vpop.permute.xlu1 %1664 }
 0x187   : > { %v1514_v38 = vsel %vm1512_vm10, %v1507_v32, %v1509_v19 }
 0x188   : > { %v637_v15 = vpop.f32.mrf.mxu0  ;;  %v656_v17 = vpop.f32.mrf.mxu1  ;;  %2324 = vrot.lane.b32.xlu2 %v5654_v39, %s5366_s17  ;;  %2456 = vrot.lane.b32.xlu1 %v5654_v39, %s5367_s26 }
 0x189   : > { %v5858_v16 = vadd.f32 %v637_v15, %v5769_v36  ;;  %v5861_v18 = vadd.f32 %v656_v17, %v5772_v37  ;;  %4690 = vmatmul.msk.bf16.gmra.mxu3 %vm278_vm1, %v5160_v13  ;;  %v5163_v15 = vld [vmem:[%s7473_s1 + $0x90] sm:$0xff]  ;;  %2588 = vrot.lane.b32.xlu0 %v5654_v39, %s5368_s15 }
 0x18a   : > { %4688 = vmatmul.msk.bf16.gmra.mxu2 %vm278_vm1, %v5160_v13 }
 0x18b   : > { %4684 = vmatmul.msk.bf16.gmra.mxu0 %vm278_vm1, %v5160_v13  ;;  %4686 = vmatmul.msk.bf16.gmra.mxu1 %vm278_vm1, %v5160_v13 }
 0x18c   : > { %v694_v20 = vpop.f32.mrf.mxu3 }
 0x18d   : > { %v5870_v21 = vadd.f32 %v694_v20, %v5781_v41  ;;  %v675_v22 = vpop.f32.mrf.mxu2 }
 0x18e   : > { %v5875_v23 = vadd.f32 %v675_v22, %v5786_v43  ;;  %v1505_v43 = vpop.permute.xlu2 %1504  ;;  %v1669_v9 = vpop.permute.xlu0 %1668 }
 0x18f   : > { %v1513_v44 = vsel %vm1512_vm10, %v1505_v43, %v1507_v32  ;;  %vm4436_vm10 = vcmask 56320  }
 0x190   : > { %v639_v24 = vpop.f32.mrf.mxu0  ;;  %v658_v25 = vpop.f32.mrf.mxu1  ;;  %2320 = vrot.lane.b32.xlu2 %v5673_v49, %s5366_s17  ;;  %2452 = vrot.lane.b32.xlu1 %v5673_v49, %s5367_s26  ;;  %s215_s17 = sand.u32 1, %s5341_s19  }
 0x191   : > { %v711_v26 = vadd.f32 %v639_v24, %v5791_v46  ;;  %v712_v27 = vadd.f32 %v658_v25, %v5794_v47  ;;  %2584 = vrot.lane.b32.xlu0 %v5673_v49, %s5368_s15  ;;  %s216_s6 = scalar_lea.vmem [#allocation2], %s215_s17  ;;  %s4447_s22 = scalar_lea.sflag [#allocation3], %s215_s17 }
 0x192   : > { %s4457_s7 = sshll.u32 %s216_s6, 4  ;;  %s4458_s7 = int_to_ptr.vmem [resolvable:$true] %s4457_s7 }
 0x194   : > { %v696_v28 = vpop.f32.mrf.mxu3 }
 0x195   : > { %v5884_v29 = vadd.f32 %v696_v28, %v5799_v50  ;;  %v677_v30 = vpop.f32.mrf.mxu2 }
 0x196   : > { %v713_v33 = vadd.f32 %v677_v30, %v5807_v54 }
 0x197   : > { %v1667_v1 = vpop.permute.xlu2 %1666 }
 0x198   : > { %v761_v36 = vpop.f32.mrf.mxu0  ;;  %v780_v37 = vpop.f32.mrf.mxu1  ;;  %2458 = vrot.lane.b32.xlu2 %v5695_v61, %s5367_s26  ;;  %2590 = vrot.lane.b32.xlu1 %v5695_v61, %s5368_s15  ;;  %v1673_v24 = vsel %vm1670_vm11, %v1665_v12, %v1667_v1 }
 0x199   : > { %v5891_v40 = vadd.f32 %v761_v36, %v5813_v59  ;;  %v5894_v41 = vadd.f32 %v780_v37, %v5816_v60  ;;  %4709 = vmatmul.msk.bf16.vlgmr.msra.gmra.mxu3 %vm278_vm1, %v5161_v31 }
 0x19a   : > { %4707 = vmatmul.msk.bf16.vlgmr.msra.gmra.mxu2 %vm278_vm1, %v5161_v31  ;;  %1590 = vmatpush.bf16.msra.mxu3 %v1511_v34 }
 0x19b   : > { %4703 = vmatmul.msk.bf16.vlgmr.msra.gmra.mxu0 %vm278_vm1, %v5161_v31  ;;  %4705 = vmatmul.msk.bf16.vlgmr.msra.gmra.mxu1 %vm278_vm1, %v5161_v31 }
 0x19c   : > { %v818_v45 = vpop.f32.mrf.mxu3  ;;  %1552 = vmatpush.bf16.msra.mxu1 %v1514_v38  ;;  %1571 = vmatpush.bf16.msra.mxu2 %v1515_v42 }
 0x19d   : > { %v5903_v46 = vadd.f32 %v818_v45, %v5827_v2  ;;  %v799_v47 = vpop.f32.mrf.mxu2  ;;  %1533 = vmatpush.bf16.msra.mxu0 %v1513_v44 }
 0x19e   : > { %v5906_v48 = vadd.f32 %v799_v47, %v5832_v4 }
 0x1a0   : > { %v763_v50 = vpop.f32.mrf.mxu0  ;;  %v782_v51 = vpop.f32.mrf.mxu1  ;;  %2454 = vrot.lane.b32.xlu2 %v5720_v11, %s5367_s26  ;;  %2586 = vrot.lane.b32.xlu1 %v5720_v11, %s5368_s15  ;;  %s5369_s26 = smov 24  }
 0x1a1   : > { %v5911_v52 = vadd.f32 %v763_v50, %v5837_v7  ;;  %v5914_v53 = vadd.f32 %v782_v51, %v5840_v8  ;;  %2722 = vrot.lane.b32.xlu0 %v5695_v61, %s5369_s26 }
 0x1a4   : > { %v820_v54 = vpop.f32.mrf.mxu3 }
 0x1a5   : > { %v5918_v55 = vadd.f32 %v820_v54, %v5845_v10  ;;  %v801_v56 = vpop.f32.mrf.mxu2 }
 0x1a6   : > { %v5924_v58 = vadd.f32 %v801_v56, %v5853_v14  ;;  %v1797_v56 = vpop.permute.xlu0 %1796 }
 0x1a8   : > { %v766_v59 = vpop.f32.mrf.mxu0  ;;  %v785_v60 = vpop.f32.mrf.mxu1  ;;  %2592 = vrot.lane.b32.xlu2 %v5651_v35, %s5368_s15  ;;  %2724 = vrot.lane.b32.xlu1 %v5651_v35, %s5369_s26 }
 0x1a9   : > { %v5928_v62 = vadd.f32 %v766_v59, %v5858_v16  ;;  %v5931_v63 = vadd.f32 %v785_v60, %v5861_v18  ;;  %4710 = vmatmul.msk.bf16.gmra.mxu3 %vm278_vm1, %v5162_v57  ;;  %v1674_v18 = vsel %vm1670_vm11, %v1667_v1, %v1669_v9  ;;  %2718 = vrot.lane.b32.xlu0 %v5720_v11, %s5369_s26 }
 0x1aa   : > { %4708 = vmatmul.msk.bf16.gmra.mxu2 %vm278_vm1, %v5162_v57  ;;  %v1663_v16 = vpop.permute.xlu2 %1662 }
 0x1ab   : > { %4704 = vmatmul.msk.bf16.gmra.mxu0 %vm278_vm1, %v5162_v57  ;;  %4706 = vmatmul.msk.bf16.gmra.mxu1 %vm278_vm1, %v5162_v57 }
 0x1ac   : > { %v823_v0 = vpop.f32.mrf.mxu3 }
 0x1ad   : > { %v839_v2 = vadd.f32 %v823_v0, %v5870_v21  ;;  %v804_v3 = vpop.f32.mrf.mxu2 }
 0x1ae   : > { %v838_v4 = vadd.f32 %v804_v3, %v5875_v23  ;;  %v1672_v23 = vsel %vm1670_vm11, %v1663_v16, %v1665_v12 }
 0x1b0   : > { %v768_v5 = vpop.f32.mrf.mxu0  ;;  %v787_v6 = vpop.f32.mrf.mxu1  ;;  %2720 = vrot.lane.b32.xlu2 %v5654_v39, %s5369_s26 }
 0x1b1   : > { %v840_v7 = vadd.f32 %v768_v5, %v711_v26  ;;  %v841_v8 = vadd.f32 %v787_v6, %v712_v27  ;;  %v1661_v26 = vpop.permute.xlu1 %1660 }
 0x1b4   : > { %v825_v10 = vpop.f32.mrf.mxu3 }
 0x1b5   : > { %v843_v13 = vadd.f32 %v825_v10, %v5884_v29  ;;  %v806_v14 = vpop.f32.mrf.mxu2  ;;  %v1671_v29 = vsel %vm1670_vm11, %v1661_v26, %v1663_v16  ;;  %vm4438_vm11 = vcmask 64512  }
 0x1b6   : > { %v842_v17 = vadd.f32 %v806_v14, %v713_v33 }
 0x1b8   : > { %v890_v19 = vpop.f32.mrf.mxu0  ;;  %v909_v20 = vpop.f32.mrf.mxu1  ;;  %2716 = vrot.lane.b32.xlu2 %v5673_v49, %s5369_s26 }
 0x1b9   : > { %v957_v21 = vadd.f32 %v890_v19, %v5891_v40  ;;  %v958_v22 = vadd.f32 %v909_v20, %v5894_v41  ;;  %4729 = vmatmul.msk.bf16.vlgmr.msrb.gmra.mxu3 %vm278_vm1, %v5163_v15  ;;  %v5164_v40 = vld [vmem:[%s7473_s1 + $0x98] sm:$0xff]  ;;  %v1799_v47 = vpop.permute.xlu1 %1798  ;;  %v5166_v19 = vld [vmem:[%s7473_s1 + $0xa8] sm:$0xff] }
 0x1ba   : > { %4727 = vmatmul.msk.bf16.vlgmr.msrb.gmra.mxu2 %vm278_vm1, %v5163_v15  ;;  %1749 = vmatpush.bf16.msrb.mxu3 %v1674_v18  ;;  %v1805_v6 = vsel %vm1802_vm12, %v1797_v56, %v1799_v47 }
 0x1bb   : > { %4723 = vmatmul.msk.bf16.vlgmr.msrb.gmra.mxu0 %vm278_vm1, %v5163_v15  ;;  %4725 = vmatmul.msk.bf16.vlgmr.msrb.gmra.mxu1 %vm278_vm1, %v5163_v15 }
 0x1bc   : > { %v947_v25 = vpop.f32.mrf.mxu3  ;;  %1711 = vmatpush.bf16.msrb.mxu1 %v1672_v23  ;;  %1730 = vmatpush.bf16.msrb.mxu2 %v1673_v24 }
 0x1bd   : > { %v5957_v27 = vadd.f32 %v947_v25, %v5903_v46  ;;  %v928_v28 = vpop.f32.mrf.mxu2  ;;  %1692 = vmatpush.bf16.msrb.mxu0 %v1671_v29 }
 0x1be   : > { %v5961_v30 = vadd.f32 %v928_v28, %v5906_v48 }
 0x1c0   : > { %v892_v31 = vpop.f32.mrf.mxu0  ;;  %v911_v32 = vpop.f32.mrf.mxu1 }
 0x1c1   : > { %v961_v33 = vadd.f32 %v892_v31, %v5911_v52  ;;  %v962_v34 = vadd.f32 %v911_v32, %v5914_v53 }
 0x1c2   : > { %v1795_v0 = vpop.permute.xlu1 %1794 }
 0x1c4   : > { %v949_v36 = vpop.f32.mrf.mxu3 }
 0x1c5   : > { %v964_v37 = vadd.f32 %v949_v36, %v5918_v55  ;;  %v930_v38 = vpop.f32.mrf.mxu2 }
 0x1c6   : > { %v963_v41 = vadd.f32 %v930_v38, %v5924_v58  ;;  %v1801_v58 = vpop.permute.xlu2 %1800  ;;  %v5172_v38 = vld [vmem:[%s7473_s1 + $0xb0] sm:$0xff] }
 0x1c7   : > { %v1806_v1 = vsel %vm1802_vm12, %v1799_v47, %v1801_v58 }
 0x1c8   : > { %v895_v42 = vpop.f32.mrf.mxu0  ;;  %v914_v43 = vpop.f32.mrf.mxu1 }
 0x1c9   : > { %v965_v44 = vadd.f32 %v895_v42, %v5928_v62  ;;  %v966_v45 = vadd.f32 %v914_v43, %v5931_v63  ;;  %4730 = vmatmul.msk.bf16.gmra.mxu3 %vm278_vm1, %v5164_v40  ;;  %v5165_v62 = vld [vmem:[%s7473_s1 + $0xa0] sm:$0xff] }
 0x1ca   : > { %4728 = vmatmul.msk.bf16.gmra.mxu2 %vm278_vm1, %v5164_v40 }
 0x1cb   : > { %4724 = vmatmul.msk.bf16.gmra.mxu0 %vm278_vm1, %v5164_v40  ;;  %4726 = vmatmul.msk.bf16.gmra.mxu1 %vm278_vm1, %v5164_v40 }
 0x1cc   : > { %v952_v46 = vpop.f32.mrf.mxu3 }
 0x1cd   : > { %v968_v48 = vadd.f32 %v952_v46, %v839_v2  ;;  %v933_v50 = vpop.f32.mrf.mxu2 }
 0x1ce   : > { %v967_v51 = vadd.f32 %v933_v50, %v838_v4  ;;  %v1929_v32 = vpop.permute.xlu2 %1928 }
 0x1d0   : > { %v897_v52 = vpop.f32.mrf.mxu0  ;;  %v916_v53 = vpop.f32.mrf.mxu1 }
 0x1d1   : > { %v969_v54 = vadd.f32 %v897_v52, %v840_v7  ;;  %v970_v55 = vadd.f32 %v916_v53, %v841_v8  ;;  %v1804_v7 = vsel %vm1802_vm12, %v1795_v0, %v1797_v56  ;;  %v1793_v8 = vpop.permute.xlu0 %1792 }
 0x1d2   : > { %v1803_v61 = vsel %vm1802_vm12, %v1793_v8, %v1795_v0  ;;  %v5173_v0 = vld [vmem:[%s7473_s1 + $0xb8] sm:$0xff]  ;;  %vm4440_vm12 = vcmask 72704  }
 0x1d4   : > { %v954_v57 = vpop.f32.mrf.mxu3 }
 0x1d5   : > { %v972_v59 = vadd.f32 %v954_v57, %v843_v13  ;;  %v935_v60 = vpop.f32.mrf.mxu2 }
 0x1d6   : > { %v971_v63 = vadd.f32 %v935_v60, %v842_v17  ;;  %v1925_v50 = vpop.permute.xlu2 %1924 }
 0x1d8   : > { %v1019_v2 = vpop.f32.mrf.mxu0  ;;  %v1038_v3 = vpop.f32.mrf.mxu1 }
 0x1d9   : > { %v1086_v4 = vadd.f32 %v1019_v2, %v957_v21  ;;  %v1087_v5 = vadd.f32 %v1038_v3, %v958_v22  ;;  %4749 = vmatmul.msk.bf16.vlgmr.msra.gmra.mxu3 %vm278_vm1, %v5165_v62  ;;  %v1931_v11 = vpop.permute.xlu0 %1930 }
 0x1da   : > { %4747 = vmatmul.msk.bf16.vlgmr.msra.gmra.mxu2 %vm278_vm1, %v5165_v62  ;;  %1881 = vmatpush.bf16.msra.mxu3 %v1806_v1 }
 0x1db   : > { %4743 = vmatmul.msk.bf16.vlgmr.msra.gmra.mxu0 %vm278_vm1, %v5165_v62  ;;  %4745 = vmatmul.msk.bf16.vlgmr.msra.gmra.mxu1 %vm278_vm1, %v5165_v62 }
 0x1dc   : > { %v1076_v35 = vpop.f32.mrf.mxu3  ;;  %1843 = vmatpush.bf16.msra.mxu1 %v1804_v7  ;;  %1862 = vmatpush.bf16.msra.mxu2 %v1805_v6 }
 0x1dd   : > { %v1089_v39 = vadd.f32 %v1076_v35, %v5957_v27  ;;  %v1057_v9 = vpop.f32.mrf.mxu2  ;;  %1824 = vmatpush.bf16.msra.mxu0 %v1803_v61 }
 0x1de   : > { %v1088_v10 = vadd.f32 %v1057_v9, %v5961_v30  ;;  %v2063_v7 = vpop.permute.xlu2 %2062 }
 0x1e0   : > { %v1021_v12 = vpop.f32.mrf.mxu0  ;;  %v1040_v13 = vpop.f32.mrf.mxu1 }
 0x1e1   : > { %v1090_v14 = vadd.f32 %v1021_v12, %v961_v33  ;;  %v1091_v15 = vadd.f32 %v1040_v13, %v962_v34  ;;  %v1933_v34 = vpop.permute.xlu1 %1932 }
 0x1e2   : > { %v1938_v42 = vsel %vm1934_vm13, %v1931_v11, %v1933_v34 }
 0x1e4   : > { %v1078_v17 = vpop.f32.mrf.mxu3 }
 0x1e5   : > { %v1093_v16 = vadd.f32 %v1078_v17, %v964_v37  ;;  %v1059_v18 = vpop.f32.mrf.mxu2 }
 0x1e6   : > { %v1092_v20 = vadd.f32 %v1059_v18, %v963_v41  ;;  %v1927_v41 = vpop.permute.xlu0 %1926  ;;  %v5174_v18 = vld [vmem:[%s7473_s1 + $0xc0] sm:$0xff] }
 0x1e7   : > { %v1936_v47 = vsel %vm1934_vm13, %v1927_v41, %v1929_v32 }
 0x1e8   : > { %v1024_v21 = vpop.f32.mrf.mxu0  ;;  %v1043_v22 = vpop.f32.mrf.mxu1 }
 0x1e9   : > { %v1094_v23 = vadd.f32 %v1024_v21, %v965_v44  ;;  %v1095_v24 = vadd.f32 %v1043_v22, %v966_v45  ;;  %4750 = vmatmul.msk.bf16.gmra.mxu3 %vm278_vm1, %v5166_v19  ;;  %v2061_v13 = vpop.permute.xlu1 %2060 }
 0x1ea   : > { %4748 = vmatmul.msk.bf16.gmra.mxu2 %vm278_vm1, %v5166_v19 }
 0x1eb   : > { %4744 = vmatmul.msk.bf16.gmra.mxu0 %vm278_vm1, %v5166_v19  ;;  %4746 = vmatmul.msk.bf16.gmra.mxu1 %vm278_vm1, %v5166_v19 }
 0x1ec   : > { %v1081_v49 = vpop.f32.mrf.mxu3 }
 0x1ed   : > { %v1097_v25 = vadd.f32 %v1081_v49, %v968_v48  ;;  %v1062_v26 = vpop.f32.mrf.mxu2  ;;  %v1937_v48 = vsel %vm1934_vm13, %v1929_v32, %v1931_v11 }
 0x1ee   : > { %v1096_v27 = vadd.f32 %v1062_v26, %v967_v51  ;;  %v1935_v51 = vsel %vm1934_vm13, %v1925_v50, %v1927_v41  ;;  %v5175_v41 = vld [vmem:[%s7473_s1 + $0xc8] sm:$0xff]  ;;  %vm4444_vm13 = vcmask 73728  }
 0x1f0   : > { %v1026_v28 = vpop.f32.mrf.mxu0  ;;  %v1045_v29 = vpop.f32.mrf.mxu1 }
 0x1f1   : > { %v1098_v30 = vadd.f32 %v1026_v28, %v969_v54  ;;  %v1099_v31 = vadd.f32 %v1045_v29, %v970_v55  ;;  %v2057_v26 = vpop.permute.xlu1 %2056 }
 0x1f4   : > { %v1083_v33 = vpop.f32.mrf.mxu3 }
 0x1f5   : > { %v1101_v36 = vadd.f32 %v1083_v33, %v972_v59  ;;  %v1064_v37 = vpop.f32.mrf.mxu2 }
 0x1f6   : > { %v1100_v40 = vadd.f32 %v1064_v37, %v971_v63 }
 0x1f8   : > { %v1148_v43 = vpop.f32.mrf.mxu0  ;;  %v1167_v44 = vpop.f32.mrf.mxu1 }
 0x1f9   : > { %v1215_v45 = vadd.f32 %v1148_v43, %v1086_v4  ;;  %v1216_v46 = vadd.f32 %v1167_v44, %v1087_v5  ;;  %4789 = vmatmul.msk.bf16.vlgmr.msrb.gmra.mxu3 %vm278_vm1, %v5172_v38 }
 0x1fa   : > { %4787 = vmatmul.msk.bf16.vlgmr.msrb.gmra.mxu2 %vm278_vm1, %v5172_v38  ;;  %2013 = vmatpush.bf16.msrb.mxu3 %v1938_v42 }
 0x1fb   : > { %4783 = vmatmul.msk.bf16.vlgmr.msrb.gmra.mxu0 %vm278_vm1, %v5172_v38  ;;  %4785 = vmatmul.msk.bf16.vlgmr.msrb.gmra.mxu1 %vm278_vm1, %v5172_v38 }
 0x1fc   : > { %v1205_v52 = vpop.f32.mrf.mxu3  ;;  %1975 = vmatpush.bf16.msrb.mxu1 %v1936_v47  ;;  %1994 = vmatpush.bf16.msrb.mxu2 %v1937_v48  ;;  %v2195_v48 = vpop.permute.xlu1 %2194 }
 0x1fd   : > { %v1218_v53 = vadd.f32 %v1205_v52, %v1089_v39  ;;  %v1186_v54 = vpop.f32.mrf.mxu2  ;;  %1956 = vmatpush.bf16.msrb.mxu0 %v1935_v51 }
 0x1fe   : > { %v1217_v55 = vadd.f32 %v1186_v54, %v1088_v10 }
 0x200   : > { %v1150_v56 = vpop.f32.mrf.mxu0  ;;  %v1169_v57 = vpop.f32.mrf.mxu1 }
 0x201   : > { %v1219_v58 = vadd.f32 %v1150_v56, %v1090_v14  ;;  %v1220_v59 = vadd.f32 %v1169_v57, %v1091_v15  ;;  %v2065_v15 = vpop.permute.xlu0 %2064 }
 0x202   : > { %v2070_v21 = vsel %vm2066_vm14, %v2063_v7, %v2065_v15 }
 0x204   : > { %v1207_v60 = vpop.f32.mrf.mxu3 }
 0x205   : > { %v1222_v62 = vadd.f32 %v1207_v60, %v1093_v16  ;;  %v1188_v63 = vpop.f32.mrf.mxu2 }
 0x206   : > { %v1221_v1 = vadd.f32 %v1188_v63, %v1092_v20  ;;  %v2059_v20 = vpop.permute.xlu2 %2058  ;;  %v5176_v63 = vld [vmem:[%s7473_s1 + $0xd0] sm:$0xff] }
 0x207   : > { %v2068_v11 = vsel %vm2066_vm14, %v2059_v20, %v2061_v13 }
 0x208   : > { %v1153_v2 = vpop.f32.mrf.mxu0  ;;  %v1172_v3 = vpop.f32.mrf.mxu1 }
 0x209   : > { %v1223_v4 = vadd.f32 %v1153_v2, %v1094_v23  ;;  %v1224_v5 = vadd.f32 %v1172_v3, %v1095_v24  ;;  %4790 = vmatmul.msk.bf16.gmra.mxu3 %vm278_vm1, %v5173_v0  ;;  %v2193_v57 = vpop.permute.xlu0 %2192 }
 0x20a   : > { %4788 = vmatmul.msk.bf16.gmra.mxu2 %vm278_vm1, %v5173_v0 }
 0x20b   : > { %4784 = vmatmul.msk.bf16.gmra.mxu0 %vm278_vm1, %v5173_v0  ;;  %4786 = vmatmul.msk.bf16.gmra.mxu1 %vm278_vm1, %v5173_v0 }
 0x20c   : > { %v1210_v6 = vpop.f32.mrf.mxu3 }
 0x20d   : > { %v1226_v8 = vadd.f32 %v1210_v6, %v1097_v25  ;;  %v1191_v61 = vpop.f32.mrf.mxu2  ;;  %v2069_v25 = vsel %vm2066_vm14, %v2061_v13, %v2063_v7  ;;  %v2201_v7 = vsel %vm2198_vm15, %v2193_v57, %v2195_v48 }
 0x20e   : > { %v1225_v35 = vadd.f32 %v1191_v61, %v1096_v27  ;;  %v2067_v27 = vsel %vm2066_vm14, %v2057_v26, %v2059_v20  ;;  %v5177_v20 = vld [vmem:[%s7473_s1 + $0xd8] sm:$0xff] }
 0x210   : > { %v1155_v39 = vpop.f32.mrf.mxu0  ;;  %v1174_v9 = vpop.f32.mrf.mxu1 }
 0x211   : > { %v1227_v10 = vadd.f32 %v1155_v39, %v1098_v30  ;;  %v1228_v12 = vadd.f32 %v1174_v9, %v1099_v31  ;;  %v2189_v61 = vpop.permute.xlu0 %2188 }
 0x214   : > { %v1212_v14 = vpop.f32.mrf.mxu3 }
 0x215   : > { %v1230_v17 = vadd.f32 %v1212_v14, %v1101_v36  ;;  %v1193_v16 = vpop.f32.mrf.mxu2 }
 0x216   : > { %v1229_v19 = vadd.f32 %v1193_v16, %v1100_v40 }
 0x218   : > { %v1277_v22 = vpop.f32.mrf.mxu0  ;;  %v1296_v23 = vpop.f32.mrf.mxu1 }
 0x219   : > { %v1344_v24 = vadd.f32 %v1277_v22, %v1215_v45  ;;  %v1345_v49 = vadd.f32 %v1296_v23, %v1216_v46  ;;  %4809 = vmatmul.msk.bf16.vlgmr.msra.gmra.mxu3 %vm278_vm1, %v5174_v18 }
 0x21a   : > { %4807 = vmatmul.msk.bf16.vlgmr.msra.gmra.mxu2 %vm278_vm1, %v5174_v18  ;;  %2145 = vmatpush.bf16.msra.mxu3 %v2070_v21 }
 0x21b   : > { %4803 = vmatmul.msk.bf16.vlgmr.msra.gmra.mxu0 %vm278_vm1, %v5174_v18  ;;  %4805 = vmatmul.msk.bf16.vlgmr.msra.gmra.mxu1 %vm278_vm1, %v5174_v18 }
 0x21c   : > { %v1334_v28 = vpop.f32.mrf.mxu3  ;;  %2107 = vmatpush.bf16.msra.mxu1 %v2068_v11  ;;  %2126 = vmatpush.bf16.msra.mxu2 %v2069_v25  ;;  %v2327_v25 = vpop.permute.xlu0 %2326 }
 0x21d   : > { %v1347_v29 = vadd.f32 %v1334_v28, %v1218_v53  ;;  %v1315_v30 = vpop.f32.mrf.mxu2  ;;  %2088 = vmatpush.bf16.msra.mxu0 %v2067_v27 }
 0x21e   : > { %v1346_v31 = vadd.f32 %v1315_v30, %v1217_v55 }
 0x220   : > { %v1279_v32 = vpop.f32.mrf.mxu0  ;;  %v1298_v33 = vpop.f32.mrf.mxu1 }
 0x221   : > { %v1348_v34 = vadd.f32 %v1279_v32, %v1219_v58  ;;  %v1349_v36 = vadd.f32 %v1298_v33, %v1220_v59  ;;  %v2197_v59 = vpop.permute.xlu2 %2196 }
 0x222   : > { %v2202_v2 = vsel %vm2198_vm15, %v2195_v48, %v2197_v59 }
 0x224   : > { %v1336_v37 = vpop.f32.mrf.mxu3 }
 0x225   : > { %v1351_v38 = vadd.f32 %v1336_v37, %v1222_v62  ;;  %v1317_v40 = vpop.f32.mrf.mxu2 }
 0x226   : > { %v1350_v42 = vadd.f32 %v1317_v40, %v1221_v1  ;;  %v2191_v1 = vpop.permute.xlu1 %2190  ;;  %v5178_v40 = vld [vmem:[%s7473_s1 + $0xe0] sm:$0xff] }
 0x228   : > { %v1282_v43 = vpop.f32.mrf.mxu0  ;;  %v1301_v44 = vpop.f32.mrf.mxu1 }
 0x229   : > { %v1352_v45 = vadd.f32 %v1282_v43, %v1223_v4  ;;  %v1353_v46 = vadd.f32 %v1301_v44, %v1224_v5  ;;  %4810 = vmatmul.msk.bf16.gmra.mxu3 %vm278_vm1, %v5175_v41  ;;  %v2325_v33 = vpop.permute.xlu2 %2324 }
 0x22a   : > { %4808 = vmatmul.msk.bf16.gmra.mxu2 %vm278_vm1, %v5175_v41 }
 0x22b   : > { %4804 = vmatmul.msk.bf16.gmra.mxu0 %vm278_vm1, %v5175_v41  ;;  %4806 = vmatmul.msk.bf16.gmra.mxu1 %vm278_vm1, %v5175_v41 }
 0x22c   : > { %v1339_v47 = vpop.f32.mrf.mxu3 }
 0x22d   : > { %v1355_v50 = vadd.f32 %v1339_v47, %v1226_v8  ;;  %v1320_v51 = vpop.f32.mrf.mxu2  ;;  %v2200_v8 = vsel %vm2198_vm15, %v2191_v1, %v2193_v57 }
 0x22e   : > { %v1354_v52 = vadd.f32 %v1320_v51, %v1225_v35  ;;  %v2199_v35 = vsel %vm2198_vm15, %v2189_v61, %v2191_v1  ;;  %v5179_v1 = vld [vmem:[%s7473_s1 + $0xe8] sm:$0xff] }
 0x230   : > { %v1284_v53 = vpop.f32.mrf.mxu0  ;;  %v1303_v54 = vpop.f32.mrf.mxu1 }
 0x231   : > { %v1356_v55 = vadd.f32 %v1284_v53, %v1227_v10  ;;  %v1357_v56 = vadd.f32 %v1303_v54, %v1228_v12  ;;  %v2321_v51 = vpop.permute.xlu2 %2320 }
 0x234   : > { %v1341_v58 = vpop.f32.mrf.mxu3 }
 0x235   : > { %v1359_v60 = vadd.f32 %v1341_v58, %v1230_v17  ;;  %v1322_v62 = vpop.f32.mrf.mxu2 }
 0x236   : > { %v1358_v0 = vadd.f32 %v1322_v62, %v1229_v19 }
 0x238   : > { %v1406_v3 = vpop.f32.mrf.mxu0  ;;  %v1425_v4 = vpop.f32.mrf.mxu1 }
 0x239   : > { %v1473_v5 = vadd.f32 %v1406_v3, %v1344_v24  ;;  %v1474_v6 = vadd.f32 %v1425_v4, %v1345_v49  ;;  %4829 = vmatmul.msk.bf16.vlgmr.msrb.gmra.mxu3 %vm278_vm1, %v5176_v63 }
 0x23a   : > { %4827 = vmatmul.msk.bf16.vlgmr.msrb.gmra.mxu2 %vm278_vm1, %v5176_v63  ;;  %2277 = vmatpush.bf16.msrb.mxu3 %v2202_v2 }
 0x23b   : > { %4823 = vmatmul.msk.bf16.vlgmr.msrb.gmra.mxu0 %vm278_vm1, %v5176_v63  ;;  %4825 = vmatmul.msk.bf16.vlgmr.msrb.gmra.mxu1 %vm278_vm1, %v5176_v63 }
 0x23c   : > { %v1463_v39 = vpop.f32.mrf.mxu3  ;;  %2239 = vmatpush.bf16.msrb.mxu1 %v2200_v8  ;;  %2258 = vmatpush.bf16.msrb.mxu2 %v2201_v7  ;;  %v2459_v7 = vpop.permute.xlu2 %2458 }
 0x23d   : > { %v1476_v9 = vadd.f32 %v1463_v39, %v1347_v29  ;;  %v1444_v10 = vpop.f32.mrf.mxu2  ;;  %2220 = vmatpush.bf16.msrb.mxu0 %v2199_v35 }
 0x23e   : > { %v1475_v12 = vadd.f32 %v1444_v10, %v1346_v31 }
 0x240   : > { %v1408_v13 = vpop.f32.mrf.mxu0  ;;  %v1427_v14 = vpop.f32.mrf.mxu1 }
 0x241   : > { %v1477_v15 = vadd.f32 %v1408_v13, %v1348_v34  ;;  %v1478_v17 = vadd.f32 %v1427_v14, %v1349_v36  ;;  %v2329_v36 = vpop.permute.xlu1 %2328 }
 0x242   : > { %v2334_v43 = vsel %vm2330_vm6, %v2327_v25, %v2329_v36 }
 0x244   : > { %v1465_v16 = vpop.f32.mrf.mxu3 }
 0x245   : > { %v1480_v18 = vadd.f32 %v1465_v16, %v1351_v38  ;;  %v1446_v19 = vpop.f32.mrf.mxu2 }
 0x246   : > { %v1479_v21 = vadd.f32 %v1446_v19, %v1350_v42  ;;  %v2323_v42 = vpop.permute.xlu0 %2322  ;;  %v5180_v19 = vld [vmem:[%s7473_s1 + $0xf0] sm:$0xff] }
 0x247   : > { %v2332_v48 = vsel %vm2330_vm6, %v2323_v42, %v2325_v33 }
 0x248   : > { %v1411_v22 = vpop.f32.mrf.mxu0  ;;  %v1430_v23 = vpop.f32.mrf.mxu1 }
 0x249   : > { %v1481_v24 = vadd.f32 %v1411_v22, %v1352_v45  ;;  %v1482_v49 = vadd.f32 %v1430_v23, %v1353_v46  ;;  %4830 = vmatmul.msk.bf16.gmra.mxu3 %vm278_vm1, %v5177_v20  ;;  %v2457_v14 = vpop.permute.xlu1 %2456  ;;  %v4973_v22 = vld [vmem:[%s5454_s9 + $0xc] sm:$0xf]  ;;  %v5193_v23 = vld [vmem:[%s5454_s9 + $0x1c] sm:$0xf0] }
 0x24a   : > { %4828 = vmatmul.msk.bf16.gmra.mxu2 %vm278_vm1, %v5177_v20 }
 0x24b   : > { %4824 = vmatmul.msk.bf16.gmra.mxu0 %vm278_vm1, %v5177_v20  ;;  %4826 = vmatmul.msk.bf16.gmra.mxu1 %vm278_vm1, %v5177_v20  ;;  %v2455_v20 = vpop.permute.xlu2 %2454 }
 0x24c   : > { %v1468_v11 = vpop.f32.mrf.mxu3 }
 0x24d   : > { %v1484_v26 = vadd.f32 %v1468_v11, %v1355_v50  ;;  %v1449_v27 = vpop.f32.mrf.mxu2  ;;  %v2333_v50 = vsel %vm2330_vm6, %v2325_v33, %v2327_v25 }
 0x24e   : > { %v1483_v28 = vadd.f32 %v1449_v27, %v1354_v52  ;;  %v2331_v52 = vsel %vm2330_vm6, %v2321_v51, %v2323_v42  ;;  %v4965_v51 = vld [vmem:[%s5454_s9 + $0x4] sm:$0xf] }
 0x250   : > { %v1413_v29 = vpop.f32.mrf.mxu0  ;;  %v1432_v30 = vpop.f32.mrf.mxu1 }
 0x251   : > { %v1485_v31 = vadd.f32 %v1413_v29, %v1356_v55  ;;  %v1486_v32 = vadd.f32 %v1432_v30, %v1357_v56  ;;  %v2465_v29 = vsel %vm2462_vm7, %v2457_v14, %v2459_v7  ;;  %v2453_v30 = vpop.permute.xlu1 %2452 }
 0x254   : > { %v1470_v34 = vpop.f32.mrf.mxu3 }
 0x255   : > { %v1488_v37 = vadd.f32 %v1470_v34, %v1359_v60  ;;  %v1451_v38 = vpop.f32.mrf.mxu2 }
 0x256   : > { %v1487_v41 = vadd.f32 %v1451_v38, %v1358_v0  ;;  %v4967_v38 = vld [vmem:[%s5454_s9 + $0x18] sm:$0xf0] }
 0x258   : > { %v1535_v44 = vpop.f32.mrf.mxu0  ;;  %v1554_v45 = vpop.f32.mrf.mxu1 }
 0x259   : > { %v1602_v46 = vadd.f32 %v1535_v44, %v1473_v5  ;;  %v1603_v47 = vadd.f32 %v1554_v45, %v1474_v6  ;;  %4849 = vmatmul.msk.bf16.vlgmr.msra.gmra.mxu3 %vm278_vm1, %v5178_v40 }
 0x25a   : > { %4847 = vmatmul.msk.bf16.vlgmr.msra.gmra.mxu2 %vm278_vm1, %v5178_v40  ;;  %2409 = vmatpush.bf16.msra.mxu3 %v2334_v43 }
 0x25b   : > { %4843 = vmatmul.msk.bf16.vlgmr.msra.gmra.mxu0 %vm278_vm1, %v5178_v40  ;;  %4845 = vmatmul.msk.bf16.vlgmr.msra.gmra.mxu1 %vm278_vm1, %v5178_v40 }
 0x25c   : > { %v1592_v53 = vpop.f32.mrf.mxu3  ;;  %2371 = vmatpush.bf16.msra.mxu1 %v2332_v48  ;;  %2390 = vmatpush.bf16.msra.mxu2 %v2333_v50  ;;  %v5181_v48 = vld [vmem:[%s7473_s1 + $0xf8] sm:$0xff] }
 0x25d   : > { %v1605_v54 = vadd.f32 %v1592_v53, %v1476_v9  ;;  %v1573_v55 = vpop.f32.mrf.mxu2  ;;  %2352 = vmatpush.bf16.msra.mxu0 %v2331_v52  ;;  %v5192_v52 = vld [vmem:[%s5454_s9 + $0x14] sm:$0xf0] }
 0x25e   : > { %v1604_v56 = vadd.f32 %v1573_v55, %v1475_v12  ;;  %v6147_v53 = vor.u32 %v5192_v52, %v4965_v51 }
 0x260   : > { %v1537_v57 = vpop.f32.mrf.mxu0  ;;  %v1556_v58 = vpop.f32.mrf.mxu1  ;;  %2985 = vrot.lane.b32.xlu0 %v6147_v53, %s5351_s10 }
 0x261   : > { %v6068_v59 = vadd.f32 %v1537_v57, %v1477_v15  ;;  %v6070_v60 = vadd.f32 %v1556_v58, %v1478_v17  ;;  %v2461_v17 = vpop.permute.xlu0 %2460 }
 0x264   : > { %v1594_v62 = vpop.f32.mrf.mxu3 }
 0x265   : > { %v6072_v63 = vadd.f32 %v1594_v62, %v1480_v18  ;;  %v1575_v0 = vpop.f32.mrf.mxu2 }
 0x266   : > { %v6077_v2 = vadd.f32 %v1575_v0, %v1479_v21 }
 0x268   : > { %v1540_v3 = vpop.f32.mrf.mxu0  ;;  %v1559_v4 = vpop.f32.mrf.mxu1 }
 0x269   : > { %v6079_v5 = vadd.f32 %v1540_v3, %v1481_v24  ;;  %v6081_v6 = vadd.f32 %v1559_v4, %v1482_v49  ;;  %4850 = vmatmul.msk.bf16.gmra.mxu3 %vm278_vm1, %v5179_v1  ;;  %v2466_v24 = vsel %vm2462_vm7, %v2459_v7, %v2461_v17  ;;  %v6105_v49 = vor.u32 %v5193_v23, %v4973_v22  ;;  %v2589_v4 = vpop.permute.xlu0 %2588 }
 0x26a   : > { %4848 = vmatmul.msk.bf16.gmra.mxu2 %vm278_vm1, %v5179_v1 }
 0x26b   : > { %4844 = vmatmul.msk.bf16.gmra.mxu0 %vm278_vm1, %v5179_v1  ;;  %4846 = vmatmul.msk.bf16.gmra.mxu1 %vm278_vm1, %v5179_v1 }
 0x26c   : > { %v1597_v8 = vpop.f32.mrf.mxu3  ;;  %2989 = vrot.lane.b32.xlu1 %v6105_v49, %s5351_s10 }
 0x26d   : > { %v6087_v61 = vadd.f32 %v1597_v8, %v1484_v26  ;;  %v1578_v35 = vpop.f32.mrf.mxu2  ;;  %v2464_v26 = vsel %vm2462_vm7, %v2455_v20, %v2457_v14 }
 0x26e   : > { %v6089_v39 = vadd.f32 %v1578_v35, %v1483_v28 }
 0x270   : > { %v1542_v9 = vpop.f32.mrf.mxu0  ;;  %v1561_v10 = vpop.f32.mrf.mxu1 }
 0x271   : > { %v6091_v12 = vadd.f32 %v1542_v9, %v1485_v31  ;;  %v6093_v13 = vadd.f32 %v1561_v10, %v1486_v32  ;;  %v2463_v31 = vsel %vm2462_vm7, %v2453_v30, %v2455_v20  ;;  %v5191_v9 = vld [vmem:[%s5454_s9 + $0x10] sm:$0xf]  ;;  %v4975_v10 = vld [vmem:[%s5454_s9 + $0x20] sm:$0xf0]  ;;  %v2585_v20 = vpop.permute.xlu0 %2584 }
 0x274   : > { %v1599_v15 = vpop.f32.mrf.mxu3 }
 0x275   : > { %v6095_v16 = vadd.f32 %v1599_v15, %v1488_v37  ;;  %v1580_v18 = vpop.f32.mrf.mxu2  ;;  %v5190_v37 = vld [vmem:[%s5454_s9 + $0x8] sm:$0xf] }
 0x276   : > { %v6100_v21 = vadd.f32 %v1580_v18, %v1487_v41  ;;  %v6126_v40 = vor.u32 %v5190_v37, %v4967_v38 }
 0x278   : > { %v1694_v11 = vpop.f32.mrf.mxu0  ;;  %v1713_v25 = vpop.f32.mrf.mxu1  ;;  %2987 = vrot.lane.b32.xlu1 %v6126_v40, %s5351_s10 }
 0x279   : > { %v6108_v27 = vadd.f32 %v1694_v11, %v1602_v46  ;;  %v6110_v28 = vadd.f32 %v1713_v25, %v1603_v47  ;;  %4869 = vmatmul.msk.bf16.vlgmr.msrb.gmra.mxu3 %vm278_vm1, %v5180_v19 }
 0x27a   : > { %4867 = vmatmul.msk.bf16.vlgmr.msrb.gmra.mxu2 %vm278_vm1, %v5180_v19  ;;  %2541 = vmatpush.bf16.msrb.mxu3 %v2466_v24 }
 0x27b   : > { %4863 = vmatmul.msk.bf16.vlgmr.msrb.gmra.mxu0 %vm278_vm1, %v5180_v19  ;;  %4865 = vmatmul.msk.bf16.vlgmr.msrb.gmra.mxu1 %vm278_vm1, %v5180_v19 }
 0x27c   : > { %v1751_v32 = vpop.f32.mrf.mxu3  ;;  %2503 = vmatpush.bf16.msrb.mxu1 %v2464_v26  ;;  %2522 = vmatpush.bf16.msrb.mxu2 %v2465_v29 }
 0x27d   : > { %v6120_v33 = vadd.f32 %v1751_v32, %v1605_v54  ;;  %v1732_v34 = vpop.f32.mrf.mxu2  ;;  %2484 = vmatpush.bf16.msrb.mxu0 %v2463_v31  ;;  %v5183_v32 = vld [vmem:[%s7473_s1 + $0x108] sm:$0xff] }
 0x27e   : > { %v6122_v36 = vadd.f32 %v1732_v34, %v1604_v56 }
 0x280   : > { %v1696_v41 = vpop.f32.mrf.mxu0  ;;  %v1715_v42 = vpop.f32.mrf.mxu1  ;;  %3113 = vrot.lane.b32.xlu1 %v6147_v53, %s5352_s11 }
 0x281   : > { %v6129_v43 = vadd.f32 %v1696_v41, %v6068_v59  ;;  %v6132_v44 = vadd.f32 %v1715_v42, %v6070_v60  ;;  %v2591_v59 = vpop.permute.xlu1 %2590  ;;  %v2723_v41 = vpop.permute.xlu0 %2722 }
 0x282   : > { %v2597_v17 = vsel %vm2594_vm8, %v2589_v4, %v2591_v59 }
 0x284   : > { %v1753_v45 = vpop.f32.mrf.mxu3 }
 0x285   : > { %v6137_v46 = vadd.f32 %v1753_v45, %v6072_v63  ;;  %v1734_v47 = vpop.f32.mrf.mxu2 }
 0x286   : > { %v6143_v50 = vadd.f32 %v1734_v47, %v6077_v2 }
 0x288   : > { %v1699_v54 = vpop.f32.mrf.mxu0  ;;  %v1718_v55 = vpop.f32.mrf.mxu1 }
 0x289   : > { %v6150_v56 = vadd.f32 %v1699_v54, %v6079_v5  ;;  %v6153_v57 = vadd.f32 %v1718_v55, %v6081_v6  ;;  %4870 = vmatmul.msk.bf16.gmra.mxu3 %vm278_vm1, %v5181_v48  ;;  %v2593_v6 = vpop.permute.xlu2 %2592 }
 0x28a   : > { %4868 = vmatmul.msk.bf16.gmra.mxu2 %vm278_vm1, %v5181_v48 }
 0x28b   : > { %4864 = vmatmul.msk.bf16.gmra.mxu0 %vm278_vm1, %v5181_v48  ;;  %4866 = vmatmul.msk.bf16.gmra.mxu1 %vm278_vm1, %v5181_v48 }
 0x28c   : > { %v1756_v58 = vpop.f32.mrf.mxu3 }
 0x28d   : > { %v6164_v60 = vadd.f32 %v1756_v58, %v6087_v61  ;;  %v1737_v62 = vpop.f32.mrf.mxu2  ;;  %v5182_v61 = vld [vmem:[%s7473_s1 + $0x100] sm:$0xff]  ;;  %v2719_v58 = vpop.permute.xlu0 %2718 }
 0x28e   : > { %v6167_v63 = vadd.f32 %v1737_v62, %v6089_v39  ;;  %v2587_v39 = vpop.permute.xlu1 %2586 }
 0x28f   : > { %v2596_v19 = vsel %vm2594_vm8, %v2587_v39, %v2589_v4 }
 0x290   : > { %v1701_v0 = vpop.f32.mrf.mxu0  ;;  %v1720_v1 = vpop.f32.mrf.mxu1 }
 0x291   : > { %v6170_v2 = vadd.f32 %v1701_v0, %v6091_v12  ;;  %v6173_v3 = vadd.f32 %v1720_v1, %v6093_v13  ;;  %v2598_v12 = vsel %vm2594_vm8, %v2591_v59, %v2593_v6  ;;  %v6187_v13 = vor.u32 %v5191_v9, %v4975_v10  ;;  %v2721_v51 = vpop.permute.xlu2 %2720 }
 0x292   : > { %v2728_v0 = vsel %vm2726_vm9, %v2719_v58, %v2721_v51 }
 0x293   : > { %2991 = vrot.lane.b32.xlu2 %v6187_v13, %s5351_s10  ;;  %3119 = vrot.lane.b32.xlu0 %v6187_v13, %s5352_s11 }
 0x294   : > { %v1758_v5 = vpop.f32.mrf.mxu3  ;;  %3247 = vrot.lane.b32.xlu1 %v6187_v13, %s5353_s12 }
 0x295   : > { %v6176_v7 = vadd.f32 %v1758_v5, %v6095_v16  ;;  %v1739_v8 = vpop.f32.mrf.mxu2 }
 0x296   : > { %v6182_v35 = vadd.f32 %v1739_v8, %v6100_v21  ;;  %v2595_v21 = vsel %vm2594_vm8, %v2585_v20, %v2587_v39  ;;  %v2725_v54 = vpop.permute.xlu1 %2724 }
 0x298   : > { %v1826_v14 = vpop.f32.mrf.mxu0  ;;  %v1845_v15 = vpop.f32.mrf.mxu1 }
 0x299   : > { %v6191_v16 = vadd.f32 %v1826_v14, %v6108_v27  ;;  %v6194_v18 = vadd.f32 %v1845_v15, %v6110_v28  ;;  %4889 = vmatmul.msk.bf16.vlgmr.msra.gmra.mxu3 %vm278_vm1, %v5182_v61  ;;  %v2717_v4 = vpop.permute.xlu2 %2716 }
 0x29a   : > { %4887 = vmatmul.msk.bf16.vlgmr.msra.gmra.mxu2 %vm278_vm1, %v5182_v61  ;;  %2673 = vmatpush.bf16.msra.mxu3 %v2598_v12  ;;  %v2727_v5 = vsel %vm2726_vm9, %v2717_v4, %v2719_v58 }
 0x29b   : > { %4883 = vmatmul.msk.bf16.vlgmr.msra.gmra.mxu0 %vm278_vm1, %v5182_v61  ;;  %4885 = vmatmul.msk.bf16.vlgmr.msra.gmra.mxu1 %vm278_vm1, %v5182_v61 }
 0x29c   : > { %v1883_v22 = vpop.f32.mrf.mxu3  ;;  %2635 = vmatpush.bf16.msra.mxu1 %v2596_v19  ;;  %2654 = vmatpush.bf16.msra.mxu2 %v2597_v17  ;;  %v5185_v17 = vld [vmem:[%s7473_s1 + $0x118] sm:$0xff] }
 0x29d   : > { %v6205_v23 = vadd.f32 %v1883_v22, %v6120_v33  ;;  %v1864_v24 = vpop.f32.mrf.mxu2  ;;  %2616 = vmatpush.bf16.msra.mxu0 %v2595_v21  ;;  %3117 = vrot.lane.b32.xlu2 %v6105_v49, %s5352_s11 }
 0x29e   : > { %v6210_v11 = vadd.f32 %v1864_v24, %v6122_v36  ;;  %3245 = vrot.lane.b32.xlu0 %v6105_v49, %s5353_s12  ;;  %3373 = vrot.lane.b32.xlu1 %v6105_v49, %s5354_s13 }
 0x2a0   : > { %v1828_v25 = vpop.f32.mrf.mxu0  ;;  %v1847_v26 = vpop.f32.mrf.mxu1 }
 0x2a1   : > { %v6215_v27 = vadd.f32 %v1828_v25, %v6129_v43  ;;  %v6218_v28 = vadd.f32 %v1847_v26, %v6132_v44 }
 0x2a4   : > { %v1885_v29 = vpop.f32.mrf.mxu3 }
 0x2a5   : > { %v6223_v30 = vadd.f32 %v1885_v29, %v6137_v46  ;;  %v1866_v31 = vpop.f32.mrf.mxu2  ;;  %3115 = vrot.lane.b32.xlu2 %v6126_v40, %s5352_s11 }
 0x2a6   : > { %v6231_v33 = vadd.f32 %v1866_v31, %v6143_v50  ;;  %3243 = vrot.lane.b32.xlu0 %v6126_v40, %s5353_s12  ;;  %3371 = vrot.lane.b32.xlu1 %v6126_v40, %s5354_s13 }
 0x2a8   : > { %v1831_v34 = vpop.f32.mrf.mxu0  ;;  %v1850_v36 = vpop.f32.mrf.mxu1 }
 0x2a9   : > { %v1901_v37 = vadd.f32 %v1831_v34, %v6150_v56  ;;  %v1902_v38 = vadd.f32 %v1850_v36, %v6153_v57  ;;  %4890 = vmatmul.msk.bf16.gmra.mxu3 %vm278_vm1, %v5183_v32  ;;  %v5184_v57 = vld [vmem:[%s7473_s1 + $0x110] sm:$0xff] }
 0x2aa   : > { %4888 = vmatmul.msk.bf16.gmra.mxu2 %vm278_vm1, %v5183_v32 }
 0x2ab   : > { %4884 = vmatmul.msk.bf16.gmra.mxu0 %vm278_vm1, %v5183_v32  ;;  %4886 = vmatmul.msk.bf16.gmra.mxu1 %vm278_vm1, %v5183_v32  ;;  %v5186_v32 = vld [vmem:[%s7473_s1 + $0x120] sm:$0xff] }
 0x2ac   : > { %v1888_v42 = vpop.f32.mrf.mxu3 }
 0x2ad   : > { %v1904_v43 = vadd.f32 %v1888_v42, %v6164_v60  ;;  %v1869_v44 = vpop.f32.mrf.mxu2  ;;  %3241 = vrot.lane.b32.xlu2 %v6147_v53, %s5353_s12  ;;  %v2730_v60 = vsel %vm2726_vm9, %v2723_v41, %v2725_v54 }
 0x2ae   : > { %v1903_v45 = vadd.f32 %v1869_v44, %v6167_v63  ;;  %3369 = vrot.lane.b32.xlu0 %v6147_v53, %s5354_s13 }
 0x2b0   : > { %v1833_v46 = vpop.f32.mrf.mxu0  ;;  %v1852_v47 = vpop.f32.mrf.mxu1 }
 0x2b1   : > { %v1905_v48 = vadd.f32 %v1833_v46, %v6170_v2  ;;  %v1906_v50 = vadd.f32 %v1852_v47, %v6173_v3  ;;  %v2729_v3 = vsel %vm2726_vm9, %v2721_v51, %v2723_v41 }
 0x2b4   : > { %v1890_v52 = vpop.f32.mrf.mxu3 }
 0x2b5   : > { %v1908_v55 = vadd.f32 %v1890_v52, %v6176_v7  ;;  %v1871_v56 = vpop.f32.mrf.mxu2  ;;  %3375 = vrot.lane.b32.xlu2 %v6187_v13, %s5354_s13  ;;  %v5187_v52 = vld [vmem:[%s7473_s1 + $0x128] sm:$0xff] }
 0x2b6   : > { %v1907_v59 = vadd.f32 %v1871_v56, %v6182_v35 }
 0x2b8   : > { %v1958_v62 = vpop.f32.mrf.mxu0  ;;  %v1977_v63 = vpop.f32.mrf.mxu1 }
 0x2b9   : > { %v2025_v1 = vadd.f32 %v1958_v62, %v6191_v16  ;;  %v2026_v2 = vadd.f32 %v1977_v63, %v6194_v18  ;;  %4909 = vmatmul.msk.bf16.vlgmr.msrb.gmra.mxu3 %vm278_vm1, %v5184_v57 }
 0x2ba   : > { %4907 = vmatmul.msk.bf16.vlgmr.msrb.gmra.mxu2 %vm278_vm1, %v5184_v57  ;;  %2805 = vmatpush.bf16.msrb.mxu3 %v2730_v60 }
 0x2bb   : > { %4903 = vmatmul.msk.bf16.vlgmr.msrb.gmra.mxu0 %vm278_vm1, %v5184_v57  ;;  %4905 = vmatmul.msk.bf16.vlgmr.msrb.gmra.mxu1 %vm278_vm1, %v5184_v57 }
 0x2bc   : > { %v2015_v6 = vpop.f32.mrf.mxu3  ;;  %2767 = vmatpush.bf16.msrb.mxu1 %v2728_v0  ;;  %2786 = vmatpush.bf16.msrb.mxu2 %v2729_v3 }
 0x2bd   : > { %v2028_v7 = vadd.f32 %v2015_v6, %v6205_v23  ;;  %v1996_v8 = vpop.f32.mrf.mxu2  ;;  %2748 = vmatpush.bf16.msrb.mxu0 %v2727_v5  ;;  %v5188_v5 = vld [vmem:[%s7473_s1 + $0x130] sm:$0xff] }
 0x2be   : > { %v2027_v61 = vadd.f32 %v1996_v8, %v6210_v11 }
 0x2c0   : > { %v1960_v35 = vpop.f32.mrf.mxu0  ;;  %v1979_v39 = vpop.f32.mrf.mxu1 }
 0x2c1   : > { %v2029_v9 = vadd.f32 %v1960_v35, %v6215_v27  ;;  %v2030_v10 = vadd.f32 %v1979_v39, %v6218_v28 }
 0x2c4   : > { %v2017_v12 = vpop.f32.mrf.mxu3 }
 0x2c5   : > { %v2032_v14 = vadd.f32 %v2017_v12, %v6223_v30  ;;  %v1998_v15 = vpop.f32.mrf.mxu2 }
 0x2c6   : > { %v2031_v16 = vadd.f32 %v1998_v15, %v6231_v33 }
 0x2c8   : > { %v1963_v18 = vpop.f32.mrf.mxu0  ;;  %v1982_v19 = vpop.f32.mrf.mxu1 }
 0x2c9   : > { %v2033_v20 = vadd.f32 %v1963_v18, %v1901_v37  ;;  %v2034_v21 = vadd.f32 %v1982_v19, %v1902_v38  ;;  %4910 = vmatmul.msk.bf16.gmra.mxu3 %vm278_vm1, %v5185_v17 }
 0x2ca   : > { %4908 = vmatmul.msk.bf16.gmra.mxu2 %vm278_vm1, %v5185_v17 }
 0x2cb   : > { %4904 = vmatmul.msk.bf16.gmra.mxu0 %vm278_vm1, %v5185_v17  ;;  %4906 = vmatmul.msk.bf16.gmra.mxu1 %vm278_vm1, %v5185_v17 }
 0x2cc   : > { %v2020_v22 = vpop.f32.mrf.mxu3 }
 0x2cd   : > { %v2036_v23 = vadd.f32 %v2020_v22, %v1904_v43  ;;  %v2001_v24 = vpop.f32.mrf.mxu2 }
 0x2ce   : > { %v2035_v11 = vadd.f32 %v2001_v24, %v1903_v45 }
 0x2d0   : > { %v1965_v25 = vpop.f32.mrf.mxu0  ;;  %v1984_v26 = vpop.f32.mrf.mxu1 }
 0x2d1   : > { %v2037_v27 = vadd.f32 %v1965_v25, %v1905_v48  ;;  %v2038_v28 = vadd.f32 %v1984_v26, %v1906_v50  ;;  %v5189_v26 = vld [vmem:[%s7473_s1 + $0x138] sm:$0xff] }
 0x2d4   : > { %v2022_v29 = vpop.f32.mrf.mxu3 }
 0x2d5   : > { %v2040_v30 = vadd.f32 %v2022_v29, %v1908_v55  ;;  %v2003_v31 = vpop.f32.mrf.mxu2 }
 0x2d6   : > { %v2039_v33 = vadd.f32 %v2003_v31, %v1907_v59 }
 0x2d8   : > { %v2090_v34 = vpop.f32.mrf.mxu0  ;;  %v2109_v36 = vpop.f32.mrf.mxu1 }
 0x2d9   : > { %v2157_v37 = vadd.f32 %v2090_v34, %v2025_v1  ;;  %v2158_v38 = vadd.f32 %v2109_v36, %v2026_v2  ;;  %4929 = vmatmul.msk.bf16.vlgmr.msra.gmra.mxu3 %vm278_vm1, %v5186_v32 }
 0x2da   : > { %4927 = vmatmul.msk.bf16.vlgmr.msra.gmra.mxu2 %vm278_vm1, %v5186_v32  ;;  %2942 = vmatpush.bf16.msra.mxu3 %v6187_v13 }
 0x2db   : > { %4923 = vmatmul.msk.bf16.vlgmr.msra.gmra.mxu0 %vm278_vm1, %v5186_v32  ;;  %4925 = vmatmul.msk.bf16.vlgmr.msra.gmra.mxu1 %vm278_vm1, %v5186_v32 }
 0x2dc   : > { %v2147_v41 = vpop.f32.mrf.mxu3  ;;  %2885 = vmatpush.bf16.msra.mxu0 %v6147_v53  ;;  %2923 = vmatpush.bf16.msra.mxu2 %v6105_v49 }
 0x2dd   : > { %v2160_v42 = vadd.f32 %v2147_v41, %v2028_v7  ;;  %v2128_v43 = vpop.f32.mrf.mxu2  ;;  %2904 = vmatpush.bf16.msra.mxu1 %v6126_v40 }
 0x2de   : > { %v2159_v44 = vadd.f32 %v2128_v43, %v2027_v61  ;;  %v2990_v57 = vpop.permute.xlu1 %2989 }
 0x2e0   : > { %v2092_v45 = vpop.f32.mrf.mxu0  ;;  %v2111_v46 = vpop.f32.mrf.mxu1 }
 0x2e1   : > { %v2161_v47 = vadd.f32 %v2092_v45, %v2029_v9  ;;  %v2162_v48 = vadd.f32 %v2111_v46, %v2030_v10 }
 0x2e4   : > { %v2149_v50 = vpop.f32.mrf.mxu3 }
 0x2e5   : > { %v2164_v13 = vadd.f32 %v2149_v50, %v2032_v14  ;;  %v2130_v51 = vpop.f32.mrf.mxu2  ;;  %v2986_v14 = vpop.permute.xlu0 %2985 }
 0x2e6   : > { %v2163_v54 = vadd.f32 %v2130_v51, %v2031_v16 }
 0x2e8   : > { %v2095_v53 = vpop.f32.mrf.mxu0  ;;  %v2114_v55 = vpop.f32.mrf.mxu1 }
 0x2e9   : > { %v2165_v49 = vadd.f32 %v2095_v53, %v2033_v20  ;;  %v2166_v56 = vadd.f32 %v2114_v55, %v2034_v21  ;;  %4930 = vmatmul.msk.bf16.gmra.mxu3 %vm278_vm1, %v5187_v52 }
 0x2ea   : > { %4928 = vmatmul.msk.bf16.gmra.mxu2 %vm278_vm1, %v5187_v52  ;;  %v2988_v8 = vpop.permute.xlu1 %2987 }
 0x2eb   : > { %4924 = vmatmul.msk.bf16.gmra.mxu0 %vm278_vm1, %v5187_v52  ;;  %4926 = vmatmul.msk.bf16.gmra.mxu1 %vm278_vm1, %v5187_v52  ;;  %v2994_v12 = vsel %vm270_vm0, %v2988_v8, %v2990_v57  ;;  %v2993_v17 = vsel %vm270_vm0, %v2986_v14, %v2988_v8 }
 0x2ec   : > { %v2152_v40 = vpop.f32.mrf.mxu3 }
 0x2ed   : > { %v2168_v58 = vadd.f32 %v2152_v40, %v2036_v23  ;;  %v2133_v59 = vpop.f32.mrf.mxu2  ;;  %v2992_v7 = vpop.permute.xlu2 %2991 }
 0x2ee   : > { %v2167_v60 = vadd.f32 %v2133_v59, %v2035_v11  ;;  %v2995_v10 = vsel %vm270_vm0, %v2990_v57, %v2992_v7 }
 0x2f0   : > { %v2097_v62 = vpop.f32.mrf.mxu0  ;;  %v2116_v63 = vpop.f32.mrf.mxu1 }
 0x2f1   : > { %v2169_v0 = vadd.f32 %v2097_v62, %v2037_v27  ;;  %v2170_v1 = vadd.f32 %v2116_v63, %v2038_v28 }
 0x2f4   : > { %v2154_v2 = vpop.f32.mrf.mxu3 }
 0x2f5   : > { %v2172_v3 = vadd.f32 %v2154_v2, %v2040_v30  ;;  %v2135_v4 = vpop.f32.mrf.mxu2 }
 0x2f6   : > { %v2171_v6 = vadd.f32 %v2135_v4, %v2039_v33 }
 0x2f7   : > { %v3118_v33 = vpop.permute.xlu2 %3117 }
 0x2f8   : > { %v2222_v61 = vpop.f32.mrf.mxu0  ;;  %v2241_v35 = vpop.f32.mrf.mxu1 }
 0x2f9   : > { %v2289_v39 = vadd.f32 %v2222_v61, %v2157_v37  ;;  %v2290_v9 = vadd.f32 %v2241_v35, %v2158_v38  ;;  %4949 = vmatmul.msk.bf16.vlgmr.msrb.gmra.mxu3 %vm278_vm1, %v5188_v5 }
 0x2fa   : > { %4947 = vmatmul.msk.bf16.vlgmr.msrb.gmra.mxu2 %vm278_vm1, %v5188_v5  ;;  %3070 = vmatpush.bf16.msrb.mxu3 %v2992_v7 }
 0x2fb   : > { %4943 = vmatmul.msk.bf16.vlgmr.msrb.gmra.mxu0 %vm278_vm1, %v5188_v5  ;;  %4945 = vmatmul.msk.bf16.vlgmr.msrb.gmra.mxu1 %vm278_vm1, %v5188_v5  ;;  %v5195_v5 = vld [vmem:[%s7473_s1 + $0x148] sm:$0xff] }
 0x2fc   : > { %v2279_v15 = vpop.f32.mrf.mxu3  ;;  %3032 = vmatpush.bf16.msrb.mxu1 %v2994_v12  ;;  %3051 = vmatpush.bf16.msrb.mxu2 %v2995_v10 }
 0x2fd   : > { %v2292_v16 = vadd.f32 %v2279_v15, %v2160_v42  ;;  %v2260_v18 = vpop.f32.mrf.mxu2  ;;  %3013 = vmatpush.bf16.msrb.mxu0 %v2993_v17 }
 0x2fe   : > { %v2291_v19 = vadd.f32 %v2260_v18, %v2159_v44 }
 0x300   : > { %v2224_v20 = vpop.f32.mrf.mxu0  ;;  %v2243_v21 = vpop.f32.mrf.mxu1 }
 0x301   : > { %v2293_v22 = vadd.f32 %v2224_v20, %v2161_v47  ;;  %v2294_v23 = vadd.f32 %v2243_v21, %v2162_v48  ;;  %v5194_v47 = vld [vmem:[%s7473_s1 + $0x140] sm:$0xff] }
 0x304   : > { %v2281_v24 = vpop.f32.mrf.mxu3 }
 0x305   : > { %v2296_v11 = vadd.f32 %v2281_v24, %v2164_v13  ;;  %v2262_v25 = vpop.f32.mrf.mxu2  ;;  %v3120_v50 = vpop.permute.xlu0 %3119 }
 0x306   : > { %v2295_v27 = vadd.f32 %v2262_v25, %v2163_v54  ;;  %v3116_v13 = vpop.permute.xlu2 %3115  ;;  %v3123_v55 = vsel %vm480_vm2, %v3118_v33, %v3120_v50 }
 0x308   : > { %v2227_v28 = vpop.f32.mrf.mxu0  ;;  %v2246_v29 = vpop.f32.mrf.mxu1 }
 0x309   : > { %v2297_v30 = vadd.f32 %v2227_v28, %v2165_v49  ;;  %v2298_v31 = vadd.f32 %v2246_v29, %v2166_v56  ;;  %4950 = vmatmul.msk.bf16.gmra.mxu3 %vm278_vm1, %v5189_v26  ;;  %v3122_v49 = vsel %vm480_vm2, %v3116_v13, %v3118_v33  ;;  %v3114_v56 = vpop.permute.xlu1 %3113 }
 0x30a   : > { %4948 = vmatmul.msk.bf16.gmra.mxu2 %vm278_vm1, %v5189_v26  ;;  %v3121_v40 = vsel %vm480_vm2, %v3114_v56, %v3116_v13  ;;  %vm4428_vm2 = vcmask 23552  }
 0x30b   : > { %4944 = vmatmul.msk.bf16.gmra.mxu0 %vm278_vm1, %v5189_v26  ;;  %4946 = vmatmul.msk.bf16.gmra.mxu1 %vm278_vm1, %v5189_v26 }
 0x30c   : > { %v2284_v32 = vpop.f32.mrf.mxu3 }
 0x30d   : > { %v2300_v34 = vadd.f32 %v2284_v32, %v2168_v58  ;;  %v2265_v36 = vpop.f32.mrf.mxu2 }
 0x30e   : > { %v2299_v37 = vadd.f32 %v2265_v36, %v2167_v60 }
 0x310   : > { %v2229_v38 = vpop.f32.mrf.mxu0  ;;  %v2248_v41 = vpop.f32.mrf.mxu1 }
 0x311   : > { %v2301_v42 = vadd.f32 %v2229_v38, %v2169_v0  ;;  %v2302_v43 = vadd.f32 %v2248_v41, %v2170_v1 }
 0x314   : > { %v2286_v44 = vpop.f32.mrf.mxu3 }
 0x315   : > { %v2304_v45 = vadd.f32 %v2286_v44, %v2172_v3  ;;  %v2267_v46 = vpop.f32.mrf.mxu2 }
 0x316   : > { %v2303_v48 = vadd.f32 %v2267_v46, %v2171_v6 }
 0x318   : > { %v2354_v51 = vpop.f32.mrf.mxu0  ;;  %v2373_v52 = vpop.f32.mrf.mxu1 }
 0x319   : > { %v2421_v54 = vadd.f32 %v2354_v51, %v2289_v39  ;;  %v2422_v53 = vadd.f32 %v2373_v52, %v2290_v9  ;;  %4985 = vmatmul.msk.bf16.vlgmr.msra.gmra.mxu3 %vm278_vm1, %v5194_v47  ;;  %v3246_v9 = vpop.permute.xlu0 %3245 }
 0x31a   : > { %4983 = vmatmul.msk.bf16.vlgmr.msra.gmra.mxu2 %vm278_vm1, %v5194_v47  ;;  %3198 = vmatpush.bf16.msra.mxu3 %v3120_v50 }
 0x31b   : > { %4979 = vmatmul.msk.bf16.vlgmr.msra.gmra.mxu0 %vm278_vm1, %v5194_v47  ;;  %4981 = vmatmul.msk.bf16.vlgmr.msra.gmra.mxu1 %vm278_vm1, %v5194_v47  ;;  %v5197_v47 = vld [vmem:[%s7473_s1 + $0x158] sm:$0xff] }
 0x31c   : > { %v2411_v57 = vpop.f32.mrf.mxu3  ;;  %3160 = vmatpush.bf16.msra.mxu1 %v3122_v49  ;;  %3179 = vmatpush.bf16.msra.mxu2 %v3123_v55 }
 0x31d   : > { %v2424_v58 = vadd.f32 %v2411_v57, %v2292_v16  ;;  %v2392_v59 = vpop.f32.mrf.mxu2  ;;  %3141 = vmatpush.bf16.msra.mxu0 %v3121_v40 }
 0x31e   : > { %v2423_v60 = vadd.f32 %v2392_v59, %v2291_v19 }
 0x320   : > { %v2356_v62 = vpop.f32.mrf.mxu0  ;;  %v2375_v63 = vpop.f32.mrf.mxu1 }
 0x321   : > { %v2425_v0 = vadd.f32 %v2356_v62, %v2293_v22  ;;  %v2426_v1 = vadd.f32 %v2375_v63, %v2294_v23  ;;  %v5196_v22 = vld [vmem:[%s7473_s1 + $0x150] sm:$0xff]  ;;  %v3244_v24 = vpop.permute.xlu0 %3243 }
 0x322   : > { %v3250_v29 = vsel %vm609_vm3, %v3244_v24, %v3246_v9 }
 0x324   : > { %v2413_v2 = vpop.f32.mrf.mxu3 }
 0x325   : > { %v2428_v3 = vadd.f32 %v2413_v2, %v2296_v11  ;;  %v2394_v4 = vpop.f32.mrf.mxu2  ;;  %v3248_v11 = vpop.permute.xlu1 %3247 }
 0x326   : > { %v2427_v6 = vadd.f32 %v2394_v4, %v2295_v27 }
 0x328   : > { %v2359_v7 = vpop.f32.mrf.mxu0  ;;  %v2378_v8 = vpop.f32.mrf.mxu1 }
 0x329   : > { %v2429_v61 = vadd.f32 %v2359_v7, %v2297_v30  ;;  %v2430_v35 = vadd.f32 %v2378_v8, %v2298_v31  ;;  %4986 = vmatmul.msk.bf16.gmra.mxu3 %vm278_vm1, %v5195_v5  ;;  %v3251_v30 = vsel %vm609_vm3, %v3246_v9, %v3248_v11  ;;  %v3242_v31 = vpop.permute.xlu2 %3241 }
 0x32a   : > { %4984 = vmatmul.msk.bf16.gmra.mxu2 %vm278_vm1, %v5195_v5  ;;  %v3249_v32 = vsel %vm609_vm3, %v3242_v31, %v3244_v24  ;;  %vm4430_vm3 = vcmask 31744  }
 0x32b   : > { %4980 = vmatmul.msk.bf16.gmra.mxu0 %vm278_vm1, %v5195_v5  ;;  %4982 = vmatmul.msk.bf16.gmra.mxu1 %vm278_vm1, %v5195_v5 }
 0x32c   : > { %v2416_v39 = vpop.f32.mrf.mxu3 }
 0x32d   : > { %v2432_v10 = vadd.f32 %v2416_v39, %v2300_v34  ;;  %v2397_v12 = vpop.f32.mrf.mxu2 }
 0x32e   : > { %v2431_v14 = vadd.f32 %v2397_v12, %v2299_v37 }
 0x330   : > { %v2361_v15 = vpop.f32.mrf.mxu0  ;;  %v2380_v17 = vpop.f32.mrf.mxu1 }
 0x331   : > { %v2433_v16 = vadd.f32 %v2361_v15, %v2301_v42  ;;  %v2434_v18 = vadd.f32 %v2380_v17, %v2302_v43  ;;  %v3376_v2 = vpop.permute.xlu2 %3375 }
 0x334   : > { %v2418_v19 = vpop.f32.mrf.mxu3 }
 0x335   : > { %v2436_v20 = vadd.f32 %v2418_v19, %v2304_v45  ;;  %v2399_v21 = vpop.f32.mrf.mxu2 }
 0x336   : > { %v2435_v23 = vadd.f32 %v2399_v21, %v2303_v48 }
 0x338   : > { %v2486_v25 = vpop.f32.mrf.mxu0  ;;  %v2505_v26 = vpop.f32.mrf.mxu1 }
 0x339   : > { %v2553_v27 = vadd.f32 %v2486_v25, %v2421_v54  ;;  %v2554_v28 = vadd.f32 %v2505_v26, %v2422_v53  ;;  %5005 = vmatmul.msk.bf16.vlgmr.msrb.gmra.mxu3 %vm278_vm1, %v5196_v22  ;;  %v3374_v53 = vpop.permute.xlu1 %3373 }
 0x33a   : > { %5003 = vmatmul.msk.bf16.vlgmr.msrb.gmra.mxu2 %vm278_vm1, %v5196_v22  ;;  %3326 = vmatpush.bf16.msrb.mxu3 %v3248_v11  ;;  %v3379_v8 = vsel %vm738_vm4, %v3374_v53, %v3376_v2 }
 0x33b   : > { %4999 = vmatmul.msk.bf16.vlgmr.msrb.gmra.mxu0 %vm278_vm1, %v5196_v22  ;;  %5001 = vmatmul.msk.bf16.vlgmr.msrb.gmra.mxu1 %vm278_vm1, %v5196_v22  ;;  %v5199_v22 = vld [vmem:[%s7473_s1 + $0x168] sm:$0xff] }
 0x33c   : > { %v2543_v33 = vpop.f32.mrf.mxu3  ;;  %3288 = vmatpush.bf16.msrb.mxu1 %v3250_v29  ;;  %3307 = vmatpush.bf16.msrb.mxu2 %v3251_v30 }
 0x33d   : > { %v2556_v34 = vadd.f32 %v2543_v33, %v2424_v58  ;;  %v2524_v36 = vpop.f32.mrf.mxu2  ;;  %3269 = vmatpush.bf16.msrb.mxu0 %v3249_v32 }
 0x33e   : > { %v2555_v37 = vadd.f32 %v2524_v36, %v2423_v60 }
 0x340   : > { %v2488_v38 = vpop.f32.mrf.mxu0  ;;  %v2507_v41 = vpop.f32.mrf.mxu1 }
 0x341   : > { %v2557_v42 = vadd.f32 %v2488_v38, %v2425_v0  ;;  %v2558_v43 = vadd.f32 %v2507_v41, %v2426_v1  ;;  %v5198_v0 = vld [vmem:[%s7473_s1 + $0x160] sm:$0xff]  ;;  %v5200_v41 = vld [vmem:[%s7473_s1 + $0x170] sm:$0xff] }
 0x344   : > { %v2545_v44 = vpop.f32.mrf.mxu3 }
 0x345   : > { %v2560_v45 = vadd.f32 %v2545_v44, %v2428_v3  ;;  %v2526_v46 = vpop.f32.mrf.mxu2  ;;  %v3372_v3 = vpop.permute.xlu1 %3371 }
 0x346   : > { %v2559_v48 = vadd.f32 %v2526_v46, %v2427_v6 }
 0x348   : > { %v2491_v50 = vpop.f32.mrf.mxu0  ;;  %v2510_v13 = vpop.f32.mrf.mxu1 }
 0x349   : > { %v2561_v51 = vadd.f32 %v2491_v50, %v2429_v61  ;;  %v2562_v52 = vadd.f32 %v2510_v13, %v2430_v35  ;;  %5006 = vmatmul.msk.bf16.gmra.mxu3 %vm278_vm1, %v5197_v47  ;;  %v3378_v61 = vsel %vm738_vm4, %v3372_v3, %v3374_v53  ;;  %v3370_v35 = vpop.permute.xlu0 %3369 }
 0x34a   : > { %5004 = vmatmul.msk.bf16.gmra.mxu2 %vm278_vm1, %v5197_v47  ;;  %v3377_v39 = vsel %vm738_vm4, %v3370_v35, %v3372_v3  ;;  %v3483_v3 = vld [vmem:[%s7474_s2 + $0x8] sm:$0xff]  ;;  %vm4432_vm4 = vcmask 39936  }
 0x34b   : > { %5000 = vmatmul.msk.bf16.gmra.mxu0 %vm278_vm1, %v5197_v47  ;;  %5002 = vmatmul.msk.bf16.gmra.mxu1 %vm278_vm1, %v5197_v47 }
 0x34c   : > { %v2548_v54 = vpop.f32.mrf.mxu3 }
 0x34d   : > { %v2564_v55 = vadd.f32 %v2548_v54, %v2432_v10  ;;  %v2529_v49 = vpop.f32.mrf.mxu2 }
 0x34e   : > { %v2563_v56 = vadd.f32 %v2529_v49, %v2431_v14 }
 0x350   : > { %v2493_v40 = vpop.f32.mrf.mxu0  ;;  %v2512_v57 = vpop.f32.mrf.mxu1 }
 0x351   : > { %v2565_v58 = vadd.f32 %v2493_v40, %v2433_v16  ;;  %v2566_v59 = vadd.f32 %v2512_v57, %v2434_v18  ;;  %v5201_v40 = vld [vmem:[%s7473_s1 + $0x178] sm:$0xff] }
 0x354   : > { %v2550_v60 = vpop.f32.mrf.mxu3 }
 0x355   : > { %v2568_v62 = vadd.f32 %v2550_v60, %v2436_v20  ;;  %v2531_v63 = vpop.f32.mrf.mxu2 }
 0x356   : > { %v2567_v1 = vadd.f32 %v2531_v63, %v2435_v23 }
 0x358   : > { %v2618_v4 = vpop.f32.mrf.mxu0  ;;  %v2637_v5 = vpop.f32.mrf.mxu1 }
 0x359   : > { %v2685_v6 = vadd.f32 %v2618_v4, %v2553_v27  ;;  %v2686_v7 = vadd.f32 %v2637_v5, %v2554_v28  ;;  %5025 = vmatmul.msk.bf16.vlgmr.msra.gmra.mxu3 %vm278_vm1, %v5198_v0  ;;  %v5370_v4 = vmov 0  }
 0x35a   : > { %5023 = vmatmul.msk.bf16.vlgmr.msra.gmra.mxu2 %vm278_vm1, %v5198_v0  ;;  %3454 = vmatpush.bf16.msra.mxu3 %v3376_v2 }
 0x35b   : > { %5019 = vmatmul.msk.bf16.vlgmr.msra.gmra.mxu0 %vm278_vm1, %v5198_v0  ;;  %5021 = vmatmul.msk.bf16.vlgmr.msra.gmra.mxu1 %vm278_vm1, %v5198_v0 }
 0x35c   : > { %v2675_v9 = vpop.f32.mrf.mxu3  ;;  %3416 = vmatpush.bf16.msra.mxu1 %v3378_v61  ;;  %3435 = vmatpush.bf16.msra.mxu2 %v3379_v8 }
 0x35d   : > { %v2688_v10 = vadd.f32 %v2675_v9, %v2556_v34  ;;  %v2656_v12 = vpop.f32.mrf.mxu2  ;;  %3397 = vmatpush.bf16.msra.mxu0 %v3377_v39  ;;  %5285 = vset.pattern.permute.xlu0 %v5370_v4  ;;  %v5202_v9 = vld [vmem:[%s7473_s1 + $0x180] sm:$0xff] }
 0x35e   : > { %v2687_v14 = vadd.f32 %v2656_v12, %v2555_v37  ;;  %5286 = vset.pattern.permute.xlu1 %v5370_v4  ;;  %3493 = vperm.xlu0 %5285, %v3483_v3   ;;  %v3482_v12 = vld [vmem:[%s7474_s2] sm:$0xff] }
 0x35f   : > { %5284 = vset.pattern.permute.xlu2 %v5370_v4 }
 0x360   : > { %v2620_v15 = vpop.f32.mrf.mxu0  ;;  %v2639_v17 = vpop.f32.mrf.mxu1  ;;  %3488 = vperm.xlu2 %5284, %v3482_v12  }
 0x361   : > { %v2689_v16 = vadd.f32 %v2620_v15, %v2557_v42  ;;  %v2690_v18 = vadd.f32 %v2639_v17, %v2558_v43 }
 0x364   : > { %v2677_v19 = vpop.f32.mrf.mxu3 }
 0x365   : > { %v2692_v20 = vadd.f32 %v2677_v19, %v2560_v45  ;;  %v2658_v21 = vpop.f32.mrf.mxu2 }
 0x366   : > { %v2691_v23 = vadd.f32 %v2658_v21, %v2559_v48 }
 0x368   : > { %v2623_v24 = vpop.f32.mrf.mxu0  ;;  %v2642_v11 = vpop.f32.mrf.mxu1 }
 0x369   : > { %v2693_v25 = vadd.f32 %v2623_v24, %v2561_v51  ;;  %v2694_v26 = vadd.f32 %v2642_v11, %v2562_v52  ;;  %5026 = vmatmul.msk.bf16.gmra.mxu3 %vm278_vm1, %v5199_v22 }
 0x36a   : > { %5024 = vmatmul.msk.bf16.gmra.mxu2 %vm278_vm1, %v5199_v22 }
 0x36b   : > { %5020 = vmatmul.msk.bf16.gmra.mxu0 %vm278_vm1, %v5199_v22  ;;  %5022 = vmatmul.msk.bf16.gmra.mxu1 %vm278_vm1, %v5199_v22 }
 0x36c   : > { %v2680_v27 = vpop.f32.mrf.mxu3 }
 0x36d   : > { %v2696_v28 = vadd.f32 %v2680_v27, %v2564_v55  ;;  %v2661_v29 = vpop.f32.mrf.mxu2 }
 0x36e   : > { %v2695_v30 = vadd.f32 %v2661_v29, %v2563_v56 }
 0x370   : > { %v2625_v31 = vpop.f32.mrf.mxu0  ;;  %v2644_v32 = vpop.f32.mrf.mxu1 }
 0x371   : > { %v2697_v33 = vadd.f32 %v2625_v31, %v2565_v58  ;;  %v2698_v34 = vadd.f32 %v2644_v32, %v2566_v59 }
 0x374   : > { %v2682_v36 = vpop.f32.mrf.mxu3 }
 0x375   : > { %v2700_v37 = vadd.f32 %v2682_v36, %v2568_v62  ;;  %v2663_v38 = vpop.f32.mrf.mxu2 }
 0x376   : > { %v2699_v42 = vadd.f32 %v2663_v38, %v2567_v1 }
 0x378   : > { %v2750_v43 = vpop.f32.mrf.mxu0  ;;  %v2769_v44 = vpop.f32.mrf.mxu1 }
 0x379   : > { %v2817_v45 = vadd.f32 %v2750_v43, %v2685_v6  ;;  %v2818_v46 = vadd.f32 %v2769_v44, %v2686_v7  ;;  %5045 = vmatmul.msk.bf16.vlgmr.msrb.gmra.mxu3 %vm278_vm1, %v5200_v41 }
 0x37a   : > { %5043 = vmatmul.msk.bf16.vlgmr.msrb.gmra.mxu2 %vm278_vm1, %v5200_v41 }
 0x37b   : > { %5039 = vmatmul.msk.bf16.vlgmr.msrb.gmra.mxu0 %vm278_vm1, %v5200_v41  ;;  %5041 = vmatmul.msk.bf16.vlgmr.msrb.gmra.mxu1 %vm278_vm1, %v5200_v41 }
 0x37c   : > { %v2807_v47 = vpop.f32.mrf.mxu3 }
 0x37d   : > { %v2820_v48 = vadd.f32 %v2807_v47, %v2688_v10  ;;  %v2788_v50 = vpop.f32.mrf.mxu2 }
 0x37e   : > { %v2819_v13 = vadd.f32 %v2788_v50, %v2687_v14  ;;  %v3484_v14 = vld [vmem:[%s7474_s2 + $0x10] sm:$0xff] }
 0x37f   : > { %3498 = vperm.xlu1 %5286, %v3484_v14  }
 0x380   : > { %v2752_v51 = vpop.f32.mrf.mxu0  ;;  %v2771_v52 = vpop.f32.mrf.mxu1 }
 0x381   : > { %v2821_v54 = vadd.f32 %v2752_v51, %v2689_v16  ;;  %v2822_v53 = vadd.f32 %v2771_v52, %v2690_v18 }
 0x384   : > { %v2809_v55 = vpop.f32.mrf.mxu3 }
 0x385   : > { %v2824_v49 = vadd.f32 %v2809_v55, %v2692_v20  ;;  %v2790_v56 = vpop.f32.mrf.mxu2 }
 0x386   : > { %v2823_v57 = vadd.f32 %v2790_v56, %v2691_v23  ;;  %v3485_v23 = vld [vmem:[%s7474_s2 + $0x18] sm:$0xff] }
 0x387   : > { %3503 = vperm.xlu2 %5284, %v3485_v23  }
 0x388   : > { %v2755_v58 = vpop.f32.mrf.mxu0  ;;  %v2774_v59 = vpop.f32.mrf.mxu1 }
 0x389   : > { %v2825_v60 = vadd.f32 %v2755_v58, %v2693_v25  ;;  %v2826_v62 = vadd.f32 %v2774_v59, %v2694_v26  ;;  %5046 = vmatmul.msk.bf16.gmra.mxu3 %vm278_vm1, %v5201_v40 }
 0x38a   : > { %5044 = vmatmul.msk.bf16.gmra.mxu2 %vm278_vm1, %v5201_v40 }
 0x38b   : > { %5040 = vmatmul.msk.bf16.gmra.mxu0 %vm278_vm1, %v5201_v40  ;;  %5042 = vmatmul.msk.bf16.gmra.mxu1 %vm278_vm1, %v5201_v40 }
 0x38c   : > { %v2812_v63 = vpop.f32.mrf.mxu3 }
 0x38d   : > { %v2828_v0 = vadd.f32 %v2812_v63, %v2696_v28  ;;  %v2793_v1 = vpop.f32.mrf.mxu2 }
 0x38e   : > { %v2827_v2 = vadd.f32 %v2793_v1, %v2695_v30  ;;  %v5203_v30 = vld [vmem:[%s7473_s1 + $0x188] sm:$0xff] }
 0x390   : > { %v2757_v5 = vpop.f32.mrf.mxu0  ;;  %v2776_v6 = vpop.f32.mrf.mxu1 }
 0x391   : > { %v2829_v7 = vadd.f32 %v2757_v5, %v2697_v33  ;;  %v2830_v8 = vadd.f32 %v2776_v6, %v2698_v34 }
 0x394   : > { %v2814_v61 = vpop.f32.mrf.mxu3 }
 0x395   : > { %v2832_v35 = vadd.f32 %v2814_v61, %v2700_v37  ;;  %v2795_v39 = vpop.f32.mrf.mxu2 }
 0x396   : > { %v2831_v10 = vadd.f32 %v2795_v39, %v2699_v42 }
 0x398   : > { %v2887_v15 = vpop.f32.mrf.mxu0  ;;  %v2906_v17 = vpop.f32.mrf.mxu1 }
 0x399   : > { %v2954_v16 = vadd.f32 %v2887_v15, %v2817_v45  ;;  %v2955_v18 = vadd.f32 %v2906_v17, %v2818_v46  ;;  %5065 = vmatmul.msk.bf16.vlgmr.msra.gmra.mxu3 %vm278_vm1, %v5202_v9 }
 0x39a   : > { %5063 = vmatmul.msk.bf16.vlgmr.msra.gmra.mxu2 %vm278_vm1, %v5202_v9 }
 0x39b   : > { %5059 = vmatmul.msk.bf16.vlgmr.msra.gmra.mxu0 %vm278_vm1, %v5202_v9  ;;  %5061 = vmatmul.msk.bf16.vlgmr.msra.gmra.mxu1 %vm278_vm1, %v5202_v9 }
 0x39c   : > { %v2944_v19 = vpop.f32.mrf.mxu3 }
 0x39d   : > { %v2957_v20 = vadd.f32 %v2944_v19, %v2820_v48  ;;  %v2925_v21 = vpop.f32.mrf.mxu2 }
 0x39e   : > { %v2956_v22 = vadd.f32 %v2925_v21, %v2819_v13 }
 0x3a0   : > { %v2889_v24 = vpop.f32.mrf.mxu0  ;;  %v2908_v11 = vpop.f32.mrf.mxu1 }
 0x3a1   : > { %v2958_v25 = vadd.f32 %v2889_v24, %v2821_v54  ;;  %v2959_v26 = vadd.f32 %v2908_v11, %v2822_v53 }
 0x3a4   : > { %v2946_v27 = vpop.f32.mrf.mxu3 }
 0x3a5   : > { %v2961_v28 = vadd.f32 %v2946_v27, %v2824_v49  ;;  %v2927_v29 = vpop.f32.mrf.mxu2 }
 0x3a6   : > { %v2960_v31 = vadd.f32 %v2927_v29, %v2823_v57 }
 0x3a8   : > { %v2892_v32 = vpop.f32.mrf.mxu0  ;;  %v2911_v33 = vpop.f32.mrf.mxu1 }
 0x3a9   : > { %v2962_v34 = vadd.f32 %v2892_v32, %v2825_v60  ;;  %v2963_v36 = vadd.f32 %v2911_v33, %v2826_v62  ;;  %5066 = vmatmul.msk.bf16.gmra.mxu3 %vm278_vm1, %v5203_v30 }
 0x3aa   : > { %5064 = vmatmul.msk.bf16.gmra.mxu2 %vm278_vm1, %v5203_v30 }
 0x3ab   : > { %5060 = vmatmul.msk.bf16.gmra.mxu0 %vm278_vm1, %v5203_v30  ;;  %5062 = vmatmul.msk.bf16.gmra.mxu1 %vm278_vm1, %v5203_v30  ;;  %vm4426_vm1 = vcmask 15360  }
 0x3ac   : > { %v2949_v37 = vpop.f32.mrf.mxu3 }
 0x3ad   : > { %v2965_v38 = vadd.f32 %v2949_v37, %v2828_v0  ;;  %v2930_v41 = vpop.f32.mrf.mxu2 }
 0x3ae   : > { %v2964_v42 = vadd.f32 %v2930_v41, %v2827_v2 }
 0x3b0   : > { %v2894_v43 = vpop.f32.mrf.mxu0  ;;  %v2913_v44 = vpop.f32.mrf.mxu1 }
 0x3b1   : > { %v2966_v45 = vadd.f32 %v2894_v43, %v2829_v7  ;;  %v2967_v46 = vadd.f32 %v2913_v44, %v2830_v8 }
 0x3b4   : > { %v2951_v47 = vpop.f32.mrf.mxu3 }
 0x3b5   : > { %v2969_v48 = vadd.f32 %v2951_v47, %v2832_v35  ;;  %v2932_v50 = vpop.f32.mrf.mxu2 }
 0x3b6   : > { %v2968_v13 = vadd.f32 %v2932_v50, %v2831_v10 }
 0x3b8   : > { %v3015_v51 = vpop.f32.mrf.mxu0  ;;  %v3034_v52 = vpop.f32.mrf.mxu1 }
 0x3b9   : > { %v6411_v54 = vadd.f32 %v3015_v51, %v2954_v16  ;;  %v6413_v53 = vadd.f32 %v3034_v52, %v2955_v18 }
 0x3bc   : > { %v3072_v55 = vpop.f32.mrf.mxu3 }
 0x3bd   : > { %v6415_v49 = vadd.f32 %v3072_v55, %v2957_v20  ;;  %v3053_v56 = vpop.f32.mrf.mxu2 }
 0x3be   : > { %v6417_v40 = vadd.f32 %v3053_v56, %v2956_v22 }
 0x3c0   : > { %v3017_v57 = vpop.f32.mrf.mxu0  ;;  %v3036_v58 = vpop.f32.mrf.mxu1 }
 0x3c1   : > { %v6419_v59 = vadd.f32 %v3017_v57, %v2958_v25  ;;  %v3087_v60 = vadd.f32 %v3036_v58, %v2959_v26 }
 0x3c4   : > { %v3074_v62 = vpop.f32.mrf.mxu3 }
 0x3c5   : > { %v6421_v63 = vadd.f32 %v3074_v62, %v2961_v28  ;;  %v3055_v0 = vpop.f32.mrf.mxu2 }
 0x3c6   : > { %v6423_v1 = vadd.f32 %v3055_v0, %v2960_v31 }
 0x3c8   : > { %v3020_v2 = vpop.f32.mrf.mxu0  ;;  %v3039_v3 = vpop.f32.mrf.mxu1 }
 0x3c9   : > { %v3090_v4 = vadd.f32 %v3020_v2, %v2962_v34  ;;  %v3091_v5 = vadd.f32 %v3039_v3, %v2963_v36 }
 0x3cc   : > { %v3077_v6 = vpop.f32.mrf.mxu3 }
 0x3cd   : > { %v3093_v7 = vadd.f32 %v3077_v6, %v2965_v38  ;;  %v3058_v8 = vpop.f32.mrf.mxu2 }
 0x3ce   : > { %v6425_v61 = vadd.f32 %v3058_v8, %v2964_v42 }
 0x3d0   : > { %v3022_v35 = vpop.f32.mrf.mxu0  ;;  %v3041_v39 = vpop.f32.mrf.mxu1 }
 0x3d1   : > { %v3094_v9 = vadd.f32 %v3022_v35, %v2966_v45  ;;  %v3095_v10 = vadd.f32 %v3041_v39, %v2967_v46 }
 0x3d4   : > { %v3079_v12 = vpop.f32.mrf.mxu3 }
 0x3d5   : > { %v3097_v14 = vadd.f32 %v3079_v12, %v2969_v48  ;;  %v3060_v15 = vpop.f32.mrf.mxu2 }
 0x3d6   : > { %v3096_v17 = vadd.f32 %v3060_v15, %v2968_v13 }
 0x3d8   : > { %v3143_v16 = vpop.f32.mrf.mxu0  ;;  %v3162_v18 = vpop.f32.mrf.mxu1 }
 0x3d9   : > { %v3210_v62 = vadd.f32 %v3143_v16, %v6411_v54  ;;  %v3211_v0 = vadd.f32 %v3162_v18, %v6413_v53 }
 0x3dc   : > { %v3200_v19 = vpop.f32.mrf.mxu3 }
 0x3dd   : > { %v3181_v20 = vpop.f32.mrf.mxu2 }
 0x3de   : > { %v3212_v39 = vadd.f32 %v3181_v20, %v6417_v40  ;;  %v3494_v40 = vpop.permute.xlu0 %3493 }
 0x3e0   : > { %v3145_v21 = vpop.f32.mrf.mxu0  ;;  %v3164_v22 = vpop.f32.mrf.mxu1 }
 0x3e1   : > { %v3215_v23 = vadd.f32 %v3164_v22, %v3087_v60  ;;  %v3214_v15 = vadd.f32 %v3145_v21, %v6419_v59 }
 0x3e4   : > { %v6427_v24 = vpop.f32.mrf.mxu3 }
 0x3e5   : > { %v6429_v11 = vpop.f32.mrf.mxu2 }
 0x3e8   : > { %v3148_v25 = vpop.f32.mrf.mxu0  ;;  %v3167_v26 = vpop.f32.mrf.mxu1 }
 0x3e9   : > { %v6431_v27 = vadd.f32 %v3148_v25, %v3090_v4  ;;  %v6433_v28 = vadd.f32 %v3167_v26, %v3091_v5  ;;  %v3217_v26 = vadd.f32 %v6427_v24, %v6421_v63 }
 0x3ec   : > { %v3205_v29 = vpop.f32.mrf.mxu3 }
 0x3ed   : > { %v6435_v30 = vadd.f32 %v3205_v29, %v3093_v7  ;;  %v6437_v31 = vpop.f32.mrf.mxu2  ;;  %v3213_v7 = vadd.f32 %v3200_v19, %v6415_v49 }
 0x3f0   : > { %v3150_v32 = vpop.f32.mrf.mxu0  ;;  %v3169_v33 = vpop.f32.mrf.mxu1 }
 0x3f1   : > { %v6439_v34 = vadd.f32 %v3150_v32, %v3094_v9  ;;  %v6441_v36 = vadd.f32 %v3169_v33, %v3095_v10  ;;  %v3489_v9 = vpop.permute.xlu2 %3488  ;;  %v3216_v33 = vadd.f32 %v6429_v11, %v6423_v1 }
 0x3f4   : > { %v3207_v37 = vpop.f32.mrf.mxu3 }
 0x3f5   : > { %v6443_v38 = vadd.f32 %v3207_v37, %v3097_v14  ;;  %v3188_v41 = vpop.f32.mrf.mxu2 }
 0x3f6   : > { %v6445_v42 = vadd.f32 %v3188_v41, %v3096_v17 }
 0x3f8   : > { %v3271_v43 = vpop.f32.mrf.mxu0  ;;  %v3290_v44 = vpop.f32.mrf.mxu1 }
 0x3f9   : > { %v3338_v3 = vadd.f32 %v3271_v43, %v3210_v62  ;;  %v3339_v4 = vadd.f32 %v3290_v44, %v3211_v0 }
 0x3fc   : > { %v3328_v45 = vpop.f32.mrf.mxu3 }
 0x3fd   : > { %v3309_v46 = vpop.f32.mrf.mxu2  ;;  %v3341_v10 = vadd.f32 %v3328_v45, %v3213_v7  ;;  %v3499_v7 = vpop.permute.xlu1 %3498 }
 0x3fe   : > { %v3340_v54 = vadd.f32 %v3309_v46, %v3212_v39 }
 0x400   : > { %v3273_v47 = vpop.f32.mrf.mxu0  ;;  %v3292_v48 = vpop.f32.mrf.mxu1 }
 0x401   : > { %v3342_v22 = vadd.f32 %v3273_v47, %v3214_v15  ;;  %v3343_v20 = vadd.f32 %v3292_v48, %v3215_v23 }
 0x404   : > { %v3330_v50 = vpop.f32.mrf.mxu3 }
 0x405   : > { %v3311_v13 = vpop.f32.mrf.mxu2  ;;  %v3345_v43 = vadd.f32 %v3330_v50, %v3217_v26 }
 0x406   : > { %v3344_v23 = vadd.f32 %v3311_v13, %v3216_v33 }
 0x408   : > { %v3276_v51 = vpop.f32.mrf.mxu0  ;;  %v6447_v52 = vpop.f32.mrf.mxu1 }
 0x409   : > { %v3346_v11 = vadd.f32 %v3276_v51, %v6431_v27 }
 0x40c   : > { %v6449_v55 = vpop.f32.mrf.mxu3 }
 0x40d   : > { %v6451_v56 = vpop.f32.mrf.mxu2 }
 0x410   : > { %v6453_v57 = vpop.f32.mrf.mxu0  ;;  %v6455_v58 = vpop.f32.mrf.mxu1 }
 0x414   : > { %v6457_v60 = vpop.f32.mrf.mxu3 }
 0x415   : > { %v6461_v2 = vpop.f32.mrf.mxu2 }
 0x418   : > { %v3399_v5 = vpop.f32.mrf.mxu0  ;;  %v3418_v6 = vpop.f32.mrf.mxu1 }
 0x419   : > { %v3466_v8 = vadd.f32 %v3399_v5, %v3338_v3  ;;  %v3467_v35 = vadd.f32 %v3418_v6, %v3339_v4  ;;  %v3220_v3 = vadd.f32 %v6437_v31, %v6425_v61  ;;  %v3347_v6 = vadd.f32 %v6447_v52, %v6433_v28 }
 0x41a   : > { %v3349_v28 = vadd.f32 %v6449_v55, %v6435_v30 }
 0x41b   : > { %v6465_v12 = vadd.f32 %v3489_v9, %v3466_v8  ;;  %v6467_v14 = vadd.f32 %v3489_v9, %v3467_v35  ;;  %v3348_v8 = vadd.f32 %v6451_v56, %v3220_v3 }
 0x41c   : > { %v3456_v53 = vpop.f32.mrf.mxu3 }
 0x41d   : > { %v3522_v17 = vmax.f32 %v6465_v12, 0.0  ;;  %v3523_v16 = vmax.f32 %v6467_v14, 0.0  ;;  %v3469_v18 = vadd.f32 %v3456_v53, %v3341_v10  ;;  %v3437_v49 = vpop.f32.mrf.mxu2 }
 0x41e   : > { %v3468_v19 = vadd.f32 %v3437_v49, %v3340_v54  ;;  %v3351_v49 = vadd.f32 %v6455_v58, %v6441_v36  ;;  %v3504_v36 = vpop.permute.xlu2 %3503 }
 0x41f   : > { %3556 = vrot.lane.b32.xlu2 %v3523_v16, %s5351_s10  ;;  %3554 = vrot.lane.b32.xlu1 %v3522_v17, %s5351_s10  ;;  %v6482_v29 = vadd.f32 %v3489_v9, %v3469_v18  ;;  %v3350_v18 = vadd.f32 %v6453_v57, %v6439_v34  ;;  %v3352_v34 = vadd.f32 %v6461_v2, %v6445_v42 }
 0x420   : > { %v6478_v25 = vadd.f32 %v3489_v9, %v3468_v19  ;;  %v3401_v59 = vpop.f32.mrf.mxu0  ;;  %v3420_v21 = vpop.f32.mrf.mxu1 }
 0x421   : > { %v3470_v32 = vadd.f32 %v3401_v59, %v3342_v22  ;;  %v3471_v41 = vadd.f32 %v3420_v21, %v3343_v20  ;;  %v3525_v63 = vmax.f32 %v6482_v29, 0.0 }
 0x422   : > { %v3524_v37 = vmax.f32 %v6478_v25, 0.0 }
 0x423   : > { %v6487_v44 = vadd.f32 %v3494_v40, %v3470_v32  ;;  %v6494_v1 = vadd.f32 %v3494_v40, %v3471_v41  ;;  %v3353_v32 = vadd.f32 %v6457_v60, %v6443_v38 }
 0x424   : > { %v3458_v45 = vpop.f32.mrf.mxu3  ;;  %3558 = vrot.lane.b32.xlu0 %v3524_v37, %s5351_s10 }
 0x425   : > { %v3473_v24 = vadd.f32 %v3458_v45, %v3345_v43  ;;  %v3439_v46 = vpop.f32.mrf.mxu2  ;;  %v3526_v47 = vmax.f32 %v6487_v44, 0.0  ;;  %v3527_v5 = vmax.f32 %v6494_v1, 0.0 }
 0x426   : > { %v3472_v48 = vadd.f32 %v3439_v46, %v3344_v23 }
 0x427   : > { %3560 = vrot.lane.b32.xlu1 %v3525_v63, %s5351_s10  ;;  %3562 = vrot.lane.b32.xlu2 %v3526_v47, %s5351_s10  ;;  %v6503_v62 = vadd.f32 %v3494_v40, %v3473_v24 }
 0x428   : > { %v3404_v50 = vpop.f32.mrf.mxu0  ;;  %v3423_v13 = vpop.f32.mrf.mxu1  ;;  %v6505_v0 = vadd.f32 %v3494_v40, %v3472_v48 }
 0x429   : > { %v3474_v4 = vadd.f32 %v3404_v50, %v3346_v11  ;;  %v3529_v27 = vmax.f32 %v6503_v62, 0.0  ;;  %v3475_v35 = vadd.f32 %v3423_v13, %v3347_v6 }
 0x42a   : > { %v3528_v51 = vmax.f32 %v6505_v0, 0.0 }
 0x42b   : > { %v6518_v31 = vadd.f32 %v3499_v7, %v3474_v4  ;;  %v6530_v56 = vadd.f32 %v3499_v7, %v3475_v35 }
 0x42c   : > { %3564 = vrot.lane.b32.xlu0 %v3527_v5, %s5351_s10  ;;  %v3461_v9 = vpop.f32.mrf.mxu3 }
 0x42d   : > { %v3442_v39 = vpop.f32.mrf.mxu2  ;;  %v3477_v10 = vadd.f32 %v3461_v9, %v3349_v28  ;;  %v3530_v15 = vmax.f32 %v6518_v31, 0.0  ;;  %v3531_v22 = vmax.f32 %v6530_v56, 0.0 }
 0x42e   : > { %v3476_v61 = vadd.f32 %v3442_v39, %v3348_v8 }
 0x42f   : > { %3566 = vrot.lane.b32.xlu1 %v3528_v51, %s5351_s10  ;;  %3568 = vrot.lane.b32.xlu2 %v3529_v27, %s5351_s10  ;;  %v6542_v40 = vadd.f32 %v3499_v7, %v3477_v10 }
 0x430   : > { %v6528_v52 = vadd.f32 %v3499_v7, %v3476_v61  ;;  %v3406_v54 = vpop.f32.mrf.mxu0  ;;  %v3425_v53 = vpop.f32.mrf.mxu1 }
 0x431   : > { %v3478_v55 = vadd.f32 %v3406_v54, %v3350_v18  ;;  %v3479_v19 = vadd.f32 %v3425_v53, %v3351_v49  ;;  %v3533_v59 = vmax.f32 %v6542_v40, 0.0  ;;  %v6674_v40 = vld [vmem:[%s7475_s3 + $0x48] sm:$0xff] }
 0x432   : > { %v3532_v30 = vmax.f32 %v6528_v52, 0.0 }
 0x433   : > { %v6550_v57 = vadd.f32 %v3504_v36, %v3478_v55  ;;  %v6552_v58 = vadd.f32 %v3504_v36, %v3479_v19 }
 0x434   : > { %3570 = vrot.lane.b32.xlu0 %v3530_v15, %s5351_s10  ;;  %v3463_v21 = vpop.f32.mrf.mxu3 }
 0x435   : > { %v3444_v20 = vpop.f32.mrf.mxu2  ;;  %v3534_v33 = vmax.f32 %v6550_v57, 0.0  ;;  %v3535_v41 = vmax.f32 %v6552_v58, 0.0  ;;  %v3481_v43 = vadd.f32 %v3463_v21, %v3353_v32  ;;  %v6694_v57 = vld [vmem:[%s7475_s3 + $0x40] sm:$0xff] }
 0x436   : > { %v3480_v26 = vadd.f32 %v3444_v20, %v3352_v34  ;;  %v6679_v20 = vld [vmem:[%s7475_s3 + $0x8] sm:$0xff]  ;;  %v6699_v58 = vld [vmem:[%s7475_s3] sm:$0xff] }
 0x437   : > { %3574 = vrot.lane.b32.xlu2 %v3532_v30, %s5351_s10  ;;  %3572 = vrot.lane.b32.xlu1 %v3531_v22, %s5351_s10  ;;  %v3521_v2 = vadd.f32 %v3504_v36, %v3481_v43  ;;  %v6684_v34 = vld [vmem:[%s7475_s3 + $0xc8] sm:$0xff]  ;;  %v3735_v32 = vunpack.c.h.bf16 %v6679_v20 }
 0x438   : > { %v6560_v42 = vadd.f32 %v3504_v36, %v3480_v26  ;;  %v6689_v36 = vld [vmem:[%s7475_s3 + $0x80] sm:$0xff]  ;;  %v3806_v26 = vunpack.c.h.bf16 %v6674_v40 }
 0x439   : > { %v3537_v38 = vmax.f32 %v3521_v2, 0.0  ;;  %v3803_v2 = vunpack.c.l.bf16 %v6694_v57 }
 0x43a   : > { %v3536_v23 = vmax.f32 %v6560_v42, 0.0  ;;  %v3873_v42 = vunpack.c.l.bf16 %v6689_v36 }
 0x43c   : > { %3576 = vrot.lane.b32.xlu0 %v3533_v59, %s5351_s10 }
 0x43f   : > { %3580 = vrot.lane.b32.xlu2 %v3535_v41, %s5351_s10  ;;  %3578 = vrot.lane.b32.xlu1 %v3534_v33, %s5351_s10 }
 0x444   : > { %3582 = vrot.lane.b32.xlu0 %v3536_v23, %s5351_s10 }
 0x447   : > { %3584 = vrot.lane.b32.xlu1 %v3537_v38, %s5351_s10 }
 0x479   : > { %v3557_v60 = vpop.permute.xlu2 %3556 }
 0x481   : > { %v3563_v46 = vpop.permute.xlu2 %3562 }
 0x491   : > { %v3555_v45 = vpop.permute.xlu1 %3554 }
 0x492   : > { %v3587_v24 = vsel %vm270_vm0, %v3555_v45, %v3557_v60  ;;  %v3874_v45 = vunpack.c.h.bf16 %v6689_v36  ;;  %v6891_v36 = vld [vmem:[%s7475_s3 + $0x68] sm:$0xff] }
 0x493   : > { %v6572_v48 = vmax.f32 %v3522_v17, %v3587_v24  ;;  %v3569_v17 = vpop.permute.xlu2 %3568  ;;  %v7481_v24 = vunpack.c.l.bf16 %v6674_v40  ;;  %v6919_v40 = vld [vmem:[%s7475_s3 + $0xb0] sm:$0xff] }
 0x494   : > { %v6616_v35 = vmax.f32 %v3529_v27, %v3569_v17 }
 0x495   : > { %3647 = vrot.lane.b32.xlu2 %v6572_v48, %s5355_s14 }
 0x496   : > { %v3559_v11 = vpop.permute.xlu0 %3558 }
 0x497   : > { %v3588_v50 = vsel %vm270_vm0, %v3557_v60, %v3559_v11  ;;  %v6726_v60 = vld [vmem:[%s7475_s3 + $0xb8] sm:$0xff] }
 0x498   : > { %v6579_v13 = vmax.f32 %v3523_v16, %v3588_v50 }
 0x499   : > { %v3561_v3 = vpop.permute.xlu1 %3560 }
 0x49a   : > { %v3589_v4 = vsel %vm270_vm0, %v3559_v11, %v3561_v3  ;;  %v3618_v6 = vmax.f32 %v3525_v63, %v3561_v3  ;;  %3649 = vrot.lane.b32.xlu0 %v6579_v13, %s5355_s14  ;;  %v3804_v11 = vunpack.c.h.bf16 %v6694_v57  ;;  %v6740_v3 = vld [vmem:[%s7475_s3 + $0x90] sm:$0xff] }
 0x49b   : > { %v6588_v12 = vmax.f32 %v3524_v37, %v3589_v4  ;;  %v6745_v4 = vld [vmem:[%s7475_s3 + $0x50] sm:$0xff] }
 0x49d   : > { %3653 = vrot.lane.b32.xlu2 %v3618_v6, %s5355_s14  ;;  %3651 = vrot.lane.b32.xlu1 %v6588_v12, %s5355_s14 }
 0x49e   : > { %v3565_v14 = vpop.permute.xlu0 %3564 }
 0x49f   : > { %v3590_v16 = vsel %vm270_vm0, %v3563_v46, %v3565_v14  ;;  %v6733_v46 = vld [vmem:[%s7475_s3 + $0x78] sm:$0xff] }
 0x4a0   : > { %v6596_v29 = vmax.f32 %v3526_v47, %v3590_v16  ;;  %v3575_v47 = vpop.permute.xlu2 %3574 }
 0x4a1   : > { %v3567_v63 = vpop.permute.xlu1 %3566 }
 0x4a2   : > { %v3591_v7 = vsel %vm270_vm0, %v3565_v14, %v3567_v63  ;;  %v3592_v25 = vsel %vm270_vm0, %v3567_v63, %v3569_v17  ;;  %3655 = vrot.lane.b32.xlu0 %v6596_v29, %s5355_s14  ;;  %v3733_v17 = vunpack.c.h.bf16 %v6699_v58 }
 0x4a3   : > { %v6604_v37 = vmax.f32 %v3527_v5, %v3591_v7  ;;  %v6608_v8 = vmax.f32 %v3528_v51, %v3592_v25 }
 0x4a5   : > { %3659 = vrot.lane.b32.xlu2 %v6608_v8, %s5355_s14  ;;  %3657 = vrot.lane.b32.xlu1 %v6604_v37, %s5355_s14 }
 0x4a6   : > { %v3571_v44 = vpop.permute.xlu0 %3570 }
 0x4a8   : > { %v3581_v9 = vpop.permute.xlu2 %3580 }
 0x4a9   : > { %v3573_v39 = vpop.permute.xlu1 %3572 }
 0x4aa   : > { %v3593_v1 = vsel %vm270_vm0, %v3571_v44, %v3573_v39  ;;  %v3594_v5 = vsel %vm270_vm0, %v3573_v39, %v3575_v47  ;;  %3661 = vrot.lane.b32.xlu0 %v6616_v35, %s5355_s14  ;;  %v6761_v44 = vld [vmem:[%s7475_s3 + $0x10] sm:$0xff] }
 0x4ab   : > { %v6624_v0 = vmax.f32 %v3530_v15, %v3593_v1  ;;  %v6626_v51 = vmax.f32 %v3531_v22, %v3594_v5  ;;  %v6669_v22 = vld [vmem:[%s7475_s3 + $0x88] sm:$0xff]  ;;  %v6819_v5 = vld [vmem:[%s7475_s3 + $0x60] sm:$0xff] }
 0x4ac   : > { %v3876_v21 = vunpack.c.h.bf16 %v6669_v22 }
 0x4ad   : > { %3665 = vrot.lane.b32.xlu2 %v6626_v51, %s5355_s14  ;;  %3663 = vrot.lane.b32.xlu1 %v6624_v0, %s5355_s14 }
 0x4ae   : > { %v3577_v62 = vpop.permute.xlu0 %3576 }
 0x4af   : > { %v3595_v27 = vsel %vm270_vm0, %v3575_v47, %v3577_v62  ;;  %v6640_v56 = vmax.f32 %v3533_v59, %v3577_v62  ;;  %v6766_v47 = vld [vmem:[%s7475_s3 + $0xf8] sm:$0xff] }
 0x4b0   : > { %v6635_v61 = vmax.f32 %v3532_v30, %v3595_v27 }
 0x4b1   : > { %v3579_v28 = vpop.permute.xlu1 %3578 }
 0x4b2   : > { %v3596_v31 = vsel %vm270_vm0, %v3579_v28, %v3581_v9  ;;  %3667 = vrot.lane.b32.xlu0 %v6635_v61, %s5355_s14 }
 0x4b3   : > { %v6642_v10 = vmax.f32 %v3534_v33, %v3596_v31  ;;  %v6710_v33 = vld [vmem:[%s7475_s3 + $0xc0] sm:$0xff]  ;;  %v6782_v31 = vld [vmem:[%s7475_s3 + $0x98] sm:$0xff] }
 0x4b5   : > { %3669 = vrot.lane.b32.xlu1 %v6640_v56, %s5355_s14  ;;  %3671 = vrot.lane.b32.xlu2 %v6642_v10, %s5355_s14 }
 0x4b6   : > { %v3583_v52 = vpop.permute.xlu0 %3582 }
 0x4b7   : > { %v3597_v54 = vsel %vm270_vm0, %v3581_v9, %v3583_v52  ;;  %v6776_v9 = vld [vmem:[%s7475_s3 + $0xd0] sm:$0xff] }
 0x4b8   : > { %v6651_v53 = vmax.f32 %v3535_v41, %v3597_v54  ;;  %v6715_v41 = vld [vmem:[%s7475_s3 + $0x148] sm:$0xff]  ;;  %v6813_v54 = vld [vmem:[%s7475_s3 + $0xa0] sm:$0xff] }
 0x4b9   : > { %v3585_v15 = vpop.permute.xlu1 %3584  ;;  %v4086_v63 = vunpack.c.h.bf16 %v6715_v41 }
 0x4ba   : > { %v3598_v18 = vsel %vm270_vm0, %v3583_v52, %v3585_v15  ;;  %v6654_v49 = vmax.f32 %v3537_v38, %v3585_v15  ;;  %3673 = vrot.lane.b32.xlu0 %v6651_v53, %s5355_s14  ;;  %v3946_v38 = vunpack.c.h.bf16 %v6684_v34  ;;  %v6836_v52 = vld [vmem:[%s7475_s3 + $0x20] sm:$0xff]  ;;  %vm4424_vm0 = vcmask 7168  }
 0x4bb   : > { %v6658_v30 = vmax.f32 %v3536_v23, %v3598_v18  ;;  %v3732_v23 = vunpack.c.l.bf16 %v6699_v58 }
 0x4bd   : > { %3677 = vrot.lane.b32.xlu2 %v6654_v49, %s5355_s14  ;;  %3675 = vrot.lane.b32.xlu1 %v6658_v30, %s5355_s14 }
 0x4ef   : > { %v3648_v55 = vpop.permute.xlu2 %3647 }
 0x4f7   : > { %v6664_v19 = vpop.permute.xlu2 %3653 }
 0x4f8   : > { %v6702_v59 = vmax.f32 %v3618_v6, %v6664_v19  ;;  %v6750_v6 = vld [vmem:[%s7475_s3 + $0x38] sm:$0xff] }
 0x4fa   : > { %v3892_v7 = vmul.f32 %v3876_v21, %v6702_v59  ;;  %v3822_v25 = vmul.f32 %v3806_v26, %v6702_v59  ;;  %v3751_v27 = vmul.f32 %v3735_v32, %v6702_v59  ;;  %v3962_v28 = vmul.f32 %v3946_v38, %v6702_v59  ;;  %v6791_v26 = vld [vmem:[%s7475_s3 + $0x58] sm:$0xff] }
 0x4fb   : > { %v6797_v38 = vld [vmem:[%s7475_s3 + $0x18] sm:$0xff] }
 0x4fc   : > { %v6804_v16 = vsel %vm2330_vm6, %v3892_v7, 0.0  ;;  %v6807_v39 = vsel %vm2330_vm6, %v3822_v25, 0.0  ;;  %v6826_v25 = vsel %vm2330_vm6, %v3962_v28, 0.0  ;;  %v6842_v28 = vld [vmem:[%s7475_s3 + $0xd8] sm:$0xff] }
 0x4ff   : > { %v6717_v43 = vpop.permute.xlu2 %3659 }
 0x507   : > { %v6844_v7 = vpop.permute.xlu2 %3665 }
 0x50c   : > { %v3650_v21 = vpop.permute.xlu0 %3649 }
 0x50d   : > { %v3680_v18 = vsel %vm867_vm5, %v3648_v55, %v3650_v21  ;;  %v6822_v55 = vsel %vm2330_vm6, %v3751_v27, 0.0 }
 0x50e   : > { %v6829_v32 = vmax.f32 %v6572_v48, %v3680_v18 }
 0x50f   : > { %v3652_v62 = vpop.permute.xlu1 %3651 }
 0x510   : > { %v3681_v48 = vsel %vm867_vm5, %v3650_v21, %v3652_v62  ;;  %v3682_v18 = vsel %vm867_vm5, %v3652_v62, %v6664_v19  ;;  %v6862_v21 = vld [vmem:[%s7475_s3 + $0xe0] sm:$0xff] }
 0x511   : > { %v6852_v14 = vmax.f32 %v6579_v13, %v3681_v48  ;;  %v6855_v27 = vmax.f32 %v6588_v12, %v3682_v18  ;;  %v6868_v13 = vmul.f32 %v4086_v63, %v6702_v59  ;;  %v3889_v12 = vmul.f32 %v3873_v42, %v6829_v32  ;;  %v6885_v63 = vld [vmem:[%s7475_s3 + $0xa8] sm:$0xff] }
 0x512   : > { %v3819_v18 = vmul.f32 %v3803_v2, %v6829_v32  ;;  %v3748_v2 = vmul.f32 %v3732_v23, %v6829_v32  ;;  %v6909_v23 = vld [vmem:[%s7475_s3 + $0x28] sm:$0xff] }
 0x513   : > { %v3890_v48 = vmul.f32 %v3874_v45, %v6852_v14  ;;  %v3820_v62 = vmul.f32 %v3804_v11, %v6852_v14  ;;  %v3749_v57 = vmul.f32 %v3733_v17, %v6852_v14  ;;  %v7480_v11 = vunpack.c.l.bf16 %v6669_v22  ;;  %v6926_v17 = vld [vmem:[%s7475_s3 + $0x140] sm:$0xff] }
 0x514   : > { %v3656_v1 = vpop.permute.xlu0 %3655  ;;  %v3821_v50 = vmul.f32 %v7481_v24, %v6855_v27  ;;  %v7482_v45 = vunpack.c.l.bf16 %v6679_v20 }
 0x515   : > { %v3891_v19 = vmul.f32 %v7480_v11, %v6855_v27  ;;  %v3905_v42 = vadd.f32 %v3890_v48, %v3889_v12  ;;  %v3835_v15 = vadd.f32 %v3820_v62, %v3819_v18  ;;  %v3764_v11 = vadd.f32 %v3749_v57, %v3748_v2 }
 0x516   : > { %v3750_v22 = vmul.f32 %v7482_v45, %v6855_v27 }
 0x517   : > { %v3658_v12 = vpop.permute.xlu1 %3657  ;;  %v3906_v62 = vadd.f32 %v3905_v42, %v3891_v19  ;;  %v3836_v18 = vadd.f32 %v3835_v15, %v3821_v50  ;;  %v6940_v42 = vpop.permute.xlu2 %3671 }
 0x518   : > { %v3683_v20 = vsel %vm867_vm5, %v3656_v1, %v3658_v12  ;;  %v3684_v2 = vsel %vm867_vm5, %v3658_v12, %v6717_v43  ;;  %v3765_v45 = vadd.f32 %v3764_v11, %v3750_v22  ;;  %v7485_v22 = vunpack.c.h.bf16 %v6740_v3 }
 0x519   : > { %v6933_v58 = vmax.f32 %v6596_v29, %v3683_v20  ;;  %v6936_v19 = vmax.f32 %v6604_v37, %v3684_v2  ;;  %v7483_v29 = vunpack.c.l.bf16 %v6740_v3  ;;  %v3908_v37 = vadd.f32 %v6804_v16, %v3906_v62  ;;  %v6953_v20 = vld [vmem:[%s7475_s3 + $0x70] sm:$0xff] }
 0x51a   : > { %v7484_v2 = vunpack.c.l.bf16 %v6745_v4  ;;  %v3838_v57 = vadd.f32 %v6807_v39, %v3836_v18  ;;  %v7487_v62 = vunpack.c.l.bf16 %v6761_v44  ;;  %v3768_v50 = vadd.f32 %v6822_v55, %v3765_v45 }
 0x51b   : > { %v3893_v11 = vmul.f32 %v7483_v29, %v6933_v58  ;;  %v3894_v48 = vmul.f32 %v7485_v22, %v6936_v19  ;;  %v7486_v29 = vunpack.c.h.bf16 %v6745_v4  ;;  %v6981_v22 = vld [vmem:[%s7475_s3 + $0x30] sm:$0xff]  ;;  %v7488_v55 = vunpack.c.h.bf16 %v6761_v44 }
 0x51c   : > { %v3823_v1 = vmul.f32 %v7484_v2, %v6933_v58  ;;  %v3662_v12 = vpop.permute.xlu0 %3661  ;;  %v3752_v15 = vmul.f32 %v7487_v62, %v6933_v58  ;;  %v7491_v62 = vunpack.c.l.bf16 %v6782_v31 }
 0x51d   : > { %v3824_v16 = vmul.f32 %v7486_v29, %v6936_v19  ;;  %v3685_v2 = vsel %vm867_vm5, %v6717_v43, %v3662_v12  ;;  %v6972_v39 = vmax.f32 %v6616_v35, %v3662_v12  ;;  %v3909_v18 = vadd.f32 %v3908_v37, %v3893_v11 }
 0x51e   : > { %v3839_v24 = vadd.f32 %v3838_v57, %v3823_v1  ;;  %v6975_v3 = vmax.f32 %v6608_v8, %v3685_v2  ;;  %v3753_v45 = vmul.f32 %v7488_v55, %v6936_v19  ;;  %v3769_v43 = vadd.f32 %v3768_v50, %v3752_v15 }
 0x51f   : > { %v3664_v29 = vpop.permute.xlu1 %3663  ;;  %v7489_v35 = vunpack.c.h.bf16 %v6782_v31  ;;  %v3910_v1 = vadd.f32 %v3909_v18, %v3894_v48  ;;  %v7490_v8 = vunpack.c.h.bf16 %v6791_v26  ;;  %v7492_v50 = vunpack.c.l.bf16 %v6791_v26 }
 0x520   : > { %v3840_v11 = vadd.f32 %v3839_v24, %v3824_v16  ;;  %v3686_v37 = vsel %vm867_vm5, %v3664_v29, %v6844_v7  ;;  %v3895_v44 = vmul.f32 %v7491_v62, %v6975_v3  ;;  %v7493_v2 = vunpack.c.l.bf16 %v6797_v38 }
 0x521   : > { %v3896_v57 = vmul.f32 %v7489_v35, %v6972_v39  ;;  %v3826_v12 = vmul.f32 %v7490_v8, %v6972_v39  ;;  %v3825_v15 = vmul.f32 %v7492_v50, %v6975_v3  ;;  %v7004_v18 = vmax.f32 %v6624_v0, %v3686_v37 }
 0x522   : > { %v3754_v48 = vmul.f32 %v7493_v2, %v6975_v3  ;;  %v7494_v55 = vunpack.c.h.bf16 %v6797_v38  ;;  %v3887_v29 = vunpack.c.l.bf16 %v6726_v60  ;;  %v3911_v35 = vadd.f32 %v3910_v1, %v3895_v44  ;;  %v3678_v2 = vpop.permute.xlu2 %3677 }
 0x523   : > { %v3841_v26 = vadd.f32 %v3840_v11, %v3825_v15  ;;  %v3770_v8 = vadd.f32 %v3769_v43, %v3753_v45  ;;  %v3912_v62 = vsel %vm2330_vm6, %v3896_v57, 0.0  ;;  %v3816_v50 = vunpack.c.h.bf16 %v6953_v20 }
 0x524   : > { %v3755_v31 = vmul.f32 %v7494_v55, %v6972_v39  ;;  %v3817_v0 = vunpack.c.l.bf16 %v6733_v46  ;;  %v3842_v37 = vsel %vm2330_vm6, %v3826_v12, 0.0  ;;  %v3668_v24 = vpop.permute.xlu0 %3667  ;;  %v3913_v16 = vadd.f32 %v3912_v62, %v3911_v35 }
 0x525   : > { %v3843_v4 = vadd.f32 %v3842_v37, %v3841_v26  ;;  %v3745_v38 = vunpack.c.h.bf16 %v6981_v22  ;;  %v3771_v55 = vadd.f32 %v3770_v8, %v3754_v48  ;;  %v3687_v1 = vsel %vm867_vm5, %v6844_v7, %v3668_v24 }
 0x526   : > { %v7495_v45 = vunpack.c.l.bf16 %v6813_v54  ;;  %v7496_v57 = vunpack.c.l.bf16 %v6819_v5  ;;  %v3772_v12 = vsel %vm2330_vm6, %v3755_v31, 0.0  ;;  %v7027_v44 = vmax.f32 %v6626_v51, %v3687_v1 }
 0x527   : > { %v3746_v15 = vunpack.c.l.bf16 %v6750_v6  ;;  %v3773_v35 = vadd.f32 %v3772_v12, %v3771_v55  ;;  %v7497_v48 = vunpack.c.h.bf16 %v6710_v33  ;;  %v7034_v26 = vmax.f32 %v6654_v49, %v3678_v2  ;;  %v3670_v8 = vpop.permute.xlu1 %3669 }
 0x528   : > { %v3897_v43 = vmul.f32 %v7495_v45, %v7004_v18  ;;  %v3827_v11 = vmul.f32 %v7496_v57, %v7004_v18  ;;  %v7498_v45 = vunpack.c.l.bf16 %v6836_v52  ;;  %v3688_v51 = vsel %vm867_vm5, %v3668_v24, %v3670_v8 }
 0x529   : > { %v3960_v7 = vmul.f32 %v7497_v48, %v6852_v14  ;;  %v7041_v1 = vmax.f32 %v6640_v56, %v3670_v8  ;;  %v7499_v55 = vunpack.c.h.bf16 %v6813_v54  ;;  %v7500_v49 = vunpack.c.h.bf16 %v6819_v5 }
 0x52a   : > { %v3914_v62 = vadd.f32 %v3913_v16, %v3897_v43  ;;  %v3844_v37 = vadd.f32 %v3843_v4, %v3827_v11  ;;  %v3756_v31 = vmul.f32 %v7498_v45, %v7004_v18  ;;  %v7050_v16 = vmax.f32 %v6635_v61, %v3688_v51 }
 0x52b   : > { %v3898_v57 = vmul.f32 %v7499_v55, %v7027_v44  ;;  %v3828_v12 = vmul.f32 %v7500_v49, %v7027_v44  ;;  %v7501_v4 = vunpack.c.h.bf16 %v6836_v52  ;;  %v7502_v56 = vunpack.c.l.bf16 %v6710_v33 }
 0x52c   : > { %v3774_v11 = vadd.f32 %v3773_v35, %v3756_v31  ;;  %v7503_v54 = vunpack.c.h.bf16 %v6885_v63  ;;  %v7504_v5 = vunpack.c.h.bf16 %v6891_v36  ;;  %v7505_v51 = vunpack.c.l.bf16 %v6885_v63 }
 0x52d   : > { %v3757_v43 = vmul.f32 %v7501_v4, %v7027_v44  ;;  %v3959_v24 = vmul.f32 %v7502_v56, %v6829_v32  ;;  %v3915_v8 = vadd.f32 %v3914_v62, %v3898_v57  ;;  %v3845_v61 = vadd.f32 %v3844_v37, %v3828_v12  ;;  %v3674_v4 = vpop.permute.xlu0 %3673 }
 0x52e   : > { %v3900_v48 = vmul.f32 %v7503_v54, %v7041_v1  ;;  %v3830_v45 = vmul.f32 %v7504_v5, %v7041_v1  ;;  %v3899_v52 = vmul.f32 %v7505_v51, %v7050_v16  ;;  %v7506_v35 = vunpack.c.l.bf16 %v6891_v36 }
 0x52f   : > { %v7507_v33 = vunpack.c.l.bf16 %v6909_v23  ;;  %v3975_v49 = vadd.f32 %v3960_v7, %v3959_v24  ;;  %v7508_v62 = vunpack.c.h.bf16 %v6726_v60  ;;  %v7509_v37 = vunpack.c.h.bf16 %v6733_v46  ;;  %v5088_v60 = vld [vmem:[%s7475_s3 + $0xe8] sm:$0xff] }
 0x530   : > { %v3829_v31 = vmul.f32 %v7506_v35, %v7050_v16  ;;  %v3775_v63 = vadd.f32 %v3774_v11, %v3757_v43  ;;  %v7510_v56 = vunpack.c.l.bf16 %v6684_v34  ;;  %v3689_v54 = vsel %vm867_vm5, %v6940_v42, %v3674_v4 }
 0x531   : > { %v3758_v55 = vmul.f32 %v7507_v33, %v7050_v16  ;;  %v3904_v57 = vmul.f32 %v7508_v62, %v7034_v26  ;;  %v3834_v12 = vmul.f32 %v7509_v37, %v7034_v26  ;;  %v3916_v5 = vadd.f32 %v3915_v8, %v3899_v52  ;;  %v3676_v62 = vpop.permute.xlu1 %3675 }
 0x532   : > { %v3961_v36 = vmul.f32 %v7510_v56, %v6855_v27  ;;  %v3846_v51 = vadd.f32 %v3845_v61, %v3829_v31  ;;  %v7511_v7 = vunpack.c.h.bf16 %v6909_v23  ;;  %v7088_v35 = vmax.f32 %v6642_v10, %v3689_v54 }
 0x533   : > { %v3917_v33 = vsel %vm2330_vm6, %v3900_v48, 0.0  ;;  %v3847_v43 = vsel %vm2330_vm6, %v3830_v45, 0.0  ;;  %v3776_v11 = vadd.f32 %v3775_v63, %v3758_v55  ;;  %v7512_v42 = vunpack.c.l.bf16 %v6776_v9 }
 0x534   : > { %v3759_v24 = vmul.f32 %v7511_v7, %v7041_v1  ;;  %v3918_v34 = vadd.f32 %v3917_v33, %v3916_v5  ;;  %v3848_v37 = vadd.f32 %v3847_v43, %v3846_v51  ;;  %v3976_v61 = vadd.f32 %v3975_v49, %v3961_v36 }
 0x535   : > { %v3963_v8 = vmul.f32 %v7512_v42, %v6933_v58  ;;  %v3690_v52 = vsel %vm867_vm5, %v3674_v4, %v3676_v62  ;;  %v3691_v23 = vsel %vm867_vm5, %v3676_v62, %v3678_v2  ;;  %v7513_v10 = vunpack.c.l.bf16 %v6919_v40 }
 0x536   : > { %v7514_v48 = vunpack.c.l.bf16 %v6953_v20  ;;  %v7104_v55 = vmax.f32 %v6651_v53, %v3690_v52  ;;  %v7107_v63 = vmax.f32 %v6658_v30, %v3691_v23  ;;  %v7515_v49 = vunpack.c.l.bf16 %v6981_v22 }
 0x537   : > { %v3901_v31 = vmul.f32 %v7513_v10, %v7088_v35  ;;  %v3777_v2 = vsel %vm2330_vm6, %v3759_v24, 0.0  ;;  %v7516_v54 = vunpack.c.h.bf16 %v6750_v6  ;;  %v7517_v53 = vunpack.c.h.bf16 %v6919_v40  ;;  %v7154_v6 = vld [vmem:[%s7475_s3 + $0x108] sm:$0xff] }
 0x538   : > { %v3831_v45 = vmul.f32 %v7514_v48, %v7088_v35  ;;  %v3760_v4 = vmul.f32 %v7515_v49, %v7088_v35  ;;  %v3778_v51 = vadd.f32 %v3777_v2, %v3776_v11  ;;  %v3832_v30 = vmul.f32 %v3816_v50, %v7104_v55 }
 0x539   : > { %v3919_v56 = vadd.f32 %v3918_v34, %v3901_v31  ;;  %v3763_v5 = vmul.f32 %v7516_v54, %v7034_v26  ;;  %v3902_v7 = vmul.f32 %v7517_v53, %v7104_v55  ;;  %v7518_v33 = vunpack.c.h.bf16 %v6776_v9 }
 0x53a   : > { %v3849_v36 = vadd.f32 %v3848_v37, %v3831_v45  ;;  %v3978_v24 = vadd.f32 %v6826_v25, %v3976_v61  ;;  %v3903_v62 = vmul.f32 %v3887_v29, %v7107_v63  ;;  %v3761_v11 = vmul.f32 %v3745_v38, %v7104_v55 }
 0x53b   : > { %v3964_v43 = vmul.f32 %v7518_v33, %v6936_v19  ;;  %v3779_v40 = vadd.f32 %v3778_v51, %v3760_v4  ;;  %v7519_v34 = vunpack.c.l.bf16 %v6842_v28  ;;  %v3920_v50 = vadd.f32 %v3919_v56, %v3902_v7 }
 0x53c   : > { %v3833_v9 = vmul.f32 %v3817_v0, %v7107_v63  ;;  %v3850_v37 = vadd.f32 %v3849_v36, %v3832_v30  ;;  %v3979_v25 = vadd.f32 %v3978_v24, %v3963_v8  ;;  %v3762_v22 = vmul.f32 %v3746_v15, %v7107_v63 }
 0x53d   : > { %v3965_v20 = vmul.f32 %v7519_v34, %v6975_v3  ;;  %v3780_v29 = vadd.f32 %v3779_v40, %v3761_v11  ;;  %v7520_v38 = vunpack.c.h.bf16 %v6842_v28  ;;  %v4084_v61 = vunpack.c.h.bf16 %v6926_v17 }
 0x53e   : > { %v3921_v52 = vadd.f32 %v3920_v50, %v3903_v62  ;;  %v3851_v46 = vadd.f32 %v3850_v37, %v3833_v9  ;;  %v3980_v0 = vadd.f32 %v3979_v25, %v3964_v43  ;;  %v4085_v23 = vunpack.c.l.bf16 %v6715_v41  ;;  %v5101_v41 = vld [vmem:[%s7475_s3 + $0x150] sm:$0xff] }
 0x53f   : > { %v3966_v42 = vmul.f32 %v7520_v38, %v6972_v39  ;;  %v3922_v10 = vsel %vm2330_vm6, %v3904_v57, 0.0  ;;  %v3852_v8 = vsel %vm2330_vm6, %v3834_v12, 0.0  ;;  %v3781_v31 = vadd.f32 %v3780_v29, %v3762_v22  ;;  %v5089_v57 = vld [vmem:[%s7475_s3 + $0xf0] sm:$0xff]  ;;  %v5103_v22 = vld [vmem:[%s7475_s3 + $0x160] sm:$0xff] }
 0x540   : > { %v3953_v48 = vunpack.c.l.bf16 %v5088_v60  ;;  %v3923_v28 = vadd.f32 %v3922_v10, %v3921_v52  ;;  %v3853_v15 = vadd.f32 %v3852_v8, %v3851_v46  ;;  %v3782_v45 = vsel %vm2330_vm6, %v3763_v5, 0.0  ;;  %v5091_v46 = vld [vmem:[%s7475_s3 + $0x100] sm:$0xff] }
 0x541   : > { %v3981_v49 = vadd.f32 %v3980_v0, %v3965_v20  ;;  %v3783_v4 = vadd.f32 %v3782_v45, %v3781_v31  ;;  %v3954_v12 = vunpack.c.h.bf16 %v5088_v60  ;;  %v3982_v2 = vsel %vm2330_vm6, %v3966_v42, 0.0 }
 0x542   : > { %v4100_v56 = vmul.f32 %v4084_v61, %v6852_v14  ;;  %3924 = vadd.xlane.f32.xlu2 %v3923_v28  ;;  %3854 = vadd.xlane.f32.xlu1 %v3853_v15  ;;  %v7521_v36 = vunpack.c.l.bf16 %v6862_v21  ;;  %v7522_v5 = vunpack.c.h.bf16 %v6862_v21  ;;  %v4016_v7 = vunpack.c.h.bf16 %v7154_v6  ;;  %v5102_v21 = vld [vmem:[%s7475_s3 + $0x158] sm:$0xff] }
 0x543   : > { %v3983_v53 = vadd.f32 %v3982_v2, %v3981_v49  ;;  %3784 = vadd.xlane.f32.xlu0 %v3783_v4  ;;  %v7523_v30 = vunpack.c.h.bf16 %v6766_v47  ;;  %v4087_v43 = vunpack.c.l.bf16 %v5101_v41  ;;  %v7524_v24 = vunpack.c.l.bf16 %v6926_v17  ;;  %v5106_v4 = vld [vmem:[%s7475_s3 + $0x178] sm:$0xff] }
 0x544   : > { %v3967_v54 = vmul.f32 %v7521_v36, %v7004_v18  ;;  %v3968_v51 = vmul.f32 %v7522_v5, %v7027_v44  ;;  %v3955_v11 = vunpack.c.l.bf16 %v5089_v57  ;;  %v3969_v40 = vmul.f32 %v3953_v48, %v7050_v16  ;;  %v5093_v5 = vld [vmem:[%s7475_s3 + $0x110] sm:$0xff] }
 0x545   : > { %v3974_v33 = vmul.f32 %v7523_v30, %v7034_v26  ;;  %v4099_v62 = vmul.f32 %v7524_v24, %v6829_v32  ;;  %v4117_v20 = vsel %vm2330_vm6, %v6868_v13, 0.0  ;;  %v3956_v50 = vunpack.c.h.bf16 %v5089_v57 }
 0x546   : > { %v3984_v34 = vadd.f32 %v3983_v53, %v3967_v54  ;;  %v3970_v9 = vmul.f32 %v3954_v12, %v7041_v1  ;;  %v4101_v37 = vmul.f32 %v4085_v23, %v6855_v27  ;;  %v3957_v17 = vunpack.c.l.bf16 %v6766_v47  ;;  %v5104_v23 = vld [vmem:[%s7475_s3 + $0x168] sm:$0xff] }
 0x547   : > { %v4115_v60 = vadd.f32 %v4100_v56, %v4099_v62  ;;  %v4088_v29 = vunpack.c.h.bf16 %v5101_v41  ;;  %v4032_v38 = vmul.f32 %v4016_v7, %v6702_v59  ;;  %v3992_v42 = vsel %vm2330_vm6, %v3974_v33, 0.0  ;;  %v5105_v41 = vld [vmem:[%s7475_s3 + $0x170] sm:$0xff] }
 0x548   : > { %v3985_v25 = vadd.f32 %v3984_v34, %v3968_v51  ;;  %v4089_v61 = vunpack.c.l.bf16 %v5102_v21  ;;  %v4103_v13 = vmul.f32 %v4087_v43, %v6933_v58  ;;  %v3971_v47 = vmul.f32 %v3955_v11, %v7088_v35 }
 0x549   : > { %v4116_v52 = vadd.f32 %v4115_v60, %v4101_v37  ;;  %v4090_v10 = vunpack.c.h.bf16 %v5102_v21  ;;  %v4014_v8 = vunpack.c.h.bf16 %v5091_v46  ;;  %v3972_v31 = vmul.f32 %v3956_v50, %v7104_v55 }
 0x54a   : > { %v3986_v0 = vadd.f32 %v3985_v25, %v3969_v40  ;;  %v3987_v48 = vsel %vm2330_vm6, %v3970_v9, 0.0  ;;  %v4091_v28 = vunpack.c.l.bf16 %v5103_v22  ;;  %v3973_v45 = vmul.f32 %v3957_v17, %v7107_v63 }
 0x54b   : > { %v4118_v15 = vadd.f32 %v4117_v20, %v4116_v52  ;;  %v4092_v57 = vunpack.c.h.bf16 %v5103_v22  ;;  %v4013_v12 = vunpack.c.l.bf16 %v5091_v46  ;;  %v4093_v2 = vunpack.c.l.bf16 %v5104_v23 }
 0x54c   : > { %v3988_v49 = vadd.f32 %v3987_v48, %v3986_v0  ;;  %v4104_v56 = vmul.f32 %v4088_v29, %v6936_v19  ;;  %v4105_v36 = vmul.f32 %v4089_v61, %v6975_v3  ;;  %v4106_v53 = vmul.f32 %v4090_v10, %v6972_v39 }
 0x54d   : > { %v4119_v54 = vadd.f32 %v4118_v15, %v4103_v13  ;;  %v4015_v7 = vunpack.c.l.bf16 %v7154_v6  ;;  %v4030_v30 = vmul.f32 %v4014_v8, %v6852_v14  ;;  %v4094_v33 = vunpack.c.h.bf16 %v5104_v23  ;;  %v5094_v6 = vld [vmem:[%s7475_s3 + $0x118] sm:$0xff] }
 0x54e   : > { %v3989_v51 = vadd.f32 %v3988_v49, %v3971_v47  ;;  %v4095_v43 = vunpack.c.l.bf16 %v5105_v41  ;;  %v4098_v24 = vunpack.c.h.bf16 %v5106_v4  ;;  %v4096_v40 = vunpack.c.h.bf16 %v5105_v41  ;;  %v5107_v41 = vld [vmem:[%s7475_s3 + $0x180] sm:$0xff] }
 0x54f   : > { %v4120_v62 = vadd.f32 %v4119_v54, %v4104_v56  ;;  %v4017_v34 = vunpack.c.l.bf16 %v5093_v5  ;;  %v4029_v21 = vmul.f32 %v4013_v12, %v6829_v32  ;;  %v4097_v20 = vunpack.c.l.bf16 %v5106_v4 }
 0x550   : > { %v3990_v11 = vadd.f32 %v3989_v51, %v3972_v31  ;;  %v4107_v50 = vmul.f32 %v4091_v28, %v7004_v18  ;;  %v4108_v9 = vmul.f32 %v4092_v57, %v7027_v44  ;;  %v4122_v17 = vsel %vm2330_vm6, %v4106_v53, 0.0  ;;  %v5095_v31 = vld [vmem:[%s7475_s3 + $0x120] sm:$0xff] }
 0x551   : > { %v4121_v37 = vadd.f32 %v4120_v62, %v4105_v36  ;;  %v4031_v25 = vmul.f32 %v4015_v7, %v6855_v27  ;;  %v4045_v22 = vadd.f32 %v4030_v30, %v4029_v21  ;;  %v4110_v29 = vmul.f32 %v4094_v33, %v7041_v1  ;;  %v5097_v36 = vld [vmem:[%s7475_s3 + $0x130] sm:$0xff]  ;;  %v5098_v30 = vld [vmem:[%s7475_s3 + $0x138] sm:$0xff] }
 0x552   : > { %v3991_v60 = vadd.f32 %v3990_v11, %v3973_v45  ;;  %v4114_v61 = vmul.f32 %v4098_v24, %v7034_v26  ;;  %v4018_v52 = vunpack.c.h.bf16 %v5093_v5  ;;  %v4019_v47 = vunpack.c.l.bf16 %v5094_v6 }
 0x553   : > { %v4123_v13 = vadd.f32 %v4122_v17, %v4121_v37  ;;  %v4033_v0 = vmul.f32 %v4017_v34, %v6933_v58  ;;  %v4046_v23 = vadd.f32 %v4045_v22, %v4031_v25  ;;  %v4109_v10 = vmul.f32 %v4093_v2, %v7050_v16  ;;  %v5108_v2 = vld [vmem:[%s7475_s3 + $0x188] sm:$0xff]  ;;  %v5109_v34 = vld [vmem:[%s7475_s3 + $0x190] sm:$0xff] }
 0x554   : > { %v3993_v46 = vadd.f32 %v3992_v42, %v3991_v60  ;;  %v4020_v48 = vunpack.c.h.bf16 %v5094_v6  ;;  %v4047_v28 = vsel %vm2330_vm6, %v4032_v38, 0.0  ;;  %v4111_v15 = vmul.f32 %v4095_v43, %v7088_v35  ;;  %v5096_v38 = vld [vmem:[%s7475_s3 + $0x128] sm:$0xff] }
 0x555   : > { %v4124_v8 = vadd.f32 %v4123_v13, %v4107_v50  ;;  %v4112_v45 = vmul.f32 %v4096_v40, %v7104_v55  ;;  %v4113_v42 = vmul.f32 %v4097_v20, %v7107_v63  ;;  %v4048_v49 = vadd.f32 %v4047_v28, %v4046_v23 }
 0x556   : > { %3994 = vadd.xlane.f32.xlu2 %v3993_v46  ;;  %v4127_v57 = vsel %vm2330_vm6, %v4110_v29, 0.0  ;;  %v4132_v12 = vsel %vm2330_vm6, %v4114_v61, 0.0  ;;  %v4154_v56 = vunpack.c.h.bf16 %v5107_v41  ;;  %v4021_v54 = vunpack.c.l.bf16 %v5095_v31 }
 0x557   : > { %v4125_v4 = vadd.f32 %v4124_v8, %v4108_v9  ;;  %v4034_v5 = vmul.f32 %v4018_v52, %v6936_v19  ;;  %v4035_v51 = vmul.f32 %v4019_v47, %v6975_v3  ;;  %v4049_v53 = vadd.f32 %v4048_v49, %v4033_v0  ;;  %v5110_v0 = vld [vmem:[%s7475_s3 + $0x198] sm:$0xff] }
 0x558   : > { %v4022_v33 = vunpack.c.h.bf16 %v5095_v31  ;;  %v4036_v43 = vmul.f32 %v4020_v48, %v6972_v39  ;;  %v4153_v24 = vunpack.c.l.bf16 %v5107_v41  ;;  %v4023_v62 = vunpack.c.l.bf16 %v5096_v38 }
 0x559   : > { %v4126_v7 = vadd.f32 %v4125_v4, %v4109_v10  ;;  %v4024_v11 = vunpack.c.h.bf16 %v5096_v38  ;;  %v4050_v40 = vadd.f32 %v4049_v53, %v4034_v5  ;;  %v4156_v21 = vunpack.c.h.bf16 %v5108_v2 }
 0x55a   : > { %v4025_v50 = vunpack.c.l.bf16 %v5097_v36  ;;  %v4155_v9 = vunpack.c.l.bf16 %v5108_v2  ;;  %v4170_v37 = vmul.f32 %v4154_v56, %v6852_v14  ;;  %v4026_v6 = vunpack.c.h.bf16 %v5097_v36 }
 0x55b   : > { %v4128_v20 = vadd.f32 %v4127_v57, %v4126_v7  ;;  %v4027_v60 = vunpack.c.l.bf16 %v5098_v30  ;;  %v4028_v17 = vunpack.c.h.bf16 %v5098_v30  ;;  %v4051_v25 = vadd.f32 %v4050_v40, %v4035_v51  ;;  %v5123_v30 = vld [vmem:[%s7475_s3 + $0x200] sm:$0xff]  ;;  %v5113_v40 = vld [vmem:[%s7475_s3 + $0x1b0] sm:$0xff] }
 0x55c   : > { %v4052_v29 = vsel %vm2330_vm6, %v4036_v43, 0.0  ;;  %v4157_v61 = vunpack.c.l.bf16 %v5109_v34  ;;  %v4169_v13 = vmul.f32 %v4153_v24, %v6829_v32  ;;  %v4037_v52 = vmul.f32 %v4021_v54, %v7004_v18 }
 0x55d   : > { %v4129_v22 = vadd.f32 %v4128_v20, %v4111_v15  ;;  %v4038_v46 = vmul.f32 %v4022_v33, %v7027_v44  ;;  %v4053_v47 = vadd.f32 %v4052_v29, %v4051_v25  ;;  %v4172_v23 = vmul.f32 %v4156_v21, %v6702_v59 }
 0x55e   : > { %v4039_v8 = vmul.f32 %v4023_v62, %v7050_v16  ;;  %v4171_v31 = vmul.f32 %v4155_v9, %v6855_v27  ;;  %v4185_v48 = vadd.f32 %v4170_v37, %v4169_v13  ;;  %v4040_v28 = vmul.f32 %v4024_v11, %v7041_v1  ;;  %v5112_v62 = vld [vmem:[%s7475_s3 + $0x1a8] sm:$0xff]  ;;  %v5114_v37 = vld [vmem:[%s7475_s3 + $0x1b8] sm:$0xff] }
 0x55f   : > { %v4130_v10 = vadd.f32 %v4129_v22, %v4112_v45  ;;  %v4044_v15 = vmul.f32 %v4028_v17, %v7034_v26  ;;  %v4054_v49 = vadd.f32 %v4053_v47, %v4037_v52  ;;  %v4158_v41 = vunpack.c.h.bf16 %v5109_v34  ;;  %v5111_v45 = vld [vmem:[%s7475_s3 + $0x1a0] sm:$0xff] }
 0x560   : > { %v4159_v57 = vunpack.c.l.bf16 %v5110_v0  ;;  %v4173_v38 = vmul.f32 %v4157_v61, %v6933_v58  ;;  %v4186_v2 = vadd.f32 %v4185_v48, %v4171_v31  ;;  %v4041_v56 = vmul.f32 %v4025_v50, %v7088_v35  ;;  %v5125_v61 = vld [vmem:[%s7475_s3 + $0x210] sm:$0xff] }
 0x561   : > { %v4131_v4 = vadd.f32 %v4130_v10, %v4113_v42  ;;  %v4055_v36 = vadd.f32 %v4054_v49, %v4038_v46  ;;  %v4160_v54 = vunpack.c.h.bf16 %v5110_v0  ;;  %v4187_v5 = vsel %vm2330_vm6, %v4172_v23, 0.0 }
 0x562   : > { %v4042_v53 = vmul.f32 %v4026_v6, %v7104_v55  ;;  %v4043_v7 = vmul.f32 %v4027_v60, %v7107_v63  ;;  %v4188_v42 = vadd.f32 %v4187_v5, %v4186_v2  ;;  %v4057_v43 = vsel %vm2330_vm6, %v4040_v28, 0.0 }
 0x563   : > { %v4133_v51 = vadd.f32 %v4132_v12, %v4131_v4  ;;  %v4056_v33 = vadd.f32 %v4055_v36, %v4039_v8  ;;  %v4062_v24 = vsel %vm2330_vm6, %v4044_v15, 0.0  ;;  %v5124_v12 = vld [vmem:[%s7475_s3 + $0x208] sm:$0xff]  ;;  %v4294_v11 = vunpack.c.h.bf16 %v5123_v30 }
 0x564   : > { %v4161_v34 = vunpack.c.l.bf16 %v5111_v45  ;;  %v4174_v21 = vmul.f32 %v4158_v41, %v6936_v19  ;;  %v4175_v20 = vmul.f32 %v4159_v57, %v6975_v3  ;;  %v4189_v50 = vadd.f32 %v4188_v42, %v4173_v38  ;;  %v5126_v38 = vld [vmem:[%s7475_s3 + $0x218] sm:$0xff] }
 0x565   : > { %4134 = vadd.xlane.f32.xlu1 %v4133_v51  ;;  %v4058_v9 = vadd.f32 %v4057_v43, %v4056_v33  ;;  %v4162_v6 = vunpack.c.h.bf16 %v5111_v45  ;;  %v4176_v60 = vmul.f32 %v4160_v54, %v6972_v39  ;;  %v4293_v17 = vunpack.c.l.bf16 %v5123_v30 }
 0x566   : > { %v4163_v25 = vunpack.c.l.bf16 %v5112_v62  ;;  %v4164_v22 = vunpack.c.h.bf16 %v5112_v62  ;;  %v4190_v29 = vadd.f32 %v4189_v50, %v4174_v21  ;;  %v4296_v13 = vunpack.c.h.bf16 %v5124_v12  ;;  %v5127_v21 = vld [vmem:[%s7475_s3 + $0x220] sm:$0xff] }
 0x567   : > { %v4059_v52 = vadd.f32 %v4058_v9, %v4041_v56  ;;  %v4165_v46 = vunpack.c.l.bf16 %v5113_v40  ;;  %v4295_v47 = vunpack.c.l.bf16 %v5124_v12  ;;  %v4310_v0 = vmul.f32 %v4294_v11, %v6852_v14 }
 0x568   : > { %v4166_v23 = vunpack.c.h.bf16 %v5113_v40  ;;  %v4167_v10 = vunpack.c.l.bf16 %v5114_v37  ;;  %v4168_v8 = vunpack.c.h.bf16 %v5114_v37  ;;  %v4191_v31 = vadd.f32 %v4190_v29, %v4175_v20 }
 0x569   : > { %v4060_v48 = vadd.f32 %v4059_v52, %v4042_v53  ;;  %v4192_v28 = vsel %vm2330_vm6, %v4176_v60, 0.0  ;;  %v4297_v15 = vunpack.c.l.bf16 %v5125_v61  ;;  %v4309_v49 = vmul.f32 %v4293_v17, %v6829_v32  ;;  %v5116_v60 = vld [vmem:[%s7475_s3 + $0x1c8] sm:$0xff]  ;;  %v5129_v52 = vld [vmem:[%s7475_s3 + $0x230] sm:$0xff] }
 0x56a   : > { %v4177_v41 = vmul.f32 %v4161_v34, %v7004_v18  ;;  %v4178_v4 = vmul.f32 %v4162_v6, %v7027_v44  ;;  %v4193_v57 = vadd.f32 %v4192_v28, %v4191_v31  ;;  %v4312_v2 = vmul.f32 %v4296_v13, %v6702_v59  ;;  %v5128_v6 = vld [vmem:[%s7475_s3 + $0x228] sm:$0xff]  ;;  %v5117_v31 = vld [vmem:[%s7475_s3 + $0x1d0] sm:$0xff] }
 0x56b   : > { %v4061_v56 = vadd.f32 %v4060_v48, %v4043_v7  ;;  %v4179_v36 = vmul.f32 %v4163_v25, %v7050_v16  ;;  %v4311_v45 = vmul.f32 %v4295_v47, %v6855_v27  ;;  %v4325_v54 = vadd.f32 %v4310_v0, %v4309_v49 }
 0x56c   : > { %v4180_v5 = vmul.f32 %v4164_v22, %v7041_v1  ;;  %v4184_v51 = vmul.f32 %v4168_v8, %v7034_v26  ;;  %v4194_v53 = vadd.f32 %v4193_v57, %v4177_v41  ;;  %v4298_v42 = vunpack.c.h.bf16 %v5125_v61 }
 0x56d   : > { %v4063_v30 = vadd.f32 %v4062_v24, %v4061_v56  ;;  %v4299_v33 = vunpack.c.l.bf16 %v5126_v38  ;;  %v4313_v43 = vmul.f32 %v4297_v15, %v6933_v58  ;;  %v4326_v62 = vadd.f32 %v4325_v54, %v4311_v45  ;;  %v5115_v24 = vld [vmem:[%s7475_s3 + $0x1c0] sm:$0xff]  ;;  %v5130_v15 = vld [vmem:[%s7475_s3 + $0x238] sm:$0xff] }
 0x56e   : > { %v4195_v12 = vadd.f32 %v4194_v53, %v4178_v4  ;;  %v4300_v11 = vunpack.c.h.bf16 %v5126_v38  ;;  %v4327_v7 = vsel %vm2330_vm6, %v4312_v2, 0.0  ;;  %v4181_v40 = vmul.f32 %v4165_v46, %v7088_v35 }
 0x56f   : > { %4064 = vadd.xlane.f32.xlu0 %v4063_v30  ;;  %v4182_v34 = vmul.f32 %v4166_v23, %v7104_v55  ;;  %v4328_v20 = vadd.f32 %v4327_v7, %v4326_v62  ;;  %v4183_v50 = vmul.f32 %v4167_v10, %v7107_v63  ;;  %v4197_v37 = vsel %vm2330_vm6, %v4180_v5, 0.0  ;;  %v5118_v30 = vld [vmem:[%s7475_s3 + $0x1d8] sm:$0xff] }
 0x570   : > { %v4196_v9 = vadd.f32 %v4195_v12, %v4179_v36  ;;  %v4224_v17 = vunpack.c.h.bf16 %v5115_v24  ;;  %v4202_v25 = vsel %vm2330_vm6, %v4184_v51, 0.0  ;;  %v4314_v22 = vmul.f32 %v4298_v42, %v6936_v19 }
 0x571   : > { %v4315_v29 = vmul.f32 %v4299_v33, %v6975_v3  ;;  %v4329_v61 = vadd.f32 %v4328_v20, %v4313_v43  ;;  %v4301_v46 = vunpack.c.l.bf16 %v5127_v21  ;;  %v4316_v47 = vmul.f32 %v4300_v11, %v6972_v39 }
 0x572   : > { %v4198_v13 = vadd.f32 %v4197_v37, %v4196_v9  ;;  %v4223_v0 = vunpack.c.l.bf16 %v5115_v24  ;;  %v4302_v23 = vunpack.c.h.bf16 %v5127_v21  ;;  %v4303_v10 = vunpack.c.l.bf16 %v5128_v6 }
 0x573   : > { %v4330_v8 = vadd.f32 %v4329_v61, %v4314_v22  ;;  %v4226_v48 = vunpack.c.h.bf16 %v5116_v60  ;;  %v4304_v49 = vunpack.c.h.bf16 %v5128_v6  ;;  %v4225_v41 = vunpack.c.l.bf16 %v5116_v60 }
 0x574   : > { %v4199_v28 = vadd.f32 %v4198_v13, %v4181_v40  ;;  %v4240_v4 = vmul.f32 %v4224_v17, %v6852_v14  ;;  %v4305_v57 = vunpack.c.l.bf16 %v5129_v52  ;;  %v4306_v38 = vunpack.c.h.bf16 %v5129_v52  ;;  %v5132_v13 = vld [vmem:[%s7475_s3 + $0x248] sm:$0xff] }
 0x575   : > { %v4307_v2 = vunpack.c.l.bf16 %v5130_v15  ;;  %v4331_v56 = vadd.f32 %v4330_v8, %v4315_v29  ;;  %v4332_v45 = vsel %vm2330_vm6, %v4316_v47, 0.0  ;;  %v4227_v54 = vunpack.c.l.bf16 %v5117_v31 }
 0x576   : > { %v4200_v36 = vadd.f32 %v4199_v28, %v4182_v34  ;;  %v4239_v5 = vmul.f32 %v4223_v0, %v6829_v32  ;;  %v4317_v51 = vmul.f32 %v4301_v46, %v7004_v18  ;;  %v4318_v53 = vmul.f32 %v4302_v23, %v7027_v44 }
 0x577   : > { %v4333_v42 = vadd.f32 %v4332_v45, %v4331_v56  ;;  %v4242_v33 = vmul.f32 %v4226_v48, %v6702_v59  ;;  %v4308_v62 = vunpack.c.h.bf16 %v5130_v15  ;;  %v4241_v12 = vmul.f32 %v4225_v41, %v6855_v27 }
 0x578   : > { %v4201_v43 = vadd.f32 %v4200_v36, %v4183_v50  ;;  %v4255_v11 = vadd.f32 %v4240_v4, %v4239_v5  ;;  %v4319_v7 = vmul.f32 %v4303_v10, %v7050_v16  ;;  %v4320_v40 = vmul.f32 %v4304_v49, %v7041_v1  ;;  %v5131_v50 = vld [vmem:[%s7475_s3 + $0x240] sm:$0xff]  ;;  %v5120_v10 = vld [vmem:[%s7475_s3 + $0x1e8] sm:$0xff]  ;;  %v5121_v49 = vld [vmem:[%s7475_s3 + $0x1f0] sm:$0xff] }
 0x579   : > { %v4334_v34 = vadd.f32 %v4333_v42, %v4317_v51  ;;  %v4228_v21 = vunpack.c.h.bf16 %v5117_v31  ;;  %v4229_v24 = vunpack.c.l.bf16 %v5118_v30  ;;  %v4243_v9 = vmul.f32 %v4227_v54, %v6933_v58 }
 0x57a   : > { %v4203_v20 = vadd.f32 %v4202_v25, %v4201_v43  ;;  %v4256_v37 = vadd.f32 %v4255_v11, %v4241_v12  ;;  %v4230_v60 = vunpack.c.h.bf16 %v5118_v30  ;;  %v4257_v17 = vsel %vm2330_vm6, %v4242_v33, 0.0  ;;  %v5119_v25 = vld [vmem:[%s7475_s3 + $0x1e0] sm:$0xff] }
 0x57b   : > { %v4335_v6 = vadd.f32 %v4334_v34, %v4318_v53  ;;  %v4321_v22 = vmul.f32 %v4305_v57, %v7088_v35  ;;  %v4322_v29 = vmul.f32 %v4306_v38, %v7104_v55  ;;  %v4364_v52 = vunpack.c.h.bf16 %v5131_v50  ;;  %v5133_v57 = vld [vmem:[%s7475_s3 + $0x250] sm:$0xff] }
 0x57c   : > { %4204 = vadd.xlane.f32.xlu2 %v4203_v20  ;;  %v4258_v61 = vadd.f32 %v4257_v17, %v4256_v37  ;;  %v4323_v46 = vmul.f32 %v4307_v2, %v7107_v63  ;;  %v4324_v47 = vmul.f32 %v4308_v62, %v7034_v26  ;;  %v4337_v23 = vsel %vm2330_vm6, %v4320_v40, 0.0 }
 0x57d   : > { %v4336_v0 = vadd.f32 %v4335_v6, %v4319_v7  ;;  %v4244_v8 = vmul.f32 %v4228_v21, %v6936_v19  ;;  %v4245_v31 = vmul.f32 %v4229_v24, %v6975_v3  ;;  %v4363_v28 = vunpack.c.l.bf16 %v5131_v50  ;;  %v5134_v7 = vld [vmem:[%s7475_s3 + $0x258] sm:$0xff] }
 0x57e   : > { %v4259_v48 = vadd.f32 %v4258_v61, %v4243_v9  ;;  %v4231_v41 = vunpack.c.l.bf16 %v5119_v25  ;;  %v4246_v4 = vmul.f32 %v4230_v60, %v6972_v39  ;;  %v4366_v38 = vunpack.c.h.bf16 %v5132_v13 }
 0x57f   : > { %v4338_v15 = vadd.f32 %v4337_v23, %v4336_v0  ;;  %v4232_v2 = vunpack.c.h.bf16 %v5119_v25  ;;  %v4365_v36 = vunpack.c.l.bf16 %v5132_v13  ;;  %v4380_v45 = vmul.f32 %v4364_v52, %v6852_v14 }
 0x580   : > { %v4260_v56 = vadd.f32 %v4259_v48, %v4244_v8  ;;  %v4342_v5 = vsel %vm2330_vm6, %v4324_v47, 0.0  ;;  %v4233_v51 = vunpack.c.l.bf16 %v5120_v10  ;;  %v4234_v53 = vunpack.c.h.bf16 %v5120_v10 }
 0x581   : > { %v4339_v54 = vadd.f32 %v4338_v15, %v4321_v22  ;;  %v4235_v42 = vunpack.c.l.bf16 %v5121_v49  ;;  %v4367_v33 = vunpack.c.l.bf16 %v5133_v57  ;;  %v4379_v43 = vmul.f32 %v4363_v28, %v6829_v32  ;;  %v5136_v28 = vld [vmem:[%s7475_s3 + $0x268] sm:$0xff] }
 0x582   : > { %v4261_v30 = vadd.f32 %v4260_v56, %v4245_v31  ;;  %v4247_v12 = vmul.f32 %v4231_v41, %v7004_v18  ;;  %v4262_v11 = vsel %vm2330_vm6, %v4246_v4, 0.0  ;;  %v4382_v14 = vmul.f32 %v4366_v38, %v6702_v59 }
 0x583   : > { %v4340_v62 = vadd.f32 %v4339_v54, %v4322_v29  ;;  %v4248_v40 = vmul.f32 %v4232_v2, %v7027_v44  ;;  %v4381_v21 = vmul.f32 %v4365_v36, %v6855_v27  ;;  %v4395_v20 = vadd.f32 %v4380_v45, %v4379_v43  ;;  %v5122_v27 = vld [vmem:[%s7475_s3 + $0x1f8] sm:$0xff]  ;;  %v5137_v36 = vld [vmem:[%s7475_s3 + $0x270] sm:$0xff] }
 0x584   : > { %v4263_v34 = vadd.f32 %v4262_v11, %v4261_v30  ;;  %v4236_v9 = vunpack.c.h.bf16 %v5121_v49  ;;  %v4249_v32 = vmul.f32 %v4233_v51, %v7050_v16  ;;  %v4368_v37 = vunpack.c.h.bf16 %v5133_v57 }
 0x585   : > { %v4341_v24 = vadd.f32 %v4340_v62, %v4323_v46  ;;  %v4369_v60 = vunpack.c.l.bf16 %v5134_v7  ;;  %v4383_v17 = vmul.f32 %v4367_v33, %v6933_v58  ;;  %v4396_v50 = vadd.f32 %v4395_v20, %v4381_v21  ;;  %v5135_v58 = vld [vmem:[%s7475_s3 + $0x260] sm:$0xff] }
 0x586   : > { %v4264_v6 = vadd.f32 %v4263_v34, %v4247_v12  ;;  %v4250_v29 = vmul.f32 %v4234_v53, %v7041_v1  ;;  %v4370_v59 = vunpack.c.h.bf16 %v5134_v7  ;;  %v4397_v25 = vsel %vm2330_vm6, %v4382_v14, 0.0  ;;  %v5138_v7 = vld [vmem:[%s7475_s3 + $0x278] sm:$0xff] }
 0x587   : > { %v4343_v22 = vadd.f32 %v4342_v5, %v4341_v24  ;;  %v4398_v13 = vadd.f32 %v4397_v25, %v4396_v50  ;;  %v4237_v52 = vunpack.c.l.bf16 %v5122_v27  ;;  %v4251_v46 = vmul.f32 %v4235_v42, %v7088_v35 }
 0x588   : > { %v4265_v61 = vadd.f32 %v4264_v6, %v4248_v40  ;;  %v4384_v0 = vmul.f32 %v4368_v37, %v6936_v19  ;;  %v4385_v23 = vmul.f32 %v4369_v60, %v6975_v3  ;;  %v4238_v8 = vunpack.c.h.bf16 %v5122_v27 }
 0x589   : > { %4344 = vadd.xlane.f32.xlu1 %v4343_v22  ;;  %v4399_v10 = vadd.f32 %v4398_v13, %v4383_v17  ;;  %v4252_v31 = vmul.f32 %v4236_v9, %v7104_v55  ;;  %v4267_v48 = vsel %vm2330_vm6, %v4250_v29, 0.0  ;;  %v4386_v15 = vmul.f32 %v4370_v59, %v6972_v39 }
 0x58a   : > { %v4266_v47 = vadd.f32 %v4265_v61, %v4249_v32  ;;  %v4371_v41 = vunpack.c.l.bf16 %v5135_v58  ;;  %v4372_v4 = vunpack.c.h.bf16 %v5135_v58  ;;  %v4373_v19 = vunpack.c.l.bf16 %v5136_v28 }
 0x58b   : > { %v4400_v57 = vadd.f32 %v4399_v10, %v4384_v0  ;;  %v4253_v3 = vmul.f32 %v4237_v52, %v7107_v63  ;;  %v4254_v56 = vmul.f32 %v4238_v8, %v7034_v26  ;;  %v4374_v45 = vunpack.c.h.bf16 %v5136_v28 }
 0x58c   : > { %v4268_v49 = vadd.f32 %v4267_v48, %v4266_v47  ;;  %v4402_v54 = vsel %vm2330_vm6, %v4386_v15, 0.0  ;;  %v4387_v39 = vmul.f32 %v4371_v41, %v7004_v18  ;;  %v4388_v51 = vmul.f32 %v4372_v4, %v7027_v44 }
 0x58d   : > { %v4401_v2 = vadd.f32 %v4400_v57, %v4385_v23  ;;  %v4375_v30 = vunpack.c.l.bf16 %v5137_v36  ;;  %v4389_v33 = vmul.f32 %v4373_v19, %v7050_v16  ;;  %v4272_v62 = vsel %vm2330_vm6, %v4254_v56, 0.0 }
 0x58e   : > { %v4269_v38 = vadd.f32 %v4268_v49, %v4251_v46  ;;  %v4390_v12 = vmul.f32 %v4374_v45, %v7041_v1  ;;  %v4376_v14 = vunpack.c.h.bf16 %v5137_v36  ;;  %v4378_v34 = vunpack.c.h.bf16 %v5138_v7 }
 0x58f   : > { %v4403_v53 = vadd.f32 %v4402_v54, %v4401_v2  ;;  %v4391_v18 = vmul.f32 %v4375_v30, %v7088_v35  ;;  %v4377_v16 = vunpack.c.l.bf16 %v5138_v7  ;;  %vm4434_vm5 = vcmask 48128  }
 0x590   : > { %v4270_v5 = vadd.f32 %v4269_v38, %v4252_v31  ;;  %v4407_v21 = vsel %vm2330_vm6, %v4390_v12, 0.0  ;;  %v4392_v20 = vmul.f32 %v4376_v14, %v7104_v55  ;;  %v4394_v1 = vmul.f32 %v4378_v34, %v7034_v26 }
 0x591   : > { %v4404_v43 = vadd.f32 %v4403_v53, %v4387_v39  ;;  %v4393_v32 = vmul.f32 %v4377_v16, %v7107_v63 }
 0x592   : > { %v4271_v42 = vadd.f32 %v4270_v5, %v4253_v3  ;;  %v4412_v60 = vsel %vm2330_vm6, %v4394_v1, 0.0 }
 0x593   : > { %v4405_v40 = vadd.f32 %v4404_v43, %v4388_v51 }
 0x594   : > { %v4273_v11 = vadd.f32 %v4272_v62, %v4271_v42 }
 0x595   : > { %v4406_v44 = vadd.f32 %v4405_v40, %v4389_v33 }
 0x596   : > { %4274 = vadd.xlane.f32.xlu0 %v4273_v11 }
 0x597   : > { %v4408_v24 = vadd.f32 %v4407_v21, %v4406_v44 }
 0x599   : > { %v4409_v9 = vadd.f32 %v4408_v24, %v4391_v18 }
 0x59b   : > { %v4410_v37 = vadd.f32 %v4409_v9, %v4392_v20 }
 0x59d   : > { %v4411_v6 = vadd.f32 %v4410_v37, %v4393_v32 }
 0x59f   : > { %v4413_v17 = vadd.f32 %v4412_v60, %v4411_v6 }
 0x5a1   : > { %4414 = vadd.xlane.f32.xlu2 %v4413_v17 }
 0x5b5   : > { %v3925_v35 = vpop.xlane.xlu2 %3924  ;;  %v3855_v50 = vpop.xlane.xlu1 %3854 }
 0x5b6   : > { %v3785_v22 = vpop.xlane.xlu0 %3784  ;;  %v3926_v29 = vrot.slane %v3925_v35, 4  ;;  %v3856_v59 = vrot.slane %v3855_v50, 4 }
 0x5b7   : > { %v3786_v25 = vrot.slane %v3785_v22, 4 }
 0x5b8   : > { %v3927_v27 = vadd.f32 %v3926_v29, %v3925_v35  ;;  %v3857_v55 = vadd.f32 %v3856_v59, %v3855_v50 }
 0x5b9   : > { %v3787_v61 = vadd.f32 %v3786_v25, %v3785_v22 }
 0x5ba   : > { %v3928_v13 = vrot.slane %v3927_v27, 2  ;;  %v3858_v52 = vrot.slane %v3857_v55, 2 }
 0x5bb   : > { %v3788_v26 = vrot.slane %v3787_v61, 2 }
 0x5bc   : > { %v3859_v63 = vadd.f32 %v3858_v52, %v3857_v55  ;;  %v3929_v58 = vadd.f32 %v3928_v13, %v3927_v27 }
 0x5bd   : > { %v3789_v46 = vadd.f32 %v3788_v26, %v3787_v61 }
 0x5be   : > { %v3860_v0 = vrot.slane %v3859_v63, 1  ;;  %v3930_v23 = vrot.slane %v3929_v58, 1 }
 0x5bf   : > { %v3790_v47 = vrot.slane %v3789_v46, 1 }
 0x5c0   : > { %v3861_v8 = vadd.f32 %v3860_v0, %v3859_v63  ;;  %v3931_v31 = vadd.f32 %v3930_v23, %v3929_v58 }
 0x5c1   : > { %v3791_v10 = vadd.f32 %v3790_v47, %v3789_v46 }
 0x5c3   : > { %5205 = vpush %v3791_v10 }
 0x5c4   : > { %5207 = vpush %v3861_v8 }
 0x5c5   : > { %5209 = vpush %v3931_v31 }
 0x5c9   : > { %v3995_v48 = vpop.xlane.xlu2 %3994 }
 0x5ca   : > { %v3996_v49 = vrot.slane %v3995_v48, 4 }
 0x5cc   : > { %v3997_v57 = vadd.f32 %v3996_v49, %v3995_v48 }
 0x5ce   : > { %v3998_v2 = vrot.slane %v3997_v57, 2 }
 0x5d0   : > { %v3999_v54 = vadd.f32 %v3998_v2, %v3997_v57 }
 0x5d2   : > { %v4000_v51 = vrot.slane %v3999_v54, 1 }
 0x5d4   : > { %v4001_v33 = vadd.f32 %v4000_v51, %v3999_v54 }
 0x5d6   : > { %5211 = vpush %v4001_v33 }
 0x5d8   : > { %v4135_v28 = vpop.xlane.xlu1 %4134 }
 0x5d9   : > { %v4136_v41 = vrot.slane %v4135_v28, 4 }
 0x5db   : > { %v4137_v38 = vadd.f32 %v4136_v41, %v4135_v28  ;;  %v4442_v28 = vld [vmem:[%s7476_s4] sm:$0x1] }
 0x5dd   : > { %v4138_v3 = vrot.slane %v4137_v38, 2 }
 0x5df   : > { %v4139_v39 = vadd.f32 %v4138_v3, %v4137_v38 }
 0x5e1   : > { %v4140_v42 = vrot.slane %v4139_v39, 1 }
 0x5e2   : > { %v4065_v15 = vpop.xlane.xlu0 %4064 }
 0x5e3   : > { %v4066_v4 = vrot.slane %v4065_v15, 4  ;;  %v4141_v62 = vadd.f32 %v4140_v42, %v4139_v39 }
 0x5e5   : > { %v4067_v19 = vadd.f32 %v4066_v4, %v4065_v15 }
 0x5e7   : > { %v4068_v56 = vrot.slane %v4067_v19, 2 }
 0x5e9   : > { %v4069_v5 = vadd.f32 %v4068_v56, %v4067_v19 }
 0x5eb   : > { %v4070_v53 = vrot.slane %v4069_v5, 1 }
 0x5ed   : > { %v4071_v43 = vadd.f32 %v4070_v53, %v4069_v5 }
 0x5ef   : > { %v4205_v36 = vpop.xlane.xlu2 %4204  ;;  %5213 = vpush %v4071_v43 }
 0x5f0   : > { %v4206_v45 = vrot.slane %v4205_v36, 4  ;;  %5215 = vpush %v4141_v62 }
 0x5f2   : > { %v4207_v30 = vadd.f32 %v4206_v45, %v4205_v36 }
 0x5f4   : > { %v4208_v12 = vrot.slane %v4207_v30, 2  ;;  %s5206_s10 = spop %5205 }
 0x5f5   : > { %s5208_s9 = spop %5207  ;;  %v3793_v27 = vstv %s5206_s10 }
 0x5f6   : > { %v4209_v7 = vadd.f32 %v4208_v12, %v4207_v30  ;;  %v3863_v55 = vstv %s5208_s9  ;;  %s5210_s15 = spop %5209 }
 0x5f7   : > { %v4425_v61 = vsel %vm4424_vm0, %v3793_v27, %v3863_v55  ;;  %v3933_v13 = vstv %s5210_s15  ;;  %s4459_s15 = sshll.u32 %s4455_s30, 4  ;;  %s4460_s15 = int_to_ptr.hbm [resolvable:$true] %s4459_s15 }
 0x5f8   : > { %v4210_v14 = vrot.slane %v4209_v7, 1  ;;  %v4427_v26 = vsel %vm4426_vm1, %v4425_v61, %v3933_v13 }
 0x5fa   : > { %v4211_v18 = vadd.f32 %v4210_v14, %v4209_v7 }
 0x5fc   : > { %v4345_v11 = vpop.xlane.xlu1 %4344  ;;  %5217 = vpush %v4211_v18 }
 0x5fd   : > { %v4346_v40 = vrot.slane %v4345_v11, 4 }
 0x5ff   : > { %v4347_v44 = vadd.f32 %v4346_v40, %v4345_v11 }
 0x601   : > { %v4348_v34 = vrot.slane %v4347_v44, 2 }
 0x603   : > { %v4349_v20 = vadd.f32 %v4348_v34, %v4347_v44 }
 0x605   : > { %v4350_v1 = vrot.slane %v4349_v20, 1 }
 0x607   : > { %v4351_v6 = vadd.f32 %v4350_v1, %v4349_v20  ;;  %s5212_s11 = spop %5211 }
 0x608   : > { %v4003_v52 = vstv %s5212_s11  ;;  %s5301_s11 = sshra.s32 %s4460_s15, 4  ;;  %s5302_s11 = int_to_ptr.hbm [resolvable:$true] %s5301_s11 }
 0x609   : > { %v4275_v21 = vpop.xlane.xlu0 %4274  ;;  %v4429_v46 = vsel %vm4428_vm2, %v4427_v26, %v4003_v52  ;;  %p5308_p0 = scmp.lt.s32.totalorder %s5302_s11, %s7477_s5 }
 0x60a   : > { %v4276_v16 = vrot.slane %v4275_v21, 4 }
 0x60c   : > { %v4277_v24 = vadd.f32 %v4276_v16, %v4275_v21 }
 0x60e   : > { %v4278_v9 = vrot.slane %v4277_v24, 2 }
 0x610   : > { %v4279_v32 = vadd.f32 %v4278_v9, %v4277_v24 }
 0x612   : > { %v4280_v37 = vrot.slane %v4279_v32, 1 }
 0x614   : > { %v4281_v60 = vadd.f32 %v4280_v37, %v4279_v32  ;;  %v4415_v17 = vpop.xlane.xlu2 %4414 }
 0x615   : > { %v4416_v35 = vrot.slane %v4415_v17, 4 }
 0x616   : > { %5219 = vpush %v4281_v60 }
 0x617   : > { %5221 = vpush %v4351_v6  ;;  %v4417_v50 = vadd.f32 %v4416_v35, %v4415_v17 }
 0x619   : > { %v4418_v22 = vrot.slane %v4417_v50, 2 }
 0x61b   : > { %v4419_v29 = vadd.f32 %v4418_v22, %v4417_v50 }
 0x61d   : > { %v4420_v59 = vrot.slane %v4419_v29, 1 }
 0x61f   : > { %v4421_v25 = vadd.f32 %v4420_v59, %v4419_v29 }
 0x620   : > { %s5214_s16 = spop %5213 }
 0x621   : > { %5223 = vpush %v4421_v25  ;;  %v4073_v63 = vstv %s5214_s16  ;;  %s5216_s12 = spop %5215  ;;  %s5303_s16 = scalar_lea.hbm %s5302_s11, 1 }
 0x622   : > { %v4431_v58 = vsel %vm4430_vm3, %v4429_v46, %v4073_v63  ;;  %v4143_v0 = vstv %s5216_s12  ;;  %p5304_p11 = scmp.ne.s32.totalorder %s5302_s11, %s5303_s16 }
 0x623   : > { %v4433_v23 = vsel %vm4432_vm4, %v4431_v58, %v4143_v0 }
 0x624   : > { %p5305_p12 = pnand %p5304_p11, %p5439_p5 }
 0x626   : > { %p5306_p13 = pneg %p5305_p12 }
 0x62d   : > { %s5218_s13 = spop %5217 }
 0x62e   : > { %v4213_v47 = vstv %s5218_s13 }
 0x62f   : > { %v4435_v10 = vsel %vm4434_vm5, %v4433_v23, %v4213_v47 }
 0x647   : > { %s5220_s14 = spop %5219 }
 0x648   : > { %v4283_v8 = vstv %s5220_s14  ;;  %s5222_s23 = spop %5221  ;;  %s5307_s14 = scalar_lea.hbm %s7477_s5, 2 }
 0x649   : > { %v4437_v31 = vsel %vm4436_vm10, %v4435_v10, %v4283_v8  ;;  %v4353_v48 = vstv %s5222_s23  ;;  %p5309_p1 = scmp.lt.s32.totalorder %s5307_s14, %s5303_s16 }
 0x64a   : > { %v4439_v15 = vsel %vm4438_vm11, %v4437_v31, %v4353_v48 }
 0x64b   : > { %p5310_p2 = por %p5309_p1, %p5308_p0 }
 0x64d   : > { %p5311_p3 = pnand %p5310_p2, %p5306_p13 }
 0x652   : > { %s5224_s8 = spop %5223 }
 0x653   : > { %v4423_v49 = vstv %s5224_s8 }
 0x654   : > { %v4441_v41 = vsel %vm4440_vm12, %v4439_v15, %v4423_v49 }
 0x655   : > { %v4443_v4 = vadd.f32 %v4442_v28, %v4441_v41 }
 0x657   : > { %4445 = vst.msk [vmem:[%s216_s6] sm:$0x1] %vm4444_vm13, %v4443_v4 }
 0x658   : > { %5314 = shalt.err (!%p5311_p3)
}
 0x659   : > { %5225 = dma.vmem_to_hbm [thread:$0]  (%p5439_p5), %s4458_s7, 16, %s4460_s15, %s4447_s22  }
 0x65a PF: > { %p5231_p4 = scmp.ge.s32.totalorder %s5349_s21, 2  ;;  %s4471_s17 = sand.u32 1, %s5337_s18  }
 0x65b   : > { %s4472_s26 = scalar_lea.sflag [#allocation3], %s4471_s17 }
 0x65c   : > { %p5228_p7 = pnand %p5231_p4, %p5443_p6 }
 0x65e   : > { %p5229_p8 = pneg %p5228_p7 }
 0x660   : > { %5332 = dma.done.wait (%p5229_p8), %s4472_s26, 16  }
 0x661   : > { %5334 = vsyncadd (%p5229_p8), %s4472_s26, 4294967280  ;;  %p15_p9 = scmp.ge.s32.totalorder %s5426_s24, 4   ;;  %s7525_s18 = smov %s5341_s19 }
 0x662   : > { %s7526_s19 = smov %s5345_s20  ;;  %s7527_s20 = smov %s5437_s27 }
 0x663   : > { %s7528_s21 = smov %s5426_s24  ;;  %17 = sbr.rel (!%p15_p9) target bundleno = 3 (0x3), region = 108 }
 0x668   :  { %4477 = vsyncpa [#allocation3], 1 }
 0x669   :  { %4479 = vsyncpa [#allocation3 + $0x1], 1 }

</bundles_post_ra>
